<compile_context>
chip_gen: v7x
topology: tpu7x:2x2x1
jax: 0.10.0
libtpu: 0.0.40
codegen_flags: <defaults>
</compile_context>

<pallas_src>
import functools

import jax
import jax.numpy as jnp
from jax.experimental import pallas as pl
from jax.experimental.pallas import tpu as pltpu

EPS = 1e-5  # PyTorch BatchNorm2d default


# ------------------------------ Pallas kernel ------------------------------ #

def cnn_fused_kernel(x4_ref, w1s_ref, w2s_ref, wfc_ref, bfc_ref,
                     gred1_ref, gbc1_ref, gamma1_ref, beta1_ref,
                     gred2_ref, gbc2_ref, gamma2_ref, beta2_ref,
                     o_ref, *, N):
    f32 = jnp.float32
    K = 5

    def batchnorm_relu(out, gred_ref, gbc_ref, gamma_ref, beta_ref, cnt):
        # Training-mode BatchNorm over a (rows, lanes) conv-activation matrix
        # whose lanes are (col-parity, w, c) groups.  gred / gbc are constant
        # 0/1 matrices that reduce / broadcast per channel over that lane
        # layout; their zero columns at the lane padding keep padded lanes
        # exactly 0 after normalization.  Two-pass (centered) variance.
        srow = jnp.sum(out, axis=0, keepdims=True)
        mean = jnp.dot(srow, gred_ref[...], preferred_element_type=f32) / cnt
        mean_row = jnp.dot(mean, gbc_ref[...], preferred_element_type=f32)
        cen = out - mean_row
        ssd = jnp.sum(cen * cen, axis=0, keepdims=True)
        var = jnp.dot(ssd, gred_ref[...], preferred_element_type=f32) / cnt
        scale = gamma_ref[...] * jax.lax.rsqrt(var + EPS)
        scale_row = jnp.dot(scale, gbc_ref[...], preferred_element_type=f32)
        beta_row = jnp.dot(beta_ref[...], gbc_ref[...],
                           preferred_element_type=f32)
        return jnp.maximum(cen * scale_row + beta_row, 0.0)

    # -------------- layer 1: conv(1->16,5,p=2) + BN + ReLU + pool -------------
    # x4[n, c, j, :] = zero-padded input row 4*j + c (lanes 0..31 real, 128 pad)
    X = x4_ref[...]                                       # (N, 4, 8, 128) f32
    blocks = []
    for n in range(N):
        for hp in range(2):              # parity of the pooled output row
            for a in range(2):           # 2x2-pool row slot
                taps = []
                for kh in range(K):      # conv row tap -> stacked contraction
                    s = 2 * hp + a + kh
                    taps.append(X[n, s % 4, s // 4:s // 4 + 7, :])   # (7, 128)
                blocks.append(jnp.concatenate(taps, axis=1))         # (7, 640)
    lhs1 = jnp.concatenate(blocks, axis=0).astype(jnp.bfloat16)      # (4N*7, 640)
    out1 = jnp.dot(lhs1, w1s_ref[...], preferred_element_type=f32)   # (4N*7, 768)

    y1 = batchnorm_relu(out1, gred1_ref, gbc1_ref, gamma1_ref, beta1_ref,
                        float(N * 28 * 28))

    # 2x2 max-pool = max over the two row slots (a) and the two 384-lane
    # column-parity halves.  The pooled tiles come out directly in layer2's
    # zero-padded (w, c) lane layout (lanes 0..31 / 256..383 are exact zeros).
    HALF1 = 384
    pooled = []                          # index n*2 + hp -> (7, 384) f32
    for n in range(N):
        for hp in range(2):
            base = (n * 2 + hp) * 14
            r0 = y1[base:base + 7, :]
            r1 = y1[base + 7:base + 14, :]
            pooled.append(jnp.maximum(
                jnp.maximum(r0[:, :HALF1], r0[:, HALF1:]),
                jnp.maximum(r1[:, :HALF1], r1[:, HALF1:])))

    # -------------- layer 2: conv(16->32,5,p=2) + BN + ReLU + pool ------------
    zrow = jnp.zeros((1, HALF1), f32)
    blocks = []
    for n in range(N):
        # Padded even/odd input-row buffers are plain row concatenations.
        e2 = jnp.concatenate([zrow, pooled[n * 2 + 0], zrow], axis=0)  # (9, 384)
        o2 = jnp.concatenate([zrow, pooled[n * 2 + 1], zrow], axis=0)
        for a in range(2):
            taps = []
            for kh in range(K):
                s = a + kh
                src = e2 if s % 2 == 0 else o2
                taps.append(src[s // 2:s // 2 + 7, :])                 # (7, 384)
            blocks.append(jnp.concatenate(taps, axis=1))               # (7, 1920)
    lhs2 = jnp.concatenate(blocks, axis=0).astype(jnp.bfloat16)        # (2N*7, 1920)
    out2 = jnp.dot(lhs2, w2s_ref[...], preferred_element_type=f32)     # (2N*7, 512)

    y2 = batchnorm_relu(out2, gred2_ref, gbc2_ref, gamma2_ref, beta2_ref,
                        float(N * 14 * 14))

    HALF2 = 256
    feat_rows = []
    for n in range(N):
        base = n * 14
        r0 = y2[base:base + 7, :]
        r1 = y2[base + 7:base + 14, :]
        p = jnp.maximum(jnp.maximum(r0[:, :HALF2], r0[:, HALF2:]),
                        jnp.maximum(r1[:, :HALF2], r1[:, HALF2:]))     # (7, 256)
        feat_rows.append(jnp.concatenate([p[h:h + 1, :] for h in range(7)],
                                         axis=1))                     # (1, 1792)
    feat = jnp.concatenate(feat_rows, axis=0).astype(jnp.bfloat16)     # (N, 1792)

    # -------------------------- fc: Linear(1568 -> 10) ------------------------
    o_ref[...] = (jnp.dot(feat, wfc_ref[...], preferred_element_type=f32)
                  + bfc_ref[...])


# --------------------------- pallas_call wrapper ---------------------------- #

def _prep_input(x_nchw):
    """Zero-pad H/W by 2, pad lanes to 128, split padded rows by (row mod 4)
    so every conv row tap inside the kernel is a unit-stride sublane slice."""
    N = x_nchw.shape[0]
    x = x_nchw.astype(jnp.float32)[:, 0]                    # (N, 28, 28)
    xp = jnp.pad(x, ((0, 0), (2, 2), (2, 2)))               # (N, 32, 32)
    xp = jnp.pad(xp, ((0, 0), (0, 0), (0, 96)))             # (N, 32, 128)
    return xp.reshape(N, 8, 4, 128).transpose(0, 2, 1, 3)   # (N, 4, 8, 128)


def cnn_forward(params, x_nchw):
    N = x_nchw.shape[0]
    x4 = _prep_input(x_nchw)
    args = (x4, params["w1s"], params["w2s"], params["wfc"], params["bfc"],
            params["gred1"], params["gbc1"], params["gamma1"], params["beta1"],
            params["gred2"], params["gbc2"], params["gamma2"], params["beta2"])
    kern = functools.partial(cnn_fused_kernel, N=N)
    return pl.pallas_call(
        kern,
        grid=(1,),
        in_specs=[pl.BlockSpec(a.shape, lambda i, _nd=a.ndim: (0,) * _nd)
                  for a in args],
        out_specs=pl.BlockSpec((N, 10), lambda i: (0, 0)),
        out_shape=jax.ShapeDtypeStruct((N, 10), jnp.float32),
        compiler_params=pltpu.CompilerParams(
            dimension_semantics=("arbitrary",),
            vmem_limit_bytes=32 * 1024 * 1024),
    )(*args)


# ------------------------- weight preprocessing (init) ---------------------- #

def _stacked_banded_weight(w_oihw, *, Wo, in_groups, tap_pad, out_off, out_half):
    """K-tap-stacked, column-parity-concatenated banded conv weight.

    Returns (K*tap_pad, 2*out_half) f32 with
      W[kh*tap_pad + g*Cin + ci, b*out_half + (wo+out_off)*Cout + co]
        = w[co, ci, kh, g - (2*wo + b)]   when 0 <= g-(2*wo+b) < K, else 0,
    where g indexes the zero-padded input column groups of the lane layout.
    Multiplying the tap-stacked activation rows by this matrix evaluates the
    5x5 'same' conv for both output-column parities of the 2x2 pool at once.
    """
    Cout, Cin, Kh, Kw = w_oihw.shape
    kw_i = jnp.arange(Kw)[:, None, None]
    g_i = jnp.arange(in_groups)[None, :, None]
    wo_i = jnp.arange(Wo)[None, None, :]
    halves = []
    for b in (0, 1):
        sel = (g_i == 2 * wo_i + b + kw_i).astype(jnp.float32)   # (Kw, G, Wo)
        band = jnp.einsum("oikl,lgw->kgiwo", w_oihw, sel)
        band = band.reshape(Kh, in_groups * Cin, Wo * Cout)
        half = jnp.zeros((Kh, tap_pad, out_half), jnp.float32)
        half = half.at[:, :in_groups * Cin,
                       out_off * Cout:out_off * Cout + Wo * Cout].set(band)
        halves.append(half)
    return jnp.concatenate(halves, axis=-1).reshape(Kh * tap_pad, 2 * out_half)


def _bn_group_matrices(Cout, Wo, out_off, out_half):
    """Per-channel reduce (gred) / broadcast (gbc) matrices over the
    parity-concatenated (w, c) lane layout; zero rows/cols at lane padding."""
    blk = jnp.tile(jnp.eye(Cout, dtype=jnp.float32), (Wo, 1))    # (Wo*Cout, C)
    half = jnp.zeros((out_half, Cout), jnp.float32)
    half = half.at[out_off * Cout:out_off * Cout + Wo * Cout, :].set(blk)
    gred = jnp.concatenate([half, half], axis=0)                 # (2*half, C)
    return gred, gred.T


def _fc_weight(fcw_hwcd):
    """(7,7,32,10) NHWC-flatten fc weight scattered into the lane-padded
    (h, 256)-per-row feature layout (zero rows at pad lanes)."""
    w = jnp.zeros((7, 256, 10), jnp.float32)
    w = w.at[:, :7 * 32, :].set(fcw_hwcd.reshape(7, 7 * 32, 10))
    return w.reshape(7 * 256, 10)


def init_params(key):
    ks = jax.random.split(key, 4)

    def u(k, shape, scale):
        return jax.random.uniform(k, shape, jnp.float32, -1.0, 1.0) * scale

    # PyTorch-style OIHW conv weights; uniform bounds match 1/sqrt(fan_in).
    # Conv biases omitted: with training-mode BatchNorm right after each conv,
    # a per-channel bias cancels exactly in both the batch mean and variance.
    w1 = u(ks[0], (16, 1, 5, 5), 0.2)
    w2 = u(ks[1], (32, 16, 5, 5), 0.05)
    # fc weight stored directly in NHWC-flatten (h, w, c) row order: a free row
    # permutation of PyTorch's Linear(7*7*32, 10) NCHW-flatten weight.
    fcw = u(ks[2], (7, 7, 32, 10), 0.025)
    bfc = u(ks[3], (1, 10), 0.025)

    gred1, gbc1 = _bn_group_matrices(16, 14, 2, 384)
    gred2, gbc2 = _bn_group_matrices(32, 7, 0, 256)
    return dict(
        # MXU operands in bf16 (f32 accumulation inside the kernel).
        w1s=_stacked_banded_weight(w1, Wo=14, in_groups=32, tap_pad=128,
                                   out_off=2, out_half=384).astype(jnp.bfloat16),
        w2s=_stacked_banded_weight(w2, Wo=7, in_groups=18, tap_pad=384,
                                   out_off=0, out_half=256).astype(jnp.bfloat16),
        wfc=_fc_weight(fcw).astype(jnp.bfloat16),
        bfc=bfc,
        gamma1=jnp.ones((1, 16), jnp.float32),
        beta1=jnp.zeros((1, 16), jnp.float32),
        gamma2=jnp.ones((1, 32), jnp.float32),
        beta2=jnp.zeros((1, 32), jnp.float32),
        gred1=gred1, gbc1=gbc1, gred2=gred2, gbc2=gbc2,
        # Raw weights kept only for the pure-JAX reference check below.
        w1_raw=w1, w2_raw=w2, fcw_raw=fcw,
    )


# --------------------------- pure-JAX f32 reference ------------------------- #

def cnn_reference(params, x_nchw):
    x = x_nchw.astype(jnp.float32)

    def conv(h, w):
        return jax.lax.conv_general_dilated(
            h, w, window_strides=(1, 1), padding=((2, 2), (2, 2)),
            dimension_numbers=("NCHW", "OIHW", "NCHW"))

    def bn_relu_pool(z, gamma, beta):
        mu = jnp.mean(z, axis=(0, 2, 3), keepdims=True)
        var = jnp.mean((z - mu) ** 2, axis=(0, 2, 3), keepdims=True)
        y = (z - mu) * jax.lax.rsqrt(var + EPS)
        y = y * gamma.reshape(1, -1, 1, 1) + beta.reshape(1, -1, 1, 1)
        y = jnp.maximum(y, 0.0)
        n, c, h, w = y.shape
        return y.reshape(n, c, h // 2, 2, w // 2, 2).max(axis=(3, 5))

    h1 = bn_relu_pool(conv(x, params["w1_raw"]), params["gamma1"], params["beta1"])
    h2 = bn_relu_pool(conv(h1, params["w2_raw"]), params["gamma2"], params["beta2"])
    feat = jnp.transpose(h2, (0, 2, 3, 1)).reshape(x.shape[0], -1)   # NHWC flatten
    return feat @ params["fcw_raw"].reshape(7 * 7 * 32, 10) + params["bfc"]


if __name__ == "__main__":
    key = jax.random.PRNGKey(0)
    pkey, xkey = jax.random.split(key)
    params = init_params(pkey)
    # MNIST-shaped input implied by fc = Linear(7*7*32, 10): (N, 1, 28, 28)
    x = jax.random.normal(xkey, (2, 1, 28, 28), jnp.float32)

    fwd = jax.jit(functools.partial(cnn_forward, params))
    out = jax.block_until_ready(fwd(x))

    assert out.shape == (2, 10), out.shape
    assert bool(jnp.all(jnp.isfinite(out)))

    # Compare against the f32 reference; bf16 MXU operands bound the expected
    # deviation to a few 1e-2 on logits with std ~0.4.
    ref = cnn_reference(params, x)
    err = float(jnp.max(jnp.abs(out - ref)))
    assert err < 0.2, f"kernel vs reference max abs err {err}"
    print("KERNEL_OK")
</pallas_src>

<mosaic_0001>
module attributes {stable_mosaic.version = 11 : i64} {
  func.func @cnn_fused_kernel(%arg0: i32, %arg1: memref<2x4x8x128xf32, #tpu.memory_space<vmem>>, %arg2: memref<640x768xbf16, #tpu.memory_space<vmem>>, %arg3: memref<1920x512xbf16, #tpu.memory_space<vmem>>, %arg4: memref<1792x10xbf16, #tpu.memory_space<vmem>>, %arg5: memref<1x10xf32, #tpu.memory_space<vmem>>, %arg6: memref<768x16xf32, #tpu.memory_space<vmem>>, %arg7: memref<16x768xf32, #tpu.memory_space<vmem>>, %arg8: memref<1x16xf32, #tpu.memory_space<vmem>>, %arg9: memref<1x16xf32, #tpu.memory_space<vmem>>, %arg10: memref<512x32xf32, #tpu.memory_space<vmem>>, %arg11: memref<32x512xf32, #tpu.memory_space<vmem>>, %arg12: memref<1x32xf32, #tpu.memory_space<vmem>>, %arg13: memref<1x32xf32, #tpu.memory_space<vmem>>, %arg14: memref<2x10xf32, #tpu.memory_space<vmem>>) attributes {dimension_semantics = [#tpu.dimension_semantics<arbitrary>], iteration_bounds = array<i64: 1>, scalar_prefetch = 0 : i64, scratch_operands = 0 : i64, tpu.core_type = #tpu.core_type<tc>, window_params = [{pipeline_mode = #tpu.pipeline_mode<synchronous>, transform_indices = @transform_0, window_bounds = array<i64: 2, 4, 8, 128>}, {pipeline_mode = #tpu.pipeline_mode<synchronous>, transform_indices = @transform_1, window_bounds = array<i64: 640, 768>}, {pipeline_mode = #tpu.pipeline_mode<synchronous>, transform_indices = @transform_2, window_bounds = array<i64: 1920, 512>}, {pipeline_mode = #tpu.pipeline_mode<synchronous>, transform_indices = @transform_3, window_bounds = array<i64: 1792, 10>}, {pipeline_mode = #tpu.pipeline_mode<synchronous>, transform_indices = @transform_4, window_bounds = array<i64: 1, 10>}, {pipeline_mode = #tpu.pipeline_mode<synchronous>, transform_indices = @transform_5, window_bounds = array<i64: 768, 16>}, {pipeline_mode = #tpu.pipeline_mode<synchronous>, transform_indices = @transform_6, window_bounds = array<i64: 16, 768>}, {pipeline_mode = #tpu.pipeline_mode<synchronous>, transform_indices = @transform_7, window_bounds = array<i64: 1, 16>}, {pipeline_mode = #tpu.pipeline_mode<synchronous>, transform_indices = @transform_8, window_bounds = array<i64: 1, 16>}, {pipeline_mode = #tpu.pipeline_mode<synchronous>, transform_indices = @transform_9, window_bounds = array<i64: 512, 32>}, {pipeline_mode = #tpu.pipeline_mode<synchronous>, transform_indices = @transform_10, window_bounds = array<i64: 32, 512>}, {pipeline_mode = #tpu.pipeline_mode<synchronous>, transform_indices = @transform_11, window_bounds = array<i64: 1, 32>}, {pipeline_mode = #tpu.pipeline_mode<synchronous>, transform_indices = @transform_12, window_bounds = array<i64: 1, 32>}, {pipeline_mode = #tpu.pipeline_mode<synchronous>, transform_indices = @transform_13, window_bounds = array<i64: 2, 10>}]} {
    %c0 = arith.constant 0 : index
    %c0_0 = arith.constant 0 : index
    %c0_1 = arith.constant 0 : index
    %c0_2 = arith.constant 0 : index
    %0 = vector.load %arg1[%c0, %c0_0, %c0_1, %c0_2] : memref<2x4x8x128xf32, #tpu.memory_space<vmem>>, vector<2x4x8x128xf32>
    %1 = vector.extract_strided_slice %0 {offsets = [0, 0, 0, 0], sizes = [1, 1, 7, 128], strides = [1, 1, 1, 1]} : vector<2x4x8x128xf32> to vector<1x1x7x128xf32>
    %2 = vector.shape_cast %1 : vector<1x1x7x128xf32> to vector<7x128xf32>
    %3 = vector.extract_strided_slice %0 {offsets = [0, 1, 0, 0], sizes = [1, 1, 7, 128], strides = [1, 1, 1, 1]} : vector<2x4x8x128xf32> to vector<1x1x7x128xf32>
    %4 = vector.shape_cast %3 : vector<1x1x7x128xf32> to vector<7x128xf32>
    %5 = vector.extract_strided_slice %0 {offsets = [0, 2, 0, 0], sizes = [1, 1, 7, 128], strides = [1, 1, 1, 1]} : vector<2x4x8x128xf32> to vector<1x1x7x128xf32>
    %6 = vector.shape_cast %5 : vector<1x1x7x128xf32> to vector<7x128xf32>
    %7 = vector.extract_strided_slice %0 {offsets = [0, 3, 0, 0], sizes = [1, 1, 7, 128], strides = [1, 1, 1, 1]} : vector<2x4x8x128xf32> to vector<1x1x7x128xf32>
    %8 = vector.shape_cast %7 : vector<1x1x7x128xf32> to vector<7x128xf32>
    %9 = vector.extract_strided_slice %0 {offsets = [0, 0, 1, 0], sizes = [1, 1, 7, 128], strides = [1, 1, 1, 1]} : vector<2x4x8x128xf32> to vector<1x1x7x128xf32>
    %10 = vector.shape_cast %9 : vector<1x1x7x128xf32> to vector<7x128xf32>
    %11 = tpu.concatenate %2, %4, %6, %8, %10 in 1 : vector<7x128xf32>, vector<7x128xf32>, vector<7x128xf32>, vector<7x128xf32>, vector<7x128xf32> -> vector<7x640xf32>
    %12 = vector.extract_strided_slice %0 {offsets = [0, 1, 0, 0], sizes = [1, 1, 7, 128], strides = [1, 1, 1, 1]} : vector<2x4x8x128xf32> to vector<1x1x7x128xf32>
    %13 = vector.shape_cast %12 : vector<1x1x7x128xf32> to vector<7x128xf32>
    %14 = vector.extract_strided_slice %0 {offsets = [0, 2, 0, 0], sizes = [1, 1, 7, 128], strides = [1, 1, 1, 1]} : vector<2x4x8x128xf32> to vector<1x1x7x128xf32>
    %15 = vector.shape_cast %14 : vector<1x1x7x128xf32> to vector<7x128xf32>
    %16 = vector.extract_strided_slice %0 {offsets = [0, 3, 0, 0], sizes = [1, 1, 7, 128], strides = [1, 1, 1, 1]} : vector<2x4x8x128xf32> to vector<1x1x7x128xf32>
    %17 = vector.shape_cast %16 : vector<1x1x7x128xf32> to vector<7x128xf32>
    %18 = vector.extract_strided_slice %0 {offsets = [0, 0, 1, 0], sizes = [1, 1, 7, 128], strides = [1, 1, 1, 1]} : vector<2x4x8x128xf32> to vector<1x1x7x128xf32>
    %19 = vector.shape_cast %18 : vector<1x1x7x128xf32> to vector<7x128xf32>
    %20 = vector.extract_strided_slice %0 {offsets = [0, 1, 1, 0], sizes = [1, 1, 7, 128], strides = [1, 1, 1, 1]} : vector<2x4x8x128xf32> to vector<1x1x7x128xf32>
    %21 = vector.shape_cast %20 : vector<1x1x7x128xf32> to vector<7x128xf32>
    %22 = tpu.concatenate %13, %15, %17, %19, %21 in 1 : vector<7x128xf32>, vector<7x128xf32>, vector<7x128xf32>, vector<7x128xf32>, vector<7x128xf32> -> vector<7x640xf32>
    %23 = vector.extract_strided_slice %0 {offsets = [0, 2, 0, 0], sizes = [1, 1, 7, 128], strides = [1, 1, 1, 1]} : vector<2x4x8x128xf32> to vector<1x1x7x128xf32>
    %24 = vector.shape_cast %23 : vector<1x1x7x128xf32> to vector<7x128xf32>
    %25 = vector.extract_strided_slice %0 {offsets = [0, 3, 0, 0], sizes = [1, 1, 7, 128], strides = [1, 1, 1, 1]} : vector<2x4x8x128xf32> to vector<1x1x7x128xf32>
    %26 = vector.shape_cast %25 : vector<1x1x7x128xf32> to vector<7x128xf32>
    %27 = vector.extract_strided_slice %0 {offsets = [0, 0, 1, 0], sizes = [1, 1, 7, 128], strides = [1, 1, 1, 1]} : vector<2x4x8x128xf32> to vector<1x1x7x128xf32>
    %28 = vector.shape_cast %27 : vector<1x1x7x128xf32> to vector<7x128xf32>
    %29 = vector.extract_strided_slice %0 {offsets = [0, 1, 1, 0], sizes = [1, 1, 7, 128], strides = [1, 1, 1, 1]} : vector<2x4x8x128xf32> to vector<1x1x7x128xf32>
    %30 = vector.shape_cast %29 : vector<1x1x7x128xf32> to vector<7x128xf32>
    %31 = vector.extract_strided_slice %0 {offsets = [0, 2, 1, 0], sizes = [1, 1, 7, 128], strides = [1, 1, 1, 1]} : vector<2x4x8x128xf32> to vector<1x1x7x128xf32>
    %32 = vector.shape_cast %31 : vector<1x1x7x128xf32> to vector<7x128xf32>
    %33 = tpu.concatenate %24, %26, %28, %30, %32 in 1 : vector<7x128xf32>, vector<7x128xf32>, vector<7x128xf32>, vector<7x128xf32>, vector<7x128xf32> -> vector<7x640xf32>
    %34 = vector.extract_strided_slice %0 {offsets = [0, 3, 0, 0], sizes = [1, 1, 7, 128], strides = [1, 1, 1, 1]} : vector<2x4x8x128xf32> to vector<1x1x7x128xf32>
    %35 = vector.shape_cast %34 : vector<1x1x7x128xf32> to vector<7x128xf32>
    %36 = vector.extract_strided_slice %0 {offsets = [0, 0, 1, 0], sizes = [1, 1, 7, 128], strides = [1, 1, 1, 1]} : vector<2x4x8x128xf32> to vector<1x1x7x128xf32>
    %37 = vector.shape_cast %36 : vector<1x1x7x128xf32> to vector<7x128xf32>
    %38 = vector.extract_strided_slice %0 {offsets = [0, 1, 1, 0], sizes = [1, 1, 7, 128], strides = [1, 1, 1, 1]} : vector<2x4x8x128xf32> to vector<1x1x7x128xf32>
    %39 = vector.shape_cast %38 : vector<1x1x7x128xf32> to vector<7x128xf32>
    %40 = vector.extract_strided_slice %0 {offsets = [0, 2, 1, 0], sizes = [1, 1, 7, 128], strides = [1, 1, 1, 1]} : vector<2x4x8x128xf32> to vector<1x1x7x128xf32>
    %41 = vector.shape_cast %40 : vector<1x1x7x128xf32> to vector<7x128xf32>
    %42 = vector.extract_strided_slice %0 {offsets = [0, 3, 1, 0], sizes = [1, 1, 7, 128], strides = [1, 1, 1, 1]} : vector<2x4x8x128xf32> to vector<1x1x7x128xf32>
    %43 = vector.shape_cast %42 : vector<1x1x7x128xf32> to vector<7x128xf32>
    %44 = tpu.concatenate %35, %37, %39, %41, %43 in 1 : vector<7x128xf32>, vector<7x128xf32>, vector<7x128xf32>, vector<7x128xf32>, vector<7x128xf32> -> vector<7x640xf32>
    %45 = vector.extract_strided_slice %0 {offsets = [1, 0, 0, 0], sizes = [1, 1, 7, 128], strides = [1, 1, 1, 1]} : vector<2x4x8x128xf32> to vector<1x1x7x128xf32>
    %46 = vector.shape_cast %45 : vector<1x1x7x128xf32> to vector<7x128xf32>
    %47 = vector.extract_strided_slice %0 {offsets = [1, 1, 0, 0], sizes = [1, 1, 7, 128], strides = [1, 1, 1, 1]} : vector<2x4x8x128xf32> to vector<1x1x7x128xf32>
    %48 = vector.shape_cast %47 : vector<1x1x7x128xf32> to vector<7x128xf32>
    %49 = vector.extract_strided_slice %0 {offsets = [1, 2, 0, 0], sizes = [1, 1, 7, 128], strides = [1, 1, 1, 1]} : vector<2x4x8x128xf32> to vector<1x1x7x128xf32>
    %50 = vector.shape_cast %49 : vector<1x1x7x128xf32> to vector<7x128xf32>
    %51 = vector.extract_strided_slice %0 {offsets = [1, 3, 0, 0], sizes = [1, 1, 7, 128], strides = [1, 1, 1, 1]} : vector<2x4x8x128xf32> to vector<1x1x7x128xf32>
    %52 = vector.shape_cast %51 : vector<1x1x7x128xf32> to vector<7x128xf32>
    %53 = vector.extract_strided_slice %0 {offsets = [1, 0, 1, 0], sizes = [1, 1, 7, 128], strides = [1, 1, 1, 1]} : vector<2x4x8x128xf32> to vector<1x1x7x128xf32>
    %54 = vector.shape_cast %53 : vector<1x1x7x128xf32> to vector<7x128xf32>
    %55 = tpu.concatenate %46, %48, %50, %52, %54 in 1 : vector<7x128xf32>, vector<7x128xf32>, vector<7x128xf32>, vector<7x128xf32>, vector<7x128xf32> -> vector<7x640xf32>
    %56 = vector.extract_strided_slice %0 {offsets = [1, 1, 0, 0], sizes = [1, 1, 7, 128], strides = [1, 1, 1, 1]} : vector<2x4x8x128xf32> to vector<1x1x7x128xf32>
    %57 = vector.shape_cast %56 : vector<1x1x7x128xf32> to vector<7x128xf32>
    %58 = vector.extract_strided_slice %0 {offsets = [1, 2, 0, 0], sizes = [1, 1, 7, 128], strides = [1, 1, 1, 1]} : vector<2x4x8x128xf32> to vector<1x1x7x128xf32>
    %59 = vector.shape_cast %58 : vector<1x1x7x128xf32> to vector<7x128xf32>
    %60 = vector.extract_strided_slice %0 {offsets = [1, 3, 0, 0], sizes = [1, 1, 7, 128], strides = [1, 1, 1, 1]} : vector<2x4x8x128xf32> to vector<1x1x7x128xf32>
    %61 = vector.shape_cast %60 : vector<1x1x7x128xf32> to vector<7x128xf32>
    %62 = vector.extract_strided_slice %0 {offsets = [1, 0, 1, 0], sizes = [1, 1, 7, 128], strides = [1, 1, 1, 1]} : vector<2x4x8x128xf32> to vector<1x1x7x128xf32>
    %63 = vector.shape_cast %62 : vector<1x1x7x128xf32> to vector<7x128xf32>
    %64 = vector.extract_strided_slice %0 {offsets = [1, 1, 1, 0], sizes = [1, 1, 7, 128], strides = [1, 1, 1, 1]} : vector<2x4x8x128xf32> to vector<1x1x7x128xf32>
    %65 = vector.shape_cast %64 : vector<1x1x7x128xf32> to vector<7x128xf32>
    %66 = tpu.concatenate %57, %59, %61, %63, %65 in 1 : vector<7x128xf32>, vector<7x128xf32>, vector<7x128xf32>, vector<7x128xf32>, vector<7x128xf32> -> vector<7x640xf32>
    %67 = vector.extract_strided_slice %0 {offsets = [1, 2, 0, 0], sizes = [1, 1, 7, 128], strides = [1, 1, 1, 1]} : vector<2x4x8x128xf32> to vector<1x1x7x128xf32>
    %68 = vector.shape_cast %67 : vector<1x1x7x128xf32> to vector<7x128xf32>
    %69 = vector.extract_strided_slice %0 {offsets = [1, 3, 0, 0], sizes = [1, 1, 7, 128], strides = [1, 1, 1, 1]} : vector<2x4x8x128xf32> to vector<1x1x7x128xf32>
    %70 = vector.shape_cast %69 : vector<1x1x7x128xf32> to vector<7x128xf32>
    %71 = vector.extract_strided_slice %0 {offsets = [1, 0, 1, 0], sizes = [1, 1, 7, 128], strides = [1, 1, 1, 1]} : vector<2x4x8x128xf32> to vector<1x1x7x128xf32>
    %72 = vector.shape_cast %71 : vector<1x1x7x128xf32> to vector<7x128xf32>
    %73 = vector.extract_strided_slice %0 {offsets = [1, 1, 1, 0], sizes = [1, 1, 7, 128], strides = [1, 1, 1, 1]} : vector<2x4x8x128xf32> to vector<1x1x7x128xf32>
    %74 = vector.shape_cast %73 : vector<1x1x7x128xf32> to vector<7x128xf32>
    %75 = vector.extract_strided_slice %0 {offsets = [1, 2, 1, 0], sizes = [1, 1, 7, 128], strides = [1, 1, 1, 1]} : vector<2x4x8x128xf32> to vector<1x1x7x128xf32>
    %76 = vector.shape_cast %75 : vector<1x1x7x128xf32> to vector<7x128xf32>
    %77 = tpu.concatenate %68, %70, %72, %74, %76 in 1 : vector<7x128xf32>, vector<7x128xf32>, vector<7x128xf32>, vector<7x128xf32>, vector<7x128xf32> -> vector<7x640xf32>
    %78 = vector.extract_strided_slice %0 {offsets = [1, 3, 0, 0], sizes = [1, 1, 7, 128], strides = [1, 1, 1, 1]} : vector<2x4x8x128xf32> to vector<1x1x7x128xf32>
    %79 = vector.shape_cast %78 : vector<1x1x7x128xf32> to vector<7x128xf32>
    %80 = vector.extract_strided_slice %0 {offsets = [1, 0, 1, 0], sizes = [1, 1, 7, 128], strides = [1, 1, 1, 1]} : vector<2x4x8x128xf32> to vector<1x1x7x128xf32>
    %81 = vector.shape_cast %80 : vector<1x1x7x128xf32> to vector<7x128xf32>
    %82 = vector.extract_strided_slice %0 {offsets = [1, 1, 1, 0], sizes = [1, 1, 7, 128], strides = [1, 1, 1, 1]} : vector<2x4x8x128xf32> to vector<1x1x7x128xf32>
    %83 = vector.shape_cast %82 : vector<1x1x7x128xf32> to vector<7x128xf32>
    %84 = vector.extract_strided_slice %0 {offsets = [1, 2, 1, 0], sizes = [1, 1, 7, 128], strides = [1, 1, 1, 1]} : vector<2x4x8x128xf32> to vector<1x1x7x128xf32>
    %85 = vector.shape_cast %84 : vector<1x1x7x128xf32> to vector<7x128xf32>
    %86 = vector.extract_strided_slice %0 {offsets = [1, 3, 1, 0], sizes = [1, 1, 7, 128], strides = [1, 1, 1, 1]} : vector<2x4x8x128xf32> to vector<1x1x7x128xf32>
    %87 = vector.shape_cast %86 : vector<1x1x7x128xf32> to vector<7x128xf32>
    %88 = tpu.concatenate %79, %81, %83, %85, %87 in 1 : vector<7x128xf32>, vector<7x128xf32>, vector<7x128xf32>, vector<7x128xf32>, vector<7x128xf32> -> vector<7x640xf32>
    %89 = tpu.concatenate %11, %22, %33, %44, %55, %66, %77, %88 in 0 : vector<7x640xf32>, vector<7x640xf32>, vector<7x640xf32>, vector<7x640xf32>, vector<7x640xf32>, vector<7x640xf32>, vector<7x640xf32>, vector<7x640xf32> -> vector<56x640xf32>
    %90 = arith.truncf %89 : vector<56x640xf32> to vector<56x640xbf16>
    %c0_3 = arith.constant 0 : index
    %c0_4 = arith.constant 0 : index
    %91 = vector.load %arg2[%c0_3, %c0_4] : memref<640x768xbf16, #tpu.memory_space<vmem>>, vector<640x768xbf16>
    %cst = arith.constant dense<0.000000e+00> : vector<56x768xf32>
    %92 = tpu.matmul %90, %91, %cst {dimension_numbers = #tpu.dot_dimension_numbers<[1], [0], [0], [1], [0, 0, 1, 1], [], []>} : vector<56x640xbf16>, vector<640x768xbf16>, vector<56x768xf32> -> vector<56x768xf32>
    %cst_5 = arith.constant dense<0.000000e+00> : vector<768xf32>
    %93 = vector.multi_reduction <add>, %92, %cst_5 [0] : vector<56x768xf32> to vector<768xf32>
    %94 = vector.shape_cast %93 : vector<768xf32> to vector<1x768xf32>
    %c0_6 = arith.constant 0 : index
    %c0_7 = arith.constant 0 : index
    %95 = vector.load %arg6[%c0_6, %c0_7] : memref<768x16xf32, #tpu.memory_space<vmem>>, vector<768x16xf32>
    %cst_8 = arith.constant dense<0.000000e+00> : vector<1x16xf32>
    %96 = tpu.matmul %94, %95, %cst_8 {dimension_numbers = #tpu.dot_dimension_numbers<[1], [0], [0], [1], [0, 0, 1, 1], [], []>} : vector<1x768xf32>, vector<768x16xf32>, vector<1x16xf32> -> vector<1x16xf32>
    %cst_9 = arith.constant 1.568000e+03 : f32
    %97 = vector.broadcast %cst_9 : f32 to vector<1x16xf32>
    %98 = arith.divf %96, %97 : vector<1x16xf32>
    %c0_10 = arith.constant 0 : index
    %c0_11 = arith.constant 0 : index
    %99 = vector.load %arg7[%c0_10, %c0_11] : memref<16x768xf32, #tpu.memory_space<vmem>>, vector<16x768xf32>
    %cst_12 = arith.constant dense<0.000000e+00> : vector<1x768xf32>
    %100 = tpu.matmul %98, %99, %cst_12 {dimension_numbers = #tpu.dot_dimension_numbers<[1], [0], [0], [1], [0, 0, 1, 1], [], []>} : vector<1x16xf32>, vector<16x768xf32>, vector<1x768xf32> -> vector<1x768xf32>
    %101 = vector.broadcast %100 : vector<1x768xf32> to vector<56x768xf32>
    %102 = arith.subf %92, %101 : vector<56x768xf32>
    %103 = arith.mulf %102, %102 : vector<56x768xf32>
    %cst_13 = arith.constant dense<0.000000e+00> : vector<768xf32>
    %104 = vector.multi_reduction <add>, %103, %cst_13 [0] : vector<56x768xf32> to vector<768xf32>
    %105 = vector.shape_cast %104 : vector<768xf32> to vector<1x768xf32>
    %c0_14 = arith.constant 0 : index
    %c0_15 = arith.constant 0 : index
    %106 = vector.load %arg6[%c0_14, %c0_15] : memref<768x16xf32, #tpu.memory_space<vmem>>, vector<768x16xf32>
    %cst_16 = arith.constant dense<0.000000e+00> : vector<1x16xf32>
    %107 = tpu.matmul %105, %106, %cst_16 {dimension_numbers = #tpu.dot_dimension_numbers<[1], [0], [0], [1], [0, 0, 1, 1], [], []>} : vector<1x768xf32>, vector<768x16xf32>, vector<1x16xf32> -> vector<1x16xf32>
    %cst_17 = arith.constant 1.568000e+03 : f32
    %108 = vector.broadcast %cst_17 : f32 to vector<1x16xf32>
    %109 = arith.divf %107, %108 : vector<1x16xf32>
    %c0_18 = arith.constant 0 : index
    %c0_19 = arith.constant 0 : index
    %110 = vector.load %arg8[%c0_18, %c0_19] : memref<1x16xf32, #tpu.memory_space<vmem>>, vector<1x16xf32>
    %cst_20 = arith.constant 9.99999974E-6 : f32
    %111 = vector.broadcast %cst_20 : f32 to vector<1x16xf32>
    %112 = arith.addf %109, %111 : vector<1x16xf32>
    %113 = math.rsqrt %112 : vector<1x16xf32>
    %114 = arith.mulf %110, %113 : vector<1x16xf32>
    %c0_21 = arith.constant 0 : index
    %c0_22 = arith.constant 0 : index
    %115 = vector.load %arg7[%c0_21, %c0_22] : memref<16x768xf32, #tpu.memory_space<vmem>>, vector<16x768xf32>
    %cst_23 = arith.constant dense<0.000000e+00> : vector<1x768xf32>
    %116 = tpu.matmul %114, %115, %cst_23 {dimension_numbers = #tpu.dot_dimension_numbers<[1], [0], [0], [1], [0, 0, 1, 1], [], []>} : vector<1x16xf32>, vector<16x768xf32>, vector<1x768xf32> -> vector<1x768xf32>
    %c0_24 = arith.constant 0 : index
    %c0_25 = arith.constant 0 : index
    %117 = vector.load %arg9[%c0_24, %c0_25] : memref<1x16xf32, #tpu.memory_space<vmem>>, vector<1x16xf32>
    %c0_26 = arith.constant 0 : index
    %c0_27 = arith.constant 0 : index
    %118 = vector.load %arg7[%c0_26, %c0_27] : memref<16x768xf32, #tpu.memory_space<vmem>>, vector<16x768xf32>
    %cst_28 = arith.constant dense<0.000000e+00> : vector<1x768xf32>
    %119 = tpu.matmul %117, %118, %cst_28 {dimension_numbers = #tpu.dot_dimension_numbers<[1], [0], [0], [1], [0, 0, 1, 1], [], []>} : vector<1x16xf32>, vector<16x768xf32>, vector<1x768xf32> -> vector<1x768xf32>
    %120 = vector.broadcast %116 : vector<1x768xf32> to vector<56x768xf32>
    %121 = arith.mulf %102, %120 : vector<56x768xf32>
    %122 = vector.broadcast %119 : vector<1x768xf32> to vector<56x768xf32>
    %123 = arith.addf %121, %122 : vector<56x768xf32>
    %cst_29 = arith.constant 0.000000e+00 : f32
    %124 = vector.broadcast %cst_29 : f32 to vector<56x768xf32>
    %125 = arith.maximumf %123, %124 : vector<56x768xf32>
    %126 = vector.extract_strided_slice %125 {offsets = [0, 0], sizes = [7, 768], strides = [1, 1]} : vector<56x768xf32> to vector<7x768xf32>
    %127 = vector.extract_strided_slice %125 {offsets = [7, 0], sizes = [7, 768], strides = [1, 1]} : vector<56x768xf32> to vector<7x768xf32>
    %128 = vector.extract_strided_slice %126 {offsets = [0, 0], sizes = [7, 384], strides = [1, 1]} : vector<7x768xf32> to vector<7x384xf32>
    %129 = vector.extract_strided_slice %126 {offsets = [0, 384], sizes = [7, 384], strides = [1, 1]} : vector<7x768xf32> to vector<7x384xf32>
    %130 = arith.maximumf %128, %129 : vector<7x384xf32>
    %131 = vector.extract_strided_slice %127 {offsets = [0, 0], sizes = [7, 384], strides = [1, 1]} : vector<7x768xf32> to vector<7x384xf32>
    %132 = vector.extract_strided_slice %127 {offsets = [0, 384], sizes = [7, 384], strides = [1, 1]} : vector<7x768xf32> to vector<7x384xf32>
    %133 = arith.maximumf %131, %132 : vector<7x384xf32>
    %134 = arith.maximumf %130, %133 : vector<7x384xf32>
    %135 = vector.extract_strided_slice %125 {offsets = [14, 0], sizes = [7, 768], strides = [1, 1]} : vector<56x768xf32> to vector<7x768xf32>
    %136 = vector.extract_strided_slice %125 {offsets = [21, 0], sizes = [7, 768], strides = [1, 1]} : vector<56x768xf32> to vector<7x768xf32>
    %137 = vector.extract_strided_slice %135 {offsets = [0, 0], sizes = [7, 384], strides = [1, 1]} : vector<7x768xf32> to vector<7x384xf32>
    %138 = vector.extract_strided_slice %135 {offsets = [0, 384], sizes = [7, 384], strides = [1, 1]} : vector<7x768xf32> to vector<7x384xf32>
    %139 = arith.maximumf %137, %138 : vector<7x384xf32>
    %140 = vector.extract_strided_slice %136 {offsets = [0, 0], sizes = [7, 384], strides = [1, 1]} : vector<7x768xf32> to vector<7x384xf32>
    %141 = vector.extract_strided_slice %136 {offsets = [0, 384], sizes = [7, 384], strides = [1, 1]} : vector<7x768xf32> to vector<7x384xf32>
    %142 = arith.maximumf %140, %141 : vector<7x384xf32>
    %143 = arith.maximumf %139, %142 : vector<7x384xf32>
    %144 = vector.extract_strided_slice %125 {offsets = [28, 0], sizes = [7, 768], strides = [1, 1]} : vector<56x768xf32> to vector<7x768xf32>
    %145 = vector.extract_strided_slice %125 {offsets = [35, 0], sizes = [7, 768], strides = [1, 1]} : vector<56x768xf32> to vector<7x768xf32>
    %146 = vector.extract_strided_slice %144 {offsets = [0, 0], sizes = [7, 384], strides = [1, 1]} : vector<7x768xf32> to vector<7x384xf32>
    %147 = vector.extract_strided_slice %144 {offsets = [0, 384], sizes = [7, 384], strides = [1, 1]} : vector<7x768xf32> to vector<7x384xf32>
    %148 = arith.maximumf %146, %147 : vector<7x384xf32>
    %149 = vector.extract_strided_slice %145 {offsets = [0, 0], sizes = [7, 384], strides = [1, 1]} : vector<7x768xf32> to vector<7x384xf32>
    %150 = vector.extract_strided_slice %145 {offsets = [0, 384], sizes = [7, 384], strides = [1, 1]} : vector<7x768xf32> to vector<7x384xf32>
    %151 = arith.maximumf %149, %150 : vector<7x384xf32>
    %152 = arith.maximumf %148, %151 : vector<7x384xf32>
    %153 = vector.extract_strided_slice %125 {offsets = [42, 0], sizes = [7, 768], strides = [1, 1]} : vector<56x768xf32> to vector<7x768xf32>
    %154 = vector.extract_strided_slice %125 {offsets = [49, 0], sizes = [7, 768], strides = [1, 1]} : vector<56x768xf32> to vector<7x768xf32>
    %155 = vector.extract_strided_slice %153 {offsets = [0, 0], sizes = [7, 384], strides = [1, 1]} : vector<7x768xf32> to vector<7x384xf32>
    %156 = vector.extract_strided_slice %153 {offsets = [0, 384], sizes = [7, 384], strides = [1, 1]} : vector<7x768xf32> to vector<7x384xf32>
    %157 = arith.maximumf %155, %156 : vector<7x384xf32>
    %158 = vector.extract_strided_slice %154 {offsets = [0, 0], sizes = [7, 384], strides = [1, 1]} : vector<7x768xf32> to vector<7x384xf32>
    %159 = vector.extract_strided_slice %154 {offsets = [0, 384], sizes = [7, 384], strides = [1, 1]} : vector<7x768xf32> to vector<7x384xf32>
    %160 = arith.maximumf %158, %159 : vector<7x384xf32>
    %161 = arith.maximumf %157, %160 : vector<7x384xf32>
    %cst_30 = arith.constant 0.000000e+00 : f32
    %162 = vector.broadcast %cst_30 : f32 to vector<1x384xf32>
    %163 = tpu.concatenate %162, %134, %162 in 0 : vector<1x384xf32>, vector<7x384xf32>, vector<1x384xf32> -> vector<9x384xf32>
    %164 = tpu.concatenate %162, %143, %162 in 0 : vector<1x384xf32>, vector<7x384xf32>, vector<1x384xf32> -> vector<9x384xf32>
    %165 = vector.extract_strided_slice %163 {offsets = [0, 0], sizes = [7, 384], strides = [1, 1]} : vector<9x384xf32> to vector<7x384xf32>
    %166 = vector.extract_strided_slice %164 {offsets = [0, 0], sizes = [7, 384], strides = [1, 1]} : vector<9x384xf32> to vector<7x384xf32>
    %167 = vector.extract_strided_slice %163 {offsets = [1, 0], sizes = [7, 384], strides = [1, 1]} : vector<9x384xf32> to vector<7x384xf32>
    %168 = vector.extract_strided_slice %164 {offsets = [1, 0], sizes = [7, 384], strides = [1, 1]} : vector<9x384xf32> to vector<7x384xf32>
    %169 = vector.extract_strided_slice %163 {offsets = [2, 0], sizes = [7, 384], strides = [1, 1]} : vector<9x384xf32> to vector<7x384xf32>
    %170 = tpu.concatenate %165, %166, %167, %168, %169 in 1 : vector<7x384xf32>, vector<7x384xf32>, vector<7x384xf32>, vector<7x384xf32>, vector<7x384xf32> -> vector<7x1920xf32>
    %171 = vector.extract_strided_slice %164 {offsets = [0, 0], sizes = [7, 384], strides = [1, 1]} : vector<9x384xf32> to vector<7x384xf32>
    %172 = vector.extract_strided_slice %163 {offsets = [1, 0], sizes = [7, 384], strides = [1, 1]} : vector<9x384xf32> to vector<7x384xf32>
    %173 = vector.extract_strided_slice %164 {offsets = [1, 0], sizes = [7, 384], strides = [1, 1]} : vector<9x384xf32> to vector<7x384xf32>
    %174 = vector.extract_strided_slice %163 {offsets = [2, 0], sizes = [7, 384], strides = [1, 1]} : vector<9x384xf32> to vector<7x384xf32>
    %175 = vector.extract_strided_slice %164 {offsets = [2, 0], sizes = [7, 384], strides = [1, 1]} : vector<9x384xf32> to vector<7x384xf32>
    %176 = tpu.concatenate %171, %172, %173, %174, %175 in 1 : vector<7x384xf32>, vector<7x384xf32>, vector<7x384xf32>, vector<7x384xf32>, vector<7x384xf32> -> vector<7x1920xf32>
    %177 = tpu.concatenate %162, %152, %162 in 0 : vector<1x384xf32>, vector<7x384xf32>, vector<1x384xf32> -> vector<9x384xf32>
    %178 = tpu.concatenate %162, %161, %162 in 0 : vector<1x384xf32>, vector<7x384xf32>, vector<1x384xf32> -> vector<9x384xf32>
    %179 = vector.extract_strided_slice %177 {offsets = [0, 0], sizes = [7, 384], strides = [1, 1]} : vector<9x384xf32> to vector<7x384xf32>
    %180 = vector.extract_strided_slice %178 {offsets = [0, 0], sizes = [7, 384], strides = [1, 1]} : vector<9x384xf32> to vector<7x384xf32>
    %181 = vector.extract_strided_slice %177 {offsets = [1, 0], sizes = [7, 384], strides = [1, 1]} : vector<9x384xf32> to vector<7x384xf32>
    %182 = vector.extract_strided_slice %178 {offsets = [1, 0], sizes = [7, 384], strides = [1, 1]} : vector<9x384xf32> to vector<7x384xf32>
    %183 = vector.extract_strided_slice %177 {offsets = [2, 0], sizes = [7, 384], strides = [1, 1]} : vector<9x384xf32> to vector<7x384xf32>
    %184 = tpu.concatenate %179, %180, %181, %182, %183 in 1 : vector<7x384xf32>, vector<7x384xf32>, vector<7x384xf32>, vector<7x384xf32>, vector<7x384xf32> -> vector<7x1920xf32>
    %185 = vector.extract_strided_slice %178 {offsets = [0, 0], sizes = [7, 384], strides = [1, 1]} : vector<9x384xf32> to vector<7x384xf32>
    %186 = vector.extract_strided_slice %177 {offsets = [1, 0], sizes = [7, 384], strides = [1, 1]} : vector<9x384xf32> to vector<7x384xf32>
    %187 = vector.extract_strided_slice %178 {offsets = [1, 0], sizes = [7, 384], strides = [1, 1]} : vector<9x384xf32> to vector<7x384xf32>
    %188 = vector.extract_strided_slice %177 {offsets = [2, 0], sizes = [7, 384], strides = [1, 1]} : vector<9x384xf32> to vector<7x384xf32>
    %189 = vector.extract_strided_slice %178 {offsets = [2, 0], sizes = [7, 384], strides = [1, 1]} : vector<9x384xf32> to vector<7x384xf32>
    %190 = tpu.concatenate %185, %186, %187, %188, %189 in 1 : vector<7x384xf32>, vector<7x384xf32>, vector<7x384xf32>, vector<7x384xf32>, vector<7x384xf32> -> vector<7x1920xf32>
    %191 = tpu.concatenate %170, %176, %184, %190 in 0 : vector<7x1920xf32>, vector<7x1920xf32>, vector<7x1920xf32>, vector<7x1920xf32> -> vector<28x1920xf32>
    %192 = arith.truncf %191 : vector<28x1920xf32> to vector<28x1920xbf16>
    %c0_31 = arith.constant 0 : index
    %c0_32 = arith.constant 0 : index
    %193 = vector.load %arg3[%c0_31, %c0_32] : memref<1920x512xbf16, #tpu.memory_space<vmem>>, vector<1920x512xbf16>
    %cst_33 = arith.constant dense<0.000000e+00> : vector<28x512xf32>
    %194 = tpu.matmul %192, %193, %cst_33 {dimension_numbers = #tpu.dot_dimension_numbers<[1], [0], [0], [1], [0, 0, 1, 1], [], []>} : vector<28x1920xbf16>, vector<1920x512xbf16>, vector<28x512xf32> -> vector<28x512xf32>
    %cst_34 = arith.constant dense<0.000000e+00> : vector<512xf32>
    %195 = vector.multi_reduction <add>, %194, %cst_34 [0] : vector<28x512xf32> to vector<512xf32>
    %196 = vector.shape_cast %195 : vector<512xf32> to vector<1x512xf32>
    %c0_35 = arith.constant 0 : index
    %c0_36 = arith.constant 0 : index
    %197 = vector.load %arg10[%c0_35, %c0_36] : memref<512x32xf32, #tpu.memory_space<vmem>>, vector<512x32xf32>
    %cst_37 = arith.constant dense<0.000000e+00> : vector<1x32xf32>
    %198 = tpu.matmul %196, %197, %cst_37 {dimension_numbers = #tpu.dot_dimension_numbers<[1], [0], [0], [1], [0, 0, 1, 1], [], []>} : vector<1x512xf32>, vector<512x32xf32>, vector<1x32xf32> -> vector<1x32xf32>
    %cst_38 = arith.constant 3.920000e+02 : f32
    %199 = vector.broadcast %cst_38 : f32 to vector<1x32xf32>
    %200 = arith.divf %198, %199 : vector<1x32xf32>
    %c0_39 = arith.constant 0 : index
    %c0_40 = arith.constant 0 : index
    %201 = vector.load %arg11[%c0_39, %c0_40] : memref<32x512xf32, #tpu.memory_space<vmem>>, vector<32x512xf32>
    %cst_41 = arith.constant dense<0.000000e+00> : vector<1x512xf32>
    %202 = tpu.matmul %200, %201, %cst_41 {dimension_numbers = #tpu.dot_dimension_numbers<[1], [0], [0], [1], [0, 0, 1, 1], [], []>} : vector<1x32xf32>, vector<32x512xf32>, vector<1x512xf32> -> vector<1x512xf32>
    %203 = vector.broadcast %202 : vector<1x512xf32> to vector<28x512xf32>
    %204 = arith.subf %194, %203 : vector<28x512xf32>
    %205 = arith.mulf %204, %204 : vector<28x512xf32>
    %cst_42 = arith.constant dense<0.000000e+00> : vector<512xf32>
    %206 = vector.multi_reduction <add>, %205, %cst_42 [0] : vector<28x512xf32> to vector<512xf32>
    %207 = vector.shape_cast %206 : vector<512xf32> to vector<1x512xf32>
    %c0_43 = arith.constant 0 : index
    %c0_44 = arith.constant 0 : index
    %208 = vector.load %arg10[%c0_43, %c0_44] : memref<512x32xf32, #tpu.memory_space<vmem>>, vector<512x32xf32>
    %cst_45 = arith.constant dense<0.000000e+00> : vector<1x32xf32>
    %209 = tpu.matmul %207, %208, %cst_45 {dimension_numbers = #tpu.dot_dimension_numbers<[1], [0], [0], [1], [0, 0, 1, 1], [], []>} : vector<1x512xf32>, vector<512x32xf32>, vector<1x32xf32> -> vector<1x32xf32>
    %cst_46 = arith.constant 3.920000e+02 : f32
    %210 = vector.broadcast %cst_46 : f32 to vector<1x32xf32>
    %211 = arith.divf %209, %210 : vector<1x32xf32>
    %c0_47 = arith.constant 0 : index
    %c0_48 = arith.constant 0 : index
    %212 = vector.load %arg12[%c0_47, %c0_48] : memref<1x32xf32, #tpu.memory_space<vmem>>, vector<1x32xf32>
    %cst_49 = arith.constant 9.99999974E-6 : f32
    %213 = vector.broadcast %cst_49 : f32 to vector<1x32xf32>
    %214 = arith.addf %211, %213 : vector<1x32xf32>
    %215 = math.rsqrt %214 : vector<1x32xf32>
    %216 = arith.mulf %212, %215 : vector<1x32xf32>
    %c0_50 = arith.constant 0 : index
    %c0_51 = arith.constant 0 : index
    %217 = vector.load %arg11[%c0_50, %c0_51] : memref<32x512xf32, #tpu.memory_space<vmem>>, vector<32x512xf32>
    %cst_52 = arith.constant dense<0.000000e+00> : vector<1x512xf32>
    %218 = tpu.matmul %216, %217, %cst_52 {dimension_numbers = #tpu.dot_dimension_numbers<[1], [0], [0], [1], [0, 0, 1, 1], [], []>} : vector<1x32xf32>, vector<32x512xf32>, vector<1x512xf32> -> vector<1x512xf32>
    %c0_53 = arith.constant 0 : index
    %c0_54 = arith.constant 0 : index
    %219 = vector.load %arg13[%c0_53, %c0_54] : memref<1x32xf32, #tpu.memory_space<vmem>>, vector<1x32xf32>
    %c0_55 = arith.constant 0 : index
    %c0_56 = arith.constant 0 : index
    %220 = vector.load %arg11[%c0_55, %c0_56] : memref<32x512xf32, #tpu.memory_space<vmem>>, vector<32x512xf32>
    %cst_57 = arith.constant dense<0.000000e+00> : vector<1x512xf32>
    %221 = tpu.matmul %219, %220, %cst_57 {dimension_numbers = #tpu.dot_dimension_numbers<[1], [0], [0], [1], [0, 0, 1, 1], [], []>} : vector<1x32xf32>, vector<32x512xf32>, vector<1x512xf32> -> vector<1x512xf32>
    %222 = vector.broadcast %218 : vector<1x512xf32> to vector<28x512xf32>
    %223 = arith.mulf %204, %222 : vector<28x512xf32>
    %224 = vector.broadcast %221 : vector<1x512xf32> to vector<28x512xf32>
    %225 = arith.addf %223, %224 : vector<28x512xf32>
    %cst_58 = arith.constant 0.000000e+00 : f32
    %226 = vector.broadcast %cst_58 : f32 to vector<28x512xf32>
    %227 = arith.maximumf %225, %226 : vector<28x512xf32>
    %228 = vector.extract_strided_slice %227 {offsets = [0, 0], sizes = [7, 512], strides = [1, 1]} : vector<28x512xf32> to vector<7x512xf32>
    %229 = vector.extract_strided_slice %227 {offsets = [7, 0], sizes = [7, 512], strides = [1, 1]} : vector<28x512xf32> to vector<7x512xf32>
    %230 = vector.extract_strided_slice %228 {offsets = [0, 0], sizes = [7, 256], strides = [1, 1]} : vector<7x512xf32> to vector<7x256xf32>
    %231 = vector.extract_strided_slice %228 {offsets = [0, 256], sizes = [7, 256], strides = [1, 1]} : vector<7x512xf32> to vector<7x256xf32>
    %232 = arith.maximumf %230, %231 : vector<7x256xf32>
    %233 = vector.extract_strided_slice %229 {offsets = [0, 0], sizes = [7, 256], strides = [1, 1]} : vector<7x512xf32> to vector<7x256xf32>
    %234 = vector.extract_strided_slice %229 {offsets = [0, 256], sizes = [7, 256], strides = [1, 1]} : vector<7x512xf32> to vector<7x256xf32>
    %235 = arith.maximumf %233, %234 : vector<7x256xf32>
    %236 = arith.maximumf %232, %235 : vector<7x256xf32>
    %237 = vector.extract_strided_slice %236 {offsets = [0, 0], sizes = [1, 256], strides = [1, 1]} : vector<7x256xf32> to vector<1x256xf32>
    %238 = vector.extract_strided_slice %236 {offsets = [1, 0], sizes = [1, 256], strides = [1, 1]} : vector<7x256xf32> to vector<1x256xf32>
    %239 = vector.extract_strided_slice %236 {offsets = [2, 0], sizes = [1, 256], strides = [1, 1]} : vector<7x256xf32> to vector<1x256xf32>
    %240 = vector.extract_strided_slice %236 {offsets = [3, 0], sizes = [1, 256], strides = [1, 1]} : vector<7x256xf32> to vector<1x256xf32>
    %241 = vector.extract_strided_slice %236 {offsets = [4, 0], sizes = [1, 256], strides = [1, 1]} : vector<7x256xf32> to vector<1x256xf32>
    %242 = vector.extract_strided_slice %236 {offsets = [5, 0], sizes = [1, 256], strides = [1, 1]} : vector<7x256xf32> to vector<1x256xf32>
    %243 = vector.extract_strided_slice %236 {offsets = [6, 0], sizes = [1, 256], strides = [1, 1]} : vector<7x256xf32> to vector<1x256xf32>
    %244 = tpu.concatenate %237, %238, %239, %240, %241, %242, %243 in 1 : vector<1x256xf32>, vector<1x256xf32>, vector<1x256xf32>, vector<1x256xf32>, vector<1x256xf32>, vector<1x256xf32>, vector<1x256xf32> -> vector<1x1792xf32>
    %245 = vector.extract_strided_slice %227 {offsets = [14, 0], sizes = [7, 512], strides = [1, 1]} : vector<28x512xf32> to vector<7x512xf32>
    %246 = vector.extract_strided_slice %227 {offsets = [21, 0], sizes = [7, 512], strides = [1, 1]} : vector<28x512xf32> to vector<7x512xf32>
    %247 = vector.extract_strided_slice %245 {offsets = [0, 0], sizes = [7, 256], strides = [1, 1]} : vector<7x512xf32> to vector<7x256xf32>
    %248 = vector.extract_strided_slice %245 {offsets = [0, 256], sizes = [7, 256], strides = [1, 1]} : vector<7x512xf32> to vector<7x256xf32>
    %249 = arith.maximumf %247, %248 : vector<7x256xf32>
    %250 = vector.extract_strided_slice %246 {offsets = [0, 0], sizes = [7, 256], strides = [1, 1]} : vector<7x512xf32> to vector<7x256xf32>
    %251 = vector.extract_strided_slice %246 {offsets = [0, 256], sizes = [7, 256], strides = [1, 1]} : vector<7x512xf32> to vector<7x256xf32>
    %252 = arith.maximumf %250, %251 : vector<7x256xf32>
    %253 = arith.maximumf %249, %252 : vector<7x256xf32>
    %254 = vector.extract_strided_slice %253 {offsets = [0, 0], sizes = [1, 256], strides = [1, 1]} : vector<7x256xf32> to vector<1x256xf32>
    %255 = vector.extract_strided_slice %253 {offsets = [1, 0], sizes = [1, 256], strides = [1, 1]} : vector<7x256xf32> to vector<1x256xf32>
    %256 = vector.extract_strided_slice %253 {offsets = [2, 0], sizes = [1, 256], strides = [1, 1]} : vector<7x256xf32> to vector<1x256xf32>
    %257 = vector.extract_strided_slice %253 {offsets = [3, 0], sizes = [1, 256], strides = [1, 1]} : vector<7x256xf32> to vector<1x256xf32>
    %258 = vector.extract_strided_slice %253 {offsets = [4, 0], sizes = [1, 256], strides = [1, 1]} : vector<7x256xf32> to vector<1x256xf32>
    %259 = vector.extract_strided_slice %253 {offsets = [5, 0], sizes = [1, 256], strides = [1, 1]} : vector<7x256xf32> to vector<1x256xf32>
    %260 = vector.extract_strided_slice %253 {offsets = [6, 0], sizes = [1, 256], strides = [1, 1]} : vector<7x256xf32> to vector<1x256xf32>
    %261 = tpu.concatenate %254, %255, %256, %257, %258, %259, %260 in 1 : vector<1x256xf32>, vector<1x256xf32>, vector<1x256xf32>, vector<1x256xf32>, vector<1x256xf32>, vector<1x256xf32>, vector<1x256xf32> -> vector<1x1792xf32>
    %262 = tpu.concatenate %244, %261 in 0 : vector<1x1792xf32>, vector<1x1792xf32> -> vector<2x1792xf32>
    %263 = arith.truncf %262 : vector<2x1792xf32> to vector<2x1792xbf16>
    %c0_59 = arith.constant 0 : index
    %c0_60 = arith.constant 0 : index
    %264 = vector.load %arg4[%c0_59, %c0_60] : memref<1792x10xbf16, #tpu.memory_space<vmem>>, vector<1792x10xbf16>
    %cst_61 = arith.constant dense<0.000000e+00> : vector<2x10xf32>
    %265 = tpu.matmul %263, %264, %cst_61 {dimension_numbers = #tpu.dot_dimension_numbers<[1], [0], [0], [1], [0, 0, 1, 1], [], []>} : vector<2x1792xbf16>, vector<1792x10xbf16>, vector<2x10xf32> -> vector<2x10xf32>
    %c0_62 = arith.constant 0 : index
    %c0_63 = arith.constant 0 : index
    %266 = vector.load %arg5[%c0_62, %c0_63] : memref<1x10xf32, #tpu.memory_space<vmem>>, vector<1x10xf32>
    %267 = vector.broadcast %266 : vector<1x10xf32> to vector<2x10xf32>
    %268 = arith.addf %265, %267 : vector<2x10xf32>
    %c0_64 = arith.constant 0 : index
    %c0_65 = arith.constant 0 : index
    %269 = vector.load %arg14[%c0_64, %c0_65] : memref<2x10xf32, #tpu.memory_space<vmem>>, vector<2x10xf32>
    tpu.vector_store %arg14[%c0_64, %c0_65], %268 {strides = array<i32>} : memref<2x10xf32, #tpu.memory_space<vmem>>, vector<2x10xf32>,
    return
  }
  func.func @transform_0(%arg0: i32) -> (i32, i32, i32, i32) {
    %c0_i32 = arith.constant 0 : i32
    %c0_i32_0 = arith.constant 0 : i32
    %c0_i32_1 = arith.constant 0 : i32
    %c0_i32_2 = arith.constant 0 : i32
    %c0_i32_3 = arith.constant 0 : i32
    return %c0_i32, %c0_i32_0, %c0_i32_1, %c0_i32_2 : i32, i32, i32, i32
  }
  func.func @transform_1(%arg0: i32) -> (i32, i32) {
    %c0_i32 = arith.constant 0 : i32
    %c0_i32_0 = arith.constant 0 : i32
    %c0_i32_1 = arith.constant 0 : i32
    return %c0_i32, %c0_i32_0 : i32, i32
  }
  func.func @transform_2(%arg0: i32) -> (i32, i32) {
    %c0_i32 = arith.constant 0 : i32
    %c0_i32_0 = arith.constant 0 : i32
    %c0_i32_1 = arith.constant 0 : i32
    return %c0_i32, %c0_i32_0 : i32, i32
  }
  func.func @transform_3(%arg0: i32) -> (i32, i32) {
    %c0_i32 = arith.constant 0 : i32
    %c0_i32_0 = arith.constant 0 : i32
    %c0_i32_1 = arith.constant 0 : i32
    return %c0_i32, %c0_i32_0 : i32, i32
  }
  func.func @transform_4(%arg0: i32) -> (i32, i32) {
    %c0_i32 = arith.constant 0 : i32
    %c0_i32_0 = arith.constant 0 : i32
    %c0_i32_1 = arith.constant 0 : i32
    return %c0_i32, %c0_i32_0 : i32, i32
  }
  func.func @transform_5(%arg0: i32) -> (i32, i32) {
    %c0_i32 = arith.constant 0 : i32
    %c0_i32_0 = arith.constant 0 : i32
    %c0_i32_1 = arith.constant 0 : i32
    return %c0_i32, %c0_i32_0 : i32, i32
  }
  func.func @transform_6(%arg0: i32) -> (i32, i32) {
    %c0_i32 = arith.constant 0 : i32
    %c0_i32_0 = arith.constant 0 : i32
    %c0_i32_1 = arith.constant 0 : i32
    return %c0_i32, %c0_i32_0 : i32, i32
  }
  func.func @transform_7(%arg0: i32) -> (i32, i32) {
    %c0_i32 = arith.constant 0 : i32
    %c0_i32_0 = arith.constant 0 : i32
    %c0_i32_1 = arith.constant 0 : i32
    return %c0_i32, %c0_i32_0 : i32, i32
  }
  func.func @transform_8(%arg0: i32) -> (i32, i32) {
    %c0_i32 = arith.constant 0 : i32
    %c0_i32_0 = arith.constant 0 : i32
    %c0_i32_1 = arith.constant 0 : i32
    return %c0_i32, %c0_i32_0 : i32, i32
  }
  func.func @transform_9(%arg0: i32) -> (i32, i32) {
    %c0_i32 = arith.constant 0 : i32
    %c0_i32_0 = arith.constant 0 : i32
    %c0_i32_1 = arith.constant 0 : i32
    return %c0_i32, %c0_i32_0 : i32, i32
  }
  func.func @transform_10(%arg0: i32) -> (i32, i32) {
    %c0_i32 = arith.constant 0 : i32
    %c0_i32_0 = arith.constant 0 : i32
    %c0_i32_1 = arith.constant 0 : i32
    return %c0_i32, %c0_i32_0 : i32, i32
  }
  func.func @transform_11(%arg0: i32) -> (i32, i32) {
    %c0_i32 = arith.constant 0 : i32
    %c0_i32_0 = arith.constant 0 : i32
    %c0_i32_1 = arith.constant 0 : i32
    return %c0_i32, %c0_i32_0 : i32, i32
  }
  func.func @transform_12(%arg0: i32) -> (i32, i32) {
    %c0_i32 = arith.constant 0 : i32
    %c0_i32_0 = arith.constant 0 : i32
    %c0_i32_1 = arith.constant 0 : i32
    return %c0_i32, %c0_i32_0 : i32, i32
  }
  func.func @transform_13(%arg0: i32) -> (i32, i32) {
    %c0_i32 = arith.constant 0 : i32
    %c0_i32_0 = arith.constant 0 : i32
    %c0_i32_1 = arith.constant 0 : i32
    return %c0_i32, %c0_i32_0 : i32, i32
  }
}

</mosaic_0001>

<bundles_post_ra>
// kernel: cnn_forward.1
= control target key start
LH: loop header
LB: loop body
LE: loop exit
PB: predicated region body
PF: predicated region fallthrough
CT: control target
= control target key end

     0   :  { %vm138_vm0 = vcmask 1046528   ;;  %vm144_vm1 = vcmask 1045504   ;;  %vm150_vm2 = vcmask 1044480   ;;  %vm156_vm3 = vcmask 1043456   ;;  %s18600_s0 = inlined_call_operand.vmem [shape: f32[2,4,8,128], index: 0, kind: input, shape index: {}]   ;;  %s18601_s1 = inlined_call_operand.vmem [shape: bf16[640,768], index: 1, kind: input, shape index: {}]   ;;  %s18602_s2 = inlined_call_operand.vmem [shape: bf16[1920,512], index: 2, kind: input, shape index: {}]   ;;  %s18603_s3 = inlined_call_operand.vmem [shape: bf16[1792,10], index: 3, kind: input, shape index: {}]   ;;  %s18604_s4 = inlined_call_operand.vmem [shape: f32[1,10], index: 4, kind: input, shape index: {}]   ;;  %s18605_s5 = inlined_call_operand.vmem [shape: f32[768,16], index: 5, kind: input, shape index: {}]   ;;  %s18606_s6 = inlined_call_operand.vmem [shape: f32[16,768], index: 6, kind: input, shape index: {}]   ;;  %s18607_s7 = inlined_call_operand.vmem [shape: f32[1,16], index: 7, kind: input, shape index: {}]   ;;  %s18608_s8 = inlined_call_operand.vmem [shape: f32[1,16], index: 8, kind: input, shape index: {}]   ;;  %s18609_s9 = inlined_call_operand.vmem [shape: f32[512,32], index: 9, kind: input, shape index: {}]   ;;  %s18610_s10 = inlined_call_operand.vmem [shape: f32[32,512], index: 10, kind: input, shape index: {}]   ;;  %s18611_s11 = inlined_call_operand.vmem [shape: f32[1,32], index: 11, kind: input, shape index: {}]   ;;  %s18612_s12 = inlined_call_operand.vmem [shape: f32[1,32], index: 12, kind: input, shape index: {}]   ;;  %s18613_s13 = inlined_call_operand.hbm [shape: f32[2,10], index: 13, kind: output, shape index: {}]  }
   0x1   :  { %v12345_v0 = vld [vmem:[%s18601_s1 + $0x4] ss:$24 sps:$4 sm:$0xff]   ;;  %v12347_v1 = vld [vmem:[%s18601_s1] ss:$24 sps:$4 sm:$0xff]   ;;  %v12348_v2 = vld [vmem:[%s18601_s1 + $0x34] ss:$24 sps:$4 sm:$0xff]  }
   0x2   :  { %1640 = vmatprep.subr.bf16.mxu0 %v12345_v0  ;;  %v12350_v3 = vld [vmem:[%s18601_s1 + $0x30] ss:$24 sps:$4 sm:$0xff]   ;;  %v12351_v4 = vld [vmem:[%s18601_s1 + $0x64] ss:$24 sps:$4 sm:$0xff]   ;;  %v12353_v7 = vld [vmem:[%s18601_s1 + $0x60] ss:$24 sps:$4 sm:$0xff]  }
   0x3   :  { %1641 = vmatpush1.bf16.msra.mxu0 %v12347_v1  ;;  %v12357_v5 = vld [vmem:[%s18601_s1 + $0xc] ss:$24 sps:$4 sm:$0xff]   ;;  %v12359_v6 = vld [vmem:[%s18601_s1 + $0x8] ss:$24 sps:$4 sm:$0xff]   ;;  %v12363_v9 = vld [vmem:[%s18601_s1 + $0x3c] ss:$24 sps:$4 sm:$0xff]  }
   0x4   :  { %1642 = vmatprep.subr.bf16.mxu0 %v12348_v2  ;;  %v12354_v8 = vld [vmem:[%s18601_s1 + $0x94] ss:$24 sps:$4 sm:$0xff]   ;;  %1853 = vmatprep.subr.bf16.mxu1 %v12357_v5  ;;  %v12365_v10 = vld [vmem:[%s18601_s1 + $0x38] ss:$24 sps:$4 sm:$0xff]   ;;  %v12360_v13 = vld [vmem:[%s18601_s1 + $0xc4] ss:$24 sps:$4 sm:$0xff]  }
   0x5   :  { %1854 = vmatpush1.bf16.msra.mxu1 %v12359_v6  ;;  %v12356_v11 = vld [vmem:[%s18601_s1 + $0x90] ss:$24 sps:$4 sm:$0xff]   ;;  %v12369_v12 = vld [vmem:[%s18601_s1 + $0x6c] ss:$24 sps:$4 sm:$0xff]   ;;  %v12375_v15 = vld [vmem:[%s18601_s1 + $0x9c] ss:$24 sps:$4 sm:$0xff]  }
   0x6   :  { %1855 = vmatprep.subr.bf16.mxu1 %v12363_v9  ;;  %v12371_v14 = vld [vmem:[%s18601_s1 + $0x68] ss:$24 sps:$4 sm:$0xff]   ;;  %v12366_v17 = vld [vmem:[%s18601_s1 + $0xf4] ss:$24 sps:$4 sm:$0xff]   ;;  %v12377_v18 = vld [vmem:[%s18601_s1 + $0x98] ss:$24 sps:$4 sm:$0xff]  }
   0x7   :  { %1643 = vmatpush1.bf16.msra.mxu0 %v12350_v3  ;;  %v12362_v16 = vld [vmem:[%s18601_s1 + $0xc0] ss:$24 sps:$4 sm:$0xff]   ;;  %v12381_v19 = vld [vmem:[%s18601_s1 + $0xcc] ss:$24 sps:$4 sm:$0xff]   ;;  %v12368_v20 = vld [vmem:[%s18601_s1 + $0xf0] ss:$24 sps:$4 sm:$0xff]  }
   0x8   :  { %1644 = vmatprep.subr.bf16.mxu0 %v12351_v4  ;;  %v12372_v21 = vld [vmem:[%s18601_s1 + $0x124] ss:$24 sps:$4 sm:$0xff]   ;;  %v12383_v22 = vld [vmem:[%s18601_s1 + $0xc8] ss:$24 sps:$4 sm:$0xff]   ;;  %v12378_v25 = vld [vmem:[%s18601_s1 + $0x154] ss:$24 sps:$4 sm:$0xff]  }
   0x9   :  { %1856 = vmatpush1.bf16.msra.mxu1 %v12365_v10  ;;  %v12387_v23 = vld [vmem:[%s18601_s1 + $0xfc] ss:$24 sps:$4 sm:$0xff]   ;;  %v12374_v24 = vld [vmem:[%s18601_s1 + $0x120] ss:$24 sps:$4 sm:$0xff]   ;;  %v12393_v27 = vld [vmem:[%s18601_s1 + $0x12c] ss:$24 sps:$4 sm:$0xff]  }
   0xa   :  { %1857 = vmatprep.subr.bf16.mxu1 %v12369_v12  ;;  %v12389_v26 = vld [vmem:[%s18601_s1 + $0xf8] ss:$24 sps:$4 sm:$0xff]   ;;  %v12384_v29 = vld [vmem:[%s18601_s1 + $0x184] ss:$24 sps:$4 sm:$0xff]   ;;  %v12395_v30 = vld [vmem:[%s18601_s1 + $0x128] ss:$24 sps:$4 sm:$0xff]  }
   0xb   :  { %1645 = vmatpush1.bf16.msra.mxu0 %v12353_v7  ;;  %v12380_v28 = vld [vmem:[%s18601_s1 + $0x150] ss:$24 sps:$4 sm:$0xff]   ;;  %v12399_v31 = vld [vmem:[%s18601_s1 + $0x15c] ss:$24 sps:$4 sm:$0xff]   ;;  %v12386_v32 = vld [vmem:[%s18601_s1 + $0x180] ss:$24 sps:$4 sm:$0xff]  }
   0xc   :  { %1646 = vmatprep.subr.bf16.mxu0 %v12354_v8  ;;  %v12390_v33 = vld [vmem:[%s18601_s1 + $0x1b4] ss:$24 sps:$4 sm:$0xff]   ;;  %v12401_v34 = vld [vmem:[%s18601_s1 + $0x158] ss:$24 sps:$4 sm:$0xff]   ;;  %v12396_v37 = vld [vmem:[%s18601_s1 + $0x1e4] ss:$24 sps:$4 sm:$0xff]  }
   0xd   :  { %1858 = vmatpush1.bf16.msra.mxu1 %v12371_v14  ;;  %v12405_v35 = vld [vmem:[%s18601_s1 + $0x18c] ss:$24 sps:$4 sm:$0xff]   ;;  %v12392_v36 = vld [vmem:[%s18601_s1 + $0x1b0] ss:$24 sps:$4 sm:$0xff]   ;;  %v12398_v39 = vld [vmem:[%s18601_s1 + $0x1e0] ss:$24 sps:$4 sm:$0xff]  }
   0xe   :  { %1859 = vmatprep.subr.bf16.mxu1 %v12375_v15  ;;  %v12407_v38 = vld [vmem:[%s18601_s1 + $0x188] ss:$24 sps:$4 sm:$0xff]   ;;  %v12411_v40 = vld [vmem:[%s18601_s1 + $0x1bc] ss:$24 sps:$4 sm:$0xff]   ;;  %v12413_v48 = vld [vmem:[%s18601_s1 + $0x1b8] ss:$24 sps:$4 sm:$0xff]  }
   0xf   :  { %1647 = vmatpush1.bf16.msra.mxu0 %v12356_v11  ;;  %v47_v41 = vld [vmem:[%s18600_s0 + $0x8] sm:$0xff]  ;;  %v13767_v42 = vld [vmem:[%s18600_s0 + $0x10] sm:$0xff]  ;;  %v13772_v43 = vld [vmem:[%s18600_s0 + $0x18] sm:$0xff]  ;;  %vm162_vm4 = vcmask 1042432   ;;  %vm168_vm5 = vcmask 1041408   ;;  %vm174_vm6 = vcmask 1040384  }
  0x10   :  { %1648 = vmatprep.subr.bf16.mxu0 %v12360_v13  ;;  %v12402_v44 = vld [vmem:[%s18601_s1 + $0x214] ss:$24 sps:$4 sm:$0xff]   ;;  %v13778_v45 = vrot.slane %v13767_v42, 1  ;;  %v79_v46 = vrot.slane %v13772_v43, 2  ;;  %v46_v47 = vld [vmem:[%s18600_s0] sm:$0xff]  ;;  %v13812_v58 = vrot.slane %v13772_v43, 1 }
  0x11   :  { %1860 = vmatpush1.bf16.msra.mxu1 %v12377_v18  ;;  %v13787_v49 = vrot.slane %v46_v47, 1  ;;  %v12417_v50 = vld [vmem:[%s18601_s1 + $0x1ec] ss:$24 sps:$4 sm:$0xff]   ;;  %v12404_v53 = vld [vmem:[%s18601_s1 + $0x210] ss:$24 sps:$4 sm:$0xff]   ;;  %v13817_v60 = vrot.slane %v47_v41, 1 }
  0x12   :  { %1861 = vmatprep.subr.bf16.mxu1 %v12381_v19  ;;  %v140_v51 = vsel %vm138_vm0, %v47_v41, %v13778_v45  ;;  %v146_v52 = vsel %vm144_vm1, %v13778_v45, %v79_v46  ;;  %v12408_v56 = vld [vmem:[%s18601_s1 + $0x244] ss:$24 sps:$4 sm:$0xff]   ;;  %v12419_v57 = vld [vmem:[%s18601_s1 + $0x1e8] ss:$24 sps:$4 sm:$0xff]   ;;  %v141_v62 = vsel %vm138_vm0, %v13767_v42, %v13812_v58  ;;  %v12414_v0 = vld [vmem:[%s18601_s1 + $0x274] ss:$24 sps:$4 sm:$0xff]  }
  0x13   :  { %1649 = vmatpush1.bf16.msra.mxu0 %v12362_v16  ;;  %v13801_v54 = vpack.c.bf16 %v146_v52, %v140_v51  ;;  %v80_v55 = vrot.slane %v13787_v49, 2  ;;  %v12423_v59 = vld [vmem:[%s18601_s1 + $0x21c] ss:$24 sps:$4 sm:$0xff]   ;;  %v12410_v61 = vld [vmem:[%s18601_s1 + $0x240] ss:$24 sps:$4 sm:$0xff]   ;;  %v72_v2 = vrot.slane %v13817_v60, 1 }
  0x14   :  { %1650 = vmatprep.subr.bf16.mxu0 %v12366_v17  ;;  %v12425_v3 = vld [vmem:[%s18601_s1 + $0x218] ss:$24 sps:$4 sm:$0xff]   ;;  %v82_v4 = vrot.slane %v13778_v45, 2  ;;  %v92_v5 = vrot.slane %v13812_v58, 3  ;;  %v12429_v6 = vld [vmem:[%s18601_s1 + $0x24c] ss:$24 sps:$4 sm:$0xff]  }
  0x15   :  { %1862 = vmatpush1.bf16.msra.mxu1 %v12383_v22  ;;  %1672 = vmatprep.mubr.bf16.mxu0 %v13801_v54  ;;  %v147_v63 = vsel %vm144_vm1, %v13812_v58, %v80_v55  ;;  %v143_v7 = vsel %vm138_vm0, %v13787_v49, %v72_v2  ;;  %v12416_v8 = vld [vmem:[%s18601_s1 + $0x270] ss:$24 sps:$4 sm:$0xff]   ;;  %v12420_v11 = vld [vmem:[%s18601_s1 + $0x2a4] ss:$24 sps:$4 sm:$0xff]   ;;  %v12422_v15 = vld [vmem:[%s18601_s1 + $0x2a0] ss:$24 sps:$4 sm:$0xff]  }
  0x16   :  { %1863 = vmatprep.subr.bf16.mxu1 %v12387_v23  ;;  %1885 = vmatprep.mubr.bf16.mxu1 %v13801_v54  ;;  %v13833_v1 = vpack.c.bf16 %v147_v63, %v141_v62  ;;  %v149_v9 = vsel %vm144_vm1, %v72_v2, %v82_v4  ;;  %v13853_v10 = vsel %vm150_vm2, %v82_v4, %v92_v5  ;;  %v12431_v13 = vld [vmem:[%s18601_s1 + $0x248] ss:$24 sps:$4 sm:$0xff]   ;;  %v12435_v14 = vld [vmem:[%s18601_s1 + $0x27c] ss:$24 sps:$4 sm:$0xff]   ;;  %v78_v16 = vrot.slane %v13767_v42, 2 }
  0x17   :  { %1651 = vmatpush1.bf16.msra.mxu0 %v12368_v20  ;;  %v13858_v12 = vpack.c.bf16 %v149_v9, %v143_v7  ;;  %v12426_v17 = vld [vmem:[%s18601_s1 + $0x2d4] ss:$24 sps:$4 sm:$0xff]   ;;  %v12437_v18 = vld [vmem:[%s18601_s1 + $0x278] ss:$24 sps:$4 sm:$0xff]   ;;  %v12434_v23 = vld [vmem:[%s18601_s1 + $0x304] ss:$24 sps:$4 sm:$0xff]  }
  0x18   :  { %1652 = vmatprep.subr.bf16.mxu0 %v12372_v21  ;;  %v12441_v19 = vld [vmem:[%s18601_s1 + $0x2ac] ss:$24 sps:$4 sm:$0xff]   ;;  %v12428_v20 = vld [vmem:[%s18601_s1 + $0x2d0] ss:$24 sps:$4 sm:$0xff]   ;;  %v139_v21 = vsel %vm138_vm0, %v46_v47, %v13817_v60  ;;  %v145_v22 = vsel %vm144_vm1, %v13817_v60, %v78_v16  ;;  %v12461_v47 = vld [vmem:[%s18601_s1 + $0x33c] ss:$24 sps:$4 sm:$0xff]  }
  0x19   :  { %1864 = vmatpush1.bf16.msra.mxu1 %v12389_v26  ;;  %v12447_v26 = vld [vmem:[%s18601_s1 + $0x2dc] ss:$24 sps:$4 sm:$0xff]   ;;  %v12444_v52 = vld [vmem:[%s18601_s1 + $0x360] ss:$24 sps:$4 sm:$0xff]   ;;  %v12450_v9 = vld [vmem:[%s18601_s1 + $0x390] ss:$24 sps:$4 sm:$0xff]  }
  0x1a   :  { %1865 = vmatprep.subr.bf16.mxu1 %v12393_v27  ;;  %v12432_v27 = vld [vmem:[%s18601_s1 + $0x300] ss:$24 sps:$4 sm:$0xff]   ;;  %v13961_v63 = vld [vmem:[%s18600_s0 + $0x30] sm:$0xff] }
  0x1b   :  { %1653 = vmatpush1.bf16.msra.mxu0 %v12374_v24  ;;  %v12443_v24 = vld [vmem:[%s18601_s1 + $0x2a8] ss:$24 sps:$4 sm:$0xff]   ;;  %v109_v4 = vrot.slane %v13961_v63, 5  ;;  %v118_v7 = vrot.slane %v13961_v63, 6 }
  0x1c   :  { %1654 = vmatprep.subr.bf16.mxu0 %v12378_v25  ;;  %v13892_v25 = vpack.c.bf16 %v145_v22, %v139_v21  ;;  %v12456_v58 = vld [vmem:[%s18601_s1 + $0x3c0] ss:$24 sps:$4 sm:$0xff]   ;;  %v12473_v21 = vld [vmem:[%s18601_s1 + $0x39c] ss:$24 sps:$4 sm:$0xff]  }
  0x1d   :  { %1866 = vmatpush1.bf16.msra.mxu1 %v12395_v30  ;;  %v88_v30 = vrot.slane %v13772_v43, 3 }
  0x1e   :  { %1867 = vmatprep.subr.bf16.mxu1 %v12399_v31  ;;  %v12449_v31 = vld [vmem:[%s18601_s1 + $0x2d8] ss:$24 sps:$4 sm:$0xff]  }
  0x1f   :  { %1655 = vmatpush1.bf16.msra.mxu0 %v12380_v28  ;;  %v89_v28 = vrot.slane %v13787_v49, 3  ;;  %v151_v41 = vsel %vm150_vm2, %v78_v16, %v88_v30 }
  0x20   :  { %1656 = vmatprep.subr.bf16.mxu0 %v12384_v29  ;;  %v12440_v29 = vld [vmem:[%s18601_s1 + $0x334] ss:$24 sps:$4 sm:$0xff]  }
  0x21   :  { %1868 = vmatpush1.bf16.msra.mxu1 %v12401_v34  ;;  %v51_v34 = vld [vmem:[%s18600_s0 + $0x28] sm:$0xff] }
  0x22   :  { %1869 = vmatprep.subr.bf16.mxu1 %v12405_v35  ;;  %v99_v35 = vrot.slane %v51_v34, 4  ;;  %v13930_v42 = vrot.slane %v51_v34, 1 }
  0x23   :  { %1657 = vmatpush1.bf16.msra.mxu0 %v12386_v32  ;;  %v12438_v32 = vld [vmem:[%s18601_s1 + $0x330] ss:$24 sps:$4 sm:$0xff]  }
  0x24   :  { %1658 = vmatprep.subr.bf16.mxu0 %v12390_v33  ;;  %v12455_v33 = vld [vmem:[%s18601_s1 + $0x30c] ss:$24 sps:$4 sm:$0xff]   ;;  %v130_v51 = vrot.slane %v13930_v42, 7  ;;  %v164_v16 = vsel %vm162_vm4, %v99_v35, %v109_v4 }
  0x25   :  { %1870 = vmatpush1.bf16.msra.mxu1 %v12407_v38  ;;  %v12446_v38 = vld [vmem:[%s18601_s1 + $0x364] ss:$24 sps:$4 sm:$0xff]  }
  0x26   :  { %1871 = vmatprep.subr.bf16.mxu1 %v12411_v40 }
  0x27   :  { %1659 = vmatpush1.bf16.msra.mxu0 %v12392_v36  ;;  %v152_v36 = vsel %vm150_vm2, %v79_v46, %v89_v28  ;;  %v158_v46 = vsel %vm156_vm3, %v89_v28, %v99_v35  ;;  %v68_v28 = vrot.slane %v13961_v63, 1  ;;  %v121_v35 = vrot.slane %v13930_v42, 6 }
  0x28   :  { %1660 = vmatprep.subr.bf16.mxu0 %v12396_v37  ;;  %v50_v37 = vld [vmem:[%s18600_s0 + $0x20] sm:$0xff] }
  0x29   :  { %1872 = vmatpush1.bf16.msra.mxu1 %v12413_v48  ;;  %v98_v40 = vrot.slane %v50_v37, 4  ;;  %v13939_v48 = vpack.c.bf16 %v158_v46, %v152_v36 }
  0x2a   :  { %1873 = vmatprep.subr.bf16.mxu1 %v12417_v50 }
  0x2b   :  { %1661 = vmatpush1.bf16.msra.mxu0 %v12398_v39  ;;  %v13927_v39 = vrot.slane %v50_v37, 1  ;;  %v157_v50 = vsel %vm156_vm3, %v88_v30, %v98_v40  ;;  %v71_v30 = vrot.slane %v13787_v49, 1  ;;  %v12549_v49 = vld [vmem:[%s18601_s1 + $0x608] ss:$24 sps:$4 sm:$0xff]  }
  0x2c   :  { %1662 = vmatprep.subr.bf16.mxu0 %v12402_v44  ;;  %v12453_v44 = vld [vmem:[%s18601_s1 + $0x308] ss:$24 sps:$4 sm:$0xff]  }
  0x2d   :  { %1874 = vmatpush1.bf16.msra.mxu1 %v12419_v57  ;;  %v108_v57 = vrot.slane %v51_v34, 5  ;;  %v120_v62 = vrot.slane %v13927_v39, 6  ;;  %v102_v2 = vrot.slane %v13927_v39, 4  ;;  %v12471_v34 = vld [vmem:[%s18601_s1 + $0x398] ss:$24 sps:$4 sm:$0xff]  }
  0x2e   :  { %1875 = vmatprep.subr.bf16.mxu1 %v12423_v59  ;;  %v12459_v59 = vld [vmem:[%s18601_s1 + $0x338] ss:$24 sps:$4 sm:$0xff]  }
  0x2f   :  { %1663 = vmatpush1.bf16.msra.mxu0 %v12404_v53  ;;  %v12452_v53 = vld [vmem:[%s18601_s1 + $0x394] ss:$24 sps:$4 sm:$0xff]  }
  0x30   :  { %1664 = vmatprep.subr.bf16.mxu0 %v12408_v56  ;;  %v13949_v56 = vpack.c.bf16 %v157_v50, %v151_v41  ;;  %v122_v41 = vrot.slane %v68_v28, 6  ;;  %v12470_v50 = vld [vmem:[%s18601_s1 + $0x424] ss:$24 sps:$4 sm:$0xff]  }
  0x31   :  { %1876 = vmatpush1.bf16.msra.mxu1 %v12425_v3  ;;  %v12467_v3 = vld [vmem:[%s18601_s1 + $0x36c] ss:$24 sps:$4 sm:$0xff]  }
  0x32   :  { %1877 = vmatprep.subr.bf16.mxu1 %v12429_v6 }
  0x33   :  { %1665 = vmatpush1.bf16.msra.mxu0 %v12410_v61  ;;  %v129_v61 = vrot.slane %v13927_v39, 7 }
  0x34   :  { %1666 = vmatprep.subr.bf16.mxu0 %v12414_v0  ;;  %v13966_v0 = vld [vmem:[%s18600_s0 + $0x38] sm:$0xff] }
  0x35   :  { %1878 = vmatpush1.bf16.msra.mxu1 %v12431_v13  ;;  %v119_v6 = vrot.slane %v13966_v0, 6  ;;  %v161_v13 = vsel %vm156_vm3, %v92_v5, %v102_v2  ;;  %v12465_v5 = vld [vmem:[%s18601_s1 + $0x368] ss:$24 sps:$4 sm:$0xff]  }
  0x36   :  { %1879 = vmatprep.subr.bf16.mxu1 %v12435_v14  ;;  %v112_v14 = vrot.slane %v13930_v42, 5 }
  0x37   :  { %1667 = vmatpush1.bf16.msra.mxu0 %v12416_v8  ;;  %v13977_v8 = vsel %vm174_vm6, %v120_v62, %v130_v51  ;;  %v142_v51 = vsel %vm138_vm0, %v13772_v43, %v71_v30  ;;  %v12485_v43 = vld [vmem:[%s18601_s1 + $0x3fc] ss:$24 sps:$4 sm:$0xff]  }
  0x38   :  { %1668 = vmatprep.subr.bf16.mxu0 %v12420_v11  ;;  %v163_v11 = vsel %vm162_vm4, %v98_v40, %v108_v57 }
  0x39   :  { %1880 = vmatpush1.bf16.msra.mxu1 %v12437_v18  ;;  %v169_v18 = vsel %vm168_vm5, %v108_v57, %v118_v7  ;;  %v14061_v57 = vsel %vm174_vm6, %v122_v41, %v13966_v0 }
  0x3a   :  { %1881 = vmatprep.subr.bf16.mxu1 %v12441_v19  ;;  %v176_v19 = vsel %vm174_vm6, %v119_v6, %v129_v61  ;;  %v14006_v22 = vpack.c.bf16 %v169_v18, %v163_v11  ;;  %v12482_v11 = vld [vmem:[%s18601_s1 + $0x484] ss:$24 sps:$4 sm:$0xff]  }
  0x3b   :  { %1669 = vmatpush1.bf16.msra.mxu0 %v12422_v15  ;;  %v12458_v15 = vld [vmem:[%s18601_s1 + $0x3c4] ss:$24 sps:$4 sm:$0xff]  }
  0x3c   :  { %1670 = vmatprep.subr.bf16.mxu0 %v12426_v17  ;;  %v170_v17 = vsel %vm168_vm5, %v109_v4, %v119_v6  ;;  %v12476_v4 = vld [vmem:[%s18601_s1 + $0x454] ss:$24 sps:$4 sm:$0xff]   ;;  %v12483_v6 = vld [vmem:[%s18601_s1 + $0x3f8] ss:$24 sps:$4 sm:$0xff]  }
  0x3d   :  { %1882 = vmatpush1.bf16.msra.mxu1 %v12443_v24  ;;  %v14010_v24 = vpack.c.bf16 %v176_v19, %v176_v19  ;;  %v12503_v18 = vld [vmem:[%s18601_s1 + $0x48c] ss:$24 sps:$4 sm:$0xff]   ;;  %v12486_v19 = vld [vmem:[%s18601_s1 + $0x4b0] ss:$24 sps:$4 sm:$0xff]  }
  0x3e   :  { %1883 = vmatprep.subr.bf16.mxu1 %v12447_v26  ;;  %v100_v26 = vrot.slane %v13961_v63, 4  ;;  %v12557_v63 = vld [vmem:[%s18601_s1 + $0x63c] ss:$24 sps:$4 sm:$0xff]  }
  0x3f   :  { %1671 = vmatpush1.bf16.msra.mxu0 %v12428_v20  ;;  %v14001_v20 = vpack.c.bf16 %v170_v17, %v164_v16  ;;  %v12488_v16 = vld [vmem:[%s18601_s1 + $0x4b4] ss:$24 sps:$4 sm:$0xff]   ;;  %v12495_v17 = vld [vmem:[%s18601_s1 + $0x458] ss:$24 sps:$4 sm:$0xff]  }
  0x40   :  { %1711 = vmatprep.subr.bf16.mxu0 %v12434_v23  ;;  %v128_v23 = vrot.slane %v13966_v0, 7 }
  0x41   :  { %1884 = vmatpush1.bf16.msra.mxu1 %v12449_v31  ;;  %v81_v31 = vrot.slane %v13817_v60, 2 }
  0x42   :  { %1673 = vmatmul.mubr.bf16.vlgmr.msra.gmra.mrb[0].mxu0 %v13892_v25  ;;  %1924 = vmatprep.subr.bf16.mxu1 %v12455_v33  ;;  %v167_v33 = vsel %vm162_vm4, %v102_v2, %v112_v14  ;;  %v175_v46 = vsel %vm174_vm6, %v118_v7, %v128_v23  ;;  %v12468_v2 = vld [vmem:[%s18601_s1 + $0x420] ss:$24 sps:$4 sm:$0xff]   ;;  %v12491_v7 = vld [vmem:[%s18601_s1 + $0x42c] ss:$24 sps:$4 sm:$0xff]  }
  0x43   :  { %1712 = vmatpush1.bf16.msra.mxu0 %v12432_v27  ;;  %1682 = vmatprep.mubr.bf16.mxu0 %v13939_v48  ;;  %v110_v27 = vrot.slane %v13966_v0, 5  ;;  %v12492_v23 = vld [vmem:[%s18601_s1 + $0x4e0] ss:$24 sps:$4 sm:$0xff]  }
  0x44   :  { %1713 = vmatprep.subr.bf16.mxu0 %v12440_v29  ;;  %1886 = vmatmul.mubr.bf16.vlgmr.msra.gmra.mrb[0].mxu1 %v13892_v25  ;;  %v12464_v29 = vld [vmem:[%s18601_s1 + $0x3f4] ss:$24 sps:$4 sm:$0xff]  }
  0x45   :  { %1925 = vmatpush1.bf16.msra.mxu1 %v12453_v44  ;;  %1895 = vmatprep.mubr.bf16.mxu1 %v13939_v48  ;;  %v165_v36 = vsel %vm162_vm4, %v100_v26, %v110_v27  ;;  %v171_v37 = vsel %vm168_vm5, %v110_v27, %v120_v62  ;;  %v12462_v44 = vld [vmem:[%s18601_s1 + $0x3f0] ss:$24 sps:$4 sm:$0xff]   ;;  %v14071_v62 = vpack.c.bf16 %v175_v46, %v175_v46  ;;  %v12500_v27 = vld [vmem:[%s18601_s1 + $0x514] ss:$24 sps:$4 sm:$0xff]   ;;  %v12518_v46 = vld [vmem:[%s18601_s1 + $0x5a4] ss:$24 sps:$4 sm:$0xff]  }
  0x46   :  { %1926 = vmatprep.subr.bf16.mxu1 %v12461_v47  ;;  %v14038_v40 = vpack.c.bf16 %v171_v37, %v165_v36  ;;  %v12521_v36 = vld [vmem:[%s18601_s1 + $0x51c] ss:$24 sps:$4 sm:$0xff]   ;;  %v12504_v37 = vld [vmem:[%s18601_s1 + $0x540] ss:$24 sps:$4 sm:$0xff]  }
  0x47   :  { %1714 = vmatpush1.bf16.msra.mxu0 %v12438_v32  ;;  %v14022_v32 = vpack.c.bf16 %v161_v13, %v13853_v10  ;;  %v12479_v10 = vld [vmem:[%s18601_s1 + $0x3cc] ss:$24 sps:$4 sm:$0xff]   ;;  %v12489_v13 = vld [vmem:[%s18601_s1 + $0x428] ss:$24 sps:$4 sm:$0xff]  }
  0x48   :  { %1715 = vmatprep.subr.bf16.mxu0 %v12446_v38  ;;  %v131_v38 = vrot.slane %v68_v28, 7  ;;  %v12507_v28 = vld [vmem:[%s18601_s1 + $0x4b8] ss:$24 sps:$4 sm:$0xff]  }
  0x49   :  { %1927 = vmatpush1.bf16.msra.mxu1 %v12459_v59  ;;  %v12477_v59 = vld [vmem:[%s18601_s1 + $0x3c8] ss:$24 sps:$4 sm:$0xff]  }
  0x4a   :  { %1683 = vmatmul.mubr.bf16.gmra.mrb[4].mxu0 %v13949_v56  ;;  %1928 = vmatprep.subr.bf16.mxu1 %v12467_v3  ;;  %v14048_v47 = vsel %vm174_vm6, %v121_v35, %v131_v38  ;;  %v12512_v38 = vld [vmem:[%s18601_s1 + $0x574] ss:$24 sps:$4 sm:$0xff]  }
  0x4b   :  { %1716 = vmatpush1.bf16.msra.mxu0 %v12444_v52  ;;  %1692 = vmatprep.mubr.bf16.mxu0 %v14001_v20  ;;  %v148_v52 = vsel %vm144_vm1, %v71_v30, %v81_v31  ;;  %v12498_v30 = vld [vmem:[%s18601_s1 + $0x510] ss:$24 sps:$4 sm:$0xff]  }
  0x4c   :  { %1717 = vmatprep.subr.bf16.mxu0 %v12452_v53  ;;  %1896 = vmatmul.mubr.bf16.gmra.mrb[4].mxu1 %v13949_v56  ;;  %v173_v53 = vsel %vm168_vm5, %v112_v14, %v122_v41  ;;  %v14076_v3 = vpack.c.bf16 %v148_v52, %v142_v51  ;;  %v12497_v14 = vld [vmem:[%s18601_s1 + $0x45c] ss:$24 sps:$4 sm:$0xff]   ;;  %v12527_v41 = vld [vmem:[%s18601_s1 + $0x54c] ss:$24 sps:$4 sm:$0xff]   ;;  %v12516_v52 = vld [vmem:[%s18601_s1 + $0x5a0] ss:$24 sps:$4 sm:$0xff]  }
  0x4d   :  { %1929 = vmatpush1.bf16.msra.mxu1 %v12465_v5  ;;  %1905 = vmatprep.mubr.bf16.mxu1 %v14001_v20  ;;  %v14066_v61 = vpack.c.bf16 %v173_v53, %v167_v33  ;;  %v12501_v5 = vld [vmem:[%s18601_s1 + $0x488] ss:$24 sps:$4 sm:$0xff]   ;;  %v12506_v33 = vld [vmem:[%s18601_s1 + $0x544] ss:$24 sps:$4 sm:$0xff]   ;;  %v12524_v53 = vld [vmem:[%s18601_s1 + $0x5d4] ss:$24 sps:$4 sm:$0xff]  }
  0x4e   :  { %1930 = vmatprep.subr.bf16.mxu1 %v12473_v21  ;;  %v12509_v21 = vld [vmem:[%s18601_s1 + $0x4bc] ss:$24 sps:$4 sm:$0xff]  }
  0x4f   :  { %1718 = vmatpush1.bf16.msra.mxu0 %v12450_v9  ;;  %v12474_v9 = vld [vmem:[%s18601_s1 + $0x450] ss:$24 sps:$4 sm:$0xff]   ;;  %v12533_v51 = vld [vmem:[%s18601_s1 + $0x57c] ss:$24 sps:$4 sm:$0xff]  }
  0x50   :  { %1719 = vmatprep.subr.bf16.mxu0 %v12458_v15  ;;  %v12480_v15 = vld [vmem:[%s18601_s1 + $0x480] ss:$24 sps:$4 sm:$0xff]  }
  0x51   :  { %1931 = vmatpush1.bf16.msra.mxu1 %v12471_v34  ;;  %v12513_v34 = vld [vmem:[%s18601_s1 + $0x4e8] ss:$24 sps:$4 sm:$0xff]  }
  0x52   :  { %1693 = vmatmul.mubr.bf16.gmra.mrb[8].mxu0 %v14006_v22  ;;  %1932 = vmatprep.subr.bf16.mxu1 %v12479_v10  ;;  %v12519_v10 = vld [vmem:[%s18601_s1 + $0x518] ss:$24 sps:$4 sm:$0xff]  }
  0x53   :  { %1720 = vmatpush1.bf16.msra.mxu0 %v12456_v58  ;;  %1702 = vmatprep.mubr.bf16.mxu0 %v14010_v24  ;;  %v12494_v58 = vld [vmem:[%s18601_s1 + $0x4e4] ss:$24 sps:$4 sm:$0xff]  }
  0x54   :  { %1721 = vmatprep.subr.bf16.mxu0 %v12464_v29  ;;  %1906 = vmatmul.mubr.bf16.gmra.mrb[8].mxu1 %v14006_v22  ;;  %v12515_v29 = vld [vmem:[%s18601_s1 + $0x4ec] ss:$24 sps:$4 sm:$0xff]  }
  0x55   :  { %1933 = vmatpush1.bf16.msra.mxu1 %v12477_v59  ;;  %1915 = vmatprep.mubr.bf16.mxu1 %v14010_v24  ;;  %v91_v59 = vrot.slane %v13778_v45, 3  ;;  %v12530_v45 = vld [vmem:[%s18601_s1 + $0x604] ss:$24 sps:$4 sm:$0xff]  }
  0x56   :  { %1934 = vmatprep.subr.bf16.mxu1 %v12485_v43  ;;  %v101_v43 = vrot.slane %v13966_v0, 4 }
  0x57   :  { %1722 = vmatpush1.bf16.msra.mxu0 %v12462_v44  ;;  %v12510_v44 = vld [vmem:[%s18601_s1 + $0x570] ss:$24 sps:$4 sm:$0xff]   ;;  %v154_v0 = vsel %vm150_vm2, %v81_v31, %v91_v59  ;;  %v90_v31 = vrot.slane %v13817_v60, 3 }
  0x58   :  { %1723 = vmatprep.subr.bf16.mxu0 %v12470_v50  ;;  %v12525_v50 = vld [vmem:[%s18601_s1 + $0x548] ss:$24 sps:$4 sm:$0xff]  }
  0x59   :  { %1935 = vmatpush1.bf16.msra.mxu1 %v12483_v6  ;;  %v12522_v6 = vld [vmem:[%s18601_s1 + $0x5d0] ss:$24 sps:$4 sm:$0xff]  }
  0x5a   :  { %1703 = vmatmul.mubr.bf16.gmra.mrb[12].mxu0 %v14071_v62  ;;  %1936 = vmatprep.subr.bf16.mxu1 %v12491_v7  ;;  %v160_v7 = vsel %vm156_vm3, %v91_v59, %v101_v43  ;;  %v12534_v60 = vld [vmem:[%s18601_s1 + $0x630] ss:$24 sps:$4 sm:$0xff]   ;;  %v12587_v59 = vld [vmem:[%s18601_s1 + $0x72c] ss:$24 sps:$4 sm:$0xff]  }
  0x5b   :  { %1724 = vmatpush1.bf16.msra.mxu0 %v12468_v2  ;;  %1743 = vmatprep.mubr.bf16.mxu0 %v14076_v3  ;;  %v12531_v2 = vld [vmem:[%s18601_s1 + $0x578] ss:$24 sps:$4 sm:$0xff]  }
  0x5c   :  { %1725 = vmatprep.subr.bf16.mxu0 %v12476_v4  ;;  %1916 = vmatmul.mubr.bf16.gmra.mrb[12].mxu1 %v14071_v62  ;;  %v12539_v4 = vld [vmem:[%s18601_s1 + $0x5ac] ss:$24 sps:$4 sm:$0xff]  }
  0x5d   :  { %1937 = vmatpush1.bf16.msra.mxu1 %v12489_v13  ;;  %1956 = vmatprep.mubr.bf16.mxu1 %v14076_v3  ;;  %v12528_v13 = vld [vmem:[%s18601_s1 + $0x600] ss:$24 sps:$4 sm:$0xff]  }
  0x5e   :  { %1938 = vmatprep.subr.bf16.mxu1 %v12497_v14  ;;  %v14210_v14 = vpack.c.bf16 %v160_v7, %v154_v0  ;;  %v12584_v0 = vld [vmem:[%s18601_s1 + $0x44] ss:$24 sps:$4 sm:$0xff]   ;;  %v12591_v7 = vld [vmem:[%s18601_s1 + $0x758] ss:$24 sps:$4 sm:$0xff]  }
  0x5f   :  { %1726 = vmatpush1.bf16.msra.mxu0 %v12474_v9  ;;  %v12537_v9 = vld [vmem:[%s18601_s1 + $0x5a8] ss:$24 sps:$4 sm:$0xff]  }
  0x60   :  { %1727 = vmatprep.subr.bf16.mxu0 %v12482_v11  ;;  %v12545_v11 = vld [vmem:[%s18601_s1 + $0x5dc] ss:$24 sps:$4 sm:$0xff]  }
  0x61   :  { %1939 = vmatpush1.bf16.msra.mxu1 %v12495_v17  ;;  %v12543_v17 = vld [vmem:[%s18601_s1 + $0x5d8] ss:$24 sps:$4 sm:$0xff]  }
  0x62   :  { %1940 = vmatprep.subr.bf16.mxu1 %v12503_v18  ;;  %v12551_v18 = vld [vmem:[%s18601_s1 + $0x60c] ss:$24 sps:$4 sm:$0xff]  }
  0x63   :  { %1728 = vmatpush1.bf16.msra.mxu0 %v12480_v15  ;;  %v12536_v15 = vld [vmem:[%s18601_s1 + $0x634] ss:$24 sps:$4 sm:$0xff]  }
  0x64   :  { %1729 = vmatprep.subr.bf16.mxu0 %v12488_v16  ;;  %v111_v16 = vrot.slane %v13927_v39, 5  ;;  %v153_v39 = vsel %vm150_vm2, %v80_v55, %v90_v31 }
  0x65   :  { %1941 = vmatpush1.bf16.msra.mxu1 %v12501_v5 }
  0x66   :  { %1942 = vmatprep.subr.bf16.mxu1 %v12509_v21  ;;  %v166_v5 = vsel %vm162_vm4, %v101_v43, %v111_v16  ;;  %v172_v21 = vsel %vm168_vm5, %v111_v16, %v121_v35  ;;  %v12548_v35 = vld [vmem:[%s18601_s1 + $0x694] ss:$24 sps:$4 sm:$0xff]   ;;  %v18614_v43 = vmov 0  }
  0x67   :  { %1730 = vmatpush1.bf16.msra.mxu0 %v12486_v19  ;;  %v159_v19 = vsel %vm156_vm3, %v90_v31, %v100_v26  ;;  %v12540_v26 = vld [vmem:[%s18601_s1 + $0x660] ss:$24 sps:$4 sm:$0xff]   ;;  %v14252_v42 = vpack.c.bf16 %v172_v21, %v166_v5  ;;  %v12596_v31 = vld [vmem:[%s18601_s1 + $0xa4] ss:$24 sps:$4 sm:$0xff]   ;;  %v12599_v16 = vld [vmem:[%s18601_s1 + $0xd4] ss:$24 sps:$4 sm:$0xff]  }
  0x68   :  { %1731 = vmatprep.subr.bf16.mxu0 %v12494_v58  ;;  %v12542_v58 = vld [vmem:[%s18601_s1 + $0x664] ss:$24 sps:$4 sm:$0xff]   ;;  %v14244_v55 = vpack.c.bf16 %v159_v19, %v153_v39  ;;  %v12605_v39 = vld [vmem:[%s18601_s1 + $0x134] ss:$24 sps:$4 sm:$0xff]   ;;  %v12603_v19 = vld [vmem:[%s18601_s1 + $0x130] ss:$24 sps:$4 sm:$0xff]  }
  0x69   :  { %1943 = vmatpush1.bf16.msra.mxu1 %v12507_v28  ;;  %v12546_v28 = vld [vmem:[%s18601_s1 + $0x690] ss:$24 sps:$4 sm:$0xff]   ;;  %v12608_v5 = vld [vmem:[%s18601_s1 + $0x164] ss:$24 sps:$4 sm:$0xff]   ;;  %v12606_v21 = vld [vmem:[%s18601_s1 + $0x160] ss:$24 sps:$4 sm:$0xff]  }
  0x6a   :  { %1944 = vmatprep.subr.bf16.mxu1 %v12515_v29  ;;  %v12554_v29 = vld [vmem:[%s18601_s1 + $0x6c4] ss:$24 sps:$4 sm:$0xff]  }
  0x6b   :  { %1732 = vmatpush1.bf16.msra.mxu0 %v12492_v23  ;;  %v12555_v23 = vld [vmem:[%s18601_s1 + $0x638] ss:$24 sps:$4 sm:$0xff]  }
  0x6c   :  { %1733 = vmatprep.subr.bf16.mxu0 %v12500_v27  ;;  %v12563_v27 = vld [vmem:[%s18601_s1 + $0x66c] ss:$24 sps:$4 sm:$0xff]  }
  0x6d   :  { %1945 = vmatpush1.bf16.msra.mxu1 %v12513_v34  ;;  %v12552_v34 = vld [vmem:[%s18601_s1 + $0x6c0] ss:$24 sps:$4 sm:$0xff]  }
  0x6e   :  { %1946 = vmatprep.subr.bf16.mxu1 %v12521_v36  ;;  %v14284_v36 = vpack.c.bf16 %v14048_v47, %v14048_v47  ;;  %v12575_v47 = vld [vmem:[%s18601_s1 + $0x6cc] ss:$24 sps:$4 sm:$0xff]  }
  0x6f   :  { %1734 = vmatpush1.bf16.msra.mxu0 %v12498_v30  ;;  %v12561_v30 = vld [vmem:[%s18601_s1 + $0x668] ss:$24 sps:$4 sm:$0xff]  }
  0x70   :  { %1735 = vmatprep.subr.bf16.mxu0 %v12506_v33  ;;  %v12569_v33 = vld [vmem:[%s18601_s1 + $0x69c] ss:$24 sps:$4 sm:$0xff]  }
  0x71   :  { %1947 = vmatpush1.bf16.msra.mxu1 %v12519_v10  ;;  %v12558_v10 = vld [vmem:[%s18601_s1 + $0x6f0] ss:$24 sps:$4 sm:$0xff]  }
  0x72   :  { %1948 = vmatprep.subr.bf16.mxu1 %v12527_v41  ;;  %v12566_v41 = vld [vmem:[%s18601_s1 + $0x724] ss:$24 sps:$4 sm:$0xff]  }
  0x73   :  { %1736 = vmatpush1.bf16.msra.mxu0 %v12504_v37  ;;  %v12560_v37 = vld [vmem:[%s18601_s1 + $0x6f4] ss:$24 sps:$4 sm:$0xff]  }
  0x74   :  { %1737 = vmatprep.subr.bf16.mxu0 %v12512_v38  ;;  %v12567_v38 = vld [vmem:[%s18601_s1 + $0x698] ss:$24 sps:$4 sm:$0xff]  }
  0x75   :  { %1949 = vmatpush1.bf16.msra.mxu1 %v12525_v50  ;;  %v12581_v50 = vld [vmem:[%s18601_s1 + $0x6fc] ss:$24 sps:$4 sm:$0xff]  }
  0x76   :  { %1950 = vmatprep.subr.bf16.mxu1 %v12533_v51  ;;  %v14316_v51 = vpack.c.bf16 %v13977_v8, %v13977_v8  ;;  %v12570_v8 = vld [vmem:[%s18601_s1 + $0x750] ss:$24 sps:$4 sm:$0xff]  }
  0x77   :  { %1738 = vmatpush1.bf16.msra.mxu0 %v12510_v44  ;;  %v12564_v44 = vld [vmem:[%s18601_s1 + $0x720] ss:$24 sps:$4 sm:$0xff]  }
  0x78   :  { %1739 = vmatprep.subr.bf16.mxu0 %v12518_v46  ;;  %v12573_v46 = vld [vmem:[%s18601_s1 + $0x6c8] ss:$24 sps:$4 sm:$0xff]  }
  0x79   :  { %1951 = vmatpush1.bf16.msra.mxu1 %v12531_v2  ;;  %v12578_v2 = vld [vmem:[%s18601_s1 + $0x14] ss:$24 sps:$4 sm:$0xff]  }
  0x7a   :  { %1952 = vmatprep.subr.bf16.mxu1 %v12539_v4  ;;  %v12585_v4 = vld [vmem:[%s18601_s1 + $0x728] ss:$24 sps:$4 sm:$0xff]  }
  0x7b   :  { %1740 = vmatpush1.bf16.msra.mxu0 %v12516_v52  ;;  %v12572_v52 = vld [vmem:[%s18601_s1 + $0x754] ss:$24 sps:$4 sm:$0xff]  }
  0x7c   :  { %1741 = vmatprep.subr.bf16.mxu0 %v12524_v53  ;;  %v12579_v53 = vld [vmem:[%s18601_s1 + $0x6f8] ss:$24 sps:$4 sm:$0xff]  }
  0x7d   :  { %1953 = vmatpush1.bf16.msra.mxu1 %v12537_v9  ;;  %v12582_v9 = vld [vmem:[%s18601_s1 + $0x40] ss:$24 sps:$4 sm:$0xff]  }
  0x7e   :  { %1954 = vmatprep.subr.bf16.mxu1 %v12545_v11  ;;  %v12590_v11 = vld [vmem:[%s18601_s1 + $0x74] ss:$24 sps:$4 sm:$0xff]  }
  0x7f   :  { %1742 = vmatpush1.bf16.msra.mxu0 %v12522_v6  ;;  %v12593_v6 = vld [vmem:[%s18601_s1 + $0x75c] ss:$24 sps:$4 sm:$0xff]  }
  0x80   :  { %1782 = vmatprep.subr.bf16.mxu0 %v12530_v45  ;;  %v12576_v45 = vld [vmem:[%s18601_s1 + $0x10] ss:$24 sps:$4 sm:$0xff]  }
  0x81   :  { %1955 = vmatpush1.bf16.msra.mxu1 %v12543_v17  ;;  %v12597_v17 = vld [vmem:[%s18601_s1 + $0xd0] ss:$24 sps:$4 sm:$0xff]  }
  0x82   :  { %1744 = vmatmul.mubr.bf16.vlgmr.msra.gmra.mrb[0].mxu0 %v13833_v1  ;;  %1995 = vmatprep.subr.bf16.mxu1 %v12551_v18  ;;  %v12602_v18 = vld [vmem:[%s18601_s1 + $0x104] ss:$24 sps:$4 sm:$0xff]  }
  0x83   :  { %1783 = vmatpush1.bf16.msra.mxu0 %v12528_v13  ;;  %1753 = vmatprep.mubr.bf16.mxu0 %v14210_v14  ;;  %v12588_v13 = vld [vmem:[%s18601_s1 + $0x70] ss:$24 sps:$4 sm:$0xff]  }
  0x84   :  { %1784 = vmatprep.subr.bf16.mxu0 %v12536_v15  ;;  %1957 = vmatmul.mubr.bf16.vlgmr.msra.gmra.mrb[0].mxu1 %v13833_v1  ;;  %v12594_v15 = vld [vmem:[%s18601_s1 + $0xa0] ss:$24 sps:$4 sm:$0xff]  }
  0x85   :  { %1996 = vmatpush1.bf16.msra.mxu1 %v12549_v49  ;;  %1966 = vmatprep.mubr.bf16.mxu1 %v14210_v14  ;;  %v12609_v49 = vld [vmem:[%s18601_s1 + $0x190] ss:$24 sps:$4 sm:$0xff]  }
  0x86   :  { %1997 = vmatprep.subr.bf16.mxu1 %v12557_v63  ;;  %v12614_v63 = vld [vmem:[%s18601_s1 + $0x1c4] ss:$24 sps:$4 sm:$0xff]  }
  0x87   :  { %1785 = vmatpush1.bf16.msra.mxu0 %v12534_v60  ;;  %v12600_v60 = vld [vmem:[%s18601_s1 + $0x100] ss:$24 sps:$4 sm:$0xff]  }
  0x88   :  { %1786 = vmatprep.subr.bf16.mxu0 %v12542_v58  ;;  %v14399_v58 = vpack.c.bf16 %v14061_v57, %v14061_v57  ;;  %v12611_v57 = vld [vmem:[%s18601_s1 + $0x194] ss:$24 sps:$4 sm:$0xff]  }
  0x89   :  { %1998 = vmatpush1.bf16.msra.mxu1 %v12555_v23  ;;  %v12620_v23 = vld [vmem:[%s18601_s1 + $0x224] ss:$24 sps:$4 sm:$0xff]  }
  0x8a   :  { %1754 = vmatmul.mubr.bf16.gmra.mrb[4].mxu0 %v14244_v55  ;;  %1999 = vmatprep.subr.bf16.mxu1 %v12563_v27  ;;  %v12618_v27 = vld [vmem:[%s18601_s1 + $0x220] ss:$24 sps:$4 sm:$0xff]  }
  0x8b   :  { %1787 = vmatpush1.bf16.msra.mxu0 %v12540_v26  ;;  %1763 = vmatprep.mubr.bf16.mxu0 %v14252_v42  ;;  %v12612_v26 = vld [vmem:[%s18601_s1 + $0x1c0] ss:$24 sps:$4 sm:$0xff]  }
  0x8c   :  { %1788 = vmatprep.subr.bf16.mxu0 %v12548_v35  ;;  %1967 = vmatmul.mubr.bf16.gmra.mrb[4].mxu1 %v14244_v55  ;;  %v12615_v35 = vld [vmem:[%s18601_s1 + $0x1f0] ss:$24 sps:$4 sm:$0xff]  }
  0x8d   :  { %2000 = vmatpush1.bf16.msra.mxu1 %v12561_v30  ;;  %1976 = vmatprep.mubr.bf16.mxu1 %v14252_v42  ;;  %v12626_v30 = vld [vmem:[%s18601_s1 + $0x284] ss:$24 sps:$4 sm:$0xff]  }
  0x8e   :  { %2001 = vmatprep.subr.bf16.mxu1 %v12569_v33  ;;  %v12624_v33 = vld [vmem:[%s18601_s1 + $0x280] ss:$24 sps:$4 sm:$0xff]  }
  0x8f   :  { %1789 = vmatpush1.bf16.msra.mxu0 %v12546_v28  ;;  %v12623_v28 = vld [vmem:[%s18601_s1 + $0x254] ss:$24 sps:$4 sm:$0xff]  }
  0x90   :  { %1790 = vmatprep.subr.bf16.mxu0 %v12554_v29  ;;  %v12621_v29 = vld [vmem:[%s18601_s1 + $0x250] ss:$24 sps:$4 sm:$0xff]  }
  0x91   :  { %2002 = vmatpush1.bf16.msra.mxu1 %v12567_v38  ;;  %v12632_v38 = vld [vmem:[%s18601_s1 + $0x2e4] ss:$24 sps:$4 sm:$0xff]  }
  0x92   :  { %1764 = vmatmul.mubr.bf16.gmra.mrb[8].mxu0 %v14038_v40  ;;  %2003 = vmatprep.subr.bf16.mxu1 %v12575_v47  ;;  %v12630_v47 = vld [vmem:[%s18601_s1 + $0x2e0] ss:$24 sps:$4 sm:$0xff]  }
  0x93   :  { %1791 = vmatpush1.bf16.msra.mxu0 %v12552_v34  ;;  %1773 = vmatprep.mubr.bf16.mxu0 %v14284_v36  ;;  %v12629_v34 = vld [vmem:[%s18601_s1 + $0x2b4] ss:$24 sps:$4 sm:$0xff]  }
  0x94   :  { %1792 = vmatprep.subr.bf16.mxu0 %v12560_v37  ;;  %1977 = vmatmul.mubr.bf16.gmra.mrb[8].mxu1 %v14038_v40  ;;  %v12627_v37 = vld [vmem:[%s18601_s1 + $0x2b0] ss:$24 sps:$4 sm:$0xff]  }
  0x95   :  { %2004 = vmatpush1.bf16.msra.mxu1 %v12573_v46  ;;  %1986 = vmatprep.mubr.bf16.mxu1 %v14284_v36  ;;  %v12636_v46 = vld [vmem:[%s18601_s1 + $0x340] ss:$24 sps:$4 sm:$0xff]  }
  0x96   :  { %2005 = vmatprep.subr.bf16.mxu1 %v12581_v50  ;;  %v12641_v50 = vld [vmem:[%s18601_s1 + $0x374] ss:$24 sps:$4 sm:$0xff]  }
  0x97   :  { %1793 = vmatpush1.bf16.msra.mxu0 %v12558_v10  ;;  %v12635_v10 = vld [vmem:[%s18601_s1 + $0x314] ss:$24 sps:$4 sm:$0xff]  }
  0x98   :  { %1794 = vmatprep.subr.bf16.mxu0 %v12566_v41  ;;  %v12633_v41 = vld [vmem:[%s18601_s1 + $0x310] ss:$24 sps:$4 sm:$0xff]  }
  0x99   :  { %2006 = vmatpush1.bf16.msra.mxu1 %v12579_v53  ;;  %v12644_v53 = vld [vmem:[%s18601_s1 + $0x3a4] ss:$24 sps:$4 sm:$0xff]  }
  0x9a   :  { %1774 = vmatmul.mubr.bf16.gmra.mrb[12].mxu0 %v14316_v51  ;;  %2007 = vmatprep.subr.bf16.mxu1 %v12587_v59  ;;  %v12647_v59 = vld [vmem:[%s18601_s1 + $0x3d4] ss:$24 sps:$4 sm:$0xff]  }
  0x9b   :  { %1795 = vmatpush1.bf16.msra.mxu0 %v12564_v44  ;;  %1814 = vmatprep.mubr.bf16.mxu0 %v18614_v43  ;;  %v12638_v44 = vld [vmem:[%s18601_s1 + $0x344] ss:$24 sps:$4 sm:$0xff]  }
  0x9c   :  { %1796 = vmatprep.subr.bf16.mxu0 %v12572_v52  ;;  %1987 = vmatmul.mubr.bf16.gmra.mrb[12].mxu1 %v14316_v51  ;;  %v12639_v52 = vld [vmem:[%s18601_s1 + $0x370] ss:$24 sps:$4 sm:$0xff]  }
  0x9d   :  { %2008 = vmatpush1.bf16.msra.mxu1 %v12585_v4  ;;  %2027 = vmatprep.mubr.bf16.mxu1 %v18614_v43  ;;  %v12656_v4 = vld [vmem:[%s18601_s1 + $0x464] ss:$24 sps:$4 sm:$0xff]  }
  0x9e   :  { %2009 = vmatprep.subr.bf16.mxu1 %v12593_v6  ;;  %v12654_v6 = vld [vmem:[%s18601_s1 + $0x460] ss:$24 sps:$4 sm:$0xff]  }
  0x9f   :  { %1797 = vmatpush1.bf16.msra.mxu0 %v12570_v8  ;;  %v12650_v8 = vld [vmem:[%s18601_s1 + $0x404] ss:$24 sps:$4 sm:$0xff]  }
  0xa0   :  { %2066 = vmatprep.subr.bf16.mxu0 %v12578_v2  ;;  %v12648_v2 = vld [vmem:[%s18601_s1 + $0x400] ss:$24 sps:$4 sm:$0xff]  }
  0xa1   :  { %2010 = vmatpush1.bf16.msra.mxu1 %v12591_v7  ;;  %v2351_v7 = vld [vmem:[%s18605_s5] sm:$0xff] }
  0xa2   :  { %1815 = vmatmul.mubr.bf16.vlgmr.msra.gmra.mrb[0].mxu0 %v13858_v12 }
  0xa3   :  { %2067 = vmatpush1.bf16.msra.mxu0 %v12576_v45  ;;  %1824 = vmatprep.mubr.bf16.mxu0 %v18614_v43  ;;  %v2368_v45 = vld [vmem:[%s18605_s5 + $0x88] sm:$0xff] }
  0xa4   :  { %2068 = vmatprep.subr.bf16.mxu0 %v12584_v0  ;;  %2028 = vmatmul.mubr.bf16.vlgmr.msra.gmra.mrb[0].mxu1 %v13858_v12 }
  0xa5   :  { %2037 = vmatprep.mubr.bf16.mxu1 %v18614_v43 }
  0xa7   :  { %2069 = vmatpush1.bf16.msra.mxu0 %v12582_v9 }
  0xa8   :  { %2070 = vmatprep.subr.bf16.mxu0 %v12590_v11  ;;  %v12657_v11 = vld [vmem:[%s18601_s1 + $0x490] ss:$24 sps:$4 sm:$0xff]  }
  0xaa   :  { %1825 = vmatmul.mubr.bf16.gmra.mrb[4].mxu0 %v14022_v32 }
  0xab   :  { %2071 = vmatpush1.bf16.msra.mxu0 %v12588_v13  ;;  %1834 = vmatprep.mubr.bf16.mxu0 %v18614_v43  ;;  %v2369_v13 = vld [vmem:[%s18605_s5 + $0x90] sm:$0xff] }
  0xac   :  { %2072 = vmatprep.subr.bf16.mxu0 %v12596_v31  ;;  %2038 = vmatmul.mubr.bf16.gmra.mrb[4].mxu1 %v14022_v32  ;;  %v2370_v31 = vld [vmem:[%s18605_s5 + $0x98] sm:$0xff] }
  0xad   :  { %2047 = vmatprep.mubr.bf16.mxu1 %v18614_v43 }
  0xaf   :  { %2073 = vmatpush1.bf16.msra.mxu0 %v12594_v15  ;;  %v14549_v15 = vpack.c.bf16 %v2370_v31, %v2369_v13  ;;  %v2365_v31 = vld [vmem:[%s18605_s5 + $0x70] sm:$0xff] }
  0xb0   :  { %2074 = vmatprep.subr.bf16.mxu0 %v12599_v16  ;;  %v2353_v16 = vld [vmem:[%s18605_s5 + $0x10] sm:$0xff] }
  0xb2   :  { %1835 = vmatmul.mubr.bf16.gmra.mrb[8].mxu0 %v14066_v61 }
  0xb3   :  { %2075 = vmatpush1.bf16.msra.mxu0 %v12597_v17  ;;  %1844 = vmatprep.mubr.bf16.mxu0 %v18614_v43  ;;  %v2354_v17 = vld [vmem:[%s18605_s5 + $0x18] sm:$0xff] }
  0xb4   :  { %2076 = vmatprep.subr.bf16.mxu0 %v12602_v18  ;;  %2048 = vmatmul.mubr.bf16.gmra.mrb[8].mxu1 %v14066_v61  ;;  %v14557_v18 = vpack.c.bf16 %v2354_v17, %v2353_v16  ;;  %v2366_v16 = vld [vmem:[%s18605_s5 + $0x78] sm:$0xff] }
  0xb5   :  { %2057 = vmatprep.mubr.bf16.mxu1 %v18614_v43  ;;  %v14701_v17 = vpack.c.bf16 %v2366_v16, %v2365_v31 }
  0xb7   :  { %2077 = vmatpush1.bf16.msra.mxu0 %v12600_v60  ;;  %v12660_v60 = vld [vmem:[%s18601_s1 + $0x4c0] ss:$24 sps:$4 sm:$0xff]  }
  0xb8   :  { %2078 = vmatprep.subr.bf16.mxu0 %v12605_v39  ;;  %v12665_v39 = vld [vmem:[%s18601_s1 + $0x4f4] ss:$24 sps:$4 sm:$0xff]  }
  0xba   :  { %1845 = vmatmul.mubr.bf16.gmra.mrb[12].mxu0 %v14399_v58 }
  0xbb   :  { %2079 = vmatpush1.bf16.msra.mxu0 %v12603_v19  ;;  %2098 = vmatprep.mubr.bf16.mxu0 %v13801_v54  ;;  %v12617_v54 = vld [vmem:[%s18601_s1 + $0x1f4] ss:$24 sps:$4 sm:$0xff]   ;;  %v2371_v19 = vld [vmem:[%s18605_s5 + $0xa0] sm:$0xff] }
  0xbc   :  { %2080 = vmatprep.subr.bf16.mxu0 %v12608_v5  ;;  %2058 = vmatmul.mubr.bf16.gmra.mrb[12].mxu1 %v14399_v58  ;;  %v2372_v5 = vld [vmem:[%s18605_s5 + $0xa8] sm:$0xff] }
  0xbf   :  { %2081 = vmatpush1.bf16.msra.mxu0 %v12606_v21  ;;  %v14573_v21 = vpack.c.bf16 %v2372_v5, %v2371_v19  ;;  %v12678_v19 = vld [vmem:[%s18601_s1 + $0x5e0] ss:$24 sps:$4 sm:$0xff]   ;;  %v12683_v5 = vld [vmem:[%s18601_s1 + $0x614] ss:$24 sps:$4 sm:$0xff]  }
  0xc0   :  { %2082 = vmatprep.subr.bf16.mxu0 %v12611_v57  ;;  %v2355_v57 = vld [vmem:[%s18605_s5 + $0x20] sm:$0xff] }
  0xc3   :  { %2083 = vmatpush1.bf16.msra.mxu0 %v12609_v49  ;;  %v2356_v49 = vld [vmem:[%s18605_s5 + $0x28] sm:$0xff] }
  0xc4   :  { %2084 = vmatprep.subr.bf16.mxu0 %v12614_v63  ;;  %v14581_v63 = vpack.c.bf16 %v2356_v49, %v2355_v57  ;;  %v12681_v49 = vld [vmem:[%s18601_s1 + $0x610] ss:$24 sps:$4 sm:$0xff]  }
  0xc7   :  { %2085 = vmatpush1.bf16.msra.mxu0 %v12612_v26  ;;  %v12663_v26 = vld [vmem:[%s18601_s1 + $0x4f0] ss:$24 sps:$4 sm:$0xff]  }
  0xc8   :  { %2086 = vmatprep.subr.bf16.mxu0 %v12617_v54  ;;  %v12668_v54 = vld [vmem:[%s18601_s1 + $0x524] ss:$24 sps:$4 sm:$0xff]  }
  0xcb   :  { %2087 = vmatpush1.bf16.msra.mxu0 %v12615_v35  ;;  %v2373_v35 = vld [vmem:[%s18605_s5 + $0xb0] sm:$0xff] }
  0xcc   :  { %2088 = vmatprep.subr.bf16.mxu0 %v12620_v23  ;;  %v2374_v23 = vld [vmem:[%s18605_s5 + $0xb8] sm:$0xff] }
  0xcf   :  { %2089 = vmatpush1.bf16.msra.mxu0 %v12618_v27  ;;  %v14597_v27 = vpack.c.bf16 %v2374_v23, %v2373_v35  ;;  %v12689_v35 = vld [vmem:[%s18601_s1 + $0x674] ss:$24 sps:$4 sm:$0xff]   ;;  %v12687_v23 = vld [vmem:[%s18601_s1 + $0x670] ss:$24 sps:$4 sm:$0xff]  }
  0xd0   :  { %2090 = vmatprep.subr.bf16.mxu0 %v12623_v28  ;;  %v2357_v28 = vld [vmem:[%s18605_s5 + $0x30] sm:$0xff] }
  0xd3   :  { %2091 = vmatpush1.bf16.msra.mxu0 %v12621_v29  ;;  %v2358_v29 = vld [vmem:[%s18605_s5 + $0x38] sm:$0xff] }
  0xd4   :  { %2092 = vmatprep.subr.bf16.mxu0 %v12626_v30  ;;  %v14605_v30 = vpack.c.bf16 %v2358_v29, %v2357_v28  ;;  %v12695_v28 = vld [vmem:[%s18601_s1 + $0x6d4] ss:$24 sps:$4 sm:$0xff]   ;;  %v12693_v29 = vld [vmem:[%s18601_s1 + $0x6d0] ss:$24 sps:$4 sm:$0xff]  }
  0xd7   :  { %2093 = vmatpush1.bf16.msra.mxu0 %v12624_v33  ;;  %v12666_v33 = vld [vmem:[%s18601_s1 + $0x520] ss:$24 sps:$4 sm:$0xff]  }
  0xd8   :  { %2094 = vmatprep.subr.bf16.mxu0 %v12629_v34  ;;  %v12671_v34 = vld [vmem:[%s18601_s1 + $0x554] ss:$24 sps:$4 sm:$0xff]  }
  0xdb   :  { %2095 = vmatpush1.bf16.msra.mxu0 %v12627_v37  ;;  %v2375_v37 = vld [vmem:[%s18605_s5 + $0xc0] sm:$0xff] }
  0xdc   :  { %2096 = vmatprep.subr.bf16.mxu0 %v12632_v38  ;;  %v2376_v38 = vld [vmem:[%s18605_s5 + $0xc8] sm:$0xff] }
  0xdf   :  { %2097 = vmatpush1.bf16.msra.mxu0 %v12630_v47  ;;  %v14621_v47 = vpack.c.bf16 %v2376_v38, %v2375_v37  ;;  %v12702_v37 = vld [vmem:[%s18601_s1 + $0x760] ss:$24 sps:$4 sm:$0xff]  }
  0xe0   :  { %2137 = vmatprep.subr.bf16.mxu0 %v12635_v10  ;;  %v2359_v10 = vld [vmem:[%s18605_s5 + $0x40] sm:$0xff] }
  0xe2   :  { %2099 = vmatmul.mubr.bf16.vlgmr.msra.gmra.mrb[16].mxu0 %v13892_v25  ;;  %v12642_v25 = vld [vmem:[%s18601_s1 + $0x3a0] ss:$24 sps:$4 sm:$0xff]  }
  0xe3   :  { %2138 = vmatpush1.bf16.msra.mxu0 %v12633_v41  ;;  %2108 = vmatprep.mubr.bf16.mxu0 %v13939_v48  ;;  %v12645_v48 = vld [vmem:[%s18601_s1 + $0x3d0] ss:$24 sps:$4 sm:$0xff]  }
  0xe4   :  { %2139 = vmatprep.subr.bf16.mxu0 %v12638_v44  ;;  %v2360_v41 = vld [vmem:[%s18605_s5 + $0x48] sm:$0xff] }
  0xe5   :  { %v14629_v44 = vpack.c.bf16 %v2360_v41, %v2359_v10 }
  0xe7   :  { %2140 = vmatpush1.bf16.msra.mxu0 %v12636_v46  ;;  %v12669_v46 = vld [vmem:[%s18601_s1 + $0x550] ss:$24 sps:$4 sm:$0xff]  }
  0xe8   :  { %2141 = vmatprep.subr.bf16.mxu0 %v12641_v50  ;;  %v12674_v50 = vld [vmem:[%s18601_s1 + $0x584] ss:$24 sps:$4 sm:$0xff]  }
  0xea   :  { %2109 = vmatmul.mubr.bf16.gmra.mrb[20].mxu0 %v13949_v56  ;;  %v12653_v56 = vld [vmem:[%s18601_s1 + $0x434] ss:$24 sps:$4 sm:$0xff]  }
  0xeb   :  { %2142 = vmatpush1.bf16.msra.mxu0 %v12639_v52  ;;  %2118 = vmatprep.mubr.bf16.mxu0 %v14001_v20  ;;  %v12651_v20 = vld [vmem:[%s18601_s1 + $0x430] ss:$24 sps:$4 sm:$0xff]  }
  0xec   :  { %2143 = vmatprep.subr.bf16.mxu0 %v12644_v53  ;;  %v2377_v52 = vld [vmem:[%s18605_s5 + $0xd0] sm:$0xff]  ;;  %v2378_v53 = vld [vmem:[%s18605_s5 + $0xd8] sm:$0xff] }
  0xef   :  { %2144 = vmatpush1.bf16.msra.mxu0 %v12642_v25  ;;  %v14645_v25 = vpack.c.bf16 %v2378_v53, %v2377_v52 }
  0xf0   :  { %2145 = vmatprep.subr.bf16.mxu0 %v12647_v59  ;;  %v2361_v59 = vld [vmem:[%s18605_s5 + $0x50] sm:$0xff] }
  0xf2   :  { %2119 = vmatmul.mubr.bf16.gmra.mrb[24].mxu0 %v14006_v22  ;;  %v12659_v22 = vld [vmem:[%s18601_s1 + $0x494] ss:$24 sps:$4 sm:$0xff]  }
  0xf3   :  { %2146 = vmatpush1.bf16.msra.mxu0 %v12645_v48  ;;  %2128 = vmatprep.mubr.bf16.mxu0 %v14010_v24  ;;  %v2367_v24 = vld [vmem:[%s18605_s5 + $0x80] sm:$0xff]  ;;  %v2362_v48 = vld [vmem:[%s18605_s5 + $0x58] sm:$0xff] }
  0xf4   :  { %2147 = vmatprep.subr.bf16.mxu0 %v12650_v8  ;;  %v14525_v0 = vpack.c.bf16 %v2368_v45, %v2367_v24  ;;  %v14653_v8 = vpack.c.bf16 %v2362_v48, %v2361_v59  ;;  %v2364_v24 = vld [vmem:[%s18605_s5 + $0x68] sm:$0xff] }
  0xf6   :  { %11731 = vmatprep.subr.bf16.mxu1 %v14525_v0 }
  0xf7   :  { %2148 = vmatpush1.bf16.msra.mxu0 %v12648_v2  ;;  %v12672_v2 = vld [vmem:[%s18601_s1 + $0x580] ss:$24 sps:$4 sm:$0xff]  }
  0xf8   :  { %2149 = vmatprep.subr.bf16.mxu0 %v12653_v56  ;;  %v12677_v56 = vld [vmem:[%s18601_s1 + $0x5b4] ss:$24 sps:$4 sm:$0xff]  }
  0xfa   :  { %2129 = vmatmul.mubr.bf16.gmra.mrb[28].mxu0 %v14071_v62  ;;  %v2352_v62 = vld [vmem:[%s18605_s5 + $0x8] sm:$0xff] }
  0xfb   :  { %2150 = vmatpush1.bf16.msra.mxu0 %v12651_v20  ;;  %2169 = vmatprep.mubr.bf16.mxu0 %v14076_v3  ;;  %v14533_v9 = vpack.c.bf16 %v2352_v62, %v2351_v7  ;;  %v12662_v3 = vld [vmem:[%s18601_s1 + $0x4c4] ss:$24 sps:$4 sm:$0xff]   ;;  %v12675_v7 = vld [vmem:[%s18601_s1 + $0x5b0] ss:$24 sps:$4 sm:$0xff]  }
  0xfc   :  { %2151 = vmatprep.subr.bf16.mxu0 %v12656_v4  ;;  %v2379_v20 = vld [vmem:[%s18605_s5 + $0xe0] sm:$0xff]  ;;  %v2380_v4 = vld [vmem:[%s18605_s5 + $0xe8] sm:$0xff] }
  0xfd   :  { %11733 = vmatpush3.bf16.msra.mxu1 %v14533_v9  ;;  %v12680_v62 = vld [vmem:[%s18601_s1 + $0x5e4] ss:$24 sps:$4 sm:$0xff]  }
  0xfe   :  { %11735 = vmatprep.subr.bf16.mxu1 %v14549_v15 }
  0xff   :  { %2152 = vmatpush1.bf16.msra.mxu0 %v12654_v6  ;;  %v14669_v6 = vpack.c.bf16 %v2380_v4, %v2379_v20 }
 0x100   :  { %2153 = vmatprep.subr.bf16.mxu0 %v12659_v22  ;;  %v2363_v22 = vld [vmem:[%s18605_s5 + $0x60] sm:$0xff] }
 0x101   :  { %11737 = vmatpush3.bf16.msra.mxu1 %v14557_v18  ;;  %v14677_v45 = vpack.c.bf16 %v2364_v24, %v2363_v22 }
 0x102   :  { %11739 = vmatprep.subr.bf16.mxu1 %v14573_v21 }
 0x103   :  { %2154 = vmatpush1.bf16.msra.mxu0 %v12657_v11  ;;  %v2381_v11 = vld [vmem:[%s18605_s5 + $0xf0] sm:$0xff] }
 0x104   :  { %2155 = vmatprep.subr.bf16.mxu0 %v12662_v3  ;;  %v2382_v3 = vld [vmem:[%s18605_s5 + $0xf8] sm:$0xff] }
 0x105   :  { %11741 = vmatpush3.bf16.msra.mxu1 %v14581_v63  ;;  %v14693_v13 = vpack.c.bf16 %v2382_v3, %v2381_v11 }
 0x106   :  { %11743 = vmatprep.subr.bf16.mxu1 %v14597_v27 }
 0x107   :  { %2156 = vmatpush1.bf16.msra.mxu0 %v12660_v60  ;;  %v2399_v60 = vld [vmem:[%s18605_s5 + $0x180] sm:$0xff] }
 0x108   :  { %2157 = vmatprep.subr.bf16.mxu0 %v12665_v39  ;;  %v2400_v39 = vld [vmem:[%s18605_s5 + $0x188] sm:$0xff] }
 0x109   :  { %11745 = vmatpush3.bf16.msra.mxu1 %v14605_v30  ;;  %v14717_v57 = vpack.c.bf16 %v2400_v39, %v2399_v60 }
 0x10a   :  { %11747 = vmatprep.subr.bf16.mxu1 %v14621_v47 }
 0x10b   :  { %2158 = vmatpush1.bf16.msra.mxu0 %v12663_v26  ;;  %v12686_v26 = vld [vmem:[%s18601_s1 + $0x644] ss:$24 sps:$4 sm:$0xff]  }
 0x10c   :  { %2159 = vmatprep.subr.bf16.mxu0 %v12668_v54  ;;  %v12684_v54 = vld [vmem:[%s18601_s1 + $0x640] ss:$24 sps:$4 sm:$0xff]  }
 0x10d   :  { %11749 = vmatpush3.bf16.msra.mxu1 %v14629_v44 }
 0x10e   :  { %11751 = vmatprep.subr.bf16.mxu1 %v14645_v25 }
 0x10f   :  { %2160 = vmatpush1.bf16.msra.mxu0 %v12666_v33  ;;  %v12701_v33 = vld [vmem:[%s18601_s1 + $0x734] ss:$24 sps:$4 sm:$0xff]  }
 0x110   :  { %2161 = vmatprep.subr.bf16.mxu0 %v12671_v34  ;;  %v12699_v34 = vld [vmem:[%s18601_s1 + $0x730] ss:$24 sps:$4 sm:$0xff]  }
 0x111   :  { %11753 = vmatpush3.bf16.msra.mxu1 %v14653_v8 }
 0x112   :  { %11755 = vmatprep.subr.bf16.mxu1 %v14669_v6 }
 0x113   :  { %2162 = vmatpush1.bf16.msra.mxu0 %v12669_v46 }
 0x114   :  { %2163 = vmatprep.subr.bf16.mxu0 %v12674_v50 }
 0x115   :  { %11757 = vmatpush3.bf16.msra.mxu1 %v14677_v45 }
 0x116   :  { %11759 = vmatprep.subr.bf16.mxu1 %v14693_v13 }
 0x117   :  { %2164 = vmatpush1.bf16.msra.mxu0 %v12672_v2 }
 0x118   :  { %2165 = vmatprep.subr.bf16.mxu0 %v12677_v56 }
 0x119   :  { %11761 = vmatpush3.bf16.msra.mxu1 %v14701_v17 }
 0x11a   :  { %11763 = vmatprep.subr.bf16.mxu1 %v14717_v57 }
 0x11b   :  { %2166 = vmatpush1.bf16.msra.mxu0 %v12675_v7 }
 0x11c   :  { %2167 = vmatprep.subr.bf16.mxu0 %v12680_v62 }
 0x11f   :  { %2168 = vmatpush1.bf16.msra.mxu0 %v12678_v19 }
 0x120   :  { %2208 = vmatprep.subr.bf16.mxu0 %v12683_v5 }
 0x122   :  { %2170 = vmatmul.mubr.bf16.vlgmr.msra.gmra.mrb[16].mxu0 %v13833_v1  ;;  %v12692_v1 = vld [vmem:[%s18601_s1 + $0x6a4] ss:$24 sps:$4 sm:$0xff]  }
 0x123   :  { %2209 = vmatpush1.bf16.msra.mxu0 %v12681_v49  ;;  %2179 = vmatprep.mubr.bf16.mxu0 %v14210_v14  ;;  %v12690_v14 = vld [vmem:[%s18601_s1 + $0x6a0] ss:$24 sps:$4 sm:$0xff]  }
 0x124   :  { %2210 = vmatprep.subr.bf16.mxu0 %v12686_v26 }
 0x127   :  { %2211 = vmatpush1.bf16.msra.mxu0 %v12684_v54 }
 0x128   :  { %2212 = vmatprep.subr.bf16.mxu0 %v12689_v35 }
 0x12a   :  { %2180 = vmatmul.mubr.bf16.gmra.mrb[20].mxu0 %v14244_v55  ;;  %v12698_v55 = vld [vmem:[%s18601_s1 + $0x704] ss:$24 sps:$4 sm:$0xff]  }
 0x12b   :  { %2213 = vmatpush1.bf16.msra.mxu0 %v12687_v23  ;;  %2189 = vmatprep.mubr.bf16.mxu0 %v14252_v42  ;;  %v12696_v42 = vld [vmem:[%s18601_s1 + $0x700] ss:$24 sps:$4 sm:$0xff]  }
 0x12c   :  { %2214 = vmatprep.subr.bf16.mxu0 %v12692_v1 }
 0x12f   :  { %2215 = vmatpush1.bf16.msra.mxu0 %v12690_v14 }
 0x130   :  { %2216 = vmatprep.subr.bf16.mxu0 %v12695_v28 }
 0x132   :  { %2190 = vmatmul.mubr.bf16.gmra.mrb[24].mxu0 %v14038_v40  ;;  %v12704_v40 = vld [vmem:[%s18601_s1 + $0x764] ss:$24 sps:$4 sm:$0xff]  }
 0x133   :  { %2217 = vmatpush1.bf16.msra.mxu0 %v12693_v29  ;;  %2199 = vmatprep.mubr.bf16.mxu0 %v14284_v36 }
 0x134   :  { %2218 = vmatprep.subr.bf16.mxu0 %v12698_v55 }
 0x137   :  { %2219 = vmatpush1.bf16.msra.mxu0 %v12696_v42 }
 0x138   :  { %2220 = vmatprep.subr.bf16.mxu0 %v12701_v33 }
 0x13a   :  { %2200 = vmatmul.mubr.bf16.gmra.mrb[28].mxu0 %v14316_v51 }
 0x13b   :  { %2221 = vmatpush1.bf16.msra.mxu0 %v12699_v34  ;;  %2240 = vmatprep.mubr.bf16.mxu0 %v18614_v43 }
 0x13c   :  { %2222 = vmatprep.subr.bf16.mxu0 %v12704_v40 }
 0x13f   :  { %2223 = vmatpush1.bf16.msra.mxu0 %v12702_v37 }
 0x142   :  { %2241 = vmatmul.mubr.bf16.vlgmr.msra.gmra.mrb[16].mxu0 %v13858_v12 }
 0x143   :  { %2250 = vmatprep.mubr.bf16.mxu0 %v18614_v43 }
 0x14a   :  { %2251 = vmatmul.mubr.bf16.gmra.mrb[20].mxu0 %v14022_v32 }
 0x14b   :  { %2260 = vmatprep.mubr.bf16.mxu0 %v18614_v43 }
 0x152   :  { %2261 = vmatmul.mubr.bf16.gmra.mrb[24].mxu0 %v14066_v61 }
 0x153   :  { %2270 = vmatprep.mubr.bf16.mxu0 %v18614_v43 }
 0x15a   :  { %2271 = vmatmul.mubr.bf16.gmra.mrb[28].mxu0 %v14399_v58 }
 0x175   :  { %v14780_v36 = vpop.f32.mrb[0].mxu0 }
 0x176   :  { %v14782_v51 = vpop.f32.mrb[1].mxu0 }
 0x177   :  { %v14784_v38 = vpop.f32.mrb[2].mxu0  ;;  %v14792_v41 = vpop.f32.mrb[0].mxu1 }
 0x178   :  { %v2279_v12 = vadd.f32 %v14784_v38, %v14780_v36  ;;  %v14788_v10 = vpop.f32.mrb[3].mxu0  ;;  %v14794_v61 = vpop.f32.mrb[1].mxu1 }
 0x179   :  { %v2291_v32 = vadd.f32 %v14788_v10, %v14782_v51  ;;  %18672 = vst [vmem:[#allocation5_spill] sm:$0xff] %v14794_v61  ;;  %v14798_v58 = vpop.f32.mrb[2].mxu1 }
 0x17a   :  { %v2303_v53 = vadd.f32 %v14798_v58, %v14792_v41  ;;  %v14805_v59 = vpop.f32.mrb[3].mxu1 }
 0x17b   :  { %18673 = vst [vmem:[#allocation6_spill] sm:$0xff] %v14805_v59  ;;  %v2315_v56 = vadd.f32 %v14805_v59, %v14794_v61  ;;  %v2444_v59 = vld [vmem:[%s18605_s5 + $0x2e8] sm:$0xff] }
 0x17d   :  { %v14796_v46 = vpop.f32.mrb[4].mxu0 }
 0x17e   :  { %v2280_v50 = vadd.f32 %v2279_v12, %v14796_v46  ;;  %v14801_v52 = vpop.f32.mrb[5].mxu0 }
 0x17f   :  { %v2292_v48 = vadd.f32 %v2291_v32, %v14801_v52  ;;  %v14808_v2 = vpop.f32.mrb[6].mxu0  ;;  %v14816_v24 = vpop.f32.mrb[4].mxu1 }
 0x180   :  { %v2281_v20 = vadd.f32 %v2280_v50, %v14808_v2  ;;  %v14813_v4 = vpop.f32.mrb[7].mxu0  ;;  %v2304_v7 = vadd.f32 %v2303_v53, %v14816_v24  ;;  %v14819_v62 = vpop.f32.mrb[5].mxu1 }
 0x181   :  { %v2293_v22 = vadd.f32 %v2292_v48, %v14813_v4  ;;  %18674 = vst [vmem:[#allocation7_spill] sm:$0xff] %v14819_v62  ;;  %v2316_v3 = vadd.f32 %v2315_v56, %v14819_v62  ;;  %v14824_v31 = vpop.f32.mrb[6].mxu1  ;;  %v2443_v62 = vld [vmem:[%s18605_s5 + $0x2e0] sm:$0xff] }
 0x182   :  { %18675 = vst [vmem:[#allocation8_spill] sm:$0xff] %v14824_v31  ;;  %v2305_v39 = vadd.f32 %v2304_v7, %v14824_v31  ;;  %v14830_v19 = vpop.f32.mrb[7].mxu1  ;;  %v11818_v61 = vpack.c.bf16 %v2444_v59, %v2443_v62  ;;  %v2445_v59 = vld [vmem:[%s18605_s5 + $0x2f0] sm:$0xff]  ;;  %v2446_v62 = vld [vmem:[%s18605_s5 + $0x2f8] sm:$0xff] }
 0x183   :  { %18676 = vst [vmem:[#allocation9_spill] sm:$0xff] %v14830_v19  ;;  %v2317_v26 = vadd.f32 %v2316_v3, %v14830_v19  ;;  %v2425_v19 = vld [vmem:[%s18605_s5 + $0x250] sm:$0xff] }
 0x185   :  { %v14821_v11 = vpop.f32.mrb[8].mxu0 }
 0x186   :  { %v2282_v16 = vadd.f32 %v2281_v20, %v14821_v11  ;;  %v14827_v60 = vpop.f32.mrb[9].mxu0 }
 0x187   :  { %v2294_v5 = vadd.f32 %v2293_v22, %v14827_v60  ;;  %v14833_v49 = vpop.f32.mrb[10].mxu0  ;;  %v14840_v1 = vpop.f32.mrb[8].mxu1 }
 0x188   :  { %v2283_v54 = vadd.f32 %v2282_v16, %v14833_v49  ;;  %v14837_v35 = vpop.f32.mrb[11].mxu0  ;;  %18677 = vst [vmem:[#allocation10_spill] sm:$0xff] %v14840_v1  ;;  %v2306_v14 = vadd.f32 %v2305_v39, %v14840_v1  ;;  %v14843_v28 = vpop.f32.mrb[9].mxu1 }
 0x189   :  { %v2295_v23 = vadd.f32 %v2294_v5, %v14837_v35  ;;  %18678 = vst [vmem:[#allocation11_spill] sm:$0xff] %v14843_v28  ;;  %v2318_v55 = vadd.f32 %v2317_v26, %v14843_v28  ;;  %v14848_v42 = vpop.f32.mrb[10].mxu1 }
 0x18a   :  { %18679 = vst [vmem:[#allocation12_spill] sm:$0xff] %v14848_v42  ;;  %v2307_v40 = vadd.f32 %v2306_v14, %v14848_v42  ;;  %v14854_v37 = vpop.f32.mrb[11].mxu1  ;;  %v2383_v14 = vld [vmem:[%s18605_s5 + $0x100] sm:$0xff] }
 0x18b   :  { %18680 = vst [vmem:[#allocation13_spill] sm:$0xff] %v14854_v37  ;;  %v2319_v50 = vadd.f32 %v2318_v55, %v14854_v37 }
 0x18d   :  { %v14845_v29 = vpop.f32.mrb[12].mxu0 }
 0x18e   :  { %v2284_v33 = vadd.f32 %v2283_v54, %v14845_v29  ;;  %v14851_v34 = vpop.f32.mrb[13].mxu0 }
 0x18f   :  { %v2296_v12 = vadd.f32 %v2295_v23, %v14851_v34  ;;  %v1850_v32 = vpop.f32.mrb[14].mxu0  ;;  %v14858_v7 = vpop.f32.mrb[12].mxu1 }
 0x190   :  { %v2285_v53 = vrot.slane %v2284_v33, 4  ;;  %v1851_v48 = vpop.f32.mrb[15].mxu0  ;;  %18681 = vst [vmem:[#allocation14_spill] sm:$0xff] %v14858_v7  ;;  %v14861_v16 = vadd.f32 %v2307_v40, %v14858_v7  ;;  %v14863_v39 = vpop.f32.mrb[13].mxu1  ;;  %v2384_v32 = vld [vmem:[%s18605_s5 + $0x108] sm:$0xff]  ;;  %v2431_v7 = vld [vmem:[%s18605_s5 + $0x280] sm:$0xff] }
 0x191   :  { %v2297_v56 = vrot.slane %v2296_v12, 4  ;;  %18682 = vst [vmem:[#allocation15_spill] sm:$0xff] %v14863_v39  ;;  %v2320_v26 = vadd.f32 %v2319_v50, %v14863_v39  ;;  %v2063_v54 = vpop.f32.mrb[14].mxu1 }
 0x192   :  { %v2286_v20 = vadd.f32 %v2285_v53, %v2284_v33  ;;  %v2064_v55 = vpop.f32.mrb[15].mxu1  ;;  %v2401_v53 = vld [vmem:[%s18605_s5 + $0x190] sm:$0xff]  ;;  %v14884_v54 = vpack.c.bf16 %v2384_v32, %v2383_v14  ;;  %v2432_v14 = vld [vmem:[%s18605_s5 + $0x288] sm:$0xff] }
 0x193   :  { %v2298_v22 = vadd.f32 %v2297_v56, %v2296_v12  ;;  %v2321_v12 = vrot.slane %v2320_v26, 4  ;;  %v2402_v56 = vld [vmem:[%s18605_s5 + $0x198] sm:$0xff]  ;;  %v2404_v55 = vld [vmem:[%s18605_s5 + $0x1a8] sm:$0xff]  ;;  %v14900_v32 = vpack.c.bf16 %v2432_v14, %v2431_v7 }
 0x194   :  { %v2287_v3 = vrot.slane %v2286_v20, 2  ;;  %18683 = vst [vmem:[#allocation16_spill] sm:$0xff] %v14884_v54  ;;  %v14892_v43 = vpack.c.bf16 %v2402_v56, %v2401_v53  ;;  %v2388_v53 = vld [vmem:[%s18605_s5 + $0x128] sm:$0xff]  ;;  %v2405_v56 = vld [vmem:[%s18605_s5 + $0x1b0] sm:$0xff] }
 0x195   :  { %v2299_v5 = vrot.slane %v2298_v22, 2  ;;  %v2322_v48 = vadd.f32 %v2321_v12, %v2320_v26  ;;  %v2403_v26 = vld [vmem:[%s18605_s5 + $0x1a0] sm:$0xff]  ;;  %11903 = vmatprep.subr.bf16.mxu0 %v14900_v32 }
 0x196   :  { %v2288_v23 = vadd.f32 %v2287_v3, %v2286_v20  ;;  %v2385_v20 = vld [vmem:[%s18605_s5 + $0x110] sm:$0xff]  ;;  %18684 = vst [vmem:[#allocation17_spill] sm:$0xff] %v14892_v43 }
 0x197   :  { %v2300_v33 = vadd.f32 %v2299_v5, %v2298_v22  ;;  %v2386_v22 = vld [vmem:[%s18605_s5 + $0x118] sm:$0xff]  ;;  %v2323_v3 = vrot.slane %v2322_v48, 2 }
 0x198   :  { %v2289_v40 = vrot.slane %v2288_v23, 1  ;;  %v14917_v7 = vpack.c.bf16 %v2386_v22, %v2385_v20  ;;  %v2433_v20 = vld [vmem:[%s18605_s5 + $0x290] sm:$0xff]  ;;  %v2434_v22 = vld [vmem:[%s18605_s5 + $0x298] sm:$0xff] }
 0x199   :  { %v2301_v50 = vrot.slane %v2300_v33, 1 }
 0x19a   :  { %v2290_v12 = vadd.f32 %v2289_v40, %v2288_v23  ;;  %v2416_v23 = vld [vmem:[%s18605_s5 + $0x208] sm:$0xff]  ;;  %v2387_v40 = vld [vmem:[%s18605_s5 + $0x120] sm:$0xff]  ;;  %18685 = vst [vmem:[#allocation18_spill] sm:$0xff] %v14917_v7 }
 0x19b   :  { %v2302_v5 = vadd.f32 %v2301_v50, %v2300_v33  ;;  %v2324_v33 = vadd.f32 %v2323_v3, %v2322_v48  ;;  %v2415_v50 = vld [vmem:[%s18605_s5 + $0x200] sm:$0xff]  ;;  %v2406_v3 = vld [vmem:[%s18605_s5 + $0x1b8] sm:$0xff] }
 0x19c   :  { %v14914_v48 = vpack.c.bf16 %v2416_v23, %v2415_v50  ;;  %v2417_v50 = vld [vmem:[%s18605_s5 + $0x210] sm:$0xff]  ;;  %v2390_v23 = vld [vmem:[%s18605_s5 + $0x138] sm:$0xff]  ;;  %v14962_v1 = vpack.c.bf16 %v2406_v3, %v2405_v56  ;;  %v2420_v56 = vld [vmem:[%s18605_s5 + $0x228] sm:$0xff] }
 0x19d   :  { %2511 = vmatprep.mubr.f32.mxu1 %v2302_v5  ;;  %v2325_v5 = vrot.slane %v2324_v33, 1  ;;  %v2391_v3 = vld [vmem:[%s18605_s5 + $0x140] sm:$0xff] }
 0x19e   :  { %2512 = vmatmul.mubr.f32.vlgmr.msra.gmra.mrb[16].mxu1 %v2290_v12  ;;  %v14927_v12 = vpack.c.bf16 %v2404_v55, %v2403_v26  ;;  %11905 = vmatpush3.bf16.msra.mxu0 %v14914_v48  ;;  %v2418_v26 = vld [vmem:[%s18605_s5 + $0x218] sm:$0xff]  ;;  %v2389_v55 = vld [vmem:[%s18605_s5 + $0x130] sm:$0xff]  ;;  %18688 = vst [vmem:[#allocation21_spill] sm:$0xff] %v14962_v1 }
 0x19f   :  { %11765 = vmatpush3.bf16.msra.mxu1 %v14884_v54  ;;  %v2326_v14 = vadd.f32 %v2325_v5, %v2324_v33  ;;  %v14951_v33 = vpack.c.bf16 %v2388_v53, %v2387_v40  ;;  %v2407_v5 = vld [vmem:[%s18605_s5 + $0x1c0] sm:$0xff]  ;;  %v2408_v54 = vld [vmem:[%s18605_s5 + $0x1c8] sm:$0xff]  ;;  %v14959_v42 = vpack.c.bf16 %v2418_v26, %v2417_v50  ;;  %v14987_v50 = vpack.c.bf16 %v2390_v23, %v2389_v55  ;;  %v2409_v26 = vld [vmem:[%s18605_s5 + $0x1d0] sm:$0xff] }
 0x1a0   :  { %11767 = vmatprep.subr.bf16.mxu1 %v14892_v43  ;;  %18686 = vst [vmem:[#allocation19_spill] sm:$0xff] %v14927_v12  ;;  %v14948_v43 = vpack.c.bf16 %v2434_v22, %v2433_v20  ;;  %v2435_v40 = vld [vmem:[%s18605_s5 + $0x2a0] sm:$0xff]  ;;  %v2436_v53 = vld [vmem:[%s18605_s5 + $0x2a8] sm:$0xff]  ;;  %v2437_v55 = vld [vmem:[%s18605_s5 + $0x2b0] sm:$0xff] }
 0x1a1   :  { %18687 = vst [vmem:[#allocation20_spill] sm:$0xff] %v14951_v33  ;;  %2581 = vmatprep.mubr.f32.mxu1 %v2326_v14  ;;  %v14971_v20 = vpack.c.bf16 %v2436_v53, %v2435_v40  ;;  %v2419_v22 = vld [vmem:[%s18605_s5 + $0x220] sm:$0xff]  ;;  %v2392_v14 = vld [vmem:[%s18605_s5 + $0x148] sm:$0xff]  ;;  %18689 = vst [vmem:[#allocation22_spill] sm:$0xff] %v14987_v50 }
 0x1a2   :  { %11907 = vmatprep.subr.bf16.mxu0 %v14948_v43  ;;  %v2410_v40 = vld [vmem:[%s18605_s5 + $0x1d8] sm:$0xff]  ;;  %v14995_v53 = vpack.c.bf16 %v2420_v56, %v2419_v22  ;;  %v2421_v22 = vld [vmem:[%s18605_s5 + $0x230] sm:$0xff] }
 0x1a3   :  { %11769 = vmatpush3.bf16.msra.mxu1 %v14917_v7  ;;  %11909 = vmatpush3.bf16.msra.mxu0 %v14959_v42  ;;  %v15000_v7 = vpack.c.bf16 %v2408_v54, %v2407_v5  ;;  %v2438_v23 = vld [vmem:[%s18605_s5 + $0x2b8] sm:$0xff]  ;;  %v2393_v54 = vld [vmem:[%s18605_s5 + $0x150] sm:$0xff]  ;;  %v15037_v37 = vpack.c.bf16 %v2410_v40, %v2409_v26  ;;  %v2396_v26 = vld [vmem:[%s18605_s5 + $0x168] sm:$0xff] }
 0x1a4   :  { %11771 = vmatprep.subr.bf16.mxu1 %v14927_v12  ;;  %11911 = vmatprep.subr.bf16.mxu0 %v14971_v20  ;;  %v2309_v12 = vrot.slane %v14861_v16, 4  ;;  %v2422_v56 = vld [vmem:[%s18605_s5 + $0x238] sm:$0xff] }
 0x1a5   :  { %18690 = vst [vmem:[#allocation23_spill] sm:$0xff] %v15000_v7  ;;  %v2394_v5 = vld [vmem:[%s18605_s5 + $0x158] sm:$0xff]  ;;  %v15032_v31 = vpack.c.bf16 %v2422_v56, %v2421_v22  ;;  %18692 = vst [vmem:[#allocation25_spill] sm:$0xff] %v15037_v37  ;;  %v2423_v22 = vld [vmem:[%s18605_s5 + $0x240] sm:$0xff] }
 0x1a6   :  { %v2310_v39 = vadd.f32 %v2309_v12, %v14861_v16  ;;  %v2424_v16 = vld [vmem:[%s18605_s5 + $0x248] sm:$0xff]  ;;  %v2395_v12 = vld [vmem:[%s18605_s5 + $0x160] sm:$0xff]  ;;  %v15059_v40 = vpack.c.bf16 %v2394_v5, %v2393_v54  ;;  %v2413_v56 = vld [vmem:[%s18605_s5 + $0x1f0] sm:$0xff] }
 0x1a7   :  { %11773 = vmatpush3.bf16.msra.mxu1 %v14951_v33  ;;  %v15008_v33 = vpack.c.bf16 %v2438_v23, %v2437_v55  ;;  %11913 = vmatpush3.bf16.msra.mxu0 %v14995_v53  ;;  %v15024_v55 = vpack.c.bf16 %v2392_v14, %v2391_v3  ;;  %v2411_v23 = vld [vmem:[%s18605_s5 + $0x1e0] sm:$0xff]  ;;  %v2440_v14 = vld [vmem:[%s18605_s5 + $0x2c8] sm:$0xff]  ;;  %v2441_v54 = vld [vmem:[%s18605_s5 + $0x2d0] sm:$0xff] }
 0x1a8   :  { %11775 = vmatprep.subr.bf16.mxu1 %v14962_v1  ;;  %v2412_v1 = vld [vmem:[%s18605_s5 + $0x1e8] sm:$0xff]  ;;  %v2439_v3 = vld [vmem:[%s18605_s5 + $0x2c0] sm:$0xff]  ;;  %18693 = vst [vmem:[#allocation26_spill] sm:$0xff] %v15059_v40  ;;  %v2442_v5 = vld [vmem:[%s18605_s5 + $0x2d8] sm:$0xff] }
 0x1a9   :  { %18691 = vst [vmem:[#allocation24_spill] sm:$0xff] %v15024_v55  ;;  %11915 = vmatprep.subr.bf16.mxu0 %v15008_v33  ;;  %v15068_v28 = vpack.c.bf16 %v2412_v1, %v2411_v23  ;;  %v2397_v1 = vld [vmem:[%s18605_s5 + $0x170] sm:$0xff]  ;;  %v2398_v23 = vld [vmem:[%s18605_s5 + $0x178] sm:$0xff] }
 0x1ab   :  { %11777 = vmatpush3.bf16.msra.mxu1 %v14987_v50  ;;  %v11810_v50 = vpack.c.bf16 %v2440_v14, %v2439_v3  ;;  %11917 = vmatpush3.bf16.msra.mxu0 %v15032_v31  ;;  %v2414_v3 = vld [vmem:[%s18605_s5 + $0x1f8] sm:$0xff]  ;;  %v11812_v14 = vpack.c.bf16 %v2424_v16, %v2423_v22  ;;  %18694 = vst [vmem:[#allocation27_spill] sm:$0xff] %v15068_v28 }
 0x1ac   :  { %11779 = vmatprep.subr.bf16.mxu1 %v15000_v7  ;;  %v2311_v7 = vrot.slane %v2310_v39, 2  ;;  %v2426_v22 = vld [vmem:[%s18605_s5 + $0x258] sm:$0xff]  ;;  %v15089_v16 = vpack.c.bf16 %v2396_v26, %v2395_v12  ;;  %v2427_v12 = vld [vmem:[%s18605_s5 + $0x260] sm:$0xff] }
 0x1ad   :  { %11919 = vmatprep.subr.bf16.mxu0 %v11810_v50 }
 0x1ae   :  { %18695 = vst [vmem:[#allocation28_spill] sm:$0xff] %v15089_v16 }
 0x1af   :  { %11781 = vmatpush3.bf16.msra.mxu1 %v15024_v55  ;;  %v11814_v55 = vpack.c.bf16 %v2442_v5, %v2441_v54  ;;  %11921 = vmatpush3.bf16.msra.mxu0 %v11812_v14  ;;  %v11816_v54 = vpack.c.bf16 %v2426_v22, %v2425_v19  ;;  %v2312_v5 = vadd.f32 %v2311_v7, %v2310_v39  ;;  %v2428_v19 = vld [vmem:[%s18605_s5 + $0x268] sm:$0xff]  ;;  %v2430_v22 = vld [vmem:[%s18605_s5 + $0x278] sm:$0xff] }
 0x1b0   :  { %11783 = vmatprep.subr.bf16.mxu1 %v15037_v37  ;;  %v15092_v37 = vpack.c.bf16 %v2414_v3, %v2413_v56  ;;  %v15107_v39 = vpack.c.bf16 %v2398_v23, %v2397_v1  ;;  %v11820_v7 = vpack.c.bf16 %v2428_v19, %v2427_v12  ;;  %v2429_v56 = vld [vmem:[%s18605_s5 + $0x270] sm:$0xff]  ;;  %v11822_v3 = vpack.c.bf16 %v2446_v62, %v2445_v59 }
 0x1b1   :  { %11923 = vmatprep.subr.bf16.mxu0 %v11814_v55  ;;  %v2313_v26 = vrot.slane %v2312_v5, 1 }
 0x1b2   :  { %18696 = vst [vmem:[#allocation29_spill] sm:$0xff] %v15092_v37  ;;  %18697 = vst [vmem:[#allocation30_spill] sm:$0xff] %v15107_v39 }
 0x1b3   :  { %11785 = vmatpush3.bf16.msra.mxu1 %v15059_v40  ;;  %11925 = vmatpush3.bf16.msra.mxu0 %v11816_v54 }
 0x1b4   :  { %11787 = vmatprep.subr.bf16.mxu1 %v15068_v28  ;;  %11927 = vmatprep.subr.bf16.mxu0 %v11818_v61 }
 0x1b7   :  { %11789 = vmatpush3.bf16.msra.mxu1 %v15089_v16  ;;  %11929 = vmatpush3.bf16.msra.mxu0 %v11820_v7 }
 0x1b8   :  { %11791 = vmatprep.subr.bf16.mxu1 %v15092_v37 }
 0x1b9   :  { %18 = vsyncpa [#allocation3], 0  ;;  %v11824_v1 = vpack.c.bf16 %v2430_v22, %v2429_v56  ;;  %11931 = vmatprep.subr.bf16.mxu0 %v11822_v3  ;;  %v2314_v23 = vadd.f32 %v2313_v26, %v2312_v5  ;;  %vm2671_vm7 = vcmask 130048   ;;  %vm8278_vm8 = vcmask 261120  }
 0x1ba   :  { %vm10349_vm9 = vcmask 74752  }
 0x1bb   :  { %11793 = vmatpush3.bf16.msra.mxu1 %v15107_v39  ;;  %11933 = vmatpush3.bf16.msra.mxu0 %v11824_v1 }
 0x1bc   :  { %11795 = vmatprep.subr.bf16.mxu1 %v14900_v32 }
 0x1be   :  { %2582 = vmatmul.mubr.f32.vlgmr.msra.gmra.mrb[18].mxu1 %v2314_v23 }
 0x1bf   :  { %11797 = vmatpush3.bf16.msra.mxu1 %v14914_v48 }
 0x1c0   :  { %11799 = vmatprep.subr.bf16.mxu1 %v14948_v43 }
 0x1c3   :  { %11801 = vmatpush3.bf16.msra.mxu1 %v14959_v42 }
 0x1c4   :  { %11803 = vmatprep.subr.bf16.mxu1 %v14971_v20 }
 0x1c7   :  { %11805 = vmatpush3.bf16.msra.mxu1 %v14995_v53 }
 0x1c8   :  { %11807 = vmatprep.subr.bf16.mxu1 %v15008_v33 }
 0x1cb   :  { %11809 = vmatpush3.bf16.msra.mxu1 %v15032_v31 }
 0x1cc   :  { %11811 = vmatprep.subr.bf16.mxu1 %v11810_v50 }
 0x1cf   :  { %11813 = vmatpush3.bf16.msra.mxu1 %v11812_v14 }
 0x1d0   :  { %11815 = vmatprep.subr.bf16.mxu1 %v11814_v55 }
 0x1d3   :  { %11817 = vmatpush3.bf16.msra.mxu1 %v11816_v54 }
 0x1d4   :  { %11819 = vmatprep.subr.bf16.mxu1 %v11818_v61 }
 0x1d7   :  { %11821 = vmatpush3.bf16.msra.mxu1 %v11820_v7 }
 0x1d8   :  { %11823 = vmatprep.subr.bf16.mxu1 %v11822_v3 }
 0x1db   :  { %11825 = vmatpush3.bf16.msra.mxu1 %v11824_v1 }
 0x215   :  { %v15131_v32 = vpop.f32.mrb[16].mxu0 }
 0x216   :  { %v15133_v43 = vpop.f32.mrb[17].mxu0 }
 0x217   :  { %v15135_v42 = vpop.f32.mrb[18].mxu0 }
 0x218   :  { %v2327_v48 = vadd.f32 %v15135_v42, %v15131_v32  ;;  %v15139_v33 = vpop.f32.mrb[19].mxu0 }
 0x219   :  { %v2339_v31 = vadd.f32 %v15139_v33, %v15133_v43 }
 0x21d   :  { %v15143_v20 = vpop.f32.mrb[20].mxu0 }
 0x21e   :  { %v2328_v61 = vadd.f32 %v2327_v48, %v15143_v20  ;;  %v15146_v50 = vpop.f32.mrb[21].mxu0 }
 0x21f   :  { %v2340_v53 = vadd.f32 %v2339_v31, %v15146_v50  ;;  %v15149_v55 = vpop.f32.mrb[22].mxu0 }
 0x220   :  { %v2329_v14 = vadd.f32 %v2328_v61, %v15149_v55  ;;  %v15152_v54 = vpop.f32.mrb[23].mxu0 }
 0x221   :  { %v2341_v5 = vadd.f32 %v2340_v53, %v15152_v54 }
 0x225   :  { %v15155_v12 = vpop.f32.mrb[24].mxu0 }
 0x226   :  { %v2330_v19 = vadd.f32 %v2329_v14, %v15155_v12  ;;  %v15158_v7 = vpop.f32.mrb[25].mxu0 }
 0x227   :  { %18698 = vst [vmem:[#allocation31_spill] sm:$0xff] %v15158_v7  ;;  %v2342_v26 = vadd.f32 %v2341_v5, %v15158_v7  ;;  %v15161_v59 = vpop.f32.mrb[26].mxu0 }
 0x228   :  { %18699 = vst [vmem:[#allocation32_spill] sm:$0xff] %v15161_v59  ;;  %v2331_v62 = vadd.f32 %v2330_v19, %v15161_v59  ;;  %v15164_v56 = vpop.f32.mrb[27].mxu0 }
 0x229   :  { %18700 = vst [vmem:[#allocation33_spill] sm:$0xff] %v15164_v56  ;;  %v2343_v3 = vadd.f32 %v2342_v26, %v15164_v56 }
 0x22d   :  { %v15167_v22 = vpop.f32.mrb[28].mxu0 }
 0x22e   :  { %18701 = vst [vmem:[#allocation34_spill] sm:$0xff] %v15167_v22  ;;  %v2332_v1 = vadd.f32 %v2331_v62, %v15167_v22  ;;  %v15170_v23 = vpop.f32.mrb[29].mxu0 }
 0x22f   :  { %18702 = vst [vmem:[#allocation35_spill] sm:$0xff] %v15170_v23  ;;  %v2344_v48 = vadd.f32 %v2343_v3, %v15170_v23  ;;  %v2276_v31 = vpop.f32.mrb[30].mxu0 }
 0x230   :  { %v2333_v61 = vrot.slane %v2332_v1, 4  ;;  %v2277_v53 = vpop.f32.mrb[31].mxu0 }
 0x231   :  { %v2345_v14 = vrot.slane %v2344_v48, 4 }
 0x232   :  { %v2334_v5 = vadd.f32 %v2333_v61, %v2332_v1  ;;  %v2660_v1 = vld [vmem:[%s18606_s6 + $0x8] sm:$0xff] }
 0x233   :  { %v2346_v39 = vadd.f32 %v2345_v14, %v2344_v48  ;;  %v18647_v48 = vmov 0.0   ;;  %v2661_v14 = vld [vmem:[%s18606_s6 + $0x10] sm:$0xff] }
 0x234   :  { %v2335_v37 = vrot.slane %v2334_v5, 2 }
 0x235   :  { %v2347_v19 = vrot.slane %v2346_v39, 2 }
 0x236   :  { %v2336_v16 = vadd.f32 %v2335_v37, %v2334_v5  ;;  %v2666_v37 = vld [vmem:[%s18606_s6 + $0x38] sm:$0xff]  ;;  %v2667_v5 = vld [vmem:[%s18606_s6 + $0x40] sm:$0xff] }
 0x237   :  { %v2348_v28 = vadd.f32 %v2347_v19, %v2346_v39  ;;  %v15179_v39 = vpack.c.bf16 %v2666_v37, %v2660_v1  ;;  %v2664_v19 = vld [vmem:[%s18606_s6 + $0x28] sm:$0xff]  ;;  %v2663_v37 = vld [vmem:[%s18606_s6 + $0x20] sm:$0xff] }
 0x238   :  { %v2337_v40 = vrot.slane %v2336_v16, 1 }
 0x239   :  { %v2349_v26 = vrot.slane %v2348_v28, 1  ;;  %11827 = vmatprep.subr.bf16.mxu1 %v15179_v39  ;;  %11935 = vmatprep.subr.bf16.mxu0 %v15179_v39 }
 0x23a   :  { %v2338_v56 = vadd.f32 %v2337_v40, %v2336_v16  ;;  %v2665_v40 = vld [vmem:[%s18606_s6 + $0x30] sm:$0xff] }
 0x23b   :  { %v2350_v59 = vadd.f32 %v2349_v26, %v2348_v28  ;;  %v2659_v28 = vld [vmem:[%s18606_s6] sm:$0xff]  ;;  %v2670_v26 = vld [vmem:[%s18606_s6 + $0x58] sm:$0xff] }
 0x23c   :  { %v15216_v1 = vpack.c.bf16 %v2670_v26, %v2664_v19 }
 0x23d   :  { %2651 = vmatprep.mubr.f32.mxu1 %v2350_v59  ;;  %v15187_v59 = vpack.c.bf16 %v2665_v40, %v2659_v28  ;;  %v2669_v28 = vld [vmem:[%s18606_s6 + $0x50] sm:$0xff] }
 0x23e   :  { %2652 = vmatmul.mubr.f32.vlgmr.msra.gmra.mrb[20].mxu1 %v2338_v56  ;;  %v2662_v56 = vld [vmem:[%s18606_s6 + $0x18] sm:$0xff]  ;;  %v15227_v40 = vpack.c.bf16 %v2669_v28, %v2663_v37 }
 0x23f   :  { %11829 = vmatpush1.bf16.msra.mxu1 %v15187_v59  ;;  %2739 = vmatprep.mubr.f32.mxu1 %v18647_v48 }
 0x271   :  { %v11258_v62 = vpop.f32.mrb[16].mxu1 }
 0x272   :  { %v11259_v22 = vpop.f32.mrb[17].mxu1 }
 0x273   :  { %v11260_v7 = vadd.f32 %v11259_v22, %v11258_v62  ;;  %v2668_v22 = vld [vmem:[%s18606_s6 + $0x48] sm:$0xff] }
 0x291   :  { %v11293_v3 = vpop.f32.mrb[18].mxu1 }
 0x292   :  { %v11294_v31 = vpop.f32.mrb[19].mxu1 }
 0x293   :  { %v11295_v23 = vadd.f32 %v11294_v31, %v11293_v3  ;;  %v15214_v3 = vpack.c.bf16 %v2667_v5, %v2661_v14 }
 0x295   :  { %v2584_v16 = vadd.f32 %v11295_v23, %v11260_v7  ;;  %v15199_v7 = vpack.c.bf16 %v2668_v22, %v2662_v56 }
 0x297   :  { %11831 = vmatprep.subr.bf16.mxu1 %v15199_v7 }
 0x311   :  { %v11328_v23 = vpop.f32.mrb[20].mxu1 }
 0x312   :  { %v11329_v61 = vpop.f32.mrb[21].mxu1 }
 0x313   :  { %v11330_v53 = vadd.f32 %v11329_v61, %v11328_v23 }
 0x315   :  { %v2654_v62 = vadd.f32 %v11330_v53, %v2584_v16 }
 0x317   :  { %v2658_v31 = vmul.f32 0.0006377551, %v2654_v62 }
 0x319   :  { %10606 = vmatmul.mubr.msk.f32.vlgmr.msra.gmra.mrb[22].mxu1 %vm2671_vm7, %v2658_v31 }
 0x31a   :  { %11833 = vmatpush1.bf16.msra.mxu1 %v15214_v3  ;;  %2810 = vmatprep.mubr.f32.mxu1 %v18647_v48 }
 0x31b   :  { %11835 = vmatprep.subr.bf16.mxu1 %v15216_v1 }
 0x31d   :  { %10607 = vmatmul.mubr.msk.f32.vlgmr.msra.gmra.mrb[24].mxu1 %vm2671_vm7, %v2658_v31 }
 0x31e   :  { %11837 = vmatpush1.bf16.msra.mxu1 %v15227_v40  ;;  %2881 = vmatprep.mubr.f32.mxu1 %v18647_v48 }
 0x31f   :  { %11839 = vmatprep.subr.bf16.mxu1 %v14525_v0  ;;  %v2888_v0 = vlaneseq }
 0x321   :  { %10608 = vmatmul.mubr.msk.f32.vlgmr.msra.gmra.mrb[26].mxu1 %vm2671_vm7, %v2658_v31 }
 0x322   :  { %11841 = vmatpush3.bf16.msra.mxu1 %v14533_v9  ;;  %v2889_v9 = vshrl.u32 %v2888_v0, 7 }
 0x323   :  { %11843 = vmatprep.subr.bf16.mxu1 %v14549_v15 }
 0x324   :  { %v15251_v15 = vsub.s32 0, %v2889_v9 }
 0x326   :  { %11845 = vmatpush3.bf16.msra.mxu1 %v14557_v18  ;;  %18703 = vst [vmem:[#allocation36_spill] sm:$0xff] %v15251_v15 }
 0x327   :  { %11847 = vmatprep.subr.bf16.mxu1 %v14573_v21 }
 0x32a   :  { %11849 = vmatpush3.bf16.msra.mxu1 %v14581_v63 }
 0x32b   :  { %11851 = vmatprep.subr.bf16.mxu1 %v14597_v27 }
 0x32e   :  { %11853 = vmatpush3.bf16.msra.mxu1 %v14605_v30 }
 0x32f   :  { %11855 = vmatprep.subr.bf16.mxu1 %v14621_v47 }
 0x332   :  { %11857 = vmatpush3.bf16.msra.mxu1 %v14629_v44 }
 0x333   :  { %11859 = vmatprep.subr.bf16.mxu1 %v14645_v25 }
 0x336   :  { %11861 = vmatpush3.bf16.msra.mxu1 %v14653_v8 }
 0x337   :  { %11863 = vmatprep.subr.bf16.mxu1 %v14669_v6 }
 0x33a   :  { %11865 = vmatpush3.bf16.msra.mxu1 %v14677_v45 }
 0x33b   :  { %11867 = vmatprep.subr.bf16.mxu1 %v14693_v13 }
 0x33e   :  { %11869 = vmatpush3.bf16.msra.mxu1 %v14701_v17 }
 0x33f   :  { %11871 = vmatprep.subr.bf16.mxu1 %v14717_v57 }
 0x3ec   :  { %v2741_v18 = vpop.f32.mrb[22].mxu1 }
 0x3ed   :  { %v2891_v21 = vrot.slane %v2741_v18, %v15251_v15  ;;  %v2743_v63 = vpop.f32.mrb[23].mxu1  ;;  %v18710_v18 = vld [vmem:[#allocation5_spill] sm:$0xff] }
 0x3ee   :  { %v2895_v27 = vrot.slane %v2743_v63, %v15251_v15  ;;  %v18712_v63 = vld [vmem:[#allocation6_spill] sm:$0xff] }
 0x3ef   :  { %v15256_v30 = vsub.f32 %v14780_v36, %v2891_v21  ;;  %v15259_v47 = vsub.f32 %v14784_v38, %v2891_v21  ;;  %v15262_v44 = vsub.f32 %v14796_v46, %v2891_v21  ;;  %v15265_v25 = vsub.f32 %v14808_v2, %v2891_v21 }
 0x3f0   :  { %v2812_v8 = vpop.f32.mrb[24].mxu1  ;;  %v15268_v6 = vsub.f32 %v14782_v51, %v2895_v27  ;;  %v15271_v45 = vsub.f32 %v14788_v10, %v2895_v27  ;;  %v15274_v13 = vsub.f32 %v14801_v52, %v2895_v27  ;;  %v15277_v17 = vsub.f32 %v14813_v4, %v2895_v27 }
 0x3f1   :  { %18704 = vst [vmem:[#allocation37_spill] sm:$0xff] %v15256_v30  ;;  %v15280_v57 = vrot.slane %v2812_v8, %v15251_v15  ;;  %v2814_v36 = vpop.f32.mrb[25].mxu1  ;;  %v15283_v38 = vsub.f32 %v14827_v60, %v2895_v27  ;;  %v15286_v46 = vsub.f32 %v14837_v35, %v2895_v27  ;;  %v15289_v51 = vsub.f32 %v14851_v34, %v2895_v27  ;;  %v18713_v8 = vld [vmem:[#allocation7_spill] sm:$0xff] }
 0x3f2   :  { %v2955_v10 = vmul.f32 %v15268_v6, %v15268_v6  ;;  %v2961_v52 = vmul.f32 %v15271_v45, %v15271_v45  ;;  %v2903_v35 = vrot.slane %v2814_v36, %v15251_v15  ;;  %v2967_v16 = vmul.f32 %v15274_v13, %v15274_v13 }
 0x3f3   :  { %18705 = vst [vmem:[#allocation38_spill] sm:$0xff] %v15283_v38  ;;  %18706 = vst [vmem:[#allocation39_spill] sm:$0xff] %v15289_v51  ;;  %v15297_v2 = vsub.f32 %v14792_v41, %v15280_v57  ;;  %v15301_v4 = vsub.f32 %v14798_v58, %v15280_v57  ;;  %v15305_v60 = vsub.f32 %v14816_v24, %v15280_v57 }
 0x3f4   :  { %v2883_v34 = vpop.f32.mrb[26].mxu1  ;;  %v3008_v56 = vadd.f32 %v2961_v52, %v2955_v10  ;;  %v15314_v23 = vsub.f32 %v14821_v11, %v2891_v21  ;;  %v15317_v58 = vsub.f32 %v14833_v49, %v2891_v21  ;;  %v15320_v24 = vsub.f32 %v14845_v29, %v2891_v21  ;;  %v18714_v10 = vld [vmem:[#allocation9_spill] sm:$0xff] }
 0x3f5   :  { %v15311_v22 = vrot.slane %v2883_v34, %v15251_v15  ;;  %v2885_v41 = vpop.f32.mrb[27].mxu1  ;;  %v2973_v61 = vmul.f32 %v15277_v17, %v15277_v17  ;;  %v2954_v14 = vmul.f32 %v15256_v30, %v15256_v30  ;;  %v2960_v5 = vmul.f32 %v15259_v47, %v15259_v47 }
 0x3f6   :  { %18707 = vst [vmem:[#allocation40_spill] sm:$0xff] %v15320_v24  ;;  %v3009_v53 = vadd.f32 %v3008_v56, %v2967_v16  ;;  %v2985_v62 = vmul.f32 %v15286_v46, %v15286_v46  ;;  %v2911_v31 = vrot.slane %v2885_v41, %v15251_v15  ;;  %v2972_v37 = vmul.f32 %v15265_v25, %v15265_v25  ;;  %v18715_v56 = vld [vmem:[#allocation11_spill] sm:$0xff] }
 0x3f7   :  { %v15330_v11 = vsub.f32 %v15131_v32, %v15311_v22  ;;  %v15334_v49 = vsub.f32 %v15135_v42, %v15311_v22  ;;  %v15338_v29 = vsub.f32 %v15143_v20, %v15311_v22  ;;  %v15342_v19 = vsub.f32 %v15149_v55, %v15311_v22 }
 0x3f8   :  { %v15346_v26 = vsub.f32 %v15155_v12, %v15311_v22  ;;  %v2979_v32 = vmul.f32 %v15283_v38, %v15283_v38  ;;  %v3010_v42 = vadd.f32 %v3009_v53, %v2973_v61  ;;  %v2991_v20 = vmul.f32 %v15289_v51, %v15289_v51  ;;  %v18716_v61 = vld [vmem:[#allocation13_spill] sm:$0xff]  ;;  %v18722_v51 = vld [vmem:[#allocation35_spill] sm:$0xff]  ;;  %v18725_v38 = vld [vmem:[#allocation8_spill] sm:$0xff] }
 0x3f9   :  { %18708 = vst [vmem:[#allocation41_spill] sm:$0xff] %v15330_v11  ;;  %18709 = vst [vmem:[#allocation42_spill] sm:$0xff] %v15334_v49  ;;  %v2966_v55 = vmul.f32 %v15262_v44, %v15262_v44  ;;  %v2958_v12 = vmul.f32 %v15330_v11, %v15330_v11  ;;  %v2964_v28 = vmul.f32 %v15334_v49, %v15334_v49 }
 0x3fa   :  { %v3011_v0 = vadd.f32 %v3010_v42, %v2979_v32  ;;  %v2996_v9 = vadd.f32 %v2960_v5, %v2954_v14  ;;  %v15364_v21 = vsub.f32 %v18710_v18, %v2903_v35  ;;  %v15367_v27 = vsub.f32 %v18712_v63, %v2903_v35  ;;  %v18717_v5 = vld [vmem:[#allocation15_spill] sm:$0xff] }
 0x3fb   :  { %v15370_v36 = vsub.f32 %v18713_v8, %v2903_v35  ;;  %v15373_v52 = vsub.f32 %v18714_v10, %v2903_v35  ;;  %v15376_v41 = vsub.f32 %v18715_v56, %v2903_v35  ;;  %v15379_v53 = vsub.f32 %v18716_v61, %v2903_v35 }
 0x3fc   :  { %18711 = vst [vmem:[#allocation5_spill] sm:$0xff] %v15364_v21  ;;  %v3012_v34 = vadd.f32 %v3011_v0, %v2985_v62  ;;  %v2997_v16 = vadd.f32 %v2996_v9, %v2966_v55  ;;  %v2978_v14 = vmul.f32 %v15314_v23, %v15314_v23  ;;  %v15384_v32 = vsub.f32 %v18717_v5, %v2903_v35 }
 0x3fd   :  { %v2957_v42 = vmul.f32 %v15364_v21, %v15364_v21  ;;  %v2963_v18 = vmul.f32 %v15367_v27, %v15367_v27  ;;  %v2984_v55 = vmul.f32 %v15317_v58, %v15317_v58  ;;  %v2990_v0 = vmul.f32 %v15320_v24, %v15320_v24  ;;  %v18721_v24 = vld [vmem:[#allocation33_spill] sm:$0xff] }
 0x3fe   :  { %18718 = vst [vmem:[#allocation6_spill] sm:$0xff] %v15384_v32  ;;  %v3013_v62 = vadd.f32 %v3012_v34, %v2991_v20  ;;  %v2998_v9 = vadd.f32 %v2997_v16, %v2972_v37  ;;  %v2969_v63 = vmul.f32 %v15370_v36, %v15370_v36  ;;  %v2975_v35 = vmul.f32 %v15373_v52, %v15373_v52  ;;  %v18720_v16 = vld [vmem:[#allocation31_spill] sm:$0xff] }
 0x3ff   :  { %v3032_v8 = vadd.f32 %v2963_v18, %v2957_v42  ;;  %v15399_v10 = vsub.f32 %v15133_v43, %v2911_v31  ;;  %v15402_v20 = vsub.f32 %v15139_v33, %v2911_v31  ;;  %v15405_v34 = vsub.f32 %v15146_v50, %v2911_v31 }
 0x400   :  { %v3014_v56 = vrot.slane %v3013_v62, 4  ;;  %v2999_v61 = vadd.f32 %v2998_v9, %v2978_v14  ;;  %v15408_v37 = vsub.f32 %v15152_v54, %v2911_v31  ;;  %v15411_v48 = vsub.f32 %v18720_v16, %v2911_v31 }
 0x401   :  { %18719 = vst [vmem:[#allocation7_spill] sm:$0xff] %v15399_v10  ;;  %v3033_v5 = vadd.f32 %v3032_v8, %v2969_v63  ;;  %v15414_v42 = vsub.f32 %v18721_v24, %v2911_v31  ;;  %v15417_v14 = vsub.f32 %v18722_v51, %v2911_v31  ;;  %v2959_v33 = vmul.f32 %v15399_v10, %v15399_v10 }
 0x402   :  { %v3015_v43 = vadd.f32 %v3014_v56, %v3013_v62  ;;  %v3000_v18 = vadd.f32 %v2999_v61, %v2984_v55  ;;  %v2970_v50 = vmul.f32 %v15338_v29, %v15338_v29  ;;  %v2981_v54 = vmul.f32 %v15376_v41, %v15376_v41  ;;  %v18723_v61 = vld [vmem:[#allocation32_spill] sm:$0xff] }
 0x403   :  { %v3034_v9 = vadd.f32 %v3033_v5, %v2975_v35  ;;  %v2965_v63 = vmul.f32 %v15402_v20, %v15402_v20  ;;  %v2987_v62 = vmul.f32 %v15379_v53, %v15379_v53  ;;  %v2993_v51 = vmul.f32 %v15384_v32, %v15384_v32 }
 0x404   :  { %v3016_v24 = vrot.slane %v3015_v43, 2  ;;  %v3001_v8 = vadd.f32 %v3000_v18, %v2990_v0  ;;  %v2971_v55 = vmul.f32 %v15405_v34, %v15405_v34  ;;  %v15435_v16 = vsub.f32 %v18723_v61, %v15311_v22  ;;  %v18724_v18 = vld [vmem:[#allocation34_spill] sm:$0xff] }
 0x405   :  { %v3035_v31 = vadd.f32 %v3034_v9, %v2981_v54  ;;  %v3056_v56 = vadd.f32 %v2965_v63, %v2959_v33  ;;  %v2977_v0 = vmul.f32 %v15408_v37, %v15408_v37  ;;  %v15441_v10 = vsub.f32 %v18724_v18, %v15311_v22 }
 0x406   :  { %v3017_v35 = vadd.f32 %v3016_v24, %v3015_v43  ;;  %v3002_v5 = vrot.slane %v3001_v8, 4  ;;  %v2983_v54 = vmul.f32 %v15411_v48, %v15411_v48  ;;  %v2989_v33 = vmul.f32 %v15414_v42, %v15414_v42 }
 0x407   :  { %v3036_v21 = vadd.f32 %v3035_v31, %v2987_v62  ;;  %v3057_v9 = vadd.f32 %v3056_v56, %v2971_v55  ;;  %v2976_v43 = vmul.f32 %v15342_v19, %v15342_v19  ;;  %v3044_v24 = vadd.f32 %v2964_v28, %v2958_v12  ;;  %v18726_v62 = vld [vmem:[#allocation10_spill] sm:$0xff]  ;;  %v18727_v55 = vld [vmem:[#allocation12_spill] sm:$0xff] }
 0x408   :  { %v3018_v63 = vrot.slane %v3017_v35, 1  ;;  %v3003_v61 = vadd.f32 %v3002_v5, %v3001_v8  ;;  %v15451_v22 = vsub.f32 %v18725_v38, %v15280_v57  ;;  %v15455_v31 = vsub.f32 %v18726_v62, %v15280_v57  ;;  %v18728_v12 = vld [vmem:[#allocation14_spill] sm:$0xff] }
 0x409   :  { %v3037_v32 = vadd.f32 %v3036_v21, %v2993_v51  ;;  %v3058_v30 = vadd.f32 %v3057_v9, %v2977_v0  ;;  %v3045_v11 = vadd.f32 %v3044_v24, %v2970_v50  ;;  %v15459_v8 = vsub.f32 %v18727_v55, %v15280_v57 }
 0x40a   :  { %v3019_v18 = vadd.f32 %v3018_v63, %v3017_v35  ;;  %v3004_v49 = vrot.slane %v3003_v61, 2  ;;  %v15463_v28 = vsub.f32 %v18728_v12, %v15280_v57  ;;  %v2956_v38 = vmul.f32 %v15297_v2, %v15297_v2  ;;  %v18729_v12 = vld [vmem:[#allocation16_spill] sm:$0xff] }
 0x40b   :  { %v3038_v56 = vrot.slane %v3037_v32, 4  ;;  %v3059_v5 = vadd.f32 %v3058_v30, %v2983_v54  ;;  %v2982_v51 = vmul.f32 %v15346_v26, %v15346_v26  ;;  %v3046_v35 = vadd.f32 %v3045_v11, %v2976_v43 }
 0x40c   :  { %3132 = vmatprep.mubr.f32.mxu1 %v3019_v18  ;;  %v3005_v21 = vadd.f32 %v3004_v49, %v3003_v61  ;;  %v2962_v50 = vmul.f32 %v15301_v4, %v15301_v4  ;;  %v2995_v30 = vmul.f32 %v15417_v14, %v15417_v14  ;;  %v2988_v57 = vmul.f32 %v15435_v16, %v15435_v16 }
 0x40d   :  { %v3039_v0 = vadd.f32 %v3038_v56, %v3037_v32  ;;  %v3060_v54 = vadd.f32 %v3059_v5, %v2989_v33  ;;  %v3047_v63 = vadd.f32 %v3046_v35, %v2982_v51  ;;  %v2968_v49 = vmul.f32 %v15305_v60, %v15305_v60 }
 0x40e   :  { %v3006_v9 = vrot.slane %v3005_v21, 1  ;;  %v3020_v61 = vadd.f32 %v2962_v50, %v2956_v38  ;;  %v2994_v43 = vmul.f32 %v15441_v10, %v15441_v10  ;;  %v2974_v33 = vmul.f32 %v15451_v22, %v15451_v22  ;;  %v18730_v50 = vld [vmem:[#allocation17_spill] sm:$0xff] }
 0x40f   :  { %v3040_v24 = vrot.slane %v3039_v0, 2  ;;  %v3061_v62 = vadd.f32 %v3060_v54, %v2995_v30  ;;  %v3048_v32 = vadd.f32 %v3047_v63, %v2988_v57  ;;  %v2980_v38 = vmul.f32 %v15455_v31, %v15455_v31 }
 0x410   :  { %v3007_v11 = vadd.f32 %v3006_v9, %v3005_v21  ;;  %v3021_v56 = vadd.f32 %v3020_v61, %v2968_v49  ;;  %v2986_v9 = vmul.f32 %v15459_v8, %v15459_v8 }
 0x411   :  { %v3041_v18 = vadd.f32 %v3040_v24, %v3039_v0  ;;  %v3062_v55 = vrot.slane %v3061_v62, 4  ;;  %v3049_v5 = vadd.f32 %v3048_v32, %v2994_v43  ;;  %v18731_v24 = vld [vmem:[#allocation18_spill] sm:$0xff] }
 0x412   :  { %3133 = vmatmul.mubr.f32.vlgmr.msra.gmra.mrb[28].mxu1 %v3007_v11  ;;  %v3022_v21 = vadd.f32 %v3021_v56, %v2974_v33  ;;  %v18732_v11 = vld [vmem:[#allocation19_spill] sm:$0xff]  ;;  %v18733_v56 = vld [vmem:[#allocation20_spill] sm:$0xff] }
 0x413   :  { %11873 = vmatpush3.bf16.msra.mxu1 %v18729_v12  ;;  %v3042_v51 = vrot.slane %v3041_v18, 1  ;;  %v3063_v35 = vadd.f32 %v3062_v55, %v3061_v62  ;;  %v3050_v30 = vrot.slane %v3049_v5, 4  ;;  %v2992_v62 = vmul.f32 %v15463_v28, %v15463_v28 }
 0x414   :  { %11875 = vmatprep.subr.bf16.mxu1 %v18730_v50  ;;  %v3023_v57 = vadd.f32 %v3022_v21, %v2980_v38  ;;  %v18736_v21 = vld [vmem:[#allocation23_spill] sm:$0xff] }
 0x415   :  { %v3043_v54 = vadd.f32 %v3042_v51, %v3041_v18  ;;  %v3064_v0 = vrot.slane %v3063_v35, 2  ;;  %v3051_v63 = vadd.f32 %v3050_v30, %v3049_v5  ;;  %v18734_v51 = vld [vmem:[#allocation21_spill] sm:$0xff]  ;;  %v18737_v30 = vmov 0.0  }
 0x416   :  { %v3024_v61 = vadd.f32 %v3023_v57, %v2986_v9  ;;  %v18740_v57 = vld [vmem:[#allocation26_spill] sm:$0xff] }
 0x417   :  { %3202 = vmatprep.mubr.f32.mxu1 %v3043_v54  ;;  %11877 = vmatpush3.bf16.msra.mxu1 %v18731_v24  ;;  %v3065_v49 = vadd.f32 %v3064_v0, %v3063_v35  ;;  %v3052_v43 = vrot.slane %v3051_v63, 2  ;;  %v18735_v35 = vld [vmem:[#allocation22_spill] sm:$0xff]  ;;  %v18738_v54 = vld [vmem:[#allocation24_spill] sm:$0xff]  ;;  %v18739_v0 = vld [vmem:[#allocation25_spill] sm:$0xff] }
 0x418   :  { %11879 = vmatprep.subr.bf16.mxu1 %v18732_v11  ;;  %v3025_v55 = vadd.f32 %v3024_v61, %v2992_v62  ;;  %v18743_v62 = vld [vmem:[#allocation29_spill] sm:$0xff]  ;;  %v18744_v11 = vld [vmem:[#allocation30_spill] sm:$0xff] }
 0x419   :  { %v3066_v32 = vrot.slane %v3065_v49, 1  ;;  %v3053_v18 = vadd.f32 %v3052_v43, %v3051_v63  ;;  %v18741_v63 = vld [vmem:[#allocation27_spill] sm:$0xff] }
 0x41a   :  { %v3026_v5 = vrot.slane %v3025_v55, 4 }
 0x41b   :  { %v3067_v33 = vadd.f32 %v3066_v32, %v3065_v49  ;;  %11881 = vmatpush3.bf16.msra.mxu1 %v18733_v56  ;;  %v3054_v12 = vrot.slane %v3053_v18, 1  ;;  %v18742_v49 = vld [vmem:[#allocation28_spill] sm:$0xff] }
 0x41c   :  { %11883 = vmatprep.subr.bf16.mxu1 %v18734_v51  ;;  %v3027_v50 = vadd.f32 %v3026_v5, %v3025_v55 }
 0x41d   :  { %3272 = vmatprep.mubr.f32.mxu0 %v3067_v33  ;;  %v3055_v38 = vadd.f32 %v3054_v12, %v3053_v18 }
 0x41e   :  { %v3028_v9 = vrot.slane %v3027_v50, 2 }
 0x41f   :  { %11885 = vmatpush3.bf16.msra.mxu1 %v18735_v35  ;;  %3273 = vmatmul.mubr.f32.vlgmr.msra.gmra.mrb[32].mxu0 %v3055_v38 }
 0x420   :  { %11887 = vmatprep.subr.bf16.mxu1 %v18736_v21  ;;  %11937 = vmatpush1.bf16.msra.mxu0 %v15187_v59  ;;  %v3029_v24 = vadd.f32 %v3028_v9, %v3027_v50 }
 0x421   :  { %3350 = vmatprep.mubr.f32.mxu0 %v18737_v30  ;;  %11955 = vmatprep.subr.bf16.mxu0 %v15216_v1 }
 0x422   :  { %v3030_v61 = vrot.slane %v3029_v24, 1 }
 0x423   :  { %11889 = vmatpush3.bf16.msra.mxu1 %v18738_v54 }
 0x424   :  { %11891 = vmatprep.subr.bf16.mxu1 %v18739_v0  ;;  %v3031_v43 = vadd.f32 %v3030_v61, %v3029_v24  ;;  %v3279_v0 = vld [vmem:[%s18607_s7] sm:$0x1]  ;;  %v12708_v24 = vld [vmem:[%s18602_s2 + $0x8] ss:$16 sps:$4 sm:$0xff]  }
 0x425   :  { %v12720_v61 = vld [vmem:[%s18602_s2 + $0x48] ss:$16 sps:$4 sm:$0xff]  }
 0x427   :  { %11893 = vmatpush3.bf16.msra.mxu1 %v18740_v57  ;;  %v12710_v57 = vld [vmem:[%s18602_s2 + $0xc] ss:$16 sps:$4 sm:$0xff]  }
 0x428   :  { %11895 = vmatprep.subr.bf16.mxu1 %v18741_v63  ;;  %v3499_v63 = vld [vmem:[%s18608_s8] sm:$0x1] }
 0x42b   :  { %11897 = vmatpush3.bf16.msra.mxu1 %v18742_v49  ;;  %v12716_v49 = vld [vmem:[%s18602_s2 + $0x2c] ss:$16 sps:$4 sm:$0xff]  }
 0x42c   :  { %11899 = vmatprep.subr.bf16.mxu1 %v18743_v62  ;;  %v12713_v62 = vld [vmem:[%s18602_s2 + $0x24] ss:$16 sps:$4 sm:$0xff]  }
 0x42f   :  { %11901 = vmatpush3.bf16.msra.mxu1 %v18744_v11  ;;  %v12711_v11 = vld [vmem:[%s18602_s2 + $0x20] ss:$16 sps:$4 sm:$0xff]  }
 0x430   :  { %11939 = vmatprep.subr.bf16.mxu1 %v15199_v7 }
 0x432   :  { %3203 = vmatmul.mubr.f32.vlgmr.msra.gmra.mrb[30].mxu1 %v3031_v43  ;;  %v12719_v43 = vld [vmem:[%s18602_s2 + $0x44] ss:$16 sps:$4 sm:$0xff]  }
 0x433   :  { %11941 = vmatpush1.bf16.msra.mxu1 %v15214_v3  ;;  %3421 = vmatprep.mubr.f32.mxu1 %v18737_v30 }
 0x434   :  { %11943 = vmatprep.subr.bf16.mxu1 %v15216_v1 }
 0x4e5   :  { %v11363_v32 = vpop.f32.mrb[28].mxu1 }
 0x4e6   :  { %v11364_v55 = vpop.f32.mrb[29].mxu1 }
 0x4e7   :  { %v11365_v18 = vadd.f32 %v11364_v55, %v11363_v32  ;;  %v12726_v32 = vld [vmem:[%s18602_s2 + $0x68] ss:$16 sps:$4 sm:$0xff]   ;;  %v12734_v55 = vld [vmem:[%s18602_s2 + $0x8c] ss:$16 sps:$4 sm:$0xff]  }
 0x4f2   :  { %v11433_v33 = vpop.f32.mrb[32].mxu0 }
 0x4f3   :  { %v11434_v56 = vpop.f32.mrb[33].mxu0 }
 0x4f4   :  { %v11435_v12 = vadd.f32 %v11434_v56, %v11433_v33  ;;  %v12725_v33 = vld [vmem:[%s18602_s2 + $0x64] ss:$16 sps:$4 sm:$0xff]   ;;  %v12732_v56 = vld [vmem:[%s18602_s2 + $0x88] ss:$16 sps:$4 sm:$0xff]  }
 0x505   :  { %v11398_v51 = vpop.f32.mrb[30].mxu1 }
 0x506   :  { %v11399_v5 = vpop.f32.mrb[31].mxu1 }
 0x507   :  { %v11400_v38 = vadd.f32 %v11399_v5, %v11398_v51  ;;  %v12723_v51 = vld [vmem:[%s18602_s2 + $0x60] ss:$16 sps:$4 sm:$0xff]   ;;  %v12731_v5 = vld [vmem:[%s18602_s2 + $0x84] ss:$16 sps:$4 sm:$0xff]  }
 0x509   :  { %v3205_v35 = vadd.f32 %v11400_v38, %v11365_v18  ;;  %v12717_v18 = vld [vmem:[%s18602_s2 + $0x40] ss:$16 sps:$4 sm:$0xff]   ;;  %v12738_v38 = vld [vmem:[%s18602_s2 + $0xa8] ss:$16 sps:$4 sm:$0xff]  }
 0x50b   :  { %v3275_v21 = vadd.f32 %v11435_v12, %v3205_v35  ;;  %v12740_v12 = vld [vmem:[%s18602_s2 + $0xac] ss:$16 sps:$4 sm:$0xff]  }
 0x50c   :  { %v12746_v35 = vld [vmem:[%s18602_s2 + $0xcc] ss:$16 sps:$4 sm:$0xff]  }
 0x50d   :  { %v3278_v50 = vmul.f32 0.0006377551, %v3275_v21  ;;  %v12729_v21 = vld [vmem:[%s18602_s2 + $0x80] ss:$16 sps:$4 sm:$0xff]  }
 0x50f   :  { %v3280_v54 = vadd.f32 1e-05, %v3278_v50  ;;  %v12737_v50 = vld [vmem:[%s18602_s2 + $0xa4] ss:$16 sps:$4 sm:$0xff]  }
 0x511   :  { %13537 = vrsqrt.f32 %v3280_v54  ;;  %v12744_v54 = vld [vmem:[%s18602_s2 + $0xc8] ss:$16 sps:$4 sm:$0xff]  }
 0x51b   :  { %v13538_v9 = vpop.eup %13537 }
 0x51c   :  { %v3282_v1 = vmul.f32 %v13538_v9, %v3279_v0  ;;  %v12752_v0 = vld [vmem:[%s18602_s2 + $0xec] ss:$16 sps:$4 sm:$0xff]   ;;  %v12735_v9 = vld [vmem:[%s18602_s2 + $0xa0] ss:$16 sps:$4 sm:$0xff]  }
 0x51e   :  { %10609 = vmatmul.mubr.msk.f32.vlgmr.msra.gmra.mrb[34].mxu0 %vm2671_vm7, %v3282_v1  ;;  %10610 = vmatmul.mubr.msk.f32.vlgmr.msra.gmra.mrb[32].mxu1 %vm2671_vm7, %v3282_v1 }
 0x51f   :  { %11945 = vmatpush1.bf16.msra.mxu1 %v15227_v40  ;;  %3492 = vmatprep.mubr.f32.mxu1 %v18737_v30 }
 0x520   :  { %11957 = vmatpush1.bf16.msra.mxu0 %v15227_v40  ;;  %11947 = vmatprep.subr.bf16.mxu1 %v15179_v39  ;;  %v12707_v39 = vld [vmem:[%s18602_s2 + $0x4] ss:$16 sps:$4 sm:$0xff]   ;;  %v12714_v40 = vld [vmem:[%s18602_s2 + $0x28] ss:$16 sps:$4 sm:$0xff]  }
 0x521   :  { %3709 = vmatprep.mubr.f32.mxu0 %v18737_v30  ;;  %7592 = vmatprep.subr.bf16.mxu0 %v12710_v57  ;;  %v12750_v57 = vld [vmem:[%s18602_s2 + $0xe8] ss:$16 sps:$4 sm:$0xff]  }
 0x522   :  { %10611 = vmatmul.mubr.msk.f32.vlgmr.msra.gmra.mrb[34].mxu1 %vm2671_vm7, %v3282_v1  ;;  %v12743_v1 = vld [vmem:[%s18602_s2 + $0xc4] ss:$16 sps:$4 sm:$0xff]  }
 0x523   :  { %11949 = vmatpush1.bf16.msra.mxu1 %v15187_v59  ;;  %10614 = vmatmul.mubr.msk.f32.vlgmr.msra.gmra.mrb[36].mxu0 %vm2671_vm7, %v3499_v63  ;;  %v12722_v59 = vld [vmem:[%s18602_s2 + $0x4c] ss:$16 sps:$4 sm:$0xff]  }
 0x524   :  { %3567 = vmatprep.mubr.f32.mxu1 %v18737_v30  ;;  %11951 = vmatprep.subr.bf16.mxu1 %v15199_v7  ;;  %v12705_v7 = vld [vmem:[%s18602_s2] ss:$16 sps:$4 sm:$0xff]  }
 0x525   :  { %7593 = vmatpush1.bf16.msra.mxu0 %v12708_v24  ;;  %v12749_v24 = vld [vmem:[%s18602_s2 + $0xe4] ss:$16 sps:$4 sm:$0xff]  }
 0x526   :  { %10612 = vmatmul.mubr.msk.f32.vlgmr.msra.gmra.mrb[36].mxu1 %vm2671_vm7, %v3499_v63  ;;  %7594 = vmatprep.subr.bf16.mxu0 %v12716_v49  ;;  %v12747_v49 = vld [vmem:[%s18602_s2 + $0xe0] ss:$16 sps:$4 sm:$0xff]  }
 0x527   :  { %11953 = vmatpush1.bf16.msra.mxu1 %v15214_v3  ;;  %3638 = vmatprep.mubr.f32.mxu1 %v18737_v30  ;;  %v12728_v3 = vld [vmem:[%s18602_s2 + $0x6c] ss:$16 sps:$4 sm:$0xff]  }
 0x528   :  { %7168 = vmatprep.subr.bf16.mxu1 %v12707_v39  ;;  %v12753_v39 = vld [vmem:[%s18602_s2 + $0x100] ss:$16 sps:$4 sm:$0xff]  }
 0x529   :  { %7595 = vmatpush1.bf16.msra.mxu0 %v12714_v40  ;;  %v12755_v40 = vld [vmem:[%s18602_s2 + $0x104] ss:$16 sps:$4 sm:$0xff]  }
 0x52a   :  { %10613 = vmatmul.mubr.msk.f32.vlgmr.msra.gmra.mrb[38].mxu1 %vm2671_vm7, %v3499_v63  ;;  %7596 = vmatprep.subr.bf16.mxu0 %v12722_v59  ;;  %v12741_v63 = vld [vmem:[%s18602_s2 + $0xc0] ss:$16 sps:$4 sm:$0xff]   ;;  %v12756_v59 = vld [vmem:[%s18602_s2 + $0x108] ss:$16 sps:$4 sm:$0xff]  }
 0x52b   :  { %7169 = vmatpush1.bf16.msra.mxu1 %v12705_v7  ;;  %v12758_v7 = vld [vmem:[%s18602_s2 + $0x10c] ss:$16 sps:$4 sm:$0xff]  }
 0x52c   :  { %7170 = vmatprep.subr.bf16.mxu1 %v12713_v62  ;;  %v12759_v62 = vld [vmem:[%s18602_s2 + $0x120] ss:$16 sps:$4 sm:$0xff]  }
 0x52d   :  { %7597 = vmatpush1.bf16.msra.mxu0 %v12720_v61  ;;  %v12761_v61 = vld [vmem:[%s18602_s2 + $0x124] ss:$16 sps:$4 sm:$0xff]  }
 0x52e   :  { %7598 = vmatprep.subr.bf16.mxu0 %v12728_v3  ;;  %v12762_v3 = vld [vmem:[%s18602_s2 + $0x128] ss:$16 sps:$4 sm:$0xff]  }
 0x52f   :  { %7171 = vmatpush1.bf16.msra.mxu1 %v12711_v11  ;;  %v12764_v11 = vld [vmem:[%s18602_s2 + $0x12c] ss:$16 sps:$4 sm:$0xff]  }
 0x530   :  { %7172 = vmatprep.subr.bf16.mxu1 %v12719_v43  ;;  %v12765_v43 = vld [vmem:[%s18602_s2 + $0x140] ss:$16 sps:$4 sm:$0xff]  }
 0x531   :  { %7599 = vmatpush1.bf16.msra.mxu0 %v12726_v32  ;;  %v12767_v32 = vld [vmem:[%s18602_s2 + $0x144] ss:$16 sps:$4 sm:$0xff]  }
 0x532   :  { %7600 = vmatprep.subr.bf16.mxu0 %v12734_v55  ;;  %v12768_v55 = vld [vmem:[%s18602_s2 + $0x148] ss:$16 sps:$4 sm:$0xff]  }
 0x533   :  { %7173 = vmatpush1.bf16.msra.mxu1 %v12717_v18  ;;  %v12770_v18 = vld [vmem:[%s18602_s2 + $0x14c] ss:$16 sps:$4 sm:$0xff]  }
 0x534   :  { %7174 = vmatprep.subr.bf16.mxu1 %v12725_v33  ;;  %v12771_v33 = vld [vmem:[%s18602_s2 + $0x160] ss:$16 sps:$4 sm:$0xff]  }
 0x535   :  { %7601 = vmatpush1.bf16.msra.mxu0 %v12732_v56  ;;  %v12773_v56 = vld [vmem:[%s18602_s2 + $0x164] ss:$16 sps:$4 sm:$0xff]  }
 0x536   :  { %7602 = vmatprep.subr.bf16.mxu0 %v12740_v12  ;;  %v12774_v12 = vld [vmem:[%s18602_s2 + $0x168] ss:$16 sps:$4 sm:$0xff]  }
 0x537   :  { %7175 = vmatpush1.bf16.msra.mxu1 %v12723_v51  ;;  %v12776_v51 = vld [vmem:[%s18602_s2 + $0x16c] ss:$16 sps:$4 sm:$0xff]  }
 0x538   :  { %7176 = vmatprep.subr.bf16.mxu1 %v12731_v5  ;;  %v12779_v5 = vld [vmem:[%s18602_s2 + $0x184] ss:$16 sps:$4 sm:$0xff]  }
 0x539   :  { %7603 = vmatpush1.bf16.msra.mxu0 %v12738_v38  ;;  %v12782_v38 = vld [vmem:[%s18602_s2 + $0x18c] ss:$16 sps:$4 sm:$0xff]  }
 0x53a   :  { %7604 = vmatprep.subr.bf16.mxu0 %v12746_v35  ;;  %v12777_v35 = vld [vmem:[%s18602_s2 + $0x180] ss:$16 sps:$4 sm:$0xff]  }
 0x53b   :  { %7177 = vmatpush1.bf16.msra.mxu1 %v12729_v21  ;;  %v12780_v21 = vld [vmem:[%s18602_s2 + $0x188] ss:$16 sps:$4 sm:$0xff]  }
 0x53c   :  { %7178 = vmatprep.subr.bf16.mxu1 %v12737_v50  ;;  %v12785_v50 = vld [vmem:[%s18602_s2 + $0x1a4] ss:$16 sps:$4 sm:$0xff]  }
 0x53d   :  { %7605 = vmatpush1.bf16.msra.mxu0 %v12744_v54  ;;  %v12788_v54 = vld [vmem:[%s18602_s2 + $0x1ac] ss:$16 sps:$4 sm:$0xff]  }
 0x53e   :  { %7606 = vmatprep.subr.bf16.mxu0 %v12752_v0  ;;  %v12783_v0 = vld [vmem:[%s18602_s2 + $0x1a0] ss:$16 sps:$4 sm:$0xff]  }
 0x53f   :  { %7179 = vmatpush1.bf16.msra.mxu1 %v12735_v9  ;;  %v12786_v9 = vld [vmem:[%s18602_s2 + $0x1a8] ss:$16 sps:$4 sm:$0xff]  }
 0x540   :  { %7180 = vmatprep.subr.bf16.mxu1 %v12743_v1  ;;  %v12791_v1 = vld [vmem:[%s18602_s2 + $0x1c4] ss:$16 sps:$4 sm:$0xff]  }
 0x541   :  { %7607 = vmatpush1.bf16.msra.mxu0 %v12750_v57  ;;  %v12794_v57 = vld [vmem:[%s18602_s2 + $0x1cc] ss:$16 sps:$4 sm:$0xff]  }
 0x542   :  { %7608 = vmatprep.subr.bf16.mxu0 %v12758_v7  ;;  %v12803_v7 = vld [vmem:[%s18602_s2 + $0x204] ss:$16 sps:$4 sm:$0xff]  }
 0x543   :  { %7181 = vmatpush1.bf16.msra.mxu1 %v12741_v63  ;;  %v12789_v63 = vld [vmem:[%s18602_s2 + $0x1c0] ss:$16 sps:$4 sm:$0xff]  }
 0x544   :  { %7182 = vmatprep.subr.bf16.mxu1 %v12749_v24  ;;  %v12792_v24 = vld [vmem:[%s18602_s2 + $0x1c8] ss:$16 sps:$4 sm:$0xff]  }
 0x545   :  { %7609 = vmatpush1.bf16.msra.mxu0 %v12756_v59  ;;  %v12798_v59 = vld [vmem:[%s18602_s2 + $0x1e8] ss:$16 sps:$4 sm:$0xff]  }
 0x546   :  { %7610 = vmatprep.subr.bf16.mxu0 %v12764_v11 }
 0x547   :  { %7183 = vmatpush1.bf16.msra.mxu1 %v12747_v49  ;;  %v12797_v49 = vld [vmem:[%s18602_s2 + $0x1e4] ss:$16 sps:$4 sm:$0xff]  }
 0x548   :  { %7184 = vmatprep.subr.bf16.mxu1 %v12755_v40  ;;  %v12795_v40 = vld [vmem:[%s18602_s2 + $0x1e0] ss:$16 sps:$4 sm:$0xff]  }
 0x549   :  { %7611 = vmatpush1.bf16.msra.mxu0 %v12762_v3 }
 0x54a   :  { %7612 = vmatprep.subr.bf16.mxu0 %v12770_v18 }
 0x54b   :  { %7185 = vmatpush1.bf16.msra.mxu1 %v12753_v39  ;;  %v12800_v39 = vld [vmem:[%s18602_s2 + $0x1ec] ss:$16 sps:$4 sm:$0xff]  }
 0x54c   :  { %7186 = vmatprep.subr.bf16.mxu1 %v12761_v61 }
 0x54d   :  { %7613 = vmatpush1.bf16.msra.mxu0 %v12768_v55 }
 0x54e   :  { %7614 = vmatprep.subr.bf16.mxu0 %v12776_v51 }
 0x54f   :  { %7187 = vmatpush1.bf16.msra.mxu1 %v12759_v62  ;;  %v12806_v62 = vld [vmem:[%s18602_s2 + $0x20c] ss:$16 sps:$4 sm:$0xff]  }
 0x550   :  { %7188 = vmatprep.subr.bf16.mxu1 %v12767_v32 }
 0x551   :  { %7615 = vmatpush1.bf16.msra.mxu0 %v12774_v12 }
 0x552   :  { %7616 = vmatprep.subr.bf16.mxu0 %v12782_v38 }
 0x553   :  { %7189 = vmatpush1.bf16.msra.mxu1 %v12765_v43 }
 0x554   :  { %7190 = vmatprep.subr.bf16.mxu1 %v12773_v56  ;;  %v15742_v56 = vrot.slane %v18737_v30, 2 }
 0x555   :  { %7617 = vmatpush1.bf16.msra.mxu0 %v12780_v21 }
 0x556   :  { %7618 = vmatprep.subr.bf16.mxu0 %v12788_v54 }
 0x557   :  { %7191 = vmatpush1.bf16.msra.mxu1 %v12771_v33 }
 0x558   :  { %7192 = vmatprep.subr.bf16.mxu1 %v12779_v5 }
 0x559   :  { %7619 = vmatpush1.bf16.msra.mxu0 %v12786_v9 }
 0x55a   :  { %7620 = vmatprep.subr.bf16.mxu0 %v12794_v57 }
 0x55b   :  { %7193 = vmatpush1.bf16.msra.mxu1 %v12777_v35 }
 0x55c   :  { %7194 = vmatprep.subr.bf16.mxu1 %v12785_v50 }
 0x55d   :  { %7621 = vmatpush1.bf16.msra.mxu0 %v12792_v24 }
 0x55e   :  { %7622 = vmatprep.subr.bf16.mxu0 %v12800_v39 }
 0x55f   :  { %7195 = vmatpush1.bf16.msra.mxu1 %v12783_v0 }
 0x560   :  { %7196 = vmatprep.subr.bf16.mxu1 %v12791_v1 }
 0x561   :  { %7623 = vmatpush1.bf16.msra.mxu0 %v12798_v59 }
 0x562   :  { %7645 = vmatprep.subr.bf16.mxu0 %v12806_v62 }
 0x563   :  { %7197 = vmatpush1.bf16.msra.mxu1 %v12789_v63 }
 0x564   :  { %7198 = vmatprep.subr.bf16.mxu1 %v12797_v49 }
 0x567   :  { %7199 = vmatpush1.bf16.msra.mxu1 %v12795_v40 }
 0x568   :  { %7221 = vmatprep.subr.bf16.mxu1 %v12803_v7 }
 0x5f1   :  { %v3352_v61 = vpop.f32.mrb[34].mxu0  ;;  %v3423_v3 = vpop.f32.mrb[32].mxu1 }
 0x5f2   :  { %v15730_v11 = vrot.slane %v3352_v61, %v15251_v15  ;;  %v15733_v43 = vrot.slane %v3423_v3, %v15251_v15  ;;  %v3354_v32 = vpop.f32.mrb[35].mxu0  ;;  %v3425_v55 = vpop.f32.mrb[33].mxu1 }
 0x5f3   :  { %v15736_v18 = vrot.slane %v3354_v32, %v15251_v15  ;;  %v15739_v33 = vrot.slane %v3425_v55, %v15251_v15 }
 0x5f4   :  { %v15746_v12 = vmul.f32 %v15730_v11, %v15259_v47  ;;  %v3752_v51 = vmul.f32 %v15730_v11, %v15262_v44  ;;  %v15752_v5 = vmul.f32 %v15730_v11, %v15265_v25  ;;  %v15756_v38 = vmul.f32 %v15730_v11, %v15314_v23 }
 0x5f5   :  { %v3770_v35 = vmul.f32 %v15730_v11, %v15317_v58  ;;  %v3748_v21 = vmul.f32 %v15733_v43, %v15301_v4  ;;  %v3754_v47 = vmul.f32 %v15733_v43, %v15305_v60  ;;  %v3760_v44 = vmul.f32 %v15733_v43, %v15451_v22  ;;  %v3494_v50 = vpop.f32.mrb[34].mxu1 }
 0x5f6   :  { %v3766_v25 = vmul.f32 %v15733_v43, %v15455_v31  ;;  %v3772_v23 = vmul.f32 %v15733_v43, %v15459_v8  ;;  %v3753_v54 = vmul.f32 %v15736_v18, %v15274_v13  ;;  %v3771_v58 = vmul.f32 %v15736_v18, %v15286_v46  ;;  %v3496_v4 = vpop.f32.mrb[35].mxu1  ;;  %v3711_v0 = vpop.f32.mrb[36].mxu0 }
 0x5f7   :  { %v15776_v60 = vmul.f32 %v15739_v33, %v15367_v27  ;;  %v3755_v22 = vmul.f32 %v15739_v33, %v15370_v36  ;;  %v15782_v31 = vmul.f32 %v15739_v33, %v15373_v52  ;;  %v15786_v8 = vmul.f32 %v15739_v33, %v15376_v41  ;;  %v3713_v13 = vpop.f32.mrb[37].mxu0 }
 0x5f8   :  { %v3773_v46 = vmul.f32 %v15739_v33, %v15379_v53  ;;  %v15791_v9 = vrot.slane %v3494_v50, %v15251_v15  ;;  %v15794_v27 = vrot.slane %v3496_v4, %v15251_v15  ;;  %v15797_v36 = vrot.slane %v3711_v0, %v15251_v15 }
 0x5f9   :  { %v15800_v52 = vrot.slane %v3713_v13, %v15251_v15  ;;  %v3569_v1 = vpop.f32.mrb[36].mxu1  ;;  %v3741_v41 = vmul.f32 %v15736_v18, %v15268_v6  ;;  %v3747_v57 = vmul.f32 %v15736_v18, %v15271_v45  ;;  %v3759_v53 = vmul.f32 %v15736_v18, %v15277_v17 }
 0x5fa   :  { %v3756_v63 = vmul.f32 %v15791_v9, %v15338_v29  ;;  %v3774_v24 = vmul.f32 %v15791_v9, %v15435_v16  ;;  %v3751_v49 = vmul.f32 %v15794_v27, %v15402_v20  ;;  %v3757_v39 = vmul.f32 %v15794_v27, %v15405_v34  ;;  %v3571_v40 = vpop.f32.mrb[37].mxu1 }
 0x5fb   :  { %v3763_v6 = vmul.f32 %v15794_v27, %v15408_v37  ;;  %v3769_v45 = vmul.f32 %v15794_v27, %v15411_v48  ;;  %v3775_v17 = vmul.f32 %v15794_v27, %v15414_v42  ;;  %v15823_v29 = vrot.slane %v3569_v1, %v15251_v15 }
 0x5fc   :  { %v15826_v16 = vadd.f32 %v15797_v36, %v3756_v63  ;;  %v15829_v20 = vadd.f32 %v15797_v36, %v3774_v24  ;;  %v15832_v34 = vadd.f32 %v15800_v52, %v3751_v49  ;;  %v3823_v37 = vadd.f32 %v15800_v52, %v3757_v39 }
 0x5fd   :  { %v15836_v59 = vadd.f32 %v15800_v52, %v3763_v6  ;;  %v15839_v48 = vadd.f32 %v15800_v52, %v3769_v45  ;;  %v3841_v42 = vadd.f32 %v15800_v52, %v3775_v17  ;;  %v15843_v7 = vadd.f32 %v15823_v29, %v3752_v51  ;;  %v3640_v62 = vpop.f32.mrb[38].mxu1  ;;  %v18746_v6 = vld [vmem:[#allocation42_spill] sm:$0xff] }
 0x5fe   :  { %v3882_v61 = vmax.f32 %v15829_v20, 0.0  ;;  %v3865_v32 = vmax.f32 %v3823_v37, 0.0  ;;  %v15848_v55 = vadd.f32 %v15823_v29, %v3770_v35  ;;  %v3642_v50 = vpop.f32.mrb[39].mxu1  ;;  %v15855_v63 = vrot.slane %v3571_v40, %v15251_v15  ;;  %v18745_v35 = vld [vmem:[#allocation41_spill] sm:$0xff]  ;;  %v18747_v20 = vld [vmem:[#allocation38_spill] sm:$0xff] }
 0x5ff   :  { %v3883_v13 = vmax.f32 %v3841_v42, 0.0  ;;  %v15858_v24 = vrot.slane %v3640_v62, %v15251_v15  ;;  %v15861_v49 = vrot.slane %v3642_v50, %v15251_v15  ;;  %v3744_v39 = vmul.f32 %v15791_v9, %v18745_v35 }
 0x600   :  { %v3750_v45 = vmul.f32 %v15791_v9, %v18746_v6  ;;  %v3762_v17 = vmul.f32 %v15791_v9, %v15342_v19  ;;  %v3765_v37 = vmul.f32 %v15736_v18, %v18747_v20  ;;  %v3819_v40 = vadd.f32 %v15855_v63, %v3753_v54 }
 0x601   :  { %v3837_v42 = vadd.f32 %v15855_v63, %v3771_v58  ;;  %v15874_v62 = vadd.f32 %v15858_v24, %v3748_v21  ;;  %v3820_v50 = vadd.f32 %v15858_v24, %v3754_v47  ;;  %v15878_v35 = vadd.f32 %v15858_v24, %v3760_v44 }
 0x602   :  { %v15881_v6 = vadd.f32 %v15858_v24, %v3766_v25  ;;  %v3838_v19 = vadd.f32 %v15858_v24, %v3772_v23  ;;  %v15885_v0 = vadd.f32 %v15861_v49, %v3755_v22  ;;  %v15889_v21 = vadd.f32 %v15861_v49, %v3773_v46 }
 0x603   :  { %v3879_v20 = vmax.f32 %v3837_v42, 0.0  ;;  %v3862_v58 = vmax.f32 %v3820_v50, 0.0  ;;  %v3768_v22 = vmul.f32 %v15791_v9, %v15346_v26  ;;  %v3807_v42 = vadd.f32 %v15855_v63, %v3741_v41 }
 0x604   :  { %v3880_v4 = vmax.f32 %v3838_v19, 0.0  ;;  %v3810_v46 = vadd.f32 %v15797_v36, %v3744_v39  ;;  %v3813_v47 = vadd.f32 %v15855_v63, %v3747_v57  ;;  %v3816_v44 = vadd.f32 %v15797_v36, %v3750_v45 }
 0x605   :  { %v15894_v3 = vmax.f32 %v3862_v58, %v3865_v32  ;;  %v3825_v19 = vadd.f32 %v15855_v63, %v3759_v53  ;;  %v3828_v32 = vadd.f32 %v15797_v36, %v3762_v17  ;;  %v3831_v58 = vadd.f32 %v15855_v63, %v3765_v37  ;;  %v18748_v37 = vld [vmem:[#allocation37_spill] sm:$0xff] }
 0x606   :  { %v15900_v50 = vmax.f32 %v3880_v4, %v3883_v13  ;;  %v3834_v54 = vadd.f32 %v15797_v36, %v3768_v22  ;;  %v3849_v51 = vmax.f32 %v3807_v42, 0.0  ;;  %v3852_v41 = vmax.f32 %v3810_v46, 0.0 }
 0x607   :  { %v3855_v4 = vmax.f32 %v3813_v47, 0.0  ;;  %v3858_v13 = vmax.f32 %v3816_v44, 0.0  ;;  %v3861_v23 = vmax.f32 %v3819_v40, 0.0  ;;  %v3864_v39 = vmax.f32 %v15826_v16, 0.0  ;;  %v18749_v47 = vld [vmem:[#allocation5_spill] sm:$0xff] }
 0x608   :  { %v3867_v57 = vmax.f32 %v3825_v19, 0.0  ;;  %v3870_v1 = vmax.f32 %v3828_v32, 0.0  ;;  %v3873_v45 = vmax.f32 %v3831_v58, 0.0  ;;  %v3876_v25 = vmax.f32 %v3834_v54, 0.0 }
 0x609   :  { %v3891_v53 = vmax.f32 %v3849_v51, %v3852_v41  ;;  %v3894_v15 = vmax.f32 %v3855_v4, %v3858_v13  ;;  %v3918_v17 = vmax.f32 %v3861_v23, %v3864_v39  ;;  %v15911_v30 = vmax.f32 %v3879_v20, %v3882_v61 }
 0x60a   :  { %v3740_v22 = vmul.f32 %v15730_v11, %v18748_v37  ;;  %v3921_v42 = vmax.f32 %v3867_v57, %v3870_v1  ;;  %v3951_v46 = vmax.f32 %v3873_v45, %v3876_v25  ;;  %v3743_v40 = vmul.f32 %v15739_v33, %v18749_v47 }
 0x60b   :  { %v3905_v26 = vrot.slane %v3891_v53, 7  ;;  %v3906_v44 = vrot.slane %v3894_v15, 7  ;;  %v3930_v16 = vrot.slane %v3918_v17, 7  ;;  %v3967_v19 = vrot.slane %v15911_v30, 7 }
 0x60c   :  { %v3806_v54 = vadd.f32 %v15823_v29, %v3740_v22  ;;  %v3934_v51 = vrot.slane %v3921_v42, 7  ;;  %v3963_v32 = vrot.slane %v3951_v46, 7  ;;  %v3809_v61 = vadd.f32 %v15861_v49, %v3743_v40 }
 0x60d   :  { %v3812_v20 = vadd.f32 %v15823_v29, %v15746_v12  ;;  %v3907_v23 = vsel %vm174_vm6, %v3905_v26, %v3906_v44  ;;  %v3945_v1 = vmax.f32 %v3894_v15, %v3930_v16  ;;  %v3815_v25 = vadd.f32 %v15861_v49, %v15776_v60 }
 0x60e   :  { %v3824_v58 = vadd.f32 %v15823_v29, %v15752_v5  ;;  %v3915_v41 = vmax.f32 %v3891_v53, %v3907_v23  ;;  %v3935_v4 = vsel %vm174_vm6, %v3930_v16, %v3934_v51  ;;  %v3968_v13 = vsel %vm174_vm6, %v3963_v32, %v3967_v19 }
 0x60f   :  { %v3978_v39 = vmax.f32 %v3921_v42, %v3963_v32  ;;  %v3948_v57 = vmax.f32 %v3918_v17, %v3935_v4  ;;  %v3981_v45 = vmax.f32 %v3951_v46, %v3968_v13  ;;  %v4022_v37 = vrot.slane %v3945_v1, 5 }
 0x610   :  { %v3827_v12 = vadd.f32 %v15861_v49, %v15782_v31  ;;  %v4005_v26 = vrot.slane %v3915_v41, 7  ;;  %v3830_v60 = vadd.f32 %v15823_v29, %v15756_v38  ;;  %v3833_v5 = vadd.f32 %v15861_v49, %v15786_v8 }
 0x611   :  { %v4078_v15 = vrot.slane %v3978_v39, 3  ;;  %v4023_v53 = vrot.slane %v3948_v57, 5  ;;  %v4079_v22 = vrot.slane %v3981_v45, 3  ;;  %v3848_v47 = vmax.f32 %v3806_v54, 0.0 }
 0x612   :  { %v3851_v40 = vmax.f32 %v3809_v61, 0.0  ;;  %v15936_v42 = vsel %vm174_vm6, 0.0, %v4005_v26  ;;  %v3854_v17 = vmax.f32 %v3812_v20, 0.0  ;;  %v3857_v46 = vmax.f32 %v3815_v25, 0.0 }
 0x613   :  { %v3866_v44 = vmax.f32 %v3824_v58, 0.0  ;;  %v4024_v31 = vsel %vm162_vm4, %v4022_v37, %v4023_v53  ;;  %v4038_v16 = vrot.slane %v15936_v42, 1  ;;  %v4056_v19 = vrot.slane %v15936_v42, 2 }
 0x614   :  { %v4080_v38 = vsel %vm150_vm2, %v4078_v15, %v4079_v22  ;;  %v15943_v8 = vsel %vm174_vm6, 0.0, %v4024_v31  ;;  %v3869_v51 = vmax.f32 %v3827_v12, 0.0  ;;  %v3872_v32 = vmax.f32 %v3830_v60, 0.0 }
 0x615   :  { %v15946_v54 = vsel %vm174_vm6, 0.0, %v4080_v38  ;;  %v15949_v61 = vrot.slane %v15943_v8, 1  ;;  %v15953_v20 = vsel %vm144_vm1, %v4056_v19, %v15742_v56  ;;  %v15960_v1 = vrot.slane %v4038_v16, 1  ;;  %v18755_v19 = vld [vmem:[#allocation40_spill] sm:$0xff] }
 0x616   :  { %v15956_v23 = vrot.slane %v15946_v54, 2  ;;  %v4142_v25 = vrot.slane %v15953_v20, 1  ;;  %v3875_v58 = vmax.f32 %v3833_v5, 0.0  ;;  %v3890_v41 = vmax.f32 %v3848_v47, %v3851_v40 }
 0x617   :  { %v3893_v4 = vmax.f32 %v3854_v17, %v3857_v46  ;;  %v4214_v13 = vsel %vm138_vm0, %v15936_v42, %v15949_v61  ;;  %v18750_v57 = vmax.f32 %v15885_v0, 0.0  ;;  %v18751_v45 = vmax.f32 %v15843_v7, 0.0  ;;  %v18754_v46 = vld [vmem:[#allocation39_spill] sm:$0xff] }
 0x618   :  { %v4229_v39 = vsel %vm144_vm1, %v15949_v61, %v15956_v23  ;;  %v3920_v12 = vmax.f32 %v3866_v44, %v3869_v51  ;;  %v3902_v15 = vrot.slane %v3890_v41, 7  ;;  %v3950_v5 = vmax.f32 %v3872_v32, %v3875_v58 }
 0x619   :  { %v3917_v37 = vmax.f32 %v18751_v45, %v18750_v57  ;;  %v4259_v26 = vpack.c.bf16 %v4229_v39, %v4214_v13  ;;  %v3903_v60 = vrot.slane %v3893_v4, 7  ;;  %v18752_v47 = vmax.f32 %v15889_v21, 0.0 }
 0x61a   :  { %v3932_v22 = vrot.slane %v3920_v12, 7  ;;  %v18753_v40 = vmax.f32 %v15848_v55, 0.0  ;;  %v3777_v31 = vmul.f32 %v15736_v18, %v18754_v46  ;;  %v3962_v0 = vrot.slane %v3950_v5, 7 }
 0x61b   :  { %v3929_v53 = vrot.slane %v3917_v37, 7  ;;  %7200 = vmatprep.mubr.bf16.mxu1 %v4259_v26  ;;  %7624 = vmatprep.mubr.bf16.mxu0 %v4259_v26  ;;  %v3904_v7 = vsel %vm174_vm6, %v3902_v15, %v3903_v60  ;;  %v3780_v44 = vmul.f32 %v15791_v9, %v15441_v10  ;;  %v3776_v38 = vmul.f32 %v15730_v11, %v18755_v19  ;;  %v18756_v10 = vld [vmem:[#allocation6_spill] sm:$0xff] }
 0x61c   :  { %v15977_v17 = vmax.f32 %v18753_v40, %v18752_v47  ;;  %v3914_v51 = vmax.f32 %v3890_v41, %v3904_v7  ;;  %v3977_v13 = vmax.f32 %v3920_v12, %v3962_v0  ;;  %v3843_v18 = vadd.f32 %v15855_v63, %v3777_v31 }
 0x61d   :  { %v3933_v21 = vsel %vm174_vm6, %v3929_v53, %v3932_v22  ;;  %v3944_v55 = vmax.f32 %v3893_v4, %v3929_v53  ;;  %v3846_v39 = vadd.f32 %v15797_v36, %v3780_v44  ;;  %v3779_v9 = vmul.f32 %v15739_v33, %v18756_v10 }
 0x61e   :  { %v3965_v32 = vrot.slane %v15977_v17, 7  ;;  %v3947_v58 = vmax.f32 %v3917_v37, %v3933_v21  ;;  %v4004_v45 = vrot.slane %v3914_v51, 7  ;;  %v4075_v15 = vrot.slane %v3977_v13, 3 }
 0x61f   :  { %v4019_v26 = vrot.slane %v3944_v55, 5  ;;  %v3885_v60 = vmax.f32 %v3843_v18, 0.0  ;;  %v3888_v37 = vmax.f32 %v3846_v39, 0.0  ;;  %v3842_v12 = vadd.f32 %v15823_v29, %v3776_v38 }
 0x620   :  { %v3966_v57 = vsel %vm174_vm6, %v3962_v0, %v3965_v32  ;;  %v4020_v41 = vrot.slane %v3947_v58, 5  ;;  %v15994_v4 = vsel %vm174_vm6, 0.0, %v4004_v45  ;;  %v3845_v63 = vadd.f32 %v15861_v49, %v3779_v9  ;;  %v18757_v32 = vld [vmem:[#allocation7_spill] sm:$0xff] }
 0x621   :  { %v3980_v11 = vmax.f32 %v3950_v5, %v3966_v57  ;;  %v4053_v53 = vrot.slane %v15994_v4, 2  ;;  %v4037_v47 = vrot.slane %v15994_v4, 1  ;;  %v3984_v5 = vmax.f32 %v3885_v60, %v3888_v37  ;;  %v12801_v57 = vld [vmem:[%s18602_s2 + $0x200] ss:$16 sps:$4 sm:$0xff]   ;;  %v12804_v45 = vld [vmem:[%s18602_s2 + $0x208] ss:$16 sps:$4 sm:$0xff]  }
 0x622   :  { %v4021_v36 = vsel %vm162_vm4, %v4019_v26, %v4020_v41  ;;  %v3884_v40 = vmax.f32 %v3842_v12, 0.0  ;;  %v3887_v46 = vmax.f32 %v3845_v63, 0.0  ;;  %v3742_v38 = vmul.f32 %v15733_v43, %v15297_v2 }
 0x623   :  { %v4076_v22 = vrot.slane %v3980_v11, 3  ;;  %v16002_v33 = vsel %vm174_vm6, 0.0, %v4021_v36  ;;  %v16011_v7 = vrot.slane %v4037_v47, 1  ;;  %v3990_v44 = vrot.slane %v3984_v5, 7  ;;  %v12809_v36 = vld [vmem:[%s18602_s2 + $0x224] ss:$16 sps:$4 sm:$0xff]  }
 0x624   :  { %v16005_v31 = vrot.slane %v16002_v33, 1  ;;  %v4063_v29 = vrot.slane %v16002_v33, 2  ;;  %v3983_v19 = vmax.f32 %v3884_v40, %v3887_v46  ;;  %v3745_v58 = vmul.f32 %v15794_v27, %v18757_v32 }
 0x625   :  { %v4077_v49 = vsel %vm150_vm2, %v4075_v15, %v4076_v22  ;;  %v16027_v55 = vsel %vm138_vm0, %v16002_v33, %v16011_v7  ;;  %v3996_v13 = vmax.f32 %v15911_v30, %v3990_v44  ;;  %v3999_v18 = vmax.f32 %v3984_v5, %v3990_v44  ;;  %v12812_v22 = vld [vmem:[%s18602_s2 + $0x22c] ss:$16 sps:$4 sm:$0xff]  }
 0x626   :  { %v16014_v0 = vsel %vm174_vm6, 0.0, %v4077_v49  ;;  %v4213_v21 = vsel %vm138_vm0, %v15994_v4, %v16005_v31  ;;  %v3989_v39 = vrot.slane %v3983_v19, 7  ;;  %v3808_v2 = vadd.f32 %v15858_v24, %v3742_v38  ;;  %v12840_v4 = vld [vmem:[%s18602_s2 + $0x2c8] ss:$16 sps:$4 sm:$0xff]  }
 0x627   :  { %v16019_v51 = vrot.slane %v16014_v0, 2  ;;  %v3811_v10 = vadd.f32 %v15800_v52, %v3745_v58  ;;  %v18758_v30 = vmax.f32 %v15832_v34, 0.0  ;;  %v18759_v9 = vmax.f32 %v15874_v62, 0.0 }
 0x628   :  { %v18760_v41 = vmax.f32 %v15836_v59, 0.0  ;;  %v18761_v15 = vmax.f32 %v15878_v35, 0.0  ;;  %v4099_v12 = vrot.slane %v3996_v13, 1  ;;  %v4100_v63 = vrot.slane %v3999_v18, 1 }
 0x629   :  { %v4228_v26 = vsel %vm144_vm1, %v16005_v31, %v16019_v51  ;;  %v3895_v11 = vmax.f32 %v18759_v9, %v18758_v30  ;;  %v3995_v34 = vmax.f32 %v15977_v17, %v3989_v39  ;;  %v3998_v62 = vmax.f32 %v3983_v19, %v3989_v39  ;;  %v12807_v17 = vld [vmem:[%s18602_s2 + $0x220] ss:$16 sps:$4 sm:$0xff]   ;;  %v12810_v19 = vld [vmem:[%s18602_s2 + $0x228] ss:$16 sps:$4 sm:$0xff]  }
 0x62a   :  { %v3922_v60 = vmax.f32 %v18761_v15, %v18760_v41  ;;  %v4258_v37 = vpack.c.bf16 %v4228_v26, %v4213_v21  ;;  %v3850_v5 = vmax.f32 %v3808_v2, 0.0  ;;  %v3853_v40 = vmax.f32 %v3811_v10, 0.0 }
 0x62b   :  { %v3909_v59 = vrot.slane %v3895_v11, 7  ;;  %v4101_v35 = vsel %vm138_vm0, %v4099_v12, %v4100_v63  ;;  %v4096_v46 = vrot.slane %v3995_v34, 1  ;;  %v3931_v49 = vrot.slane %v15894_v3, 7 }
 0x62c   :  { %7201 = vmatmul.mubr.bf16.vlgmr.msra.gmra.mrb[40].mxu1 %v4258_v37  ;;  %7625 = vmatmul.mubr.bf16.vlgmr.msra.gmra.mrb[40].mxu0 %v4258_v37  ;;  %v3936_v44 = vrot.slane %v3922_v60, 7  ;;  %v16061_v38 = vsel %vm174_vm6, 0.0, %v4101_v35  ;;  %v4097_v21 = vrot.slane %v3998_v62, 1  ;;  %v3892_v32 = vmax.f32 %v3850_v5, %v3853_v40 }
 0x62d   :  { %7222 = vmatpush1.bf16.msra.mxu1 %v12801_v57  ;;  %7646 = vmatpush1.bf16.msra.mxu0 %v12804_v45  ;;  %v18762_v58 = vmax.f32 %v15839_v48, 0.0  ;;  %v18763_v13 = vmax.f32 %v15881_v6, 0.0  ;;  %v16074_v39 = vrot.slane %v16061_v38, 2  ;;  %v4184_v2 = vrot.slane %v16061_v38, 3  ;;  %v12815_v57 = vld [vmem:[%s18602_s2 + $0x244] ss:$16 sps:$4 sm:$0xff]  }
 0x62e   :  { %7223 = vmatprep.subr.bf16.mxu1 %v12809_v36  ;;  %7647 = vmatprep.subr.bf16.mxu0 %v12812_v22  ;;  %v12818_v45 = vld [vmem:[%s18602_s2 + $0x24c] ss:$16 sps:$4 sm:$0xff]   ;;  %v3937_v48 = vsel %vm174_vm6, %v3931_v49, %v3936_v44  ;;  %v3946_v26 = vmax.f32 %v3895_v11, %v3931_v49  ;;  %v4098_v6 = vsel %vm138_vm0, %v4096_v46, %v4097_v21  ;;  %v3908_v10 = vrot.slane %v3892_v32, 7  ;;  %v12813_v11 = vld [vmem:[%s18602_s2 + $0x240] ss:$16 sps:$4 sm:$0xff]  }
 0x62f   :  { %v3952_v18 = vmax.f32 %v18763_v13, %v18762_v58  ;;  %v3949_v30 = vmax.f32 %v15894_v3, %v3937_v48  ;;  %v4244_v41 = vsel %vm150_vm2, %v15956_v23, %v4184_v2  ;;  %v16089_v15 = vsel %vm174_vm6, 0.0, %v4098_v6  ;;  %v12816_v3 = vld [vmem:[%s18602_s2 + $0x248] ss:$16 sps:$4 sm:$0xff]   ;;  %v12821_v21 = vld [vmem:[%s18602_s2 + $0x264] ss:$16 sps:$4 sm:$0xff]  }
 0x630   :  { %v4025_v37 = vrot.slane %v3946_v26, 5  ;;  %v4114_v12 = vrot.slane %v16014_v0, 1  ;;  %v4274_v63 = vpack.c.bf16 %v4184_v2, %v4244_v41  ;;  %v4183_v36 = vrot.slane %v16089_v15, 3  ;;  %v12822_v13 = vld [vmem:[%s18602_s2 + $0x268] ss:$16 sps:$4 sm:$0xff]  }
 0x631   :  { %v3964_v9 = vrot.slane %v3952_v18, 7  ;;  %7224 = vmatpush1.bf16.msra.mxu1 %v12807_v17  ;;  %7648 = vmatpush1.bf16.msra.mxu0 %v12810_v19  ;;  %v16100_v22 = vrot.slane %v16089_v15, 2  ;;  %v3910_v34 = vsel %vm174_vm6, %v3908_v10, %v3909_v59  ;;  %v18764_v62 = vrot.slane %v15900_v50, 7  ;;  %v12819_v59 = vld [vmem:[%s18602_s2 + $0x260] ss:$16 sps:$4 sm:$0xff]  }
 0x632   :  { %7225 = vmatprep.subr.bf16.mxu1 %v12815_v57  ;;  %7649 = vmatprep.subr.bf16.mxu0 %v12818_v45  ;;  %v3916_v0 = vmax.f32 %v3892_v32, %v3910_v34  ;;  %v4026_v35 = vrot.slane %v3949_v30, 5  ;;  %v4243_v46 = vsel %vm150_vm2, %v16019_v51, %v4183_v36  ;;  %v16114_v17 = vrot.slane %v4114_v12, 2  ;;  %v12824_v32 = vld [vmem:[%s18602_s2 + $0x26c] ss:$16 sps:$4 sm:$0xff]   ;;  %v12827_v45 = vld [vmem:[%s18602_s2 + $0x284] ss:$16 sps:$4 sm:$0xff]  }
 0x633   :  { %v3970_v5 = vsel %vm174_vm6, %v3964_v9, %v18764_v62  ;;  %v3979_v40 = vmax.f32 %v3922_v60, %v3964_v9  ;;  %7210 = vmatprep.mubr.bf16.mxu1 %v4274_v63  ;;  %7634 = vmatprep.mubr.bf16.mxu0 %v4274_v63  ;;  %v4231_v49 = vsel %vm144_vm1, %v16011_v7, %v16100_v22  ;;  %v4186_v57 = vrot.slane %v4114_v12, 3  ;;  %v12830_v48 = vld [vmem:[%s18602_s2 + $0x28c] ss:$16 sps:$4 sm:$0xff]  }
 0x634   :  { %v3982_v44 = vmax.f32 %v3952_v18, %v3970_v5  ;;  %v4273_v19 = vpack.c.bf16 %v4183_v36, %v4243_v46  ;;  %v4261_v60 = vpack.c.bf16 %v4231_v49, %v16027_v55  ;;  %v4006_v58 = vrot.slane %v3916_v0, 7  ;;  %v12836_v62 = vld [vmem:[%s18602_s2 + $0x2ac] ss:$16 sps:$4 sm:$0xff]  }
 0x635   :  { %v4027_v7 = vsel %vm162_vm4, %v4025_v37, %v4026_v35  ;;  %7226 = vmatpush1.bf16.msra.mxu1 %v12813_v11  ;;  %7650 = vmatpush1.bf16.msra.mxu0 %v12816_v3  ;;  %v4081_v55 = vrot.slane %v3979_v40, 3  ;;  %v3778_v10 = vmul.f32 %v15733_v43, %v15463_v28  ;;  %v3781_v30 = vmul.f32 %v15794_v27, %v15417_v14  ;;  %v12825_v28 = vld [vmem:[%s18602_s2 + $0x280] ss:$16 sps:$4 sm:$0xff]   ;;  %v12828_v11 = vld [vmem:[%s18602_s2 + $0x288] ss:$16 sps:$4 sm:$0xff]  }
 0x636   :  { %v16128_v18 = vsel %vm174_vm6, 0.0, %v4027_v7  ;;  %v4082_v2 = vrot.slane %v3982_v44, 3  ;;  %7211 = vmatmul.mubr.bf16.gmra.mrb[44].mxu1 %v4273_v19  ;;  %7635 = vmatmul.mubr.bf16.gmra.mrb[44].mxu0 %v4273_v19  ;;  %v16137_v26 = vsel %vm174_vm6, 0.0, %v4006_v58  ;;  %v4246_v41 = vsel %vm150_vm2, %v16100_v22, %v4186_v57  ;;  %v12833_v3 = vld [vmem:[%s18602_s2 + $0x2a4] ss:$16 sps:$4 sm:$0xff]  }
 0x637   :  { %v16140_v6 = vrot.slane %v16128_v18, 1  ;;  %7253 = vmatprep.mubr.bf16.mxu1 %v4261_v60  ;;  %7677 = vmatprep.mubr.bf16.mxu0 %v4261_v60  ;;  %v4039_v37 = vrot.slane %v16137_v26, 1  ;;  %v4217_v12 = vsel %vm138_vm0, %v15943_v8, %v15960_v1  ;;  %v16160_v27 = vpack.c.bf16 %v4186_v57, %v4246_v41  ;;  %v12842_v57 = vld [vmem:[%s18602_s2 + $0x2cc] ss:$16 sps:$4 sm:$0xff]  }
 0x638   :  { %v4083_v9 = vsel %vm150_vm2, %v4081_v55, %v4082_v2  ;;  %7227 = vmatprep.subr.bf16.mxu1 %v12821_v21  ;;  %7651 = vmatprep.subr.bf16.mxu0 %v12824_v32  ;;  %v3844_v63 = vadd.f32 %v15858_v24, %v3778_v10  ;;  %v3847_v34 = vadd.f32 %v15800_v52, %v3781_v30  ;;  %v4115_v52 = vrot.slane %v15946_v54, 1  ;;  %v12831_v54 = vld [vmem:[%s18602_s2 + $0x2a0] ss:$16 sps:$4 sm:$0xff]   ;;  %v12834_v32 = vld [vmem:[%s18602_s2 + $0x2a8] ss:$16 sps:$4 sm:$0xff]  }
 0x639   :  { %v4089_v14 = vsel %vm174_vm6, 0.0, %v4083_v9  ;;  %v4215_v43 = vsel %vm138_vm0, %v16137_v26, %v16140_v6  ;;  %7228 = vmatpush1.bf16.msra.mxu1 %v12819_v59  ;;  %7652 = vmatpush1.bf16.msra.mxu0 %v12822_v13  ;;  %v16174_v0 = vrot.slane %v4039_v37, 1  ;;  %v4232_v24 = vsel %vm144_vm1, %v15960_v1, %v16074_v39  ;;  %v12839_v2 = vld [vmem:[%s18602_s2 + $0x2c4] ss:$16 sps:$4 sm:$0xff]  }
 0x63a   :  { %v16169_v36 = vrot.slane %v4089_v14, 2  ;;  %7229 = vmatprep.subr.bf16.mxu1 %v12827_v45  ;;  %7653 = vmatprep.subr.bf16.mxu0 %v12830_v48  ;;  %v3886_v5 = vmax.f32 %v3844_v63, 0.0  ;;  %v16182_v40 = vpack.c.bf16 %v4232_v24, %v4217_v12  ;;  %v4116_v35 = vrot.slane %v4089_v14, 1 }
 0x63b   :  { %v3889_v49 = vmax.f32 %v3847_v34, 0.0  ;;  %v16191_v1 = vsel %vm138_vm0, %v16128_v18, %v16174_v0  ;;  %v4139_v59 = vrot.slane %v15949_v61, 1  ;;  %v4187_v21 = vrot.slane %v4115_v52, 3 }
 0x63c   :  { %v4230_v46 = vsel %vm144_vm1, %v16140_v6, %v16169_v36  ;;  %v16196_v19 = vrot.slane %v4116_v35, 2  ;;  %v16198_v60 = vrot.slane %v4116_v35, 3  ;;  %v4160_v7 = vrot.slane %v4115_v52, 2 }
 0x63d   :  { %v16194_v44 = vpack.c.bf16 %v4230_v46, %v4215_v43  ;;  %7230 = vmatpush1.bf16.msra.mxu1 %v12825_v28  ;;  %7654 = vmatpush1.bf16.msra.mxu0 %v12828_v11  ;;  %v3985_v58 = vmax.f32 %v3886_v5, %v3889_v49  ;;  %v4220_v13 = vsel %vm138_vm0, %v4038_v16, %v4139_v59  ;;  %v4138_v55 = vrot.slane %v16005_v31, 1  ;;  %v12845_v11 = vld [vmem:[%s18602_s2 + $0x2e4] ss:$16 sps:$4 sm:$0xff]   ;;  %v12843_v49 = vld [vmem:[%s18602_s2 + $0x2e0] ss:$16 sps:$4 sm:$0xff]  }
 0x63e   :  { %7231 = vmatprep.subr.bf16.mxu1 %v12833_v3  ;;  %7655 = vmatprep.subr.bf16.mxu0 %v12836_v62  ;;  %v4247_v45 = vsel %vm150_vm2, %v16074_v39, %v4187_v21  ;;  %v4121_v48 = vrot.slane %v16061_v38, 1  ;;  %v4120_v42 = vrot.slane %v16089_v15, 1  ;;  %v4055_v16 = vsel %vm144_vm1, %v4053_v53, %v15742_v56  ;;  %v12837_v53 = vld [vmem:[%s18602_s2 + $0x2c0] ss:$16 sps:$4 sm:$0xff]   ;;  %v12848_v3 = vld [vmem:[%s18602_s2 + $0x2ec] ss:$16 sps:$4 sm:$0xff]  }
 0x63f   :  { %v3991_v10 = vrot.slane %v3985_v58, 7  ;;  %v16224_v30 = vpack.c.bf16 %v4187_v21, %v4247_v45  ;;  %v4235_v9 = vsel %vm144_vm1, %v4139_v59, %v4160_v7  ;;  %v4219_v41 = vsel %vm138_vm0, %v4037_v47, %v4138_v55 }
 0x640   :  { %v16230_v12 = vpack.c.bf16 %v4235_v9, %v4220_v13  ;;  %v4234_v38 = vsel %vm144_vm1, %v4138_v55, %v16114_v17  ;;  %v16234_v15 = vrot.slane %v4121_v48, 2  ;;  %v4190_v28 = vrot.slane %v4121_v48, 3  ;;  %v12854_v13 = vld [vmem:[%s18602_s2 + $0x30c] ss:$16 sps:$4 sm:$0xff]  }
 0x641   :  { %7232 = vmatpush1.bf16.msra.mxu1 %v12831_v54  ;;  %7656 = vmatpush1.bf16.msra.mxu0 %v12834_v32  ;;  %v3997_v47 = vmax.f32 %v15900_v50, %v3991_v10  ;;  %v4000_v14 = vmax.f32 %v3985_v58, %v3991_v10  ;;  %v16243_v43 = vpack.c.bf16 %v4234_v38, %v4219_v41  ;;  %v4189_v63 = vrot.slane %v4120_v42, 3  ;;  %v12846_v54 = vld [vmem:[%s18602_s2 + $0x2e8] ss:$16 sps:$4 sm:$0xff]  }
 0x642   :  { %7233 = vmatprep.subr.bf16.mxu1 %v12839_v2  ;;  %7657 = vmatprep.subr.bf16.mxu0 %v12842_v57  ;;  %v4250_v34 = vsel %vm150_vm2, %v4160_v7, %v4190_v28  ;;  %v4064_v50 = vsel %vm144_vm1, %v4063_v29, %v15742_v56  ;;  %v4141_v24 = vrot.slane %v4055_v16, 1  ;;  %v4162_v62 = vrot.slane %v4120_v42, 2 }
 0x643   :  { %v4102_v5 = vrot.slane %v3997_v47, 1  ;;  %v4103_v35 = vrot.slane %v4000_v14, 1  ;;  %v16256_v52 = vpack.c.bf16 %v4190_v28, %v4250_v34  ;;  %v4249_v46 = vsel %vm150_vm2, %v16114_v17, %v4189_v63  ;;  %v12851_v17 = vld [vmem:[%s18602_s2 + $0x304] ss:$16 sps:$4 sm:$0xff]   ;;  %v12849_v28 = vld [vmem:[%s18602_s2 + $0x300] ss:$16 sps:$4 sm:$0xff]  }
 0x644   :  { %v16263_v59 = vpack.c.bf16 %v4189_v63, %v4249_v46  ;;  %v4144_v21 = vrot.slane %v4064_v50, 1  ;;  %v4222_v33 = vsel %vm138_vm0, %v16005_v31, %v4141_v24  ;;  %v4237_v29 = vsel %vm144_vm1, %v4141_v24, %v4162_v62  ;;  %v12857_v63 = vld [vmem:[%s18602_s2 + $0x324] ss:$16 sps:$4 sm:$0xff]  }
 0x645   :  { %7234 = vmatpush1.bf16.msra.mxu1 %v12837_v53  ;;  %7658 = vmatpush1.bf16.msra.mxu0 %v12840_v4  ;;  %v4104_v32 = vsel %vm138_vm0, %v4102_v5, %v4103_v35  ;;  %v16275_v58 = vpack.c.bf16 %v4237_v29, %v4222_v33  ;;  %v4140_v7 = vrot.slane %v16140_v6, 1  ;;  %v16281_v31 = vsel %vm144_vm1, %v16019_v51, %v15742_v56  ;;  %v12863_v33 = vld [vmem:[%s18602_s2 + $0x344] ss:$16 sps:$4 sm:$0xff]   ;;  %v12866_v29 = vld [vmem:[%s18602_s2 + $0x34c] ss:$16 sps:$4 sm:$0xff]  }
 0x646   :  { %7235 = vmatprep.subr.bf16.mxu1 %v12845_v11  ;;  %7659 = vmatprep.subr.bf16.mxu0 %v12848_v3  ;;  %v4110_v55 = vsel %vm174_vm6, 0.0, %v4104_v32  ;;  %v4225_v2 = vsel %vm138_vm0, %v4055_v16, %v4144_v21  ;;  %v4165_v57 = vrot.slane %v16281_v31, 2  ;;  %v4192_v45 = vrot.slane %v16281_v31, 3  ;;  %v12860_v11 = vld [vmem:[%s18602_s2 + $0x32c] ss:$16 sps:$4 sm:$0xff]  }
 0x647   :  { %v4185_v48 = vrot.slane %v4110_v55, 3  ;;  %v16290_v42 = vrot.slane %v4110_v55, 2  ;;  %v4221_v51 = vsel %vm138_vm0, %v4039_v37, %v4140_v7  ;;  %v4236_v10 = vsel %vm144_vm1, %v4140_v7, %v16196_v19  ;;  %v12852_v37 = vld [vmem:[%s18602_s2 + $0x308] ss:$16 sps:$4 sm:$0xff]   ;;  %v12881_v31 = vld [vmem:[%s18602_s2 + $0x3a4] ss:$16 sps:$4 sm:$0xff]  }
 0x648   :  { %v16297_v9 = vpack.c.bf16 %v4236_v10, %v4221_v51  ;;  %v4240_v16 = vsel %vm144_vm1, %v4144_v21, %v4165_v57  ;;  %v4252_v41 = vsel %vm150_vm2, %v4162_v62, %v4192_v45  ;;  %v4122_v38 = vrot.slane %v4110_v55, 1 }
 0x649   :  { %7236 = vmatpush1.bf16.msra.mxu1 %v12843_v49  ;;  %7660 = vmatpush1.bf16.msra.mxu0 %v12846_v54  ;;  %v4245_v53 = vsel %vm150_vm2, %v16169_v36, %v4185_v48  ;;  %v4233_v4 = vsel %vm144_vm1, %v16174_v0, %v16290_v42  ;;  %v4248_v47 = vsel %vm150_vm2, %v16290_v42, %v16198_v60  ;;  %v4058_v14 = vrot.slane %v16137_v26, 2  ;;  %v12855_v49 = vld [vmem:[%s18602_s2 + $0x320] ss:$16 sps:$4 sm:$0xff]  }
 0x64a   :  { %7237 = vmatprep.subr.bf16.mxu1 %v12851_v17  ;;  %7661 = vmatprep.subr.bf16.mxu0 %v12854_v13  ;;  %v16324_v3 = vpack.c.bf16 %v4185_v48, %v4245_v53  ;;  %v16327_v0 = vpack.c.bf16 %v4233_v4, %v16191_v1  ;;  %v16330_v34 = vpack.c.bf16 %v16198_v60, %v4248_v47  ;;  %v4191_v50 = vrot.slane %v4122_v38, 3 }
 0x64b   :  { %v16332_v26 = vpack.c.bf16 %v4192_v45, %v4252_v41  ;;  %v4059_v24 = vsel %vm144_vm1, %v4058_v14, %v15742_v56  ;;  %v4223_v62 = vsel %vm138_vm0, %v15949_v61, %v4142_v25  ;;  %v4238_v1 = vsel %vm144_vm1, %v4142_v25, %v16234_v15  ;;  %v12858_v61 = vld [vmem:[%s18602_s2 + $0x328] ss:$16 sps:$4 sm:$0xff]  }
 0x64c   :  { %v4251_v60 = vsel %vm150_vm2, %v16196_v19, %v4191_v50  ;;  %v4067_v5 = vrot.slane %v16128_v18, 2  ;;  %v4143_v35 = vrot.slane %v4059_v24, 1  ;;  %v4164_v46 = vrot.slane %v4122_v38, 2  ;;  %v12864_v41 = vld [vmem:[%s18602_s2 + $0x348] ss:$16 sps:$4 sm:$0xff]  }
 0x64d   :  { %7238 = vmatpush1.bf16.msra.mxu1 %v12849_v28  ;;  %7662 = vmatpush1.bf16.msra.mxu0 %v12852_v37  ;;  %v16353_v21 = vpack.c.bf16 %v4191_v50, %v4251_v60  ;;  %v16355_v25 = vpack.c.bf16 %v4238_v1, %v4223_v62  ;;  %v4128_v18 = vsel %vm144_vm1, %v16169_v36, %v15742_v56  ;;  %v4065_v19 = vrot.slane %v15943_v8, 2  ;;  %v12869_v28 = vld [vmem:[%s18602_s2 + $0x364] ss:$16 sps:$4 sm:$0xff]   ;;  %v12872_v37 = vld [vmem:[%s18602_s2 + $0x36c] ss:$16 sps:$4 sm:$0xff]  }
 0x64e   :  { %7239 = vmatprep.subr.bf16.mxu1 %v12857_v63  ;;  %7663 = vmatprep.subr.bf16.mxu0 %v12860_v11  ;;  %v4068_v54 = vsel %vm144_vm1, %v4067_v5, %v15742_v56  ;;  %v4224_v17 = vsel %vm138_vm0, %v16140_v6, %v4143_v35  ;;  %v4239_v36 = vsel %vm144_vm1, %v4143_v35, %v4164_v46  ;;  %v4167_v32 = vrot.slane %v4128_v18, 2  ;;  %v12861_v6 = vld [vmem:[%s18602_s2 + $0x340] ss:$16 sps:$4 sm:$0xff]   ;;  %v12875_v5 = vld [vmem:[%s18602_s2 + $0x384] ss:$16 sps:$4 sm:$0xff]  }
 0x64f   :  { %v16372_v8 = vpack.c.bf16 %v4239_v36, %v4224_v17  ;;  %v4126_v7 = vsel %vm144_vm1, %v15956_v23, %v15742_v56  ;;  %v4066_v13 = vsel %vm144_vm1, %v4065_v19, %v15742_v56  ;;  %v16379_v55 = vpack.c.bf16 %v4240_v16, %v4225_v2  ;;  %v12867_v62 = vld [vmem:[%s18602_s2 + $0x360] ss:$16 sps:$4 sm:$0xff]   ;;  %v12878_v35 = vld [vmem:[%s18602_s2 + $0x38c] ss:$16 sps:$4 sm:$0xff]   ;;  %v12887_v17 = vld [vmem:[%s18602_s2 + $0x3c4] ss:$16 sps:$4 sm:$0xff]  }
 0x650   :  { %v4146_v45 = vrot.slane %v4068_v54, 1  ;;  %v4194_v48 = vrot.slane %v4128_v18, 3  ;;  %v4166_v51 = vrot.slane %v4126_v7, 2  ;;  %v4193_v10 = vrot.slane %v4126_v7, 3  ;;  %v12873_v19 = vld [vmem:[%s18602_s2 + $0x380] ss:$16 sps:$4 sm:$0xff]  }
 0x651   :  { %7240 = vmatpush1.bf16.msra.mxu1 %v12855_v49  ;;  %7664 = vmatpush1.bf16.msra.mxu0 %v12858_v61  ;;  %v4145_v23 = vrot.slane %v4066_v13, 1  ;;  %v4132_v2 = vsel %vm144_vm1, %v16074_v39, %v15742_v56  ;;  %v4130_v16 = vsel %vm144_vm1, %v16100_v22, %v15742_v56  ;;  %v4134_v38 = vsel %vm144_vm1, %v16290_v42, %v15742_v56  ;;  %v12882_v54 = vld [vmem:[%s18602_s2 + $0x3a8] ss:$16 sps:$4 sm:$0xff]   ;;  %v12890_v36 = vld [vmem:[%s18602_s2 + $0x3cc] ss:$16 sps:$4 sm:$0xff]  }
 0x652   :  { %7241 = vmatprep.subr.bf16.mxu1 %v12863_v33  ;;  %7665 = vmatprep.subr.bf16.mxu0 %v12866_v29  ;;  %v4227_v39 = vsel %vm138_vm0, %v4059_v24, %v4146_v45  ;;  %v4242_v53 = vsel %vm144_vm1, %v4146_v45, %v4167_v32  ;;  %v4254_v22 = vsel %vm150_vm2, %v4164_v46, %v4194_v48  ;;  %v4196_v4 = vrot.slane %v4132_v2, 3  ;;  %v12876_v33 = vld [vmem:[%s18602_s2 + $0x388] ss:$16 sps:$4 sm:$0xff]   ;;  %v12879_v29 = vld [vmem:[%s18602_s2 + $0x3a0] ss:$16 sps:$4 sm:$0xff]  }
 0x653   :  { %v16405_v47 = vpack.c.bf16 %v4194_v48, %v4254_v22  ;;  %v4253_v56 = vsel %vm150_vm2, %v16234_v15, %v4193_v10  ;;  %v4226_v42 = vsel %vm138_vm0, %v15953_v20, %v4145_v23  ;;  %v4241_v14 = vsel %vm144_vm1, %v4145_v23, %v4166_v51  ;;  %v12870_v15 = vld [vmem:[%s18602_s2 + $0x368] ss:$16 sps:$4 sm:$0xff]   ;;  %v12893_v13 = vld [vmem:[%s18602_s2 + $0x3e4] ss:$16 sps:$4 sm:$0xff]   ;;  %v12896_v45 = vld [vmem:[%s18602_s2 + $0x3ec] ss:$16 sps:$4 sm:$0xff]  }
 0x654   :  { %v16412_v63 = vpack.c.bf16 %v4193_v10, %v4253_v56  ;;  %v16414_v11 = vpack.c.bf16 %v4241_v14, %v4226_v42  ;;  %v4256_v50 = vsel %vm150_vm2, %v4166_v51, %v4196_v4  ;;  %v4195_v24 = vrot.slane %v4130_v16, 3  ;;  %v12888_v7 = vld [vmem:[%s18602_s2 + $0x3c8] ss:$16 sps:$4 sm:$0xff]   ;;  %v12891_v48 = vld [vmem:[%s18602_s2 + $0x3e0] ss:$16 sps:$4 sm:$0xff]  }
 0x655   :  { %7242 = vmatpush1.bf16.msra.mxu1 %v12861_v6  ;;  %7666 = vmatpush1.bf16.msra.mxu0 %v12864_v41  ;;  %v16423_v20 = vpack.c.bf16 %v4196_v4, %v4256_v50  ;;  %v16425_v1 = vpack.c.bf16 %v4242_v53, %v4227_v39  ;;  %v4197_v60 = vrot.slane %v4134_v38, 3  ;;  %v12894_v51 = vld [vmem:[%s18602_s2 + $0x3e8] ss:$16 sps:$4 sm:$0xff]   ;;  %v12899_v10 = vld [vmem:[%s18602_s2 + $0x404] ss:$16 sps:$4 sm:$0xff]  }
 0x656   :  { %7243 = vmatprep.subr.bf16.mxu1 %v12869_v28  ;;  %7667 = vmatprep.subr.bf16.mxu0 %v12872_v37  ;;  %v4255_v46 = vsel %vm150_vm2, %v4165_v57, %v4195_v24  ;;  %v12884_v57 = vld [vmem:[%s18602_s2 + $0x3ac] ss:$16 sps:$4 sm:$0xff]   ;;  %v12897_v41 = vld [vmem:[%s18602_s2 + $0x400] ss:$16 sps:$4 sm:$0xff]   ;;  %v12900_v23 = vld [vmem:[%s18602_s2 + $0x408] ss:$16 sps:$4 sm:$0xff]  }
 0x657   :  { %v16436_v49 = vpack.c.bf16 %v4195_v24, %v4255_v46  ;;  %v4257_v61 = vsel %vm150_vm2, %v4167_v32, %v4197_v60  ;;  %v12885_v32 = vld [vmem:[%s18602_s2 + $0x3c0] ss:$16 sps:$4 sm:$0xff]   ;;  %v12902_v6 = vld [vmem:[%s18602_s2 + $0x40c] ss:$16 sps:$4 sm:$0xff]   ;;  %v12905_v2 = vld [vmem:[%s18602_s2 + $0x424] ss:$16 sps:$4 sm:$0xff]  }
 0x658   :  { %v16439_v18 = vpack.c.bf16 %v4197_v60, %v4257_v61  ;;  %v12908_v16 = vld [vmem:[%s18602_s2 + $0x42c] ss:$16 sps:$4 sm:$0xff]   ;;  %v12903_v38 = vld [vmem:[%s18602_s2 + $0x420] ss:$16 sps:$4 sm:$0xff]   ;;  %v12906_v28 = vld [vmem:[%s18602_s2 + $0x428] ss:$16 sps:$4 sm:$0xff]  }
 0x659   :  { %7244 = vmatpush1.bf16.msra.mxu1 %v12867_v62  ;;  %7668 = vmatpush1.bf16.msra.mxu0 %v12870_v15  ;;  %v12911_v37 = vld [vmem:[%s18602_s2 + $0x444] ss:$16 sps:$4 sm:$0xff]   ;;  %v12912_v39 = vld [vmem:[%s18602_s2 + $0x448] ss:$16 sps:$4 sm:$0xff]   ;;  %v12920_v22 = vld [vmem:[%s18602_s2 + $0x46c] ss:$16 sps:$4 sm:$0xff]  }
 0x65a   :  { %7245 = vmatprep.subr.bf16.mxu1 %v12875_v5  ;;  %7669 = vmatprep.subr.bf16.mxu0 %v12878_v35  ;;  %v12917_v53 = vld [vmem:[%s18602_s2 + $0x464] ss:$16 sps:$4 sm:$0xff]   ;;  %v12915_v4 = vld [vmem:[%s18602_s2 + $0x460] ss:$16 sps:$4 sm:$0xff]   ;;  %v12918_v56 = vld [vmem:[%s18602_s2 + $0x468] ss:$16 sps:$4 sm:$0xff]  }
 0x65b   :  { %v12923_v42 = vld [vmem:[%s18602_s2 + $0x484] ss:$16 sps:$4 sm:$0xff]   ;;  %v12921_v14 = vld [vmem:[%s18602_s2 + $0x480] ss:$16 sps:$4 sm:$0xff]   ;;  %v12932_v24 = vld [vmem:[%s18602_s2 + $0x4ac] ss:$16 sps:$4 sm:$0xff]  }
 0x65c   :  { %v12929_v50 = vld [vmem:[%s18602_s2 + $0x4a4] ss:$16 sps:$4 sm:$0xff]   ;;  %v12927_v62 = vld [vmem:[%s18602_s2 + $0x4a0] ss:$16 sps:$4 sm:$0xff]   ;;  %v12930_v15 = vld [vmem:[%s18602_s2 + $0x4a8] ss:$16 sps:$4 sm:$0xff]  }
 0x65d   :  { %7246 = vmatpush1.bf16.msra.mxu1 %v12873_v19  ;;  %7670 = vmatpush1.bf16.msra.mxu0 %v12876_v33  ;;  %v12935_v60 = vld [vmem:[%s18602_s2 + $0x4c4] ss:$16 sps:$4 sm:$0xff]   ;;  %v12938_v5 = vld [vmem:[%s18602_s2 + $0x4cc] ss:$16 sps:$4 sm:$0xff]   ;;  %v12933_v35 = vld [vmem:[%s18602_s2 + $0x4c0] ss:$16 sps:$4 sm:$0xff]  }
 0x65e   :  { %7247 = vmatprep.subr.bf16.mxu1 %v12881_v31  ;;  %7671 = vmatprep.subr.bf16.mxu0 %v12884_v57  ;;  %v12936_v46 = vld [vmem:[%s18602_s2 + $0x4c8] ss:$16 sps:$4 sm:$0xff]   ;;  %v12941_v61 = vld [vmem:[%s18602_s2 + $0x4e4] ss:$16 sps:$4 sm:$0xff]   ;;  %v12944_v19 = vld [vmem:[%s18602_s2 + $0x4ec] ss:$16 sps:$4 sm:$0xff]  }
 0x65f   :  { %v12939_v33 = vld [vmem:[%s18602_s2 + $0x4e0] ss:$16 sps:$4 sm:$0xff]   ;;  %v12942_v31 = vld [vmem:[%s18602_s2 + $0x4e8] ss:$16 sps:$4 sm:$0xff]   ;;  %v12947_v57 = vld [vmem:[%s18602_s2 + $0x504] ss:$16 sps:$4 sm:$0xff]  }
 0x661   :  { %7248 = vmatpush1.bf16.msra.mxu1 %v12879_v29  ;;  %7672 = vmatpush1.bf16.msra.mxu0 %v12882_v54  ;;  %v12950_v29 = vld [vmem:[%s18602_s2 + $0x50c] ss:$16 sps:$4 sm:$0xff]   ;;  %v12945_v54 = vld [vmem:[%s18602_s2 + $0x500] ss:$16 sps:$4 sm:$0xff]  }
 0x662   :  { %7249 = vmatprep.subr.bf16.mxu1 %v12887_v17  ;;  %7673 = vmatprep.subr.bf16.mxu0 %v12890_v36  ;;  %v12948_v17 = vld [vmem:[%s18602_s2 + $0x508] ss:$16 sps:$4 sm:$0xff]   ;;  %v12953_v36 = vld [vmem:[%s18602_s2 + $0x524] ss:$16 sps:$4 sm:$0xff]  }
 0x665   :  { %7250 = vmatpush1.bf16.msra.mxu1 %v12885_v32  ;;  %7674 = vmatpush1.bf16.msra.mxu0 %v12888_v7  ;;  %v12956_v32 = vld [vmem:[%s18602_s2 + $0x52c] ss:$16 sps:$4 sm:$0xff]   ;;  %v12951_v7 = vld [vmem:[%s18602_s2 + $0x520] ss:$16 sps:$4 sm:$0xff]  }
 0x666   :  { %7251 = vmatprep.subr.bf16.mxu1 %v12893_v13  ;;  %7675 = vmatprep.subr.bf16.mxu0 %v12896_v45  ;;  %v12954_v13 = vld [vmem:[%s18602_s2 + $0x528] ss:$16 sps:$4 sm:$0xff]   ;;  %v12959_v45 = vld [vmem:[%s18602_s2 + $0x544] ss:$16 sps:$4 sm:$0xff]  }
 0x669   :  { %7252 = vmatpush1.bf16.msra.mxu1 %v12891_v48  ;;  %7676 = vmatpush1.bf16.msra.mxu0 %v12894_v51  ;;  %v12962_v48 = vld [vmem:[%s18602_s2 + $0x54c] ss:$16 sps:$4 sm:$0xff]   ;;  %v12957_v51 = vld [vmem:[%s18602_s2 + $0x540] ss:$16 sps:$4 sm:$0xff]  }
 0x66a   :  { %7274 = vmatprep.subr.bf16.mxu1 %v12899_v10  ;;  %7698 = vmatprep.subr.bf16.mxu0 %v12902_v6  ;;  %v12960_v10 = vld [vmem:[%s18602_s2 + $0x548] ss:$16 sps:$4 sm:$0xff]   ;;  %v12965_v6 = vld [vmem:[%s18602_s2 + $0x564] ss:$16 sps:$4 sm:$0xff]  }
 0x66c   :  { %7254 = vmatmul.mubr.bf16.vlgmr.msra.gmra.mrb[40].mxu1 %v16194_v44  ;;  %7678 = vmatmul.mubr.bf16.vlgmr.msra.gmra.mrb[40].mxu0 %v16194_v44  ;;  %v12914_v44 = vld [vmem:[%s18602_s2 + $0x44c] ss:$16 sps:$4 sm:$0xff]  }
 0x66d   :  { %7263 = vmatprep.mubr.bf16.mxu1 %v16160_v27  ;;  %7275 = vmatpush1.bf16.msra.mxu1 %v12897_v41  ;;  %v12968_v41 = vld [vmem:[%s18602_s2 + $0x56c] ss:$16 sps:$4 sm:$0xff]  }
 0x66e   :  { %7687 = vmatprep.mubr.bf16.mxu0 %v16160_v27  ;;  %7699 = vmatpush1.bf16.msra.mxu0 %v12900_v23  ;;  %v12909_v27 = vld [vmem:[%s18602_s2 + $0x440] ss:$16 sps:$4 sm:$0xff]  }
 0x66f   :  { %7276 = vmatprep.subr.bf16.mxu1 %v12905_v2  ;;  %7700 = vmatprep.subr.bf16.mxu0 %v12908_v16  ;;  %v12963_v23 = vld [vmem:[%s18602_s2 + $0x560] ss:$16 sps:$4 sm:$0xff]   ;;  %v12966_v2 = vld [vmem:[%s18602_s2 + $0x568] ss:$16 sps:$4 sm:$0xff]   ;;  %v12971_v16 = vld [vmem:[%s18602_s2 + $0x584] ss:$16 sps:$4 sm:$0xff]  }
 0x671   :  { %7277 = vmatpush1.bf16.msra.mxu1 %v12903_v38  ;;  %v12974_v38 = vld [vmem:[%s18602_s2 + $0x58c] ss:$16 sps:$4 sm:$0xff]  }
 0x672   :  { %7701 = vmatpush1.bf16.msra.mxu0 %v12906_v28  ;;  %7278 = vmatprep.subr.bf16.mxu1 %v12911_v37  ;;  %v12969_v28 = vld [vmem:[%s18602_s2 + $0x580] ss:$16 sps:$4 sm:$0xff]   ;;  %v12972_v37 = vld [vmem:[%s18602_s2 + $0x588] ss:$16 sps:$4 sm:$0xff]  }
 0x673   :  { %7702 = vmatprep.subr.bf16.mxu0 %v12914_v44  ;;  %v12977_v44 = vld [vmem:[%s18602_s2 + $0x5a4] ss:$16 sps:$4 sm:$0xff]  }
 0x674   :  { %7264 = vmatmul.mubr.bf16.gmra.mrb[44].mxu1 %v16324_v3  ;;  %7688 = vmatmul.mubr.bf16.gmra.mrb[44].mxu0 %v16324_v3  ;;  %v12926_v3 = vld [vmem:[%s18602_s2 + $0x48c] ss:$16 sps:$4 sm:$0xff]  }
 0x675   :  { %7279 = vmatpush1.bf16.msra.mxu1 %v12909_v27  ;;  %7306 = vmatprep.mubr.bf16.mxu1 %v16327_v0  ;;  %v12980_v27 = vld [vmem:[%s18602_s2 + $0x5ac] ss:$16 sps:$4 sm:$0xff]  }
 0x676   :  { %7703 = vmatpush1.bf16.msra.mxu0 %v12912_v39  ;;  %7730 = vmatprep.mubr.bf16.mxu0 %v16327_v0  ;;  %v12924_v0 = vld [vmem:[%s18602_s2 + $0x488] ss:$16 sps:$4 sm:$0xff]   ;;  %v12975_v39 = vld [vmem:[%s18602_s2 + $0x5a0] ss:$16 sps:$4 sm:$0xff]  }
 0x677   :  { %7280 = vmatprep.subr.bf16.mxu1 %v12917_v53  ;;  %7704 = vmatprep.subr.bf16.mxu0 %v12920_v22  ;;  %v12978_v53 = vld [vmem:[%s18602_s2 + $0x5a8] ss:$16 sps:$4 sm:$0xff]   ;;  %v12983_v22 = vld [vmem:[%s18602_s2 + $0x5c4] ss:$16 sps:$4 sm:$0xff]  }
 0x679   :  { %7281 = vmatpush1.bf16.msra.mxu1 %v12915_v4  ;;  %v12986_v4 = vld [vmem:[%s18602_s2 + $0x5cc] ss:$16 sps:$4 sm:$0xff]  }
 0x67a   :  { %7705 = vmatpush1.bf16.msra.mxu0 %v12918_v56  ;;  %7282 = vmatprep.subr.bf16.mxu1 %v12923_v42  ;;  %v12981_v56 = vld [vmem:[%s18602_s2 + $0x5c0] ss:$16 sps:$4 sm:$0xff]   ;;  %v12984_v42 = vld [vmem:[%s18602_s2 + $0x5c8] ss:$16 sps:$4 sm:$0xff]  }
 0x67b   :  { %7706 = vmatprep.subr.bf16.mxu0 %v12926_v3  ;;  %v12989_v3 = vld [vmem:[%s18602_s2 + $0x5e4] ss:$16 sps:$4 sm:$0xff]  }
 0x67d   :  { %7283 = vmatpush1.bf16.msra.mxu1 %v12921_v14  ;;  %v12992_v14 = vld [vmem:[%s18602_s2 + $0x5ec] ss:$16 sps:$4 sm:$0xff]  }
 0x67e   :  { %7707 = vmatpush1.bf16.msra.mxu0 %v12924_v0  ;;  %7284 = vmatprep.subr.bf16.mxu1 %v12929_v50  ;;  %v12987_v0 = vld [vmem:[%s18602_s2 + $0x5e0] ss:$16 sps:$4 sm:$0xff]   ;;  %v12990_v50 = vld [vmem:[%s18602_s2 + $0x5e8] ss:$16 sps:$4 sm:$0xff]  }
 0x67f   :  { %7708 = vmatprep.subr.bf16.mxu0 %v12932_v24  ;;  %v12995_v24 = vld [vmem:[%s18602_s2 + $0x604] ss:$16 sps:$4 sm:$0xff]  }
 0x681   :  { %7285 = vmatpush1.bf16.msra.mxu1 %v12927_v62  ;;  %v12998_v62 = vld [vmem:[%s18602_s2 + $0x60c] ss:$16 sps:$4 sm:$0xff]  }
 0x682   :  { %7709 = vmatpush1.bf16.msra.mxu0 %v12930_v15  ;;  %7286 = vmatprep.subr.bf16.mxu1 %v12935_v60  ;;  %v12993_v15 = vld [vmem:[%s18602_s2 + $0x600] ss:$16 sps:$4 sm:$0xff]   ;;  %v12996_v60 = vld [vmem:[%s18602_s2 + $0x608] ss:$16 sps:$4 sm:$0xff]  }
 0x683   :  { %7710 = vmatprep.subr.bf16.mxu0 %v12938_v5  ;;  %v13001_v5 = vld [vmem:[%s18602_s2 + $0x624] ss:$16 sps:$4 sm:$0xff]  }
 0x685   :  { %7287 = vmatpush1.bf16.msra.mxu1 %v12933_v35  ;;  %v13004_v35 = vld [vmem:[%s18602_s2 + $0x62c] ss:$16 sps:$4 sm:$0xff]  }
 0x686   :  { %7711 = vmatpush1.bf16.msra.mxu0 %v12936_v46  ;;  %7288 = vmatprep.subr.bf16.mxu1 %v12941_v61  ;;  %v12999_v46 = vld [vmem:[%s18602_s2 + $0x620] ss:$16 sps:$4 sm:$0xff]   ;;  %v13002_v61 = vld [vmem:[%s18602_s2 + $0x628] ss:$16 sps:$4 sm:$0xff]  }
 0x687   :  { %7712 = vmatprep.subr.bf16.mxu0 %v12944_v19  ;;  %v13007_v19 = vld [vmem:[%s18602_s2 + $0x644] ss:$16 sps:$4 sm:$0xff]  }
 0x689   :  { %7289 = vmatpush1.bf16.msra.mxu1 %v12939_v33  ;;  %v13008_v33 = vld [vmem:[%s18602_s2 + $0x648] ss:$16 sps:$4 sm:$0xff]  }
 0x68a   :  { %7713 = vmatpush1.bf16.msra.mxu0 %v12942_v31  ;;  %7290 = vmatprep.subr.bf16.mxu1 %v12947_v57  ;;  %v13013_v31 = vld [vmem:[%s18602_s2 + $0x664] ss:$16 sps:$4 sm:$0xff]   ;;  %v13016_v57 = vld [vmem:[%s18602_s2 + $0x66c] ss:$16 sps:$4 sm:$0xff]  }
 0x68b   :  { %7714 = vmatprep.subr.bf16.mxu0 %v12950_v29  ;;  %v13011_v29 = vld [vmem:[%s18602_s2 + $0x660] ss:$16 sps:$4 sm:$0xff]  }
 0x68d   :  { %7291 = vmatpush1.bf16.msra.mxu1 %v12945_v54  ;;  %v13014_v54 = vld [vmem:[%s18602_s2 + $0x668] ss:$16 sps:$4 sm:$0xff]  }
 0x68e   :  { %7715 = vmatpush1.bf16.msra.mxu0 %v12948_v17  ;;  %7292 = vmatprep.subr.bf16.mxu1 %v12953_v36  ;;  %v13019_v17 = vld [vmem:[%s18602_s2 + $0x684] ss:$16 sps:$4 sm:$0xff]   ;;  %v13020_v36 = vld [vmem:[%s18602_s2 + $0x688] ss:$16 sps:$4 sm:$0xff]  }
 0x68f   :  { %7716 = vmatprep.subr.bf16.mxu0 %v12956_v32  ;;  %v13025_v32 = vld [vmem:[%s18602_s2 + $0x6a4] ss:$16 sps:$4 sm:$0xff]  }
 0x691   :  { %7293 = vmatpush1.bf16.msra.mxu1 %v12951_v7  ;;  %v13028_v7 = vld [vmem:[%s18602_s2 + $0x6ac] ss:$16 sps:$4 sm:$0xff]  }
 0x692   :  { %7717 = vmatpush1.bf16.msra.mxu0 %v12954_v13  ;;  %7294 = vmatprep.subr.bf16.mxu1 %v12959_v45  ;;  %v13023_v13 = vld [vmem:[%s18602_s2 + $0x6a0] ss:$16 sps:$4 sm:$0xff]   ;;  %v13026_v45 = vld [vmem:[%s18602_s2 + $0x6a8] ss:$16 sps:$4 sm:$0xff]  }
 0x693   :  { %7718 = vmatprep.subr.bf16.mxu0 %v12962_v48  ;;  %v13031_v48 = vld [vmem:[%s18602_s2 + $0x6c4] ss:$16 sps:$4 sm:$0xff]  }
 0x695   :  { %7295 = vmatpush1.bf16.msra.mxu1 %v12957_v51  ;;  %v13034_v51 = vld [vmem:[%s18602_s2 + $0x6cc] ss:$16 sps:$4 sm:$0xff]  }
 0x696   :  { %7719 = vmatpush1.bf16.msra.mxu0 %v12960_v10  ;;  %7296 = vmatprep.subr.bf16.mxu1 %v12965_v6  ;;  %v13029_v10 = vld [vmem:[%s18602_s2 + $0x6c0] ss:$16 sps:$4 sm:$0xff]   ;;  %v13032_v6 = vld [vmem:[%s18602_s2 + $0x6c8] ss:$16 sps:$4 sm:$0xff]  }
 0x697   :  { %7720 = vmatprep.subr.bf16.mxu0 %v12968_v41  ;;  %v13037_v41 = vld [vmem:[%s18602_s2 + $0x6e4] ss:$16 sps:$4 sm:$0xff]  }
 0x699   :  { %7297 = vmatpush1.bf16.msra.mxu1 %v12963_v23  ;;  %v13040_v23 = vld [vmem:[%s18602_s2 + $0x6ec] ss:$16 sps:$4 sm:$0xff]  }
 0x69a   :  { %7721 = vmatpush1.bf16.msra.mxu0 %v12966_v2  ;;  %7298 = vmatprep.subr.bf16.mxu1 %v12971_v16  ;;  %v13035_v2 = vld [vmem:[%s18602_s2 + $0x6e0] ss:$16 sps:$4 sm:$0xff]   ;;  %v13038_v16 = vld [vmem:[%s18602_s2 + $0x6e8] ss:$16 sps:$4 sm:$0xff]  }
 0x69b   :  { %7722 = vmatprep.subr.bf16.mxu0 %v12974_v38  ;;  %v13043_v38 = vld [vmem:[%s18602_s2 + $0x704] ss:$16 sps:$4 sm:$0xff]  }
 0x69d   :  { %7299 = vmatpush1.bf16.msra.mxu1 %v12969_v28  ;;  %v13046_v28 = vld [vmem:[%s18602_s2 + $0x70c] ss:$16 sps:$4 sm:$0xff]  }
 0x69e   :  { %7723 = vmatpush1.bf16.msra.mxu0 %v12972_v37  ;;  %7300 = vmatprep.subr.bf16.mxu1 %v12977_v44  ;;  %v13041_v37 = vld [vmem:[%s18602_s2 + $0x700] ss:$16 sps:$4 sm:$0xff]   ;;  %v13044_v44 = vld [vmem:[%s18602_s2 + $0x708] ss:$16 sps:$4 sm:$0xff]  }
 0x69f   :  { %7724 = vmatprep.subr.bf16.mxu0 %v12980_v27  ;;  %v13049_v27 = vld [vmem:[%s18602_s2 + $0x724] ss:$16 sps:$4 sm:$0xff]  }
 0x6a1   :  { %7301 = vmatpush1.bf16.msra.mxu1 %v12975_v39  ;;  %v13052_v39 = vld [vmem:[%s18602_s2 + $0x72c] ss:$16 sps:$4 sm:$0xff]  }
 0x6a2   :  { %7725 = vmatpush1.bf16.msra.mxu0 %v12978_v53  ;;  %7302 = vmatprep.subr.bf16.mxu1 %v12983_v22  ;;  %v13047_v53 = vld [vmem:[%s18602_s2 + $0x720] ss:$16 sps:$4 sm:$0xff]   ;;  %v13050_v22 = vld [vmem:[%s18602_s2 + $0x728] ss:$16 sps:$4 sm:$0xff]  }
 0x6a3   :  { %7726 = vmatprep.subr.bf16.mxu0 %v12986_v4  ;;  %v13055_v4 = vld [vmem:[%s18602_s2 + $0x744] ss:$16 sps:$4 sm:$0xff]  }
 0x6a5   :  { %7303 = vmatpush1.bf16.msra.mxu1 %v12981_v56  ;;  %v13058_v56 = vld [vmem:[%s18602_s2 + $0x74c] ss:$16 sps:$4 sm:$0xff]  }
 0x6a6   :  { %7727 = vmatpush1.bf16.msra.mxu0 %v12984_v42  ;;  %7304 = vmatprep.subr.bf16.mxu1 %v12989_v3  ;;  %v13053_v42 = vld [vmem:[%s18602_s2 + $0x740] ss:$16 sps:$4 sm:$0xff]   ;;  %v13056_v3 = vld [vmem:[%s18602_s2 + $0x748] ss:$16 sps:$4 sm:$0xff]  }
 0x6a7   :  { %7728 = vmatprep.subr.bf16.mxu0 %v12992_v14  ;;  %v13061_v14 = vld [vmem:[%s18602_s2 + $0x764] ss:$16 sps:$4 sm:$0xff]  }
 0x6a9   :  { %7305 = vmatpush1.bf16.msra.mxu1 %v12987_v0  ;;  %v13064_v0 = vld [vmem:[%s18602_s2 + $0x76c] ss:$16 sps:$4 sm:$0xff]  }
 0x6aa   :  { %7729 = vmatpush1.bf16.msra.mxu0 %v12990_v50  ;;  %7327 = vmatprep.subr.bf16.mxu1 %v12995_v24  ;;  %v13059_v50 = vld [vmem:[%s18602_s2 + $0x760] ss:$16 sps:$4 sm:$0xff]   ;;  %v13062_v24 = vld [vmem:[%s18602_s2 + $0x768] ss:$16 sps:$4 sm:$0xff]  }
 0x6ab   :  { %7751 = vmatprep.subr.bf16.mxu0 %v12998_v62  ;;  %v13067_v62 = vld [vmem:[%s18602_s2 + $0x784] ss:$16 sps:$4 sm:$0xff]  }
 0x6ac   :  { %7307 = vmatmul.mubr.bf16.vlgmr.msra.gmra.mrb[40].mxu1 %v16182_v40 }
 0x6ad   :  { %7731 = vmatmul.mubr.bf16.vlgmr.msra.gmra.mrb[40].mxu0 %v16182_v40  ;;  %7316 = vmatprep.mubr.bf16.mxu1 %v16330_v34  ;;  %v13010_v40 = vld [vmem:[%s18602_s2 + $0x64c] ss:$16 sps:$4 sm:$0xff]  }
 0x6ae   :  { %7328 = vmatpush1.bf16.msra.mxu1 %v12993_v15  ;;  %7740 = vmatprep.mubr.bf16.mxu0 %v16330_v34  ;;  %v13005_v34 = vld [vmem:[%s18602_s2 + $0x640] ss:$16 sps:$4 sm:$0xff]   ;;  %v13070_v15 = vld [vmem:[%s18602_s2 + $0x78c] ss:$16 sps:$4 sm:$0xff]  }
 0x6af   :  { %7752 = vmatpush1.bf16.msra.mxu0 %v12996_v60  ;;  %7329 = vmatprep.subr.bf16.mxu1 %v13001_v5  ;;  %v13065_v60 = vld [vmem:[%s18602_s2 + $0x780] ss:$16 sps:$4 sm:$0xff]   ;;  %v13068_v5 = vld [vmem:[%s18602_s2 + $0x788] ss:$16 sps:$4 sm:$0xff]  }
 0x6b0   :  { %7753 = vmatprep.subr.bf16.mxu0 %v13004_v35  ;;  %v13073_v35 = vld [vmem:[%s18602_s2 + $0x7a4] ss:$16 sps:$4 sm:$0xff]  }
 0x6b2   :  { %7330 = vmatpush1.bf16.msra.mxu1 %v12999_v46  ;;  %v13076_v46 = vld [vmem:[%s18602_s2 + $0x7ac] ss:$16 sps:$4 sm:$0xff]  }
 0x6b3   :  { %7754 = vmatpush1.bf16.msra.mxu0 %v13002_v61  ;;  %7331 = vmatprep.subr.bf16.mxu1 %v13007_v19  ;;  %v13071_v61 = vld [vmem:[%s18602_s2 + $0x7a0] ss:$16 sps:$4 sm:$0xff]   ;;  %v13074_v19 = vld [vmem:[%s18602_s2 + $0x7a8] ss:$16 sps:$4 sm:$0xff]  }
 0x6b4   :  { %7317 = vmatmul.mubr.bf16.gmra.mrb[44].mxu1 %v16224_v30  ;;  %7755 = vmatprep.subr.bf16.mxu0 %v13010_v40  ;;  %v13079_v40 = vld [vmem:[%s18602_s2 + $0x7c4] ss:$16 sps:$4 sm:$0xff]  }
 0x6b5   :  { %7741 = vmatmul.mubr.bf16.gmra.mrb[44].mxu0 %v16224_v30  ;;  %7359 = vmatprep.mubr.bf16.mxu1 %v16230_v12  ;;  %v13022_v30 = vld [vmem:[%s18602_s2 + $0x68c] ss:$16 sps:$4 sm:$0xff]  }
 0x6b6   :  { %7332 = vmatpush1.bf16.msra.mxu1 %v13005_v34  ;;  %7783 = vmatprep.mubr.bf16.mxu0 %v16230_v12  ;;  %v13017_v12 = vld [vmem:[%s18602_s2 + $0x680] ss:$16 sps:$4 sm:$0xff]   ;;  %v13082_v34 = vld [vmem:[%s18602_s2 + $0x7cc] ss:$16 sps:$4 sm:$0xff]  }
 0x6b7   :  { %7756 = vmatpush1.bf16.msra.mxu0 %v13008_v33  ;;  %7333 = vmatprep.subr.bf16.mxu1 %v13013_v31  ;;  %v13077_v33 = vld [vmem:[%s18602_s2 + $0x7c0] ss:$16 sps:$4 sm:$0xff]   ;;  %v13080_v31 = vld [vmem:[%s18602_s2 + $0x7c8] ss:$16 sps:$4 sm:$0xff]  }
 0x6b8   :  { %7757 = vmatprep.subr.bf16.mxu0 %v13016_v57  ;;  %v13085_v57 = vld [vmem:[%s18602_s2 + $0x7e4] ss:$16 sps:$4 sm:$0xff]  }
 0x6ba   :  { %7334 = vmatpush1.bf16.msra.mxu1 %v13011_v29  ;;  %v13088_v29 = vld [vmem:[%s18602_s2 + $0x7ec] ss:$16 sps:$4 sm:$0xff]  }
 0x6bb   :  { %7758 = vmatpush1.bf16.msra.mxu0 %v13014_v54  ;;  %7335 = vmatprep.subr.bf16.mxu1 %v13019_v17  ;;  %v13083_v54 = vld [vmem:[%s18602_s2 + $0x7e0] ss:$16 sps:$4 sm:$0xff]   ;;  %v13086_v17 = vld [vmem:[%s18602_s2 + $0x7e8] ss:$16 sps:$4 sm:$0xff]  }
 0x6bc   :  { %7759 = vmatprep.subr.bf16.mxu0 %v13022_v30  ;;  %v13091_v30 = vld [vmem:[%s18602_s2 + $0x804] ss:$16 sps:$4 sm:$0xff]  }
 0x6be   :  { %7336 = vmatpush1.bf16.msra.mxu1 %v13017_v12  ;;  %v13094_v12 = vld [vmem:[%s18602_s2 + $0x80c] ss:$16 sps:$4 sm:$0xff]  }
 0x6bf   :  { %7760 = vmatpush1.bf16.msra.mxu0 %v13020_v36  ;;  %7337 = vmatprep.subr.bf16.mxu1 %v13025_v32  ;;  %v13089_v36 = vld [vmem:[%s18602_s2 + $0x800] ss:$16 sps:$4 sm:$0xff]   ;;  %v13092_v32 = vld [vmem:[%s18602_s2 + $0x808] ss:$16 sps:$4 sm:$0xff]  }
 0x6c0   :  { %7761 = vmatprep.subr.bf16.mxu0 %v13028_v7  ;;  %v13097_v7 = vld [vmem:[%s18602_s2 + $0x824] ss:$16 sps:$4 sm:$0xff]  }
 0x6c2   :  { %7338 = vmatpush1.bf16.msra.mxu1 %v13023_v13  ;;  %v13100_v13 = vld [vmem:[%s18602_s2 + $0x82c] ss:$16 sps:$4 sm:$0xff]  }
 0x6c3   :  { %7762 = vmatpush1.bf16.msra.mxu0 %v13026_v45  ;;  %7339 = vmatprep.subr.bf16.mxu1 %v13031_v48  ;;  %v13095_v45 = vld [vmem:[%s18602_s2 + $0x820] ss:$16 sps:$4 sm:$0xff]   ;;  %v13098_v48 = vld [vmem:[%s18602_s2 + $0x828] ss:$16 sps:$4 sm:$0xff]  }
 0x6c4   :  { %7763 = vmatprep.subr.bf16.mxu0 %v13034_v51  ;;  %v13103_v51 = vld [vmem:[%s18602_s2 + $0x844] ss:$16 sps:$4 sm:$0xff]  }
 0x6c6   :  { %7340 = vmatpush1.bf16.msra.mxu1 %v13029_v10  ;;  %v13104_v10 = vld [vmem:[%s18602_s2 + $0x848] ss:$16 sps:$4 sm:$0xff]  }
 0x6c7   :  { %7764 = vmatpush1.bf16.msra.mxu0 %v13032_v6  ;;  %7341 = vmatprep.subr.bf16.mxu1 %v13037_v41  ;;  %v13109_v6 = vld [vmem:[%s18602_s2 + $0x864] ss:$16 sps:$4 sm:$0xff]   ;;  %v13112_v41 = vld [vmem:[%s18602_s2 + $0x86c] ss:$16 sps:$4 sm:$0xff]  }
 0x6c8   :  { %7765 = vmatprep.subr.bf16.mxu0 %v13040_v23  ;;  %v13107_v23 = vld [vmem:[%s18602_s2 + $0x860] ss:$16 sps:$4 sm:$0xff]  }
 0x6ca   :  { %7342 = vmatpush1.bf16.msra.mxu1 %v13035_v2  ;;  %v13110_v2 = vld [vmem:[%s18602_s2 + $0x868] ss:$16 sps:$4 sm:$0xff]  }
 0x6cb   :  { %7766 = vmatpush1.bf16.msra.mxu0 %v13038_v16  ;;  %7343 = vmatprep.subr.bf16.mxu1 %v13043_v38  ;;  %v13115_v16 = vld [vmem:[%s18602_s2 + $0x884] ss:$16 sps:$4 sm:$0xff]   ;;  %v13116_v38 = vld [vmem:[%s18602_s2 + $0x888] ss:$16 sps:$4 sm:$0xff]  }
 0x6cc   :  { %7767 = vmatprep.subr.bf16.mxu0 %v13046_v28  ;;  %v13121_v28 = vld [vmem:[%s18602_s2 + $0x8a4] ss:$16 sps:$4 sm:$0xff]  }
 0x6ce   :  { %7344 = vmatpush1.bf16.msra.mxu1 %v13041_v37  ;;  %v13124_v37 = vld [vmem:[%s18602_s2 + $0x8ac] ss:$16 sps:$4 sm:$0xff]  }
 0x6cf   :  { %7768 = vmatpush1.bf16.msra.mxu0 %v13044_v44  ;;  %7345 = vmatprep.subr.bf16.mxu1 %v13049_v27  ;;  %v13119_v44 = vld [vmem:[%s18602_s2 + $0x8a0] ss:$16 sps:$4 sm:$0xff]   ;;  %v13122_v27 = vld [vmem:[%s18602_s2 + $0x8a8] ss:$16 sps:$4 sm:$0xff]  }
 0x6d0   :  { %7769 = vmatprep.subr.bf16.mxu0 %v13052_v39  ;;  %v13127_v39 = vld [vmem:[%s18602_s2 + $0x8c4] ss:$16 sps:$4 sm:$0xff]  }
 0x6d2   :  { %7346 = vmatpush1.bf16.msra.mxu1 %v13047_v53  ;;  %v13130_v53 = vld [vmem:[%s18602_s2 + $0x8cc] ss:$16 sps:$4 sm:$0xff]  }
 0x6d3   :  { %7770 = vmatpush1.bf16.msra.mxu0 %v13050_v22  ;;  %7347 = vmatprep.subr.bf16.mxu1 %v13055_v4  ;;  %v13125_v22 = vld [vmem:[%s18602_s2 + $0x8c0] ss:$16 sps:$4 sm:$0xff]   ;;  %v13128_v4 = vld [vmem:[%s18602_s2 + $0x8c8] ss:$16 sps:$4 sm:$0xff]  }
 0x6d4   :  { %7771 = vmatprep.subr.bf16.mxu0 %v13058_v56  ;;  %v13133_v56 = vld [vmem:[%s18602_s2 + $0x8e4] ss:$16 sps:$4 sm:$0xff]  }
 0x6d6   :  { %7348 = vmatpush1.bf16.msra.mxu1 %v13053_v42  ;;  %v13136_v42 = vld [vmem:[%s18602_s2 + $0x8ec] ss:$16 sps:$4 sm:$0xff]  }
 0x6d7   :  { %7772 = vmatpush1.bf16.msra.mxu0 %v13056_v3  ;;  %7349 = vmatprep.subr.bf16.mxu1 %v13061_v14  ;;  %v13131_v3 = vld [vmem:[%s18602_s2 + $0x8e0] ss:$16 sps:$4 sm:$0xff]   ;;  %v13134_v14 = vld [vmem:[%s18602_s2 + $0x8e8] ss:$16 sps:$4 sm:$0xff]  }
 0x6d8   :  { %7773 = vmatprep.subr.bf16.mxu0 %v13064_v0  ;;  %v13139_v0 = vld [vmem:[%s18602_s2 + $0x904] ss:$16 sps:$4 sm:$0xff]  }
 0x6da   :  { %7350 = vmatpush1.bf16.msra.mxu1 %v13059_v50  ;;  %v13142_v50 = vld [vmem:[%s18602_s2 + $0x90c] ss:$16 sps:$4 sm:$0xff]  }
 0x6db   :  { %7774 = vmatpush1.bf16.msra.mxu0 %v13062_v24  ;;  %7351 = vmatprep.subr.bf16.mxu1 %v13067_v62  ;;  %v13137_v24 = vld [vmem:[%s18602_s2 + $0x900] ss:$16 sps:$4 sm:$0xff]   ;;  %v13140_v62 = vld [vmem:[%s18602_s2 + $0x908] ss:$16 sps:$4 sm:$0xff]  }
 0x6dc   :  { %7775 = vmatprep.subr.bf16.mxu0 %v13070_v15  ;;  %v13145_v15 = vld [vmem:[%s18602_s2 + $0x924] ss:$16 sps:$4 sm:$0xff]  }
 0x6de   :  { %7352 = vmatpush1.bf16.msra.mxu1 %v13065_v60  ;;  %v13148_v60 = vld [vmem:[%s18602_s2 + $0x92c] ss:$16 sps:$4 sm:$0xff]  }
 0x6df   :  { %7776 = vmatpush1.bf16.msra.mxu0 %v13068_v5  ;;  %7353 = vmatprep.subr.bf16.mxu1 %v13073_v35  ;;  %v13143_v5 = vld [vmem:[%s18602_s2 + $0x920] ss:$16 sps:$4 sm:$0xff]   ;;  %v13146_v35 = vld [vmem:[%s18602_s2 + $0x928] ss:$16 sps:$4 sm:$0xff]  }
 0x6e0   :  { %7777 = vmatprep.subr.bf16.mxu0 %v13076_v46  ;;  %v13151_v46 = vld [vmem:[%s18602_s2 + $0x944] ss:$16 sps:$4 sm:$0xff]  }
 0x6e2   :  { %7354 = vmatpush1.bf16.msra.mxu1 %v13071_v61  ;;  %v13154_v61 = vld [vmem:[%s18602_s2 + $0x94c] ss:$16 sps:$4 sm:$0xff]  }
 0x6e3   :  { %7778 = vmatpush1.bf16.msra.mxu0 %v13074_v19  ;;  %7355 = vmatprep.subr.bf16.mxu1 %v13079_v40  ;;  %v13149_v19 = vld [vmem:[%s18602_s2 + $0x940] ss:$16 sps:$4 sm:$0xff]   ;;  %v13152_v40 = vld [vmem:[%s18602_s2 + $0x948] ss:$16 sps:$4 sm:$0xff]  }
 0x6e4   :  { %7779 = vmatprep.subr.bf16.mxu0 %v13082_v34  ;;  %v13157_v34 = vld [vmem:[%s18602_s2 + $0x964] ss:$16 sps:$4 sm:$0xff]  }
 0x6e6   :  { %7356 = vmatpush1.bf16.msra.mxu1 %v13077_v33  ;;  %v13160_v33 = vld [vmem:[%s18602_s2 + $0x96c] ss:$16 sps:$4 sm:$0xff]  }
 0x6e7   :  { %7780 = vmatpush1.bf16.msra.mxu0 %v13080_v31  ;;  %7357 = vmatprep.subr.bf16.mxu1 %v13085_v57  ;;  %v13155_v31 = vld [vmem:[%s18602_s2 + $0x960] ss:$16 sps:$4 sm:$0xff]   ;;  %v13158_v57 = vld [vmem:[%s18602_s2 + $0x968] ss:$16 sps:$4 sm:$0xff]  }
 0x6e8   :  { %7781 = vmatprep.subr.bf16.mxu0 %v13088_v29  ;;  %v13163_v29 = vld [vmem:[%s18602_s2 + $0x984] ss:$16 sps:$4 sm:$0xff]  }
 0x6ea   :  { %7358 = vmatpush1.bf16.msra.mxu1 %v13083_v54  ;;  %v13166_v54 = vld [vmem:[%s18602_s2 + $0x98c] ss:$16 sps:$4 sm:$0xff]  }
 0x6eb   :  { %7782 = vmatpush1.bf16.msra.mxu0 %v13086_v17  ;;  %7380 = vmatprep.subr.bf16.mxu1 %v13091_v30  ;;  %v13161_v17 = vld [vmem:[%s18602_s2 + $0x980] ss:$16 sps:$4 sm:$0xff]   ;;  %v13164_v30 = vld [vmem:[%s18602_s2 + $0x988] ss:$16 sps:$4 sm:$0xff]  }
 0x6ec   :  { %7804 = vmatprep.subr.bf16.mxu0 %v13094_v12  ;;  %v13169_v12 = vld [vmem:[%s18602_s2 + $0x9a4] ss:$16 sps:$4 sm:$0xff]  }
 0x6ed   :  { %7360 = vmatmul.mubr.bf16.vlgmr.msra.gmra.mrb[40].mxu1 %v16243_v43 }
 0x6ee   :  { %7784 = vmatmul.mubr.bf16.vlgmr.msra.gmra.mrb[40].mxu0 %v16243_v43  ;;  %7369 = vmatprep.mubr.bf16.mxu1 %v16256_v52  ;;  %v13106_v43 = vld [vmem:[%s18602_s2 + $0x84c] ss:$16 sps:$4 sm:$0xff]  }
 0x6ef   :  { %7381 = vmatpush1.bf16.msra.mxu1 %v13089_v36  ;;  %7793 = vmatprep.mubr.bf16.mxu0 %v16256_v52  ;;  %v13101_v52 = vld [vmem:[%s18602_s2 + $0x840] ss:$16 sps:$4 sm:$0xff]   ;;  %v13172_v36 = vld [vmem:[%s18602_s2 + $0x9ac] ss:$16 sps:$4 sm:$0xff]  }
 0x6f0   :  { %7805 = vmatpush1.bf16.msra.mxu0 %v13092_v32  ;;  %7382 = vmatprep.subr.bf16.mxu1 %v13097_v7  ;;  %v13167_v32 = vld [vmem:[%s18602_s2 + $0x9a0] ss:$16 sps:$4 sm:$0xff]   ;;  %v13170_v7 = vld [vmem:[%s18602_s2 + $0x9a8] ss:$16 sps:$4 sm:$0xff]  }
 0x6f1   :  { %7806 = vmatprep.subr.bf16.mxu0 %v13100_v13  ;;  %v13175_v13 = vld [vmem:[%s18602_s2 + $0x9c4] ss:$16 sps:$4 sm:$0xff]  }
 0x6f3   :  { %7383 = vmatpush1.bf16.msra.mxu1 %v13095_v45  ;;  %v13178_v45 = vld [vmem:[%s18602_s2 + $0x9cc] ss:$16 sps:$4 sm:$0xff]  }
 0x6f4   :  { %7807 = vmatpush1.bf16.msra.mxu0 %v13098_v48  ;;  %7384 = vmatprep.subr.bf16.mxu1 %v13103_v51  ;;  %v13173_v48 = vld [vmem:[%s18602_s2 + $0x9c0] ss:$16 sps:$4 sm:$0xff]   ;;  %v13176_v51 = vld [vmem:[%s18602_s2 + $0x9c8] ss:$16 sps:$4 sm:$0xff]  }
 0x6f5   :  { %7370 = vmatmul.mubr.bf16.gmra.mrb[44].mxu1 %v16263_v59  ;;  %7808 = vmatprep.subr.bf16.mxu0 %v13106_v43  ;;  %v13181_v43 = vld [vmem:[%s18602_s2 + $0x9e4] ss:$16 sps:$4 sm:$0xff]  }
 0x6f6   :  { %7794 = vmatmul.mubr.bf16.gmra.mrb[44].mxu0 %v16263_v59  ;;  %7412 = vmatprep.mubr.bf16.mxu1 %v16275_v58  ;;  %v13118_v59 = vld [vmem:[%s18602_s2 + $0x88c] ss:$16 sps:$4 sm:$0xff]  }
 0x6f7   :  { %7385 = vmatpush1.bf16.msra.mxu1 %v13101_v52  ;;  %7836 = vmatprep.mubr.bf16.mxu0 %v16275_v58  ;;  %v13113_v58 = vld [vmem:[%s18602_s2 + $0x880] ss:$16 sps:$4 sm:$0xff]   ;;  %v13184_v52 = vld [vmem:[%s18602_s2 + $0x9ec] ss:$16 sps:$4 sm:$0xff]  }
 0x6f8   :  { %7809 = vmatpush1.bf16.msra.mxu0 %v13104_v10  ;;  %7386 = vmatprep.subr.bf16.mxu1 %v13109_v6  ;;  %v13179_v10 = vld [vmem:[%s18602_s2 + $0x9e0] ss:$16 sps:$4 sm:$0xff]   ;;  %v13182_v6 = vld [vmem:[%s18602_s2 + $0x9e8] ss:$16 sps:$4 sm:$0xff]  }
 0x6f9   :  { %7810 = vmatprep.subr.bf16.mxu0 %v13112_v41  ;;  %v13187_v41 = vld [vmem:[%s18602_s2 + $0xa04] ss:$16 sps:$4 sm:$0xff]  }
 0x6fb   :  { %7387 = vmatpush1.bf16.msra.mxu1 %v13107_v23  ;;  %v13190_v23 = vld [vmem:[%s18602_s2 + $0xa0c] ss:$16 sps:$4 sm:$0xff]  }
 0x6fc   :  { %7811 = vmatpush1.bf16.msra.mxu0 %v13110_v2  ;;  %7388 = vmatprep.subr.bf16.mxu1 %v13115_v16  ;;  %v13185_v2 = vld [vmem:[%s18602_s2 + $0xa00] ss:$16 sps:$4 sm:$0xff]   ;;  %v13188_v16 = vld [vmem:[%s18602_s2 + $0xa08] ss:$16 sps:$4 sm:$0xff]  }
 0x6fd   :  { %7812 = vmatprep.subr.bf16.mxu0 %v13118_v59  ;;  %v13193_v59 = vld [vmem:[%s18602_s2 + $0xa24] ss:$16 sps:$4 sm:$0xff]  }
 0x6ff   :  { %7389 = vmatpush1.bf16.msra.mxu1 %v13113_v58  ;;  %v13196_v58 = vld [vmem:[%s18602_s2 + $0xa2c] ss:$16 sps:$4 sm:$0xff]  }
 0x700   :  { %7813 = vmatpush1.bf16.msra.mxu0 %v13116_v38  ;;  %7390 = vmatprep.subr.bf16.mxu1 %v13121_v28  ;;  %v13191_v38 = vld [vmem:[%s18602_s2 + $0xa20] ss:$16 sps:$4 sm:$0xff]   ;;  %v13194_v28 = vld [vmem:[%s18602_s2 + $0xa28] ss:$16 sps:$4 sm:$0xff]  }
 0x701   :  { %7814 = vmatprep.subr.bf16.mxu0 %v13124_v37  ;;  %v13199_v37 = vld [vmem:[%s18602_s2 + $0xa44] ss:$16 sps:$4 sm:$0xff]  }
 0x703   :  { %7391 = vmatpush1.bf16.msra.mxu1 %v13119_v44  ;;  %v13200_v44 = vld [vmem:[%s18602_s2 + $0xa48] ss:$16 sps:$4 sm:$0xff]  }
 0x704   :  { %7815 = vmatpush1.bf16.msra.mxu0 %v13122_v27  ;;  %7392 = vmatprep.subr.bf16.mxu1 %v13127_v39  ;;  %v13205_v27 = vld [vmem:[%s18602_s2 + $0xa64] ss:$16 sps:$4 sm:$0xff]   ;;  %v13208_v39 = vld [vmem:[%s18602_s2 + $0xa6c] ss:$16 sps:$4 sm:$0xff]  }
 0x705   :  { %7816 = vmatprep.subr.bf16.mxu0 %v13130_v53  ;;  %v13203_v53 = vld [vmem:[%s18602_s2 + $0xa60] ss:$16 sps:$4 sm:$0xff]  }
 0x707   :  { %7393 = vmatpush1.bf16.msra.mxu1 %v13125_v22  ;;  %v13206_v22 = vld [vmem:[%s18602_s2 + $0xa68] ss:$16 sps:$4 sm:$0xff]  }
 0x708   :  { %7817 = vmatpush1.bf16.msra.mxu0 %v13128_v4  ;;  %7394 = vmatprep.subr.bf16.mxu1 %v13133_v56  ;;  %v13211_v4 = vld [vmem:[%s18602_s2 + $0xa84] ss:$16 sps:$4 sm:$0xff]   ;;  %v13212_v56 = vld [vmem:[%s18602_s2 + $0xa88] ss:$16 sps:$4 sm:$0xff]  }
 0x709   :  { %7818 = vmatprep.subr.bf16.mxu0 %v13136_v42  ;;  %v13217_v42 = vld [vmem:[%s18602_s2 + $0xaa4] ss:$16 sps:$4 sm:$0xff]  }
 0x70b   :  { %7395 = vmatpush1.bf16.msra.mxu1 %v13131_v3  ;;  %v13220_v3 = vld [vmem:[%s18602_s2 + $0xaac] ss:$16 sps:$4 sm:$0xff]  }
 0x70c   :  { %7819 = vmatpush1.bf16.msra.mxu0 %v13134_v14  ;;  %7396 = vmatprep.subr.bf16.mxu1 %v13139_v0  ;;  %v13215_v14 = vld [vmem:[%s18602_s2 + $0xaa0] ss:$16 sps:$4 sm:$0xff]   ;;  %v13218_v0 = vld [vmem:[%s18602_s2 + $0xaa8] ss:$16 sps:$4 sm:$0xff]  }
 0x70d   :  { %7820 = vmatprep.subr.bf16.mxu0 %v13142_v50  ;;  %v13223_v50 = vld [vmem:[%s18602_s2 + $0xac4] ss:$16 sps:$4 sm:$0xff]  }
 0x70f   :  { %7397 = vmatpush1.bf16.msra.mxu1 %v13137_v24  ;;  %v13226_v24 = vld [vmem:[%s18602_s2 + $0xacc] ss:$16 sps:$4 sm:$0xff]  }
 0x710   :  { %7821 = vmatpush1.bf16.msra.mxu0 %v13140_v62  ;;  %7398 = vmatprep.subr.bf16.mxu1 %v13145_v15  ;;  %v13221_v62 = vld [vmem:[%s18602_s2 + $0xac0] ss:$16 sps:$4 sm:$0xff]   ;;  %v13224_v15 = vld [vmem:[%s18602_s2 + $0xac8] ss:$16 sps:$4 sm:$0xff]  }
 0x711   :  { %7822 = vmatprep.subr.bf16.mxu0 %v13148_v60  ;;  %v13229_v60 = vld [vmem:[%s18602_s2 + $0xae4] ss:$16 sps:$4 sm:$0xff]  }
 0x713   :  { %7399 = vmatpush1.bf16.msra.mxu1 %v13143_v5  ;;  %v13232_v5 = vld [vmem:[%s18602_s2 + $0xaec] ss:$16 sps:$4 sm:$0xff]  }
 0x714   :  { %7823 = vmatpush1.bf16.msra.mxu0 %v13146_v35  ;;  %7400 = vmatprep.subr.bf16.mxu1 %v13151_v46  ;;  %v13227_v35 = vld [vmem:[%s18602_s2 + $0xae0] ss:$16 sps:$4 sm:$0xff]   ;;  %v13230_v46 = vld [vmem:[%s18602_s2 + $0xae8] ss:$16 sps:$4 sm:$0xff]  }
 0x715   :  { %7824 = vmatprep.subr.bf16.mxu0 %v13154_v61  ;;  %v13235_v61 = vld [vmem:[%s18602_s2 + $0xb04] ss:$16 sps:$4 sm:$0xff]  }
 0x717   :  { %7401 = vmatpush1.bf16.msra.mxu1 %v13149_v19  ;;  %v13238_v19 = vld [vmem:[%s18602_s2 + $0xb0c] ss:$16 sps:$4 sm:$0xff]  }
 0x718   :  { %7825 = vmatpush1.bf16.msra.mxu0 %v13152_v40  ;;  %7402 = vmatprep.subr.bf16.mxu1 %v13157_v34  ;;  %v13233_v40 = vld [vmem:[%s18602_s2 + $0xb00] ss:$16 sps:$4 sm:$0xff]   ;;  %v13236_v34 = vld [vmem:[%s18602_s2 + $0xb08] ss:$16 sps:$4 sm:$0xff]  }
 0x719   :  { %7826 = vmatprep.subr.bf16.mxu0 %v13160_v33  ;;  %v13241_v33 = vld [vmem:[%s18602_s2 + $0xb24] ss:$16 sps:$4 sm:$0xff]  }
 0x71b   :  { %7403 = vmatpush1.bf16.msra.mxu1 %v13155_v31  ;;  %v13244_v31 = vld [vmem:[%s18602_s2 + $0xb2c] ss:$16 sps:$4 sm:$0xff]  }
 0x71c   :  { %7827 = vmatpush1.bf16.msra.mxu0 %v13158_v57  ;;  %7404 = vmatprep.subr.bf16.mxu1 %v13163_v29  ;;  %v13239_v57 = vld [vmem:[%s18602_s2 + $0xb20] ss:$16 sps:$4 sm:$0xff]   ;;  %v13242_v29 = vld [vmem:[%s18602_s2 + $0xb28] ss:$16 sps:$4 sm:$0xff]  }
 0x71d   :  { %7828 = vmatprep.subr.bf16.mxu0 %v13166_v54  ;;  %v13247_v54 = vld [vmem:[%s18602_s2 + $0xb44] ss:$16 sps:$4 sm:$0xff]  }
 0x71f   :  { %7405 = vmatpush1.bf16.msra.mxu1 %v13161_v17  ;;  %v13250_v17 = vld [vmem:[%s18602_s2 + $0xb4c] ss:$16 sps:$4 sm:$0xff]  }
 0x720   :  { %7829 = vmatpush1.bf16.msra.mxu0 %v13164_v30  ;;  %7406 = vmatprep.subr.bf16.mxu1 %v13169_v12  ;;  %v13245_v30 = vld [vmem:[%s18602_s2 + $0xb40] ss:$16 sps:$4 sm:$0xff]   ;;  %v13248_v12 = vld [vmem:[%s18602_s2 + $0xb48] ss:$16 sps:$4 sm:$0xff]  }
 0x721   :  { %7830 = vmatprep.subr.bf16.mxu0 %v13172_v36  ;;  %v13253_v36 = vld [vmem:[%s18602_s2 + $0xb64] ss:$16 sps:$4 sm:$0xff]  }
 0x723   :  { %7407 = vmatpush1.bf16.msra.mxu1 %v13167_v32  ;;  %v13256_v32 = vld [vmem:[%s18602_s2 + $0xb6c] ss:$16 sps:$4 sm:$0xff]  }
 0x724   :  { %7831 = vmatpush1.bf16.msra.mxu0 %v13170_v7  ;;  %7408 = vmatprep.subr.bf16.mxu1 %v13175_v13  ;;  %v13251_v7 = vld [vmem:[%s18602_s2 + $0xb60] ss:$16 sps:$4 sm:$0xff]   ;;  %v13254_v13 = vld [vmem:[%s18602_s2 + $0xb68] ss:$16 sps:$4 sm:$0xff]  }
 0x725   :  { %7832 = vmatprep.subr.bf16.mxu0 %v13178_v45  ;;  %v13259_v45 = vld [vmem:[%s18602_s2 + $0xb84] ss:$16 sps:$4 sm:$0xff]  }
 0x727   :  { %7409 = vmatpush1.bf16.msra.mxu1 %v13173_v48  ;;  %v13262_v48 = vld [vmem:[%s18602_s2 + $0xb8c] ss:$16 sps:$4 sm:$0xff]  }
 0x728   :  { %7833 = vmatpush1.bf16.msra.mxu0 %v13176_v51  ;;  %7410 = vmatprep.subr.bf16.mxu1 %v13181_v43  ;;  %v13257_v51 = vld [vmem:[%s18602_s2 + $0xb80] ss:$16 sps:$4 sm:$0xff]   ;;  %v13260_v43 = vld [vmem:[%s18602_s2 + $0xb88] ss:$16 sps:$4 sm:$0xff]  }
 0x729   :  { %7834 = vmatprep.subr.bf16.mxu0 %v13184_v52  ;;  %v13265_v52 = vld [vmem:[%s18602_s2 + $0xba4] ss:$16 sps:$4 sm:$0xff]  }
 0x72b   :  { %7411 = vmatpush1.bf16.msra.mxu1 %v13179_v10  ;;  %v13268_v10 = vld [vmem:[%s18602_s2 + $0xbac] ss:$16 sps:$4 sm:$0xff]  }
 0x72c   :  { %7835 = vmatpush1.bf16.msra.mxu0 %v13182_v6  ;;  %7433 = vmatprep.subr.bf16.mxu1 %v13187_v41  ;;  %v13263_v6 = vld [vmem:[%s18602_s2 + $0xba0] ss:$16 sps:$4 sm:$0xff]   ;;  %v13266_v41 = vld [vmem:[%s18602_s2 + $0xba8] ss:$16 sps:$4 sm:$0xff]  }
 0x72d   :  { %7857 = vmatprep.subr.bf16.mxu0 %v13190_v23  ;;  %v13271_v23 = vld [vmem:[%s18602_s2 + $0xbc4] ss:$16 sps:$4 sm:$0xff]  }
 0x72e   :  { %7413 = vmatmul.mubr.bf16.vlgmr.msra.gmra.mrb[40].mxu1 %v16297_v9 }
 0x72f   :  { %7837 = vmatmul.mubr.bf16.vlgmr.msra.gmra.mrb[40].mxu0 %v16297_v9  ;;  %7422 = vmatprep.mubr.bf16.mxu1 %v16332_v26  ;;  %v13202_v9 = vld [vmem:[%s18602_s2 + $0xa4c] ss:$16 sps:$4 sm:$0xff]  }
 0x730   :  { %7434 = vmatpush1.bf16.msra.mxu1 %v13185_v2  ;;  %7846 = vmatprep.mubr.bf16.mxu0 %v16332_v26  ;;  %v13197_v26 = vld [vmem:[%s18602_s2 + $0xa40] ss:$16 sps:$4 sm:$0xff]   ;;  %v13274_v2 = vld [vmem:[%s18602_s2 + $0xbcc] ss:$16 sps:$4 sm:$0xff]  }
 0x731   :  { %7858 = vmatpush1.bf16.msra.mxu0 %v13188_v16  ;;  %7435 = vmatprep.subr.bf16.mxu1 %v13193_v59  ;;  %v13269_v16 = vld [vmem:[%s18602_s2 + $0xbc0] ss:$16 sps:$4 sm:$0xff]   ;;  %v13272_v59 = vld [vmem:[%s18602_s2 + $0xbc8] ss:$16 sps:$4 sm:$0xff]  }
 0x732   :  { %7859 = vmatprep.subr.bf16.mxu0 %v13196_v58  ;;  %v13277_v58 = vld [vmem:[%s18602_s2 + $0xbe4] ss:$16 sps:$4 sm:$0xff]  }
 0x734   :  { %7436 = vmatpush1.bf16.msra.mxu1 %v13191_v38  ;;  %v13280_v38 = vld [vmem:[%s18602_s2 + $0xbec] ss:$16 sps:$4 sm:$0xff]  }
 0x735   :  { %7860 = vmatpush1.bf16.msra.mxu0 %v13194_v28  ;;  %7437 = vmatprep.subr.bf16.mxu1 %v13199_v37  ;;  %v13275_v28 = vld [vmem:[%s18602_s2 + $0xbe0] ss:$16 sps:$4 sm:$0xff]   ;;  %v13278_v37 = vld [vmem:[%s18602_s2 + $0xbe8] ss:$16 sps:$4 sm:$0xff]  }
 0x736   :  { %7423 = vmatmul.mubr.bf16.gmra.mrb[44].mxu1 %v16353_v21  ;;  %7861 = vmatprep.subr.bf16.mxu0 %v13202_v9  ;;  %v13283_v9 = vld [vmem:[%s18602_s2 + $0xc04] ss:$16 sps:$4 sm:$0xff]  }
 0x737   :  { %7847 = vmatmul.mubr.bf16.gmra.mrb[44].mxu0 %v16353_v21  ;;  %7465 = vmatprep.mubr.bf16.mxu1 %v16372_v8  ;;  %v13214_v21 = vld [vmem:[%s18602_s2 + $0xa8c] ss:$16 sps:$4 sm:$0xff]  }
 0x738   :  { %7438 = vmatpush1.bf16.msra.mxu1 %v13197_v26  ;;  %7889 = vmatprep.mubr.bf16.mxu0 %v16372_v8  ;;  %v13209_v8 = vld [vmem:[%s18602_s2 + $0xa80] ss:$16 sps:$4 sm:$0xff]   ;;  %v13286_v26 = vld [vmem:[%s18602_s2 + $0xc0c] ss:$16 sps:$4 sm:$0xff]  }
 0x739   :  { %7862 = vmatpush1.bf16.msra.mxu0 %v13200_v44  ;;  %7439 = vmatprep.subr.bf16.mxu1 %v13205_v27  ;;  %v13281_v44 = vld [vmem:[%s18602_s2 + $0xc00] ss:$16 sps:$4 sm:$0xff]   ;;  %v13284_v27 = vld [vmem:[%s18602_s2 + $0xc08] ss:$16 sps:$4 sm:$0xff]  }
 0x73a   :  { %7863 = vmatprep.subr.bf16.mxu0 %v13208_v39  ;;  %v13289_v39 = vld [vmem:[%s18602_s2 + $0xc24] ss:$16 sps:$4 sm:$0xff]  }
 0x73c   :  { %7440 = vmatpush1.bf16.msra.mxu1 %v13203_v53  ;;  %v13292_v53 = vld [vmem:[%s18602_s2 + $0xc2c] ss:$16 sps:$4 sm:$0xff]  }
 0x73d   :  { %7864 = vmatpush1.bf16.msra.mxu0 %v13206_v22  ;;  %7441 = vmatprep.subr.bf16.mxu1 %v13211_v4  ;;  %v13287_v22 = vld [vmem:[%s18602_s2 + $0xc20] ss:$16 sps:$4 sm:$0xff]   ;;  %v13290_v4 = vld [vmem:[%s18602_s2 + $0xc28] ss:$16 sps:$4 sm:$0xff]  }
 0x73e   :  { %7865 = vmatprep.subr.bf16.mxu0 %v13214_v21  ;;  %v13295_v21 = vld [vmem:[%s18602_s2 + $0xc44] ss:$16 sps:$4 sm:$0xff]  }
 0x740   :  { %7442 = vmatpush1.bf16.msra.mxu1 %v13209_v8  ;;  %v13296_v8 = vld [vmem:[%s18602_s2 + $0xc48] ss:$16 sps:$4 sm:$0xff]  }
 0x741   :  { %7866 = vmatpush1.bf16.msra.mxu0 %v13212_v56  ;;  %7443 = vmatprep.subr.bf16.mxu1 %v13217_v42  ;;  %v13301_v56 = vld [vmem:[%s18602_s2 + $0xc64] ss:$16 sps:$4 sm:$0xff]   ;;  %v13304_v42 = vld [vmem:[%s18602_s2 + $0xc6c] ss:$16 sps:$4 sm:$0xff]  }
 0x742   :  { %7867 = vmatprep.subr.bf16.mxu0 %v13220_v3  ;;  %v13299_v3 = vld [vmem:[%s18602_s2 + $0xc60] ss:$16 sps:$4 sm:$0xff]  }
 0x744   :  { %7444 = vmatpush1.bf16.msra.mxu1 %v13215_v14  ;;  %v13302_v14 = vld [vmem:[%s18602_s2 + $0xc68] ss:$16 sps:$4 sm:$0xff]  }
 0x745   :  { %7868 = vmatpush1.bf16.msra.mxu0 %v13218_v0  ;;  %7445 = vmatprep.subr.bf16.mxu1 %v13223_v50  ;;  %v13307_v0 = vld [vmem:[%s18602_s2 + $0xc84] ss:$16 sps:$4 sm:$0xff]   ;;  %v13308_v50 = vld [vmem:[%s18602_s2 + $0xc88] ss:$16 sps:$4 sm:$0xff]  }
 0x746   :  { %7869 = vmatprep.subr.bf16.mxu0 %v13226_v24  ;;  %v13313_v24 = vld [vmem:[%s18602_s2 + $0xca4] ss:$16 sps:$4 sm:$0xff]  }
 0x748   :  { %7446 = vmatpush1.bf16.msra.mxu1 %v13221_v62  ;;  %v13316_v62 = vld [vmem:[%s18602_s2 + $0xcac] ss:$16 sps:$4 sm:$0xff]  }
 0x749   :  { %7870 = vmatpush1.bf16.msra.mxu0 %v13224_v15  ;;  %7447 = vmatprep.subr.bf16.mxu1 %v13229_v60  ;;  %v13311_v15 = vld [vmem:[%s18602_s2 + $0xca0] ss:$16 sps:$4 sm:$0xff]   ;;  %v13314_v60 = vld [vmem:[%s18602_s2 + $0xca8] ss:$16 sps:$4 sm:$0xff]  }
 0x74a   :  { %7871 = vmatprep.subr.bf16.mxu0 %v13232_v5  ;;  %v13319_v5 = vld [vmem:[%s18602_s2 + $0xcc4] ss:$16 sps:$4 sm:$0xff]  }
 0x74c   :  { %7448 = vmatpush1.bf16.msra.mxu1 %v13227_v35  ;;  %v13322_v35 = vld [vmem:[%s18602_s2 + $0xccc] ss:$16 sps:$4 sm:$0xff]  }
 0x74d   :  { %7872 = vmatpush1.bf16.msra.mxu0 %v13230_v46  ;;  %7449 = vmatprep.subr.bf16.mxu1 %v13235_v61  ;;  %v13317_v46 = vld [vmem:[%s18602_s2 + $0xcc0] ss:$16 sps:$4 sm:$0xff]   ;;  %v13320_v61 = vld [vmem:[%s18602_s2 + $0xcc8] ss:$16 sps:$4 sm:$0xff]  }
 0x74e   :  { %7873 = vmatprep.subr.bf16.mxu0 %v13238_v19  ;;  %v13325_v19 = vld [vmem:[%s18602_s2 + $0xce4] ss:$16 sps:$4 sm:$0xff]  }
 0x750   :  { %7450 = vmatpush1.bf16.msra.mxu1 %v13233_v40  ;;  %v13328_v40 = vld [vmem:[%s18602_s2 + $0xcec] ss:$16 sps:$4 sm:$0xff]  }
 0x751   :  { %7874 = vmatpush1.bf16.msra.mxu0 %v13236_v34  ;;  %7451 = vmatprep.subr.bf16.mxu1 %v13241_v33  ;;  %v13323_v34 = vld [vmem:[%s18602_s2 + $0xce0] ss:$16 sps:$4 sm:$0xff]   ;;  %v13326_v33 = vld [vmem:[%s18602_s2 + $0xce8] ss:$16 sps:$4 sm:$0xff]  }
 0x752   :  { %7875 = vmatprep.subr.bf16.mxu0 %v13244_v31  ;;  %v13331_v31 = vld [vmem:[%s18602_s2 + $0xd04] ss:$16 sps:$4 sm:$0xff]  }
 0x754   :  { %7452 = vmatpush1.bf16.msra.mxu1 %v13239_v57  ;;  %v13334_v57 = vld [vmem:[%s18602_s2 + $0xd0c] ss:$16 sps:$4 sm:$0xff]  }
 0x755   :  { %7876 = vmatpush1.bf16.msra.mxu0 %v13242_v29  ;;  %7453 = vmatprep.subr.bf16.mxu1 %v13247_v54  ;;  %v13329_v29 = vld [vmem:[%s18602_s2 + $0xd00] ss:$16 sps:$4 sm:$0xff]   ;;  %v13332_v54 = vld [vmem:[%s18602_s2 + $0xd08] ss:$16 sps:$4 sm:$0xff]  }
 0x756   :  { %7877 = vmatprep.subr.bf16.mxu0 %v13250_v17  ;;  %v13337_v17 = vld [vmem:[%s18602_s2 + $0xd24] ss:$16 sps:$4 sm:$0xff]  }
 0x758   :  { %7454 = vmatpush1.bf16.msra.mxu1 %v13245_v30  ;;  %v13340_v30 = vld [vmem:[%s18602_s2 + $0xd2c] ss:$16 sps:$4 sm:$0xff]  }
 0x759   :  { %7878 = vmatpush1.bf16.msra.mxu0 %v13248_v12  ;;  %7455 = vmatprep.subr.bf16.mxu1 %v13253_v36  ;;  %v13335_v12 = vld [vmem:[%s18602_s2 + $0xd20] ss:$16 sps:$4 sm:$0xff]   ;;  %v13338_v36 = vld [vmem:[%s18602_s2 + $0xd28] ss:$16 sps:$4 sm:$0xff]  }
 0x75a   :  { %7879 = vmatprep.subr.bf16.mxu0 %v13256_v32  ;;  %v13343_v32 = vld [vmem:[%s18602_s2 + $0xd44] ss:$16 sps:$4 sm:$0xff]  }
 0x75c   :  { %7456 = vmatpush1.bf16.msra.mxu1 %v13251_v7  ;;  %v13346_v7 = vld [vmem:[%s18602_s2 + $0xd4c] ss:$16 sps:$4 sm:$0xff]  }
 0x75d   :  { %7880 = vmatpush1.bf16.msra.mxu0 %v13254_v13  ;;  %7457 = vmatprep.subr.bf16.mxu1 %v13259_v45  ;;  %v13341_v13 = vld [vmem:[%s18602_s2 + $0xd40] ss:$16 sps:$4 sm:$0xff]   ;;  %v13344_v45 = vld [vmem:[%s18602_s2 + $0xd48] ss:$16 sps:$4 sm:$0xff]  }
 0x75e   :  { %7881 = vmatprep.subr.bf16.mxu0 %v13262_v48  ;;  %v13349_v48 = vld [vmem:[%s18602_s2 + $0xd64] ss:$16 sps:$4 sm:$0xff]  }
 0x760   :  { %7458 = vmatpush1.bf16.msra.mxu1 %v13257_v51  ;;  %v13352_v51 = vld [vmem:[%s18602_s2 + $0xd6c] ss:$16 sps:$4 sm:$0xff]  }
 0x761   :  { %7882 = vmatpush1.bf16.msra.mxu0 %v13260_v43  ;;  %7459 = vmatprep.subr.bf16.mxu1 %v13265_v52  ;;  %v13347_v43 = vld [vmem:[%s18602_s2 + $0xd60] ss:$16 sps:$4 sm:$0xff]   ;;  %v13350_v52 = vld [vmem:[%s18602_s2 + $0xd68] ss:$16 sps:$4 sm:$0xff]  }
 0x762   :  { %7883 = vmatprep.subr.bf16.mxu0 %v13268_v10  ;;  %v13355_v10 = vld [vmem:[%s18602_s2 + $0xd84] ss:$16 sps:$4 sm:$0xff]  }
 0x764   :  { %7460 = vmatpush1.bf16.msra.mxu1 %v13263_v6  ;;  %v13358_v6 = vld [vmem:[%s18602_s2 + $0xd8c] ss:$16 sps:$4 sm:$0xff]  }
 0x765   :  { %7884 = vmatpush1.bf16.msra.mxu0 %v13266_v41  ;;  %7461 = vmatprep.subr.bf16.mxu1 %v13271_v23  ;;  %v13353_v41 = vld [vmem:[%s18602_s2 + $0xd80] ss:$16 sps:$4 sm:$0xff]   ;;  %v13356_v23 = vld [vmem:[%s18602_s2 + $0xd88] ss:$16 sps:$4 sm:$0xff]  }
 0x766   :  { %7885 = vmatprep.subr.bf16.mxu0 %v13274_v2  ;;  %v13361_v2 = vld [vmem:[%s18602_s2 + $0xda4] ss:$16 sps:$4 sm:$0xff]  }
 0x768   :  { %7462 = vmatpush1.bf16.msra.mxu1 %v13269_v16  ;;  %v13364_v16 = vld [vmem:[%s18602_s2 + $0xdac] ss:$16 sps:$4 sm:$0xff]  }
 0x769   :  { %7886 = vmatpush1.bf16.msra.mxu0 %v13272_v59  ;;  %7463 = vmatprep.subr.bf16.mxu1 %v13277_v58  ;;  %v13359_v59 = vld [vmem:[%s18602_s2 + $0xda0] ss:$16 sps:$4 sm:$0xff]   ;;  %v13362_v58 = vld [vmem:[%s18602_s2 + $0xda8] ss:$16 sps:$4 sm:$0xff]  }
 0x76a   :  { %7887 = vmatprep.subr.bf16.mxu0 %v13280_v38  ;;  %v13367_v38 = vld [vmem:[%s18602_s2 + $0xdc4] ss:$16 sps:$4 sm:$0xff]  }
 0x76c   :  { %7464 = vmatpush1.bf16.msra.mxu1 %v13275_v28  ;;  %v13370_v28 = vld [vmem:[%s18602_s2 + $0xdcc] ss:$16 sps:$4 sm:$0xff]  }
 0x76d   :  { %7888 = vmatpush1.bf16.msra.mxu0 %v13278_v37  ;;  %7486 = vmatprep.subr.bf16.mxu1 %v13283_v9  ;;  %v13365_v37 = vld [vmem:[%s18602_s2 + $0xdc0] ss:$16 sps:$4 sm:$0xff]   ;;  %v13368_v9 = vld [vmem:[%s18602_s2 + $0xdc8] ss:$16 sps:$4 sm:$0xff]  }
 0x76e   :  { %7910 = vmatprep.subr.bf16.mxu0 %v13286_v26  ;;  %v13373_v26 = vld [vmem:[%s18602_s2 + $0xde4] ss:$16 sps:$4 sm:$0xff]  }
 0x76f   :  { %7466 = vmatmul.mubr.bf16.vlgmr.msra.gmra.mrb[40].mxu1 %v16355_v25 }
 0x770   :  { %7890 = vmatmul.mubr.bf16.vlgmr.msra.gmra.mrb[40].mxu0 %v16355_v25  ;;  %7475 = vmatprep.mubr.bf16.mxu1 %v16405_v47  ;;  %v13298_v25 = vld [vmem:[%s18602_s2 + $0xc4c] ss:$16 sps:$4 sm:$0xff]  }
 0x771   :  { %7487 = vmatpush1.bf16.msra.mxu1 %v13281_v44  ;;  %7899 = vmatprep.mubr.bf16.mxu0 %v16405_v47  ;;  %v13293_v47 = vld [vmem:[%s18602_s2 + $0xc40] ss:$16 sps:$4 sm:$0xff]   ;;  %v13376_v44 = vld [vmem:[%s18602_s2 + $0xdec] ss:$16 sps:$4 sm:$0xff]  }
 0x772   :  { %7911 = vmatpush1.bf16.msra.mxu0 %v13284_v27  ;;  %7488 = vmatprep.subr.bf16.mxu1 %v13289_v39  ;;  %v13371_v27 = vld [vmem:[%s18602_s2 + $0xde0] ss:$16 sps:$4 sm:$0xff]   ;;  %v13374_v39 = vld [vmem:[%s18602_s2 + $0xde8] ss:$16 sps:$4 sm:$0xff]  }
 0x773   :  { %7912 = vmatprep.subr.bf16.mxu0 %v13292_v53  ;;  %v13379_v53 = vld [vmem:[%s18602_s2 + $0xe04] ss:$16 sps:$4 sm:$0xff]  }
 0x775   :  { %7489 = vmatpush1.bf16.msra.mxu1 %v13287_v22  ;;  %v13382_v22 = vld [vmem:[%s18602_s2 + $0xe0c] ss:$16 sps:$4 sm:$0xff]  }
 0x776   :  { %7913 = vmatpush1.bf16.msra.mxu0 %v13290_v4  ;;  %7490 = vmatprep.subr.bf16.mxu1 %v13295_v21  ;;  %v13377_v4 = vld [vmem:[%s18602_s2 + $0xe00] ss:$16 sps:$4 sm:$0xff]   ;;  %v13380_v21 = vld [vmem:[%s18602_s2 + $0xe08] ss:$16 sps:$4 sm:$0xff]  }
 0x777   :  { %7476 = vmatmul.mubr.bf16.gmra.mrb[44].mxu1 %v16412_v63  ;;  %7914 = vmatprep.subr.bf16.mxu0 %v13298_v25  ;;  %v13385_v25 = vld [vmem:[%s18602_s2 + $0xe24] ss:$16 sps:$4 sm:$0xff]  }
 0x778   :  { %7900 = vmatmul.mubr.bf16.gmra.mrb[44].mxu0 %v16412_v63  ;;  %7518 = vmatprep.mubr.bf16.mxu1 %v16414_v11  ;;  %v13310_v63 = vld [vmem:[%s18602_s2 + $0xc8c] ss:$16 sps:$4 sm:$0xff]  }
 0x779   :  { %7491 = vmatpush1.bf16.msra.mxu1 %v13293_v47  ;;  %7942 = vmatprep.mubr.bf16.mxu0 %v16414_v11  ;;  %v13305_v11 = vld [vmem:[%s18602_s2 + $0xc80] ss:$16 sps:$4 sm:$0xff]   ;;  %v13388_v47 = vld [vmem:[%s18602_s2 + $0xe2c] ss:$16 sps:$4 sm:$0xff]  }
 0x77a   :  { %7915 = vmatpush1.bf16.msra.mxu0 %v13296_v8  ;;  %7492 = vmatprep.subr.bf16.mxu1 %v13301_v56  ;;  %v13383_v8 = vld [vmem:[%s18602_s2 + $0xe20] ss:$16 sps:$4 sm:$0xff]   ;;  %v13386_v56 = vld [vmem:[%s18602_s2 + $0xe28] ss:$16 sps:$4 sm:$0xff]  }
 0x77b   :  { %7916 = vmatprep.subr.bf16.mxu0 %v13304_v42  ;;  %v13391_v42 = vld [vmem:[%s18602_s2 + $0xe44] ss:$16 sps:$4 sm:$0xff]  }
 0x77d   :  { %7493 = vmatpush1.bf16.msra.mxu1 %v13299_v3  ;;  %v13392_v3 = vld [vmem:[%s18602_s2 + $0xe48] ss:$16 sps:$4 sm:$0xff]  }
 0x77e   :  { %7917 = vmatpush1.bf16.msra.mxu0 %v13302_v14  ;;  %7494 = vmatprep.subr.bf16.mxu1 %v13307_v0  ;;  %v13397_v14 = vld [vmem:[%s18602_s2 + $0xe64] ss:$16 sps:$4 sm:$0xff]   ;;  %v13400_v0 = vld [vmem:[%s18602_s2 + $0xe6c] ss:$16 sps:$4 sm:$0xff]  }
 0x77f   :  { %7918 = vmatprep.subr.bf16.mxu0 %v13310_v63  ;;  %v18765_v63 = vmov 0  }
 0x781   :  { %7495 = vmatpush1.bf16.msra.mxu1 %v13305_v11  ;;  %v13395_v11 = vld [vmem:[%s18602_s2 + $0xe60] ss:$16 sps:$4 sm:$0xff]  }
 0x782   :  { %7919 = vmatpush1.bf16.msra.mxu0 %v13308_v50  ;;  %7496 = vmatprep.subr.bf16.mxu1 %v13313_v24  ;;  %v13398_v50 = vld [vmem:[%s18602_s2 + $0xe68] ss:$16 sps:$4 sm:$0xff]   ;;  %v13403_v24 = vld [vmem:[%s18602_s2 + $0xe84] ss:$16 sps:$4 sm:$0xff]  }
 0x783   :  { %7920 = vmatprep.subr.bf16.mxu0 %v13316_v62  ;;  %v13401_v62 = vld [vmem:[%s18602_s2 + $0xe80] ss:$16 sps:$4 sm:$0xff]  }
 0x785   :  { %7497 = vmatpush1.bf16.msra.mxu1 %v13311_v15  ;;  %v13404_v15 = vld [vmem:[%s18602_s2 + $0xe88] ss:$16 sps:$4 sm:$0xff]  }
 0x786   :  { %7921 = vmatpush1.bf16.msra.mxu0 %v13314_v60  ;;  %7498 = vmatprep.subr.bf16.mxu1 %v13319_v5  ;;  %v13409_v60 = vld [vmem:[%s18602_s2 + $0xea4] ss:$16 sps:$4 sm:$0xff]   ;;  %v13412_v5 = vld [vmem:[%s18602_s2 + $0xeac] ss:$16 sps:$4 sm:$0xff]  }
 0x787   :  { %7922 = vmatprep.subr.bf16.mxu0 %v13322_v35  ;;  %v13407_v35 = vld [vmem:[%s18602_s2 + $0xea0] ss:$16 sps:$4 sm:$0xff]  }
 0x789   :  { %7499 = vmatpush1.bf16.msra.mxu1 %v13317_v46  ;;  %v13410_v46 = vld [vmem:[%s18602_s2 + $0xea8] ss:$16 sps:$4 sm:$0xff]  }
 0x78a   :  { %7923 = vmatpush1.bf16.msra.mxu0 %v13320_v61  ;;  %7500 = vmatprep.subr.bf16.mxu1 %v13325_v19  ;;  %v13415_v61 = vld [vmem:[%s18602_s2 + $0xec4] ss:$16 sps:$4 sm:$0xff]   ;;  %v13418_v19 = vld [vmem:[%s18602_s2 + $0xecc] ss:$16 sps:$4 sm:$0xff]  }
 0x78b   :  { %7924 = vmatprep.subr.bf16.mxu0 %v13328_v40  ;;  %v13413_v40 = vld [vmem:[%s18602_s2 + $0xec0] ss:$16 sps:$4 sm:$0xff]  }
 0x78d   :  { %7501 = vmatpush1.bf16.msra.mxu1 %v13323_v34  ;;  %v13416_v34 = vld [vmem:[%s18602_s2 + $0xec8] ss:$16 sps:$4 sm:$0xff]  }
 0x78e   :  { %7925 = vmatpush1.bf16.msra.mxu0 %v13326_v33  ;;  %7502 = vmatprep.subr.bf16.mxu1 %v13331_v31  ;;  %v13421_v33 = vld [vmem:[%s18602_s2 + $0xee4] ss:$16 sps:$4 sm:$0xff]   ;;  %v13424_v31 = vld [vmem:[%s18602_s2 + $0xeec] ss:$16 sps:$4 sm:$0xff]  }
 0x78f   :  { %7926 = vmatprep.subr.bf16.mxu0 %v13334_v57  ;;  %v8072_v57 = vld [vmem:[%s18609_s9 + $0x80] sm:$0xff] }
 0x791   :  { %7503 = vmatpush1.bf16.msra.mxu1 %v13329_v29  ;;  %v8073_v29 = vld [vmem:[%s18609_s9 + $0x88] sm:$0xff] }
 0x792   :  { %7927 = vmatpush1.bf16.msra.mxu0 %v13332_v54  ;;  %7504 = vmatprep.subr.bf16.mxu1 %v13337_v17  ;;  %v8104_v54 = vld [vmem:[%s18609_s9 + $0x180] sm:$0xff]  ;;  %v8105_v17 = vld [vmem:[%s18609_s9 + $0x188] sm:$0xff] }
 0x793   :  { %7928 = vmatprep.subr.bf16.mxu0 %v13340_v30  ;;  %v13419_v30 = vld [vmem:[%s18602_s2 + $0xee0] ss:$16 sps:$4 sm:$0xff]  }
 0x795   :  { %7505 = vmatpush1.bf16.msra.mxu1 %v13335_v12  ;;  %v13422_v12 = vld [vmem:[%s18602_s2 + $0xee8] ss:$16 sps:$4 sm:$0xff]  }
 0x796   :  { %7929 = vmatpush1.bf16.msra.mxu0 %v13338_v36  ;;  %7506 = vmatprep.subr.bf16.mxu1 %v13343_v32  ;;  %v17599_v36 = vpack.c.bf16 %v8073_v29, %v8072_v57  ;;  %v17601_v32 = vpack.c.bf16 %v8105_v17, %v8104_v54  ;;  %v8114_v57 = vld [vmem:[%s18609_s9 + $0x1d0] sm:$0xff]  ;;  %v8115_v29 = vld [vmem:[%s18609_s9 + $0x1d8] sm:$0xff] }
 0x797   :  { %7930 = vmatprep.subr.bf16.mxu0 %v13346_v7  ;;  %v8056_v7 = vld [vmem:[%s18609_s9] sm:$0xff]  ;;  %v17786_v17 = vpack.c.bf16 %v8115_v29, %v8114_v57 }
 0x799   :  { %7507 = vmatpush1.bf16.msra.mxu1 %v13341_v13  ;;  %v8057_v13 = vld [vmem:[%s18609_s9 + $0x8] sm:$0xff] }
 0x79a   :  { %7931 = vmatpush1.bf16.msra.mxu0 %v13344_v45  ;;  %7508 = vmatprep.subr.bf16.mxu1 %v13349_v48  ;;  %v8088_v45 = vld [vmem:[%s18609_s9 + $0x100] sm:$0xff]  ;;  %v8089_v48 = vld [vmem:[%s18609_s9 + $0x108] sm:$0xff] }
 0x79b   :  { %7932 = vmatprep.subr.bf16.mxu0 %v13352_v51  ;;  %v17616_v51 = vpack.c.bf16 %v8057_v13, %v8056_v7  ;;  %v8098_v7 = vld [vmem:[%s18609_s9 + $0x150] sm:$0xff] }
 0x79d   :  { %7509 = vmatpush1.bf16.msra.mxu1 %v13347_v43  ;;  %v17619_v43 = vpack.c.bf16 %v8089_v48, %v8088_v45  ;;  %v8099_v45 = vld [vmem:[%s18609_s9 + $0x158] sm:$0xff]  ;;  %v8084_v48 = vld [vmem:[%s18609_s9 + $0xe0] sm:$0xff] }
 0x79e   :  { %7933 = vmatpush1.bf16.msra.mxu0 %v13350_v52  ;;  %7510 = vmatprep.subr.bf16.mxu1 %v13355_v10  ;;  %v8074_v52 = vld [vmem:[%s18609_s9 + $0x90] sm:$0xff] }
 0x79f   :  { %7934 = vmatprep.subr.bf16.mxu0 %v13358_v6  ;;  %v8106_v10 = vld [vmem:[%s18609_s9 + $0x190] sm:$0xff] }
 0x7a1   :  { %7511 = vmatpush1.bf16.msra.mxu1 %v13353_v41  ;;  %v8107_v41 = vld [vmem:[%s18609_s9 + $0x198] sm:$0xff] }
 0x7a2   :  { %7935 = vmatpush1.bf16.msra.mxu0 %v13356_v23  ;;  %7512 = vmatprep.subr.bf16.mxu1 %v13361_v2  ;;  %v8059_v23 = vld [vmem:[%s18609_s9 + $0x18] sm:$0xff]  ;;  %v17649_v2 = vpack.c.bf16 %v8107_v41, %v8106_v10  ;;  %v8116_v41 = vld [vmem:[%s18609_s9 + $0x1e0] sm:$0xff] }
 0x7a3   :  { %7936 = vmatprep.subr.bf16.mxu0 %v13364_v16 }
 0x7a5   :  { %7513 = vmatpush1.bf16.msra.mxu1 %v13359_v59  ;;  %v8090_v59 = vld [vmem:[%s18609_s9 + $0x110] sm:$0xff] }
 0x7a6   :  { %7937 = vmatpush1.bf16.msra.mxu0 %v13362_v58  ;;  %7514 = vmatprep.subr.bf16.mxu1 %v13367_v38  ;;  %v8091_v58 = vld [vmem:[%s18609_s9 + $0x118] sm:$0xff] }
 0x7a7   :  { %7938 = vmatprep.subr.bf16.mxu0 %v13370_v28  ;;  %v17660_v38 = vpack.c.bf16 %v8091_v58, %v8090_v59  ;;  %v8076_v28 = vld [vmem:[%s18609_s9 + $0xa0] sm:$0xff]  ;;  %v8069_v58 = vld [vmem:[%s18609_s9 + $0x68] sm:$0xff] }
 0x7a9   :  { %7515 = vmatpush1.bf16.msra.mxu1 %v13365_v37  ;;  %v8077_v37 = vld [vmem:[%s18609_s9 + $0xa8] sm:$0xff] }
 0x7aa   :  { %7939 = vmatpush1.bf16.msra.mxu0 %v13368_v9  ;;  %7516 = vmatprep.subr.bf16.mxu1 %v13373_v26  ;;  %v8108_v9 = vld [vmem:[%s18609_s9 + $0x1a0] sm:$0xff]  ;;  %v17674_v26 = vpack.c.bf16 %v8077_v37, %v8076_v28  ;;  %v8101_v37 = vld [vmem:[%s18609_s9 + $0x168] sm:$0xff] }
 0x7ab   :  { %7940 = vmatprep.subr.bf16.mxu0 %v13376_v44  ;;  %v8109_v44 = vld [vmem:[%s18609_s9 + $0x1a8] sm:$0xff]  ;;  %v8100_v28 = vld [vmem:[%s18609_s9 + $0x160] sm:$0xff] }
 0x7ad   :  { %7517 = vmatpush1.bf16.msra.mxu1 %v13371_v27  ;;  %v8060_v27 = vld [vmem:[%s18609_s9 + $0x20] sm:$0xff] }
 0x7ae   :  { %7941 = vmatpush1.bf16.msra.mxu0 %v13374_v39  ;;  %7539 = vmatprep.subr.bf16.mxu1 %v13379_v53  ;;  %v8061_v39 = vld [vmem:[%s18609_s9 + $0x28] sm:$0xff]  ;;  %v17685_v53 = vpack.c.bf16 %v8109_v44, %v8108_v9  ;;  %v8086_v44 = vld [vmem:[%s18609_s9 + $0xf0] sm:$0xff] }
 0x7af   :  { %7963 = vmatprep.subr.bf16.mxu0 %v13382_v22  ;;  %v17687_v22 = vpack.c.bf16 %v8061_v39, %v8060_v27  ;;  %v8087_v27 = vld [vmem:[%s18609_s9 + $0xf8] sm:$0xff]  ;;  %v8118_v39 = vld [vmem:[%s18609_s9 + $0x1f0] sm:$0xff] }
 0x7b0   :  { %7519 = vmatmul.mubr.bf16.vlgmr.msra.gmra.mrb[40].mxu1 %v16379_v55 }
 0x7b1   :  { %7943 = vmatmul.mubr.bf16.vlgmr.msra.gmra.mrb[40].mxu0 %v16379_v55  ;;  %7528 = vmatprep.mubr.bf16.mxu1 %v16423_v20  ;;  %v13394_v55 = vld [vmem:[%s18602_s2 + $0xe4c] ss:$16 sps:$4 sm:$0xff]  }
 0x7b2   :  { %7540 = vmatpush1.bf16.msra.mxu1 %v13377_v4  ;;  %7952 = vmatprep.mubr.bf16.mxu0 %v16423_v20  ;;  %v13389_v20 = vld [vmem:[%s18602_s2 + $0xe40] ss:$16 sps:$4 sm:$0xff]  }
 0x7b3   :  { %7964 = vmatpush1.bf16.msra.mxu0 %v13380_v21  ;;  %7541 = vmatprep.subr.bf16.mxu1 %v13385_v25  ;;  %v8092_v4 = vld [vmem:[%s18609_s9 + $0x120] sm:$0xff]  ;;  %v8093_v21 = vld [vmem:[%s18609_s9 + $0x128] sm:$0xff] }
 0x7b4   :  { %7965 = vmatprep.subr.bf16.mxu0 %v13388_v47  ;;  %v17696_v25 = vpack.c.bf16 %v8093_v21, %v8092_v4  ;;  %v8078_v47 = vld [vmem:[%s18609_s9 + $0xb0] sm:$0xff]  ;;  %v17849_v4 = vpack.c.bf16 %v8101_v37, %v8100_v28  ;;  %v17851_v21 = vpack.c.bf16 %v8087_v27, %v8086_v44 }
 0x7b6   :  { %7542 = vmatpush1.bf16.msra.mxu1 %v13383_v8  ;;  %v8079_v8 = vld [vmem:[%s18609_s9 + $0xb8] sm:$0xff] }
 0x7b7   :  { %7966 = vmatpush1.bf16.msra.mxu0 %v13386_v56  ;;  %7543 = vmatprep.subr.bf16.mxu1 %v13391_v42  ;;  %v8110_v56 = vld [vmem:[%s18609_s9 + $0x1b0] sm:$0xff]  ;;  %v17710_v42 = vpack.c.bf16 %v8079_v8, %v8078_v47  ;;  %v8119_v47 = vld [vmem:[%s18609_s9 + $0x1f8] sm:$0xff] }
 0x7b8   :  { %7529 = vmatmul.mubr.bf16.gmra.mrb[44].mxu1 %v16436_v49  ;;  %7967 = vmatprep.subr.bf16.mxu0 %v13394_v55  ;;  %v8111_v55 = vld [vmem:[%s18609_s9 + $0x1b8] sm:$0xff]  ;;  %v8070_v8 = vld [vmem:[%s18609_s9 + $0x70] sm:$0xff] }
 0x7b9   :  { %7953 = vmatmul.mubr.bf16.gmra.mrb[44].mxu0 %v16436_v49  ;;  %7571 = vmatprep.mubr.bf16.mxu1 %v18765_v63  ;;  %v13406_v49 = vld [vmem:[%s18602_s2 + $0xe8c] ss:$16 sps:$4 sm:$0xff]  }
 0x7ba   :  { %7544 = vmatpush1.bf16.msra.mxu1 %v13389_v20  ;;  %7995 = vmatprep.mubr.bf16.mxu0 %v18765_v63  ;;  %v8062_v20 = vld [vmem:[%s18609_s9 + $0x30] sm:$0xff] }
 0x7bb   :  { %7968 = vmatpush1.bf16.msra.mxu0 %v13392_v3  ;;  %7545 = vmatprep.subr.bf16.mxu1 %v13397_v14  ;;  %v8063_v3 = vld [vmem:[%s18609_s9 + $0x38] sm:$0xff]  ;;  %v17721_v14 = vpack.c.bf16 %v8111_v55, %v8110_v56  ;;  %v17863_v55 = vpack.c.bf16 %v8119_v47, %v8118_v39 }
 0x7bc   :  { %7969 = vmatprep.subr.bf16.mxu0 %v13400_v0  ;;  %v17723_v0 = vpack.c.bf16 %v8063_v3, %v8062_v20  ;;  %v8071_v56 = vld [vmem:[%s18609_s9 + $0x78] sm:$0xff]  ;;  %v8102_v20 = vld [vmem:[%s18609_s9 + $0x170] sm:$0xff] }
 0x7bd   :  { %v8103_v3 = vld [vmem:[%s18609_s9 + $0x178] sm:$0xff] }
 0x7be   :  { %7546 = vmatpush1.bf16.msra.mxu1 %v13395_v11  ;;  %v8095_v11 = vld [vmem:[%s18609_s9 + $0x138] sm:$0xff] }
 0x7bf   :  { %7970 = vmatpush1.bf16.msra.mxu0 %v13398_v50  ;;  %7547 = vmatprep.subr.bf16.mxu1 %v13403_v24  ;;  %v8080_v24 = vld [vmem:[%s18609_s9 + $0xc0] sm:$0xff] }
 0x7c0   :  { %7971 = vmatprep.subr.bf16.mxu0 %v13406_v49  ;;  %v8081_v49 = vld [vmem:[%s18609_s9 + $0xc8] sm:$0xff] }
 0x7c2   :  { %7548 = vmatpush1.bf16.msra.mxu1 %v13401_v62  ;;  %v8112_v62 = vld [vmem:[%s18609_s9 + $0x1c0] sm:$0xff] }
 0x7c3   :  { %7972 = vmatpush1.bf16.msra.mxu0 %v13404_v15  ;;  %7549 = vmatprep.subr.bf16.mxu1 %v13409_v60  ;;  %v17746_v15 = vpack.c.bf16 %v8081_v49, %v8080_v24  ;;  %v8113_v60 = vld [vmem:[%s18609_s9 + $0x1c8] sm:$0xff]  ;;  %v17878_v24 = vpack.c.bf16 %v8071_v56, %v8070_v8  ;;  %v17882_v49 = vpack.c.bf16 %v8103_v3, %v8102_v20 }
 0x7c4   :  { %7973 = vmatprep.subr.bf16.mxu0 %v13412_v5  ;;  %v8064_v5 = vld [vmem:[%s18609_s9 + $0x40] sm:$0xff] }
 0x7c6   :  { %7550 = vmatpush1.bf16.msra.mxu1 %v13407_v35  ;;  %v8065_v35 = vld [vmem:[%s18609_s9 + $0x48] sm:$0xff] }
 0x7c7   :  { %7974 = vmatpush1.bf16.msra.mxu0 %v13410_v46  ;;  %7551 = vmatprep.subr.bf16.mxu1 %v13415_v61  ;;  %v17757_v46 = vpack.c.bf16 %v8113_v60, %v8112_v62  ;;  %v17759_v61 = vpack.c.bf16 %v8065_v35, %v8064_v5 }
 0x7c8   :  { %7975 = vmatprep.subr.bf16.mxu0 %v13418_v19  ;;  %v8096_v19 = vld [vmem:[%s18609_s9 + $0x140] sm:$0xff] }
 0x7ca   :  { %7552 = vmatpush1.bf16.msra.mxu1 %v13413_v40  ;;  %v8097_v40 = vld [vmem:[%s18609_s9 + $0x148] sm:$0xff] }
 0x7cb   :  { %7976 = vmatpush1.bf16.msra.mxu0 %v13416_v34  ;;  %7553 = vmatprep.subr.bf16.mxu1 %v13421_v33  ;;  %v8082_v34 = vld [vmem:[%s18609_s9 + $0xd0] sm:$0xff]  ;;  %v17771_v33 = vpack.c.bf16 %v8097_v40, %v8096_v19 }
 0x7cc   :  { %7977 = vmatprep.subr.bf16.mxu0 %v13424_v31  ;;  %v8083_v31 = vld [vmem:[%s18609_s9 + $0xd8] sm:$0xff] }
 0x7cd   :  { %v17784_v54 = vpack.c.bf16 %v8083_v31, %v8082_v34 }
 0x7ce   :  { %7554 = vmatpush1.bf16.msra.mxu1 %v13419_v30  ;;  %v8066_v30 = vld [vmem:[%s18609_s9 + $0x50] sm:$0xff] }
 0x7cf   :  { %7978 = vmatpush1.bf16.msra.mxu0 %v13422_v12  ;;  %11959 = vmatprep.subr.bf16.mxu1 %v17599_v36  ;;  %v8067_v12 = vld [vmem:[%s18609_s9 + $0x58] sm:$0xff] }
 0x7d0   :  { %11991 = vmatprep.subr.bf16.mxu0 %v17601_v32  ;;  %v17798_v13 = vpack.c.bf16 %v8067_v12, %v8066_v30 }
 0x7d1   :  { %7572 = vmatmul.mubr.bf16.vlgmr.msra.gmra.mrb[40].mxu1 %v16425_v1 }
 0x7d2   :  { %7996 = vmatmul.mubr.bf16.vlgmr.msra.gmra.mrb[40].mxu0 %v16425_v1  ;;  %7581 = vmatprep.mubr.bf16.mxu1 %v18765_v63  ;;  %v8075_v1 = vld [vmem:[%s18609_s9 + $0x98] sm:$0xff] }
 0x7d3   :  { %8005 = vmatprep.mubr.bf16.mxu0 %v18765_v63  ;;  %11961 = vmatpush3.bf16.msra.mxu1 %v17616_v51  ;;  %v17638_v6 = vpack.c.bf16 %v8075_v1, %v8074_v52  ;;  %v8094_v63 = vld [vmem:[%s18609_s9 + $0x130] sm:$0xff]  ;;  %v8085_v52 = vld [vmem:[%s18609_s9 + $0xe8] sm:$0xff]  ;;  %v17811_v1 = vpack.c.bf16 %v8099_v45, %v8098_v7 }
 0x7d4   :  { %11993 = vmatpush3.bf16.msra.mxu0 %v17619_v43  ;;  %v17732_v50 = vpack.c.bf16 %v8095_v11, %v8094_v63  ;;  %v17813_v10 = vpack.c.bf16 %v8085_v52, %v8084_v48  ;;  %v8263_v63 = vld [vmem:[%s18610_s10 + $0x8] sm:$0xff] }
 0x7d5   :  { %11963 = vmatprep.subr.bf16.mxu1 %v17638_v6  ;;  %11995 = vmatprep.subr.bf16.mxu0 %v17649_v2  ;;  %v8267_v11 = vld [vmem:[%s18610_s10 + $0x28] sm:$0xff] }
 0x7d6   :  { %v17885_v62 = vpack.c.bf16 %v8267_v11, %v8263_v63 }
 0x7d8   :  { %11997 = vmatpush3.bf16.msra.mxu0 %v17660_v38 }
 0x7d9   :  { %7582 = vmatmul.mubr.bf16.gmra.mrb[44].mxu1 %v16439_v18  ;;  %11999 = vmatprep.subr.bf16.mxu0 %v17685_v53 }
 0x7da   :  { %8006 = vmatmul.mubr.bf16.gmra.mrb[44].mxu0 %v16439_v18  ;;  %v8058_v18 = vld [vmem:[%s18609_s9 + $0x10] sm:$0xff] }
 0x7db   :  { %v17651_v16 = vpack.c.bf16 %v8059_v23, %v8058_v18  ;;  %v8117_v18 = vld [vmem:[%s18609_s9 + $0x1e8] sm:$0xff]  ;;  %v8068_v23 = vld [vmem:[%s18609_s9 + $0x60] sm:$0xff] }
 0x7dc   :  { %12001 = vmatpush3.bf16.msra.mxu0 %v17696_v25  ;;  %v17824_v59 = vpack.c.bf16 %v8117_v18, %v8116_v41  ;;  %v17836_v9 = vpack.c.bf16 %v8069_v58, %v8068_v23 }
 0x7dd   :  { %11965 = vmatpush3.bf16.msra.mxu1 %v17651_v16  ;;  %12003 = vmatprep.subr.bf16.mxu0 %v17721_v14 }
 0x7de   :  { %11967 = vmatprep.subr.bf16.mxu1 %v17674_v26 }
 0x7e0   :  { %12005 = vmatpush3.bf16.msra.mxu0 %v17732_v50 }
 0x7e1   :  { %11969 = vmatpush3.bf16.msra.mxu1 %v17687_v22  ;;  %12007 = vmatprep.subr.bf16.mxu0 %v17757_v46 }
 0x7e2   :  { %11971 = vmatprep.subr.bf16.mxu1 %v17710_v42 }
 0x7e4   :  { %12009 = vmatpush3.bf16.msra.mxu0 %v17771_v33 }
 0x7e5   :  { %11973 = vmatpush3.bf16.msra.mxu1 %v17723_v0  ;;  %12011 = vmatprep.subr.bf16.mxu0 %v17786_v17 }
 0x7e6   :  { %11975 = vmatprep.subr.bf16.mxu1 %v17746_v15 }
 0x7e8   :  { %12013 = vmatpush3.bf16.msra.mxu0 %v17811_v1 }
 0x7e9   :  { %11977 = vmatpush3.bf16.msra.mxu1 %v17759_v61  ;;  %12015 = vmatprep.subr.bf16.mxu0 %v17824_v59 }
 0x7ea   :  { %11979 = vmatprep.subr.bf16.mxu1 %v17784_v54 }
 0x7ec   :  { %12017 = vmatpush3.bf16.msra.mxu0 %v17849_v4 }
 0x7ed   :  { %11981 = vmatpush3.bf16.msra.mxu1 %v17798_v13  ;;  %12019 = vmatprep.subr.bf16.mxu0 %v17863_v55 }
 0x7ee   :  { %11983 = vmatprep.subr.bf16.mxu1 %v17813_v10 }
 0x7f0   :  { %12021 = vmatpush3.bf16.msra.mxu0 %v17882_v49 }
 0x7f1   :  { %11985 = vmatpush3.bf16.msra.mxu1 %v17836_v9  ;;  %12023 = vmatprep.subr.bf16.mxu0 %v17885_v62 }
 0x7f2   :  { %11987 = vmatprep.subr.bf16.mxu1 %v17851_v21 }
 0x7f5   :  { %11989 = vmatpush3.bf16.msra.mxu1 %v17878_v24 }
 0x7f6   :  { %12039 = vmatprep.subr.bf16.mxu1 %v17599_v36 }
 0x8a4   :  { %v17891_v60 = vpop.f32.mrb[40].mxu1 }
 0x8a5   :  { %v17893_v5 = vpop.f32.mrb[40].mxu0  ;;  %v17895_v35 = vpop.f32.mrb[41].mxu1 }
 0x8a6   :  { %18766 = vst [vmem:[#allocation9_spill] sm:$0xff] %v17893_v5  ;;  %v17897_v19 = vpop.f32.mrb[41].mxu0  ;;  %v17899_v40 = vpop.f32.mrb[42].mxu1 }
 0x8a7   :  { %18767 = vst [vmem:[#allocation11_spill] sm:$0xff] %v17897_v19  ;;  %v8016_v34 = vadd.f32 %v17899_v40, %v17891_v60  ;;  %v17903_v31 = vpop.f32.mrb[42].mxu0  ;;  %v17905_v57 = vpop.f32.mrb[43].mxu1 }
 0x8a8   :  { %18768 = vst [vmem:[#allocation13_spill] sm:$0xff] %v17903_v31  ;;  %18769 = vst [vmem:[#allocation15_spill] sm:$0xff] %v17905_v57  ;;  %v8036_v36 = vadd.f32 %v17903_v31, %v17893_v5  ;;  %v8026_v29 = vadd.f32 %v17905_v57, %v17895_v35  ;;  %v17911_v30 = vpop.f32.mrb[43].mxu0 }
 0x8a9   :  { %18770 = vst [vmem:[#allocation31_spill] sm:$0xff] %v17911_v30  ;;  %v8046_v12 = vadd.f32 %v17911_v30, %v17897_v19 }
 0x8ac   :  { %v17915_v7 = vpop.f32.mrb[44].mxu1 }
 0x8ad   :  { %v8017_v45 = vadd.f32 %v8016_v34, %v17915_v7  ;;  %v17918_v48 = vpop.f32.mrb[44].mxu0  ;;  %v17920_v52 = vpop.f32.mrb[45].mxu1 }
 0x8ae   :  { %18771 = vst [vmem:[#allocation33_spill] sm:$0xff] %v17918_v48  ;;  %18772 = vst [vmem:[#allocation35_spill] sm:$0xff] %v17920_v52  ;;  %v8037_v41 = vadd.f32 %v8036_v36, %v17918_v48  ;;  %v8027_v18 = vadd.f32 %v8026_v29, %v17920_v52  ;;  %v17924_v23 = vpop.f32.mrb[45].mxu0  ;;  %v17926_v58 = vpop.f32.mrb[46].mxu1 }
 0x8af   :  { %18773 = vst [vmem:[#allocation32_spill] sm:$0xff] %v17924_v23  ;;  %v8047_v28 = vadd.f32 %v8046_v12, %v17924_v23  ;;  %v8018_v37 = vsel %vm156_vm3, %v17926_v58, 0.0  ;;  %v17931_v44 = vpop.f32.mrb[46].mxu0  ;;  %v17933_v27 = vpop.f32.mrb[47].mxu1 }
 0x8b0   :  { %18774 = vst [vmem:[#allocation34_spill] sm:$0xff] %v17931_v44  ;;  %18775 = vst [vmem:[#allocation8_spill] sm:$0xff] %v17933_v27  ;;  %v8019_v39 = vadd.f32 %v8018_v37, %v8017_v45  ;;  %v8038_v47 = vsel %vm156_vm3, %v17931_v44, 0.0  ;;  %v8028_v8 = vsel %vm156_vm3, %v17933_v27, 0.0  ;;  %v17939_v56 = vpop.f32.mrb[47].mxu0 }
 0x8b1   :  { %18776 = vst [vmem:[#allocation10_spill] sm:$0xff] %v17939_v56  ;;  %v8039_v20 = vadd.f32 %v8038_v47, %v8037_v41  ;;  %v8029_v3 = vadd.f32 %v8028_v8, %v8027_v18  ;;  %v8048_v63 = vsel %vm156_vm3, %v17939_v56, 0.0 }
 0x8b2   :  { %v8020_v11 = vrot.slane %v8019_v39, 4  ;;  %v8049_v34 = vadd.f32 %v8048_v63, %v8047_v28 }
 0x8b3   :  { %v8040_v36 = vrot.slane %v8039_v20, 4  ;;  %v8030_v29 = vrot.slane %v8029_v3, 4 }
 0x8b4   :  { %v8021_v12 = vadd.f32 %v8020_v11, %v8019_v39  ;;  %v8050_v23 = vrot.slane %v8049_v34, 4  ;;  %v8276_v11 = vld [vmem:[%s18610_s10 + $0x70] sm:$0xff] }
 0x8b5   :  { %v8041_v45 = vadd.f32 %v8040_v36, %v8039_v20  ;;  %v8031_v37 = vadd.f32 %v8030_v29, %v8029_v3  ;;  %v8272_v3 = vld [vmem:[%s18610_s10 + $0x50] sm:$0xff] }
 0x8b6   :  { %v8022_v30 = vrot.slane %v8021_v12, 2  ;;  %v8051_v19 = vadd.f32 %v8050_v23, %v8049_v34  ;;  %v18777_v23 = vmov 0.0   ;;  %v18020_v34 = vpack.c.bf16 %v8276_v11, %v8272_v3 }
 0x8b7   :  { %v8042_v44 = vrot.slane %v8041_v45, 2  ;;  %v8032_v48 = vrot.slane %v8031_v37, 2 }
 0x8b8   :  { %v8023_v31 = vadd.f32 %v8022_v30, %v8021_v12  ;;  %v8052_v5 = vrot.slane %v8051_v19, 2  ;;  %v8268_v30 = vld [vmem:[%s18610_s10 + $0x30] sm:$0xff] }
 0x8b9   :  { %v8043_v27 = vadd.f32 %v8042_v44, %v8041_v45  ;;  %v8033_v41 = vadd.f32 %v8032_v48, %v8031_v37  ;;  %v8273_v48 = vld [vmem:[%s18610_s10 + $0x58] sm:$0xff] }
 0x8ba   :  { %v8024_v18 = vrot.slane %v8023_v31, 1  ;;  %v8053_v47 = vadd.f32 %v8052_v5, %v8051_v19 }
 0x8bb   :  { %v8044_v8 = vrot.slane %v8043_v27, 1  ;;  %v8034_v56 = vrot.slane %v8033_v41, 1 }
 0x8bc   :  { %v8054_v52 = vrot.slane %v8053_v47, 1  ;;  %v8025_v63 = vadd.f32 %v8024_v18, %v8023_v31 }
 0x8bd   :  { %v8035_v28 = vadd.f32 %v8034_v56, %v8033_v41  ;;  %v8045_v39 = vadd.f32 %v8044_v8, %v8043_v27 }
 0x8be   :  { %v8055_v57 = vadd.f32 %v8054_v52, %v8053_v47  ;;  %v8277_v52 = vld [vmem:[%s18610_s10 + $0x78] sm:$0xff] }
 0x8bf   :  { %8184 = vmatprep.mubr.f32.mxu1 %v8035_v28  ;;  %v18010_v20 = vpack.c.bf16 %v8277_v52, %v8273_v48 }
 0x8c0   :  { %8254 = vmatprep.mubr.f32.mxu0 %v8055_v57  ;;  %8185 = vmatmul.mubr.f32.vlgmr.msra.gmra.mrb[48].mxu1 %v8025_v63  ;;  %v8264_v57 = vld [vmem:[%s18610_s10 + $0x10] sm:$0xff] }
 0x8c1   :  { %8255 = vmatmul.mubr.f32.vlgmr.msra.gmra.mrb[38].mxu0 %v8045_v39  ;;  %12041 = vmatpush3.bf16.msra.mxu1 %v17616_v51  ;;  %v8262_v51 = vld [vmem:[%s18610_s10] sm:$0xff]  ;;  %v18008_v27 = vpack.c.bf16 %v8268_v30, %v8264_v57 }
 0x8c2   :  { %8346 = vmatprep.mubr.f32.mxu0 %v18777_v23  ;;  %12043 = vmatprep.subr.bf16.mxu1 %v17638_v6  ;;  %v8266_v6 = vld [vmem:[%s18610_s10 + $0x20] sm:$0xff] }
 0x8c3   :  { %v18782_v39 = vld [vmem:[#allocation9_spill] sm:$0xff] }
 0x8c5   :  { %12045 = vmatpush3.bf16.msra.mxu1 %v17651_v16  ;;  %v17966_v16 = vpack.c.bf16 %v8266_v6, %v8262_v51  ;;  %v18783_v6 = vld [vmem:[#allocation13_spill] sm:$0xff] }
 0x8c6   :  { %12047 = vmatprep.subr.bf16.mxu1 %v17674_v26  ;;  %v8271_v26 = vld [vmem:[%s18610_s10 + $0x48] sm:$0xff] }
 0x8c7   :  { %12025 = vmatpush1.bf16.msra.mxu0 %v17966_v16 }
 0x8c9   :  { %12049 = vmatpush3.bf16.msra.mxu1 %v17687_v22  ;;  %v8275_v22 = vld [vmem:[%s18610_s10 + $0x68] sm:$0xff] }
 0x8ca   :  { %12051 = vmatprep.subr.bf16.mxu1 %v17710_v42  ;;  %v8270_v42 = vld [vmem:[%s18610_s10 + $0x40] sm:$0xff] }
 0x8cd   :  { %12053 = vmatpush3.bf16.msra.mxu1 %v17723_v0  ;;  %v17978_v0 = vpack.c.bf16 %v8275_v22, %v8271_v26  ;;  %v18784_v22 = vld [vmem:[#allocation33_spill] sm:$0xff] }
 0x8ce   :  { %12055 = vmatprep.subr.bf16.mxu1 %v17746_v15  ;;  %v8274_v15 = vld [vmem:[%s18610_s10 + $0x60] sm:$0xff] }
 0x8cf   :  { %12027 = vmatprep.subr.bf16.mxu0 %v17978_v0 }
 0x8d1   :  { %12057 = vmatpush3.bf16.msra.mxu1 %v17759_v61  ;;  %v8265_v61 = vld [vmem:[%s18610_s10 + $0x18] sm:$0xff] }
 0x8d2   :  { %12059 = vmatprep.subr.bf16.mxu1 %v17784_v54  ;;  %v8269_v54 = vld [vmem:[%s18610_s10 + $0x38] sm:$0xff] }
 0x8d5   :  { %12061 = vmatpush3.bf16.msra.mxu1 %v17798_v13  ;;  %v17989_v13 = vpack.c.bf16 %v8274_v15, %v8270_v42  ;;  %v18785_v15 = vld [vmem:[#allocation34_spill] sm:$0xff] }
 0x8d6   :  { %12063 = vmatprep.subr.bf16.mxu1 %v17813_v10  ;;  %v17991_v10 = vpack.c.bf16 %v8269_v54, %v8265_v61  ;;  %v18786_v54 = vld [vmem:[#allocation11_spill] sm:$0xff] }
 0x8d7   :  { %12029 = vmatpush1.bf16.msra.mxu0 %v17989_v13 }
 0x8d8   :  { %12031 = vmatprep.subr.bf16.mxu0 %v17991_v10 }
 0x8d9   :  { %12065 = vmatpush3.bf16.msra.mxu1 %v17836_v9 }
 0x8da   :  { %12067 = vmatprep.subr.bf16.mxu1 %v17851_v21 }
 0x8dd   :  { %12069 = vmatpush3.bf16.msra.mxu1 %v17878_v24 }
 0x8de   :  { %12103 = vmatprep.subr.bf16.mxu1 %v17885_v62 }
 0x993   :  { %v11468_v9 = vpop.f32.mrb[48].mxu1 }
 0x994   :  { %v11503_v21 = vpop.f32.mrb[38].mxu0  ;;  %v11469_v24 = vpop.f32.mrb[49].mxu1 }
 0x995   :  { %v11470_v5 = vadd.f32 %v11469_v24, %v11468_v9  ;;  %v11504_v19 = vpop.f32.mrb[39].mxu0 }
 0x996   :  { %v11505_v31 = vadd.f32 %v11504_v19, %v11503_v21  ;;  %v18787_v21 = vld [vmem:[#allocation31_spill] sm:$0xff] }
 0x998   :  { %v8257_v44 = vadd.f32 %v11505_v31, %v11470_v5  ;;  %v18788_v5 = vld [vmem:[#allocation32_spill] sm:$0xff]  ;;  %v18789_v31 = vld [vmem:[#allocation10_spill] sm:$0xff] }
 0x99a   :  { %v8261_v56 = vmul.f32 0.0025510204, %v8257_v44 }
 0x99c   :  { %11095 = vmatmul.mubr.msk.f32.vlgmr.msra.gmra.mrb[48].mxu0 %vm8278_vm8, %v8261_v56 }
 0x99d   :  { %12033 = vmatpush1.bf16.msra.mxu0 %v18008_v27  ;;  %8417 = vmatprep.mubr.f32.mxu0 %v18777_v23 }
 0x99e   :  { %12035 = vmatprep.subr.bf16.mxu0 %v18010_v20 }
 0x9a1   :  { %12037 = vmatpush1.bf16.msra.mxu0 %v18020_v34 }
 0x9a2   :  { %12071 = vmatprep.subr.bf16.mxu0 %v17601_v32 }
 0x9a4   :  { %11096 = vmatmul.mubr.msk.f32.vlgmr.msra.gmra.mrb[50].mxu0 %vm8278_vm8, %v8261_v56 }
 0x9a5   :  { %12073 = vmatpush3.bf16.msra.mxu0 %v17619_v43  ;;  %v18778_v43 = vld [vmem:[#allocation36_spill] sm:$0xff] }
 0x9a6   :  { %12075 = vmatprep.subr.bf16.mxu0 %v17649_v2 }
 0x9a9   :  { %12077 = vmatpush3.bf16.msra.mxu0 %v17660_v38 }
 0x9aa   :  { %12079 = vmatprep.subr.bf16.mxu0 %v17685_v53 }
 0x9ad   :  { %12081 = vmatpush3.bf16.msra.mxu0 %v17696_v25 }
 0x9ae   :  { %12083 = vmatprep.subr.bf16.mxu0 %v17721_v14 }
 0x9b1   :  { %12085 = vmatpush3.bf16.msra.mxu0 %v17732_v50 }
 0x9b2   :  { %12087 = vmatprep.subr.bf16.mxu0 %v17757_v46 }
 0x9b5   :  { %12089 = vmatpush3.bf16.msra.mxu0 %v17771_v33 }
 0x9b6   :  { %12091 = vmatprep.subr.bf16.mxu0 %v17786_v17  ;;  %v18779_v17 = vld [vmem:[#allocation15_spill] sm:$0xff] }
 0x9b9   :  { %12093 = vmatpush3.bf16.msra.mxu0 %v17811_v1 }
 0x9ba   :  { %12095 = vmatprep.subr.bf16.mxu0 %v17824_v59  ;;  %v18780_v59 = vld [vmem:[#allocation35_spill] sm:$0xff] }
 0x9bd   :  { %12097 = vmatpush3.bf16.msra.mxu0 %v17849_v4 }
 0x9be   :  { %12099 = vmatprep.subr.bf16.mxu0 %v17863_v55  ;;  %v18781_v55 = vld [vmem:[#allocation8_spill] sm:$0xff] }
 0x9c1   :  { %12101 = vmatpush3.bf16.msra.mxu0 %v17882_v49 }
 0x9c2   :  { %12111 = vmatprep.subr.bf16.mxu0 %v17991_v10 }
 0xa6f   :  { %v8348_v32 = vpop.f32.mrb[48].mxu0 }
 0xa70   :  { %v8427_v2 = vrot.slane %v8348_v32, %v18778_v43  ;;  %v8350_v38 = vpop.f32.mrb[49].mxu0 }
 0xa71   :  { %v8431_v53 = vrot.slane %v8350_v38, %v18778_v43 }
 0xa72   :  { %v18046_v25 = vsub.f32 %v17891_v60, %v8427_v2  ;;  %v18049_v14 = vsub.f32 %v17899_v40, %v8427_v2  ;;  %v18052_v50 = vsub.f32 %v17915_v7, %v8427_v2  ;;  %v18055_v46 = vsub.f32 %v17926_v58, %v8427_v2 }
 0xa73   :  { %v18058_v33 = vsub.f32 %v17895_v35, %v8431_v53  ;;  %v18061_v1 = vsub.f32 %v18779_v17, %v8431_v53  ;;  %v18064_v4 = vsub.f32 %v18780_v59, %v8431_v53  ;;  %v18067_v49 = vsub.f32 %v18781_v55, %v8431_v53 }
 0xa74   :  { %v8456_v60 = vmul.f32 %v18046_v25, %v18046_v25  ;;  %v8460_v40 = vmul.f32 %v18049_v14, %v18049_v14  ;;  %v8464_v36 = vmul.f32 %v18052_v50, %v18052_v50  ;;  %v8468_v37 = vmul.f32 %v18055_v46, %v18055_v46 }
 0xa75   :  { %v8457_v7 = vmul.f32 %v18058_v33, %v18058_v33  ;;  %v8461_v35 = vmul.f32 %v18061_v1, %v18061_v1  ;;  %v8465_v29 = vmul.f32 %v18064_v4, %v18064_v4  ;;  %v8469_v41 = vmul.f32 %v18067_v49, %v18067_v49 }
 0xa76   :  { %v8472_v58 = vadd.f32 %v8460_v40, %v8456_v60  ;;  %v8474_v30 = vsel %vm156_vm3, %v8468_v37, 0.0 }
 0xa77   :  { %v8482_v12 = vadd.f32 %v8461_v35, %v8457_v7  ;;  %v8419_v45 = vpop.f32.mrb[50].mxu0  ;;  %v8484_v44 = vsel %vm156_vm3, %v8469_v41, 0.0 }
 0xa78   :  { %v8435_v18 = vrot.slane %v8419_v45, %v18778_v43  ;;  %v8421_v47 = vpop.f32.mrb[51].mxu0  ;;  %v8473_v8 = vadd.f32 %v8472_v58, %v8464_v36 }
 0xa79   :  { %v8439_v28 = vrot.slane %v8421_v47, %v18778_v43  ;;  %v8483_v63 = vadd.f32 %v8482_v12, %v8465_v29 }
 0xa7a   :  { %v18088_v51 = vsub.f32 %v18782_v39, %v8435_v18  ;;  %v18091_v26 = vsub.f32 %v18783_v6, %v8435_v18  ;;  %v18094_v42 = vsub.f32 %v18784_v22, %v8435_v18  ;;  %v18097_v61 = vsub.f32 %v18785_v15, %v8435_v18 }
 0xa7b   :  { %v18100_v9 = vsub.f32 %v18786_v54, %v8439_v28  ;;  %v18103_v24 = vsub.f32 %v18787_v21, %v8439_v28  ;;  %v18106_v19 = vsub.f32 %v18788_v5, %v8439_v28  ;;  %v18109_v57 = vsub.f32 %v18789_v31, %v8439_v28 }
 0xa7c   :  { %v8458_v48 = vmul.f32 %v18088_v51, %v18088_v51  ;;  %v8462_v52 = vmul.f32 %v18091_v26, %v18091_v26  ;;  %v8466_v56 = vmul.f32 %v18094_v42, %v18094_v42  ;;  %v8470_v3 = vmul.f32 %v18097_v61, %v18097_v61 }
 0xa7d   :  { %v8459_v11 = vmul.f32 %v18100_v9, %v18100_v9  ;;  %v8463_v32 = vmul.f32 %v18103_v24, %v18103_v24  ;;  %v8471_v38 = vmul.f32 %v18109_v57, %v18109_v57  ;;  %v8485_v53 = vadd.f32 %v8484_v44, %v8483_v63 }
 0xa7e   :  { %v8492_v2 = vadd.f32 %v8462_v52, %v8458_v48  ;;  %v8475_v17 = vadd.f32 %v8474_v30, %v8473_v8  ;;  %v8467_v59 = vmul.f32 %v18106_v19, %v18106_v19  ;;  %v8494_v35 = vsel %vm156_vm3, %v8470_v3, 0.0 }
 0xa7f   :  { %v8502_v55 = vadd.f32 %v8463_v32, %v8459_v11  ;;  %v8486_v40 = vrot.slane %v8485_v53, 4  ;;  %v8504_v12 = vsel %vm156_vm3, %v8471_v38, 0.0 }
 0xa80   :  { %v8493_v60 = vadd.f32 %v8492_v2, %v8466_v56  ;;  %v8476_v7 = vrot.slane %v8475_v17, 4 }
 0xa81   :  { %v8503_v58 = vadd.f32 %v8502_v55, %v8467_v59  ;;  %v8487_v36 = vadd.f32 %v8486_v40, %v8485_v53  ;;  %v8653_v40 = vld [vmem:[%s18611_s11] sm:$0x1] }
 0xa82   :  { %v8477_v29 = vadd.f32 %v8476_v7, %v8475_v17  ;;  %v8495_v45 = vadd.f32 %v8494_v35, %v8493_v60  ;;  %v13427_v35 = vld [vmem:[%s18603_s3 + $0xc0] sm:$0xff]  }
 0xa83   :  { %v8505_v37 = vadd.f32 %v8504_v12, %v8503_v58  ;;  %v8488_v41 = vrot.slane %v8487_v36, 2  ;;  %v13433_v58 = vld [vmem:[%s18603_s3 + $0x50] sm:$0xff]  }
 0xa84   :  { %v8478_v18 = vrot.slane %v8477_v29, 2  ;;  %v8496_v47 = vrot.slane %v8495_v45, 4  ;;  %v13436_v12 = vld [vmem:[%s18603_s3 + $0x90] sm:$0xff]  }
 0xa85   :  { %v8506_v8 = vrot.slane %v8505_v37, 4  ;;  %v8489_v28 = vadd.f32 %v8488_v41, %v8487_v36  ;;  %v13434_v36 = vld [vmem:[%s18603_s3 + $0x10] sm:$0xff]   ;;  %v13439_v41 = vld [vmem:[%s18603_s3 + $0xd8] sm:$0xff]  }
 0xa86   :  { %v8479_v63 = vadd.f32 %v8478_v18, %v8477_v29  ;;  %v8497_v39 = vadd.f32 %v8496_v47, %v8495_v45  ;;  %v13435_v29 = vld [vmem:[%s18603_s3 + $0xd0] sm:$0xff]   ;;  %v13437_v45 = vld [vmem:[%s18603_s3 + $0x58] sm:$0xff]   ;;  %v13441_v47 = vld [vmem:[%s18603_s3 + $0x60] sm:$0xff]  }
 0xa87   :  { %v8507_v6 = vadd.f32 %v8506_v8, %v8505_v37  ;;  %v8490_v22 = vrot.slane %v8489_v28, 1  ;;  %v13438_v37 = vld [vmem:[%s18603_s3 + $0x18] sm:$0xff]   ;;  %v13442_v8 = vld [vmem:[%s18603_s3 + $0x20] sm:$0xff]  }
 0xa88   :  { %v8480_v15 = vrot.slane %v8479_v63, 1  ;;  %v8498_v54 = vrot.slane %v8497_v39, 2  ;;  %v13440_v18 = vld [vmem:[%s18603_s3 + $0x98] sm:$0xff]  }
 0xa89   :  { %v8508_v21 = vrot.slane %v8507_v6, 2  ;;  %v8491_v5 = vadd.f32 %v8490_v22, %v8489_v28  ;;  %v13443_v28 = vld [vmem:[%s18603_s3 + $0xe0] sm:$0xff]   ;;  %v13447_v22 = vld [vmem:[%s18603_s3 + $0xe8] sm:$0xff]  }
 0xa8a   :  { %v8499_v31 = vadd.f32 %v8498_v54, %v8497_v39  ;;  %v8481_v30 = vadd.f32 %v8480_v15, %v8479_v63  ;;  %v13445_v63 = vld [vmem:[%s18603_s3 + $0x68] sm:$0xff]   ;;  %v13444_v39 = vld [vmem:[%s18603_s3 + $0xa0] sm:$0xff]   ;;  %v13449_v15 = vld [vmem:[%s18603_s3 + $0x70] sm:$0xff]  }
 0xa8b   :  { %v8509_v48 = vadd.f32 %v8508_v21, %v8507_v6  ;;  %8576 = vmatprep.mubr.f32.mxu1 %v8491_v5  ;;  %v13446_v6 = vld [vmem:[%s18603_s3 + $0x28] sm:$0xff]   ;;  %v13450_v21 = vld [vmem:[%s18603_s3 + $0x30] sm:$0xff]  }
 0xa8c   :  { %v8500_v52 = vrot.slane %v8499_v31, 1  ;;  %8577 = vmatmul.mubr.f32.vlgmr.msra.gmra.mrb[50].mxu1 %v8481_v30  ;;  %v13448_v54 = vld [vmem:[%s18603_s3 + $0xa8] sm:$0xff]   ;;  %v13451_v5 = vld [vmem:[%s18603_s3 + $0xf0] sm:$0xff]  }
 0xa8d   :  { %v8510_v44 = vrot.slane %v8509_v48, 1  ;;  %12105 = vmatpush1.bf16.msra.mxu1 %v17966_v16  ;;  %8724 = vmatprep.mubr.f32.mxu1 %v18777_v23  ;;  %v13452_v30 = vld [vmem:[%s18603_s3 + $0xb0] sm:$0xff]  }
 0xa8e   :  { %12107 = vmatprep.subr.bf16.mxu1 %v17978_v0  ;;  %v8501_v3 = vadd.f32 %v8500_v52, %v8499_v31  ;;  %v13453_v31 = vld [vmem:[%s18603_s3 + $0x78] sm:$0xff]  }
 0xa8f   :  { %v8511_v56 = vadd.f32 %v8510_v44, %v8509_v48  ;;  %v13454_v48 = vld [vmem:[%s18603_s3 + $0x38] sm:$0xff]   ;;  %v13457_v44 = vld [vmem:[%s18603_s3 + $0x140] sm:$0xff]  }
 0xa90   :  { %v13455_v52 = vld [vmem:[%s18603_s3 + $0xf8] sm:$0xff]  }
 0xa91   :  { %8646 = vmatprep.mubr.f32.mxu0 %v8511_v56  ;;  %12109 = vmatpush1.bf16.msra.mxu1 %v17989_v13  ;;  %v13456_v56 = vld [vmem:[%s18603_s3 + $0xb8] sm:$0xff]  }
 0xa92   :  { %8647 = vmatmul.mubr.f32.vlgmr.msra.gmra.mrb[52].mxu0 %v8501_v3  ;;  %12119 = vmatprep.subr.bf16.mxu1 %v17885_v62  ;;  %v13459_v3 = vld [vmem:[%s18603_s3 + $0x1c0] sm:$0xff]  }
 0xa93   :  { %12113 = vmatpush1.bf16.msra.mxu0 %v18008_v27  ;;  %8795 = vmatprep.mubr.f32.mxu0 %v18777_v23 }
 0xa94   :  { %12115 = vmatprep.subr.bf16.mxu0 %v18010_v20 }
 0xa97   :  { %12117 = vmatpush1.bf16.msra.mxu0 %v18020_v34 }
 0xa98   :  { %12127 = vmatprep.subr.bf16.mxu0 %v17991_v10  ;;  %v13425_v10 = vld [vmem:[%s18603_s3 + $0x40] sm:$0xff]  }
 0xb5f   :  { %v11538_v11 = vpop.f32.mrb[50].mxu1 }
 0xb60   :  { %v11539_v32 = vpop.f32.mrb[51].mxu1 }
 0xb61   :  { %v11540_v2 = vadd.f32 %v11539_v32, %v11538_v11 }
 0xb65   :  { %v11573_v38 = vpop.f32.mrb[52].mxu0 }
 0xb66   :  { %v11574_v53 = vpop.f32.mrb[53].mxu0 }
 0xb67   :  { %v11575_v17 = vadd.f32 %v11574_v53, %v11573_v38 }
 0xb69   :  { %v8649_v59 = vadd.f32 %v11575_v17, %v11540_v2 }
 0xb6b   :  { %v8652_v55 = vmul.f32 0.0025510204, %v8649_v59 }
 0xb6d   :  { %v8654_v60 = vadd.f32 1e-05, %v8652_v55 }
 0xb6f   :  { %13539 = vrsqrt.f32 %v8654_v60 }
 0xb79   :  { %v13540_v7 = vpop.eup %13539 }
 0xb7a   :  { %v8656_v62 = vmul.f32 %v13540_v7, %v8653_v40 }
 0xb7c   :  { %11097 = vmatmul.mubr.msk.f32.vlgmr.msra.gmra.mrb[52].mxu1 %vm8278_vm8, %v8656_v62  ;;  %11098 = vmatmul.mubr.msk.f32.vlgmr.msra.gmra.mrb[54].mxu0 %vm8278_vm8, %v8656_v62 }
 0xb7d   :  { %12121 = vmatpush1.bf16.msra.mxu1 %v17966_v16  ;;  %12129 = vmatpush1.bf16.msra.mxu0 %v18008_v27  ;;  %v8802_v16 = vld [vmem:[%s18612_s12] sm:$0x1] }
 0xb7e   :  { %12123 = vmatprep.subr.bf16.mxu1 %v17978_v0  ;;  %12131 = vmatprep.subr.bf16.mxu0 %v18010_v20  ;;  %v13426_v0 = vld [vmem:[%s18603_s3] sm:$0xff]   ;;  %v13430_v20 = vld [vmem:[%s18603_s3 + $0x8] sm:$0xff]  }
 0xb7f   :  { %8870 = vmatprep.mubr.f32.mxu1 %v18777_v23  ;;  %8941 = vmatprep.mubr.f32.mxu0 %v18777_v23  ;;  %v13428_v27 = vld [vmem:[%s18603_s3 + $0x80] sm:$0xff]   ;;  %v13429_v23 = vld [vmem:[%s18603_s3 + $0x48] sm:$0xff]  }
 0xb81   :  { %12125 = vmatpush1.bf16.msra.mxu1 %v17989_v13  ;;  %12133 = vmatpush1.bf16.msra.mxu0 %v18020_v34  ;;  %v13431_v13 = vld [vmem:[%s18603_s3 + $0xc8] sm:$0xff]  }
 0xb82   :  { %11576 = vmatprep.subr.bf16.mxu1 %v13425_v10  ;;  %11598 = vmatprep.subr.bf16.mxu0 %v13427_v35  ;;  %v13432_v34 = vld [vmem:[%s18603_s3 + $0x88] sm:$0xff]  }
 0xb84   :  { %11099 = vmatmul.mubr.msk.f32.vlgmr.msra.gmra.mrb[54].mxu1 %vm8278_vm8, %v8802_v16  ;;  %11100 = vmatmul.mubr.msk.f32.vlgmr.msra.gmra.mrb[56].mxu0 %vm8278_vm8, %v8802_v16 }
 0xb85   :  { %11577 = vmatpush3.bf16.msra.mxu1 %v13426_v0  ;;  %11599 = vmatpush3.bf16.msra.mxu0 %v13428_v27 }
 0xb86   :  { %11578 = vmatprep.subr.bf16.mxu1 %v13429_v23  ;;  %11600 = vmatprep.subr.bf16.mxu0 %v13431_v13 }
 0xb89   :  { %11579 = vmatpush3.bf16.msra.mxu1 %v13430_v20  ;;  %11601 = vmatpush3.bf16.msra.mxu0 %v13432_v34 }
 0xb8a   :  { %11580 = vmatprep.subr.bf16.mxu1 %v13433_v58  ;;  %11602 = vmatprep.subr.bf16.mxu0 %v13435_v29 }
 0xb8d   :  { %11581 = vmatpush3.bf16.msra.mxu1 %v13434_v36  ;;  %11603 = vmatpush3.bf16.msra.mxu0 %v13436_v12 }
 0xb8e   :  { %11582 = vmatprep.subr.bf16.mxu1 %v13437_v45  ;;  %11604 = vmatprep.subr.bf16.mxu0 %v13439_v41 }
 0xb91   :  { %11583 = vmatpush3.bf16.msra.mxu1 %v13438_v37  ;;  %11605 = vmatpush3.bf16.msra.mxu0 %v13440_v18 }
 0xb92   :  { %11584 = vmatprep.subr.bf16.mxu1 %v13441_v47  ;;  %11606 = vmatprep.subr.bf16.mxu0 %v13443_v28 }
 0xb95   :  { %11585 = vmatpush3.bf16.msra.mxu1 %v13442_v8  ;;  %11607 = vmatpush3.bf16.msra.mxu0 %v13444_v39 }
 0xb96   :  { %11586 = vmatprep.subr.bf16.mxu1 %v13445_v63  ;;  %11608 = vmatprep.subr.bf16.mxu0 %v13447_v22 }
 0xb99   :  { %11587 = vmatpush3.bf16.msra.mxu1 %v13446_v6  ;;  %11609 = vmatpush3.bf16.msra.mxu0 %v13448_v54 }
 0xb9a   :  { %11588 = vmatprep.subr.bf16.mxu1 %v13449_v15  ;;  %11610 = vmatprep.subr.bf16.mxu0 %v13451_v5 }
 0xb9d   :  { %11589 = vmatpush3.bf16.msra.mxu1 %v13450_v21  ;;  %11611 = vmatpush3.bf16.msra.mxu0 %v13452_v30 }
 0xb9e   :  { %11590 = vmatprep.subr.bf16.mxu1 %v13453_v31  ;;  %11612 = vmatprep.subr.bf16.mxu0 %v13455_v52 }
 0xba1   :  { %11591 = vmatpush3.bf16.msra.mxu1 %v13454_v48  ;;  %11613 = vmatpush3.bf16.msra.mxu0 %v13456_v56 }
 0xba2   :  { %11620 = vmatprep.subr.bf16.mxu1 %v13457_v44  ;;  %11642 = vmatprep.subr.bf16.mxu0 %v13459_v3 }
 0xc4f   :  { %v8726_v11 = vpop.f32.mrb[52].mxu1  ;;  %v8797_v32 = vpop.f32.mrb[54].mxu0 }
 0xc50   :  { %v8728_v2 = vpop.f32.mrb[53].mxu1  ;;  %v8799_v38 = vpop.f32.mrb[55].mxu0  ;;  %v8951_v53 = vrot.slane %v8726_v11, %v18778_v43  ;;  %v8959_v17 = vrot.slane %v8797_v32, %v18778_v43 }
 0xc51   :  { %v8955_v59 = vrot.slane %v8728_v2, %v18778_v43  ;;  %v8963_v55 = vrot.slane %v8799_v38, %v18778_v43 }
 0xc52   :  { %v8964_v60 = vmul.f32 %v8951_v53, %v18046_v25  ;;  %v8968_v40 = vmul.f32 %v8951_v53, %v18049_v14  ;;  %v8972_v7 = vmul.f32 %v8951_v53, %v18052_v50  ;;  %v8976_v62 = vmul.f32 %v8951_v53, %v18055_v46 }
 0xc53   :  { %v8966_v10 = vmul.f32 %v8959_v17, %v18088_v51  ;;  %v8970_v35 = vmul.f32 %v8959_v17, %v18091_v26  ;;  %v8974_v16 = vmul.f32 %v8959_v17, %v18094_v42  ;;  %v8978_v0 = vmul.f32 %v8959_v17, %v18097_v61 }
 0xc54   :  { %v8965_v27 = vmul.f32 %v8955_v59, %v18058_v33  ;;  %v8969_v23 = vmul.f32 %v8955_v59, %v18061_v1  ;;  %v8973_v25 = vmul.f32 %v8955_v59, %v18064_v4  ;;  %v8977_v50 = vmul.f32 %v8955_v59, %v18067_v49 }
 0xc55   :  { %v8967_v46 = vmul.f32 %v8963_v55, %v18100_v9  ;;  %v8971_v61 = vmul.f32 %v8963_v55, %v18103_v24  ;;  %v8975_v33 = vmul.f32 %v8963_v55, %v18106_v19  ;;  %v8979_v5 = vmul.f32 %v8963_v55, %v18109_v57 }
 0xc57   :  { %v8872_v13 = vpop.f32.mrb[54].mxu1  ;;  %v8943_v14 = vpop.f32.mrb[56].mxu0 }
 0xc58   :  { %v8983_v51 = vrot.slane %v8872_v13, %v18778_v43  ;;  %v8991_v26 = vrot.slane %v8943_v14, %v18778_v43  ;;  %v8874_v20 = vpop.f32.mrb[55].mxu1  ;;  %v8945_v42 = vpop.f32.mrb[57].mxu0 }
 0xc59   :  { %v8987_v1 = vrot.slane %v8874_v20, %v18778_v43  ;;  %v8995_v4 = vrot.slane %v8945_v42, %v18778_v43 }
 0xc5a   :  { %v8996_v34 = vadd.f32 %v8983_v51, %v8964_v60  ;;  %v9000_v58 = vadd.f32 %v8983_v51, %v8968_v40  ;;  %v9004_v36 = vadd.f32 %v8983_v51, %v8972_v7  ;;  %v9008_v49 = vadd.f32 %v8983_v51, %v8976_v62 }
 0xc5b   :  { %v8998_v29 = vadd.f32 %v8991_v26, %v8966_v10  ;;  %v9002_v9 = vadd.f32 %v8991_v26, %v8970_v35  ;;  %v9006_v12 = vadd.f32 %v8991_v26, %v8974_v16  ;;  %v9010_v45 = vadd.f32 %v8991_v26, %v8978_v0 }
 0xc5c   :  { %v9012_v37 = vmax.f32 %v8996_v34, 0.0  ;;  %v9016_v41 = vmax.f32 %v9000_v58, 0.0  ;;  %v9020_v18 = vmax.f32 %v9004_v36, 0.0  ;;  %v9024_v47 = vmax.f32 %v9008_v49, 0.0 }
 0xc5d   :  { %v9014_v8 = vmax.f32 %v8998_v29, 0.0  ;;  %v9018_v24 = vmax.f32 %v9002_v9, 0.0  ;;  %v9022_v28 = vmax.f32 %v9006_v12, 0.0  ;;  %v9026_v19 = vmax.f32 %v9010_v45, 0.0 }
 0xc5e   :  { %v8997_v63 = vadd.f32 %v8987_v1, %v8965_v27  ;;  %v9001_v39 = vadd.f32 %v8987_v1, %v8969_v23  ;;  %v9005_v6 = vadd.f32 %v8987_v1, %v8973_v25  ;;  %v9009_v43 = vadd.f32 %v8987_v1, %v8977_v50 }
 0xc5f   :  { %v9028_v22 = vmax.f32 %v9012_v37, %v9014_v8  ;;  %v9030_v15 = vmax.f32 %v9016_v41, %v9018_v24  ;;  %v9072_v54 = vmax.f32 %v9020_v18, %v9022_v28  ;;  %v9074_v21 = vmax.f32 %v9024_v47, %v9026_v19 }
 0xc60   :  { %v9013_v31 = vmax.f32 %v8997_v63, 0.0  ;;  %v9017_v30 = vmax.f32 %v9001_v39, 0.0  ;;  %v9021_v48 = vmax.f32 %v9005_v6, 0.0  ;;  %v8999_v11 = vadd.f32 %v8995_v4, %v8967_v46 }
 0xc61   :  { %v9036_v52 = vrot.slane %v9028_v22, 7  ;;  %v9037_v44 = vrot.slane %v9030_v15, 7  ;;  %v9080_v56 = vrot.slane %v9072_v54, 7  ;;  %v9082_v3 = vrot.slane %v9074_v21, 7  ;;  %v13458_v21 = vld [vmem:[%s18603_s3 + $0x100] sm:$0xff]  }
 0xc62   :  { %v9003_v32 = vadd.f32 %v8995_v4, %v8971_v61  ;;  %v9007_v2 = vadd.f32 %v8995_v4, %v8975_v33  ;;  %v9011_v38 = vadd.f32 %v8995_v4, %v8979_v5  ;;  %v9025_v60 = vmax.f32 %v9009_v43, 0.0 }
 0xc63   :  { %v9038_v53 = vsel %vm174_vm6, %v9036_v52, %v9037_v44  ;;  %v9083_v17 = vsel %vm174_vm6, %v9080_v56, %v9082_v3  ;;  %v9090_v59 = vmax.f32 %v9030_v15, %v9080_v56  ;;  %v9015_v55 = vmax.f32 %v8999_v11, 0.0  ;;  %v13460_v52 = vld [vmem:[%s18603_s3 + $0x180] sm:$0xff]   ;;  %v13461_v3 = vld [vmem:[%s18603_s3 + $0x148] sm:$0xff]  }
 0xc64   :  { %v18287_v40 = vmax.f32 %v9028_v22, %v9038_v53  ;;  %v18289_v57 = vmax.f32 %v9072_v54, %v9083_v17  ;;  %v9019_v7 = vmax.f32 %v9003_v32, 0.0  ;;  %v9023_v62 = vmax.f32 %v9007_v2, 0.0  ;;  %v13463_v11 = vld [vmem:[%s18603_s3 + $0x1c8] sm:$0xff]  }
 0xc65   :  { %v9027_v10 = vmax.f32 %v9011_v38, 0.0  ;;  %v9110_v35 = vrot.slane %v9090_v59, 5  ;;  %v11101_v16 = vrot.slane %v9090_v59, 6  ;;  %v9029_v0 = vmax.f32 %v9013_v31, %v9015_v55 }
 0xc66   :  { %v9031_v27 = vmax.f32 %v9017_v30, %v9019_v7  ;;  %v9048_v23 = vrot.slane %v18287_v40, 1  ;;  %v9052_v25 = vrot.slane %v18287_v40, 2  ;;  %v9073_v13 = vmax.f32 %v9021_v48, %v9023_v62  ;;  %v13464_v62 = vld [vmem:[%s18603_s3 + $0x188] sm:$0xff]  }
 0xc67   :  { %v9075_v14 = vmax.f32 %v9025_v60, %v9027_v10  ;;  %v9138_v50 = vsel %vm174_vm6, %v18287_v40, %v9110_v35  ;;  %v11103_v46 = vrot.slane %v18289_v57, 7  ;;  %v9039_v51 = vrot.slane %v9029_v0, 7  ;;  %v13462_v60 = vld [vmem:[%s18603_s3 + $0x108] sm:$0xff]   ;;  %v13465_v10 = vld [vmem:[%s18603_s3 + $0x150] sm:$0xff]  }
 0xc68   :  { %v9040_v26 = vrot.slane %v9031_v27, 7  ;;  %v9140_v20 = vsel %vm174_vm6, %v9048_v23, %v11101_v16  ;;  %v9081_v61 = vrot.slane %v9073_v13, 7  ;;  %v9152_v4 = vpack.c.bf16 %v9138_v50, %v9138_v50  ;;  %v13466_v16 = vld [vmem:[%s18603_s3 + $0x110] sm:$0xff]   ;;  %v13471_v23 = vld [vmem:[%s18603_s3 + $0x1d8] sm:$0xff]   ;;  %v13475_v50 = vld [vmem:[%s18603_s3 + $0x1e0] sm:$0xff]  }
 0xc69   :  { %v9084_v42 = vrot.slane %v9075_v14, 7  ;;  %v18298_v33 = vsel %vm174_vm6, %v9052_v25, %v11103_v46  ;;  %v9056_v34 = vrot.slane %v18287_v40, 3  ;;  %v9060_v29 = vrot.slane %v18287_v40, 4  ;;  %v13470_v25 = vld [vmem:[%s18603_s3 + $0x118] sm:$0xff]   ;;  %v13473_v14 = vld [vmem:[%s18603_s3 + $0x160] sm:$0xff]  }
 0xc6a   :  { %v9041_v1 = vsel %vm174_vm6, %v9039_v51, %v9040_v26  ;;  %v9091_v49 = vmax.f32 %v9031_v27, %v9081_v61  ;;  %v11107_v45 = vrot.slane %v18289_v57, 9  ;;  %v9064_v37 = vrot.slane %v18287_v40, 5  ;;  %v13469_v27 = vld [vmem:[%s18603_s3 + $0x158] sm:$0xff]   ;;  %v13474_v46 = vld [vmem:[%s18603_s3 + $0x120] sm:$0xff]   ;;  %v13477_v26 = vld [vmem:[%s18603_s3 + $0x168] sm:$0xff]  }
 0xc6b   :  { %v9045_v58 = vmax.f32 %v9029_v0, %v9041_v1  ;;  %v9085_v36 = vsel %vm174_vm6, %v9081_v61, %v9084_v42  ;;  %v18306_v12 = vsel %vm174_vm6, %v9056_v34, %v18289_v57  ;;  %v11109_v63 = vrot.slane %v18289_v57, 10  ;;  %v13468_v0 = vld [vmem:[%s18603_s3 + $0x190] sm:$0xff]   ;;  %v13476_v51 = vld [vmem:[%s18603_s3 + $0x1a0] sm:$0xff]   ;;  %v13478_v42 = vld [vmem:[%s18603_s3 + $0x128] sm:$0xff]  }
 0xc6c   :  { %v9093_v9 = vmax.f32 %v9073_v13, %v9085_v36  ;;  %v9111_v41 = vrot.slane %v9091_v49, 5  ;;  %v11102_v47 = vrot.slane %v9091_v49, 6  ;;  %v9154_v30 = vpack.c.bf16 %v9140_v20, %v9140_v20  ;;  %v13472_v13 = vld [vmem:[%s18603_s3 + $0x198] sm:$0xff]   ;;  %v13479_v20 = vld [vmem:[%s18603_s3 + $0x1e8] sm:$0xff]   ;;  %v13481_v1 = vld [vmem:[%s18603_s3 + $0x170] sm:$0xff]  }
 0xc6d   :  { %v9049_v18 = vrot.slane %v9045_v58, 1  ;;  %v9053_v8 = vrot.slane %v9045_v58, 2  ;;  %v9057_v28 = vrot.slane %v9045_v58, 3  ;;  %v9061_v19 = vrot.slane %v9045_v58, 4  ;;  %v13480_v61 = vld [vmem:[%s18603_s3 + $0x1a8] sm:$0xff]   ;;  %v13482_v34 = vld [vmem:[%s18603_s3 + $0x130] sm:$0xff]  }
 0xc6e   :  { %v11104_v24 = vrot.slane %v9093_v9, 7  ;;  %v9139_v39 = vsel %vm174_vm6, %v9045_v58, %v9111_v41  ;;  %v11108_v43 = vrot.slane %v9093_v9, 9  ;;  %v9065_v22 = vrot.slane %v9045_v58, 5  ;;  %v13485_v36 = vld [vmem:[%s18603_s3 + $0x178] sm:$0xff]   ;;  %v13490_v41 = vld [vmem:[%s18603_s3 + $0x200] sm:$0xff]  }
 0xc6f   :  { %v9141_v6 = vsel %vm174_vm6, %v9049_v18, %v11102_v47  ;;  %v9153_v15 = vpack.c.bf16 %v9139_v39, %v9139_v39  ;;  %v9145_v31 = vsel %vm174_vm6, %v9057_v28, %v9093_v9  ;;  %v11110_v56 = vrot.slane %v9093_v9, 10  ;;  %v13487_v49 = vld [vmem:[%s18603_s3 + $0x1f8] sm:$0xff]   ;;  %v13492_v47 = vld [vmem:[%s18603_s3 + $0x280] sm:$0xff]   ;;  %v13497_v39 = vld [vmem:[%s18603_s3 + $0x250] sm:$0xff]  }
 0xc70   :  { %v9155_v54 = vpack.c.bf16 %v9141_v6, %v9141_v6  ;;  %v9143_v5 = vsel %vm174_vm6, %v9053_v8, %v11104_v24  ;;  %v18322_v44 = vsel %vm174_vm6, %v9061_v19, %v11108_v43  ;;  %v18331_v32 = vsel %vm174_vm6, %v9060_v29, %v11107_v45  ;;  %v13486_v29 = vld [vmem:[%s18603_s3 + $0x138] sm:$0xff]   ;;  %v13489_v45 = vld [vmem:[%s18603_s3 + $0x240] sm:$0xff]   ;;  %v13493_v24 = vld [vmem:[%s18603_s3 + $0x248] sm:$0xff]  }
 0xc71   :  { %v9157_v48 = vpack.c.bf16 %v9143_v5, %v9143_v5  ;;  %10101 = vmatprep.mubr.bf16.mxu1 %v9153_v15  ;;  %v18334_v2 = vsel %vm174_vm6, %v9064_v37, %v11109_v63  ;;  %v9069_v38 = vrot.slane %v9045_v58, 6  ;;  %v9159_v53 = vpack.c.bf16 %v9145_v31, %v9145_v31  ;;  %v13484_v58 = vld [vmem:[%s18603_s3 + $0x1b0] sm:$0xff]   ;;  %v13491_v37 = vld [vmem:[%s18603_s3 + $0x2c0] sm:$0xff]   ;;  %v13496_v63 = vld [vmem:[%s18603_s3 + $0x288] sm:$0xff]  }
 0xc72   :  { %10141 = vmatprep.mubr.bf16.mxu0 %v9155_v54  ;;  %10102 = vmatmul.mubr.bf16.vlgmr.msra.gmra.mrb[56].mxu1 %v9152_v4  ;;  %v18337_v17 = vsel %vm174_vm6, %v9065_v22, %v11110_v56  ;;  %v11112_v59 = vrot.slane %v9093_v9, 11  ;;  %v9068_v55 = vrot.slane %v18287_v40, 6  ;;  %v11111_v7 = vrot.slane %v18289_v57, 11  ;;  %v13467_v40 = vld [vmem:[%s18603_s3 + $0x1d0] sm:$0xff]   ;;  %v13488_v9 = vld [vmem:[%s18603_s3 + $0x1b8] sm:$0xff]   ;;  %v13505_v31 = vld [vmem:[%s18603_s3 + $0x260] sm:$0xff]  }
 0xc73   :  { %10142 = vmatmul.mubr.bf16.vlgmr.msra.gmra.mrb[60].mxu0 %v9154_v30  ;;  %11621 = vmatpush3.bf16.msra.mxu1 %v13458_v21  ;;  %v13483_v4 = vld [vmem:[%s18603_s3 + $0x1f0] sm:$0xff]   ;;  %v9156_v18 = vpack.c.bf16 %v18298_v33, %v18298_v33  ;;  %v9158_v8 = vpack.c.bf16 %v18306_v12, %v18306_v12  ;;  %v9161_v28 = vpack.c.bf16 %v18322_v44, %v18322_v44  ;;  %v13495_v33 = vld [vmem:[%s18603_s3 + $0x2c8] sm:$0xff]   ;;  %v13501_v15 = vld [vmem:[%s18603_s3 + $0x258] sm:$0xff]  }
 0xc74   :  { %10181 = vmatprep.mubr.bf16.mxu1 %v9157_v48  ;;  %11643 = vmatpush3.bf16.msra.mxu0 %v13460_v52  ;;  %v18351_v35 = vsel %vm174_vm6, %v9069_v38, %v11112_v59  ;;  %v18357_v57 = vsel %vm174_vm6, %v9068_v55, %v11111_v7  ;;  %v9163_v19 = vpack.c.bf16 %v18337_v17, %v18337_v17  ;;  %v13494_v12 = vld [vmem:[%s18603_s3 + $0x208] sm:$0xff]   ;;  %v13499_v6 = vld [vmem:[%s18603_s3 + $0x2d0] sm:$0xff]   ;;  %v13503_v54 = vld [vmem:[%s18603_s3 + $0x2d8] sm:$0xff]  }
 0xc75   :  { %10221 = vmatprep.mubr.bf16.mxu0 %v9159_v53  ;;  %11622 = vmatprep.subr.bf16.mxu1 %v13461_v3  ;;  %v13498_v43 = vld [vmem:[%s18603_s3 + $0x210] sm:$0xff]   ;;  %v13502_v21 = vld [vmem:[%s18603_s3 + $0x218] sm:$0xff]   ;;  %v13507_v30 = vld [vmem:[%s18603_s3 + $0x2e0] sm:$0xff]  }
 0xc76   :  { %11644 = vmatprep.subr.bf16.mxu0 %v13463_v11  ;;  %v13500_v22 = vld [vmem:[%s18603_s3 + $0x290] sm:$0xff]   ;;  %v13504_v5 = vld [vmem:[%s18603_s3 + $0x298] sm:$0xff]   ;;  %v13506_v48 = vld [vmem:[%s18603_s3 + $0x220] sm:$0xff]  }
 0xc77   :  { %11623 = vmatpush3.bf16.msra.mxu1 %v13462_v60  ;;  %v13508_v52 = vld [vmem:[%s18603_s3 + $0x2a0] sm:$0xff]   ;;  %v13509_v44 = vld [vmem:[%s18603_s3 + $0x268] sm:$0xff]   ;;  %v13513_v38 = vld [vmem:[%s18603_s3 + $0x270] sm:$0xff]  }
 0xc78   :  { %11645 = vmatpush3.bf16.msra.mxu0 %v13464_v62  ;;  %11624 = vmatprep.subr.bf16.mxu1 %v13465_v10  ;;  %v13511_v56 = vld [vmem:[%s18603_s3 + $0x2e8] sm:$0xff]   ;;  %v13515_v53 = vld [vmem:[%s18603_s3 + $0x2f0] sm:$0xff]   ;;  %v13517_v60 = vld [vmem:[%s18603_s3 + $0x278] sm:$0xff]  }
 0xc79   :  { %11646 = vmatprep.subr.bf16.mxu0 %v13467_v40  ;;  %v13510_v3 = vld [vmem:[%s18603_s3 + $0x228] sm:$0xff]   ;;  %v13514_v17 = vld [vmem:[%s18603_s3 + $0x230] sm:$0xff]   ;;  %v13519_v55 = vld [vmem:[%s18603_s3 + $0x2f8] sm:$0xff]  }
 0xc7a   :  { %v13512_v11 = vld [vmem:[%s18603_s3 + $0x2a8] sm:$0xff]   ;;  %v13516_v59 = vld [vmem:[%s18603_s3 + $0x2b0] sm:$0xff]   ;;  %v13518_v7 = vld [vmem:[%s18603_s3 + $0x238] sm:$0xff]  }
 0xc7b   :  { %11625 = vmatpush3.bf16.msra.mxu1 %v13466_v16  ;;  %v13520_v62 = vld [vmem:[%s18603_s3 + $0x2b8] sm:$0xff]   ;;  %v13521_v10 = vld [vmem:[%s18603_s3 + $0x340] sm:$0xff]   ;;  %v9160_v16 = vpack.c.bf16 %v18331_v32, %v18331_v32  ;;  %v13525_v32 = vld [vmem:[%s18603_s3 + $0x350] sm:$0xff]  }
 0xc7c   :  { %11647 = vmatpush3.bf16.msra.mxu0 %v13468_v0  ;;  %11626 = vmatprep.subr.bf16.mxu1 %v13469_v27  ;;  %v13522_v40 = vld [vmem:[%s18603_s3 + $0x300] sm:$0xff]   ;;  %v13523_v0 = vld [vmem:[%s18603_s3 + $0x348] sm:$0xff]   ;;  %v9162_v27 = vpack.c.bf16 %v18334_v2, %v18334_v2  ;;  %v13526_v2 = vld [vmem:[%s18603_s3 + $0x310] sm:$0xff]  }
 0xc7d   :  { %11648 = vmatprep.subr.bf16.mxu0 %v13471_v23  ;;  %v9165_v23 = vpack.c.bf16 %v18351_v35, %v18351_v35  ;;  %v13527_v35 = vld [vmem:[%s18603_s3 + $0x358] sm:$0xff]  }
 0xc7f   :  { %11627 = vmatpush3.bf16.msra.mxu1 %v13470_v25  ;;  %v13524_v25 = vld [vmem:[%s18603_s3 + $0x308] sm:$0xff]  }
 0xc80   :  { %11649 = vmatpush3.bf16.msra.mxu0 %v13472_v13  ;;  %11628 = vmatprep.subr.bf16.mxu1 %v13473_v14  ;;  %v13528_v13 = vld [vmem:[%s18603_s3 + $0x318] sm:$0xff]   ;;  %v13529_v14 = vld [vmem:[%s18603_s3 + $0x360] sm:$0xff]  }
 0xc81   :  { %11650 = vmatprep.subr.bf16.mxu0 %v13475_v50  ;;  %v13530_v50 = vld [vmem:[%s18603_s3 + $0x320] sm:$0xff]  }
 0xc83   :  { %11629 = vmatpush3.bf16.msra.mxu1 %v13474_v46  ;;  %v13531_v46 = vld [vmem:[%s18603_s3 + $0x368] sm:$0xff]  }
 0xc84   :  { %11651 = vmatpush3.bf16.msra.mxu0 %v13476_v51  ;;  %11630 = vmatprep.subr.bf16.mxu1 %v13477_v26  ;;  %v13532_v51 = vld [vmem:[%s18603_s3 + $0x328] sm:$0xff]   ;;  %v13533_v26 = vld [vmem:[%s18603_s3 + $0x370] sm:$0xff]  }
 0xc85   :  { %11652 = vmatprep.subr.bf16.mxu0 %v13479_v20  ;;  %v13534_v20 = vld [vmem:[%s18603_s3 + $0x330] sm:$0xff]  }
 0xc87   :  { %11631 = vmatpush3.bf16.msra.mxu1 %v13478_v42  ;;  %v13535_v42 = vld [vmem:[%s18603_s3 + $0x378] sm:$0xff]  }
 0xc88   :  { %11653 = vmatpush3.bf16.msra.mxu0 %v13480_v61  ;;  %11632 = vmatprep.subr.bf16.mxu1 %v13481_v1  ;;  %v13536_v61 = vld [vmem:[%s18603_s3 + $0x338] sm:$0xff]   ;;  %v9164_v1 = vpack.c.bf16 %v18357_v57, %v18357_v57  ;;  %s13567_s3 = smov [#allocation2]  }
 0xc89   :  { %11654 = vmatprep.subr.bf16.mxu0 %v13483_v4 }
 0xc8b   :  { %11633 = vmatpush3.bf16.msra.mxu1 %v13482_v34 }
 0xc8c   :  { %11655 = vmatpush3.bf16.msra.mxu0 %v13484_v58  ;;  %11634 = vmatprep.subr.bf16.mxu1 %v13485_v36  ;;  %v11113_v58 = vld [vmem:[%s18604_s4] ss:$0 sm:$0xff]  ;;  %s10357_s4 = sshll.u32 %s13567_s3, 4  ;;  %s10358_s4 = int_to_ptr.vmem [resolvable:$true] %s10357_s4 }
 0xc8d   :  { %11656 = vmatprep.subr.bf16.mxu0 %v13487_v49  ;;  %s13541_s27 = scalar_lea.vmem %s10358_s4, 32  ;;  %p13546_p1 = scmp.lt.s32.totalorder %s10358_s4, %s10358_s4 }
 0xc8e   :  { %p13542_p0 = scmp.ne.s32.totalorder %s10358_s4, %s13541_s27  ;;  %p13547_p2 = scmp.lt.s32.totalorder %s13541_s27, %s13541_s27 }
 0xc8f   :  { %11635 = vmatpush3.bf16.msra.mxu1 %v13486_v29 }
 0xc90   :  { %11657 = vmatpush3.bf16.msra.mxu0 %v13488_v9  ;;  %11664 = vmatprep.subr.bf16.mxu1 %v13489_v45  ;;  %p13548_p3 = por %p13547_p2, %p13546_p1 }
 0xc91   :  { %11686 = vmatprep.subr.bf16.mxu0 %v13491_v37 }
 0xc92   :  { %10182 = vmatmul.mubr.bf16.vlgmr.msra.gmra.mrb[60].mxu1 %v9156_v18  ;;  %p13549_p4 = pnand %p13548_p3, %p13542_p0 }
 0xc93   :  { %10222 = vmatmul.mubr.bf16.vlgmr.msra.gmra.mrb[64].mxu0 %v9158_v8  ;;  %11665 = vmatpush3.bf16.msra.mxu1 %v13490_v41 }
 0xc94   :  { %10261 = vmatprep.mubr.bf16.mxu1 %v9161_v28  ;;  %11687 = vmatpush3.bf16.msra.mxu0 %v13492_v47 }
 0xc95   :  { %10301 = vmatprep.mubr.bf16.mxu0 %v9163_v19  ;;  %11666 = vmatprep.subr.bf16.mxu1 %v13493_v24 }
 0xc96   :  { %11688 = vmatprep.subr.bf16.mxu0 %v13495_v33 }
 0xc97   :  { %11667 = vmatpush3.bf16.msra.mxu1 %v13494_v12 }
 0xc98   :  { %11689 = vmatpush3.bf16.msra.mxu0 %v13496_v63  ;;  %11668 = vmatprep.subr.bf16.mxu1 %v13497_v39 }
 0xc99   :  { %11690 = vmatprep.subr.bf16.mxu0 %v13499_v6 }
 0xc9b   :  { %11669 = vmatpush3.bf16.msra.mxu1 %v13498_v43 }
 0xc9c   :  { %11691 = vmatpush3.bf16.msra.mxu0 %v13500_v22  ;;  %11670 = vmatprep.subr.bf16.mxu1 %v13501_v15 }
 0xc9d   :  { %11692 = vmatprep.subr.bf16.mxu0 %v13503_v54 }
 0xc9f   :  { %11671 = vmatpush3.bf16.msra.mxu1 %v13502_v21 }
 0xca0   :  { %11693 = vmatpush3.bf16.msra.mxu0 %v13504_v5  ;;  %11672 = vmatprep.subr.bf16.mxu1 %v13505_v31 }
 0xca1   :  { %11694 = vmatprep.subr.bf16.mxu0 %v13507_v30 }
 0xca3   :  { %11673 = vmatpush3.bf16.msra.mxu1 %v13506_v48 }
 0xca4   :  { %11695 = vmatpush3.bf16.msra.mxu0 %v13508_v52  ;;  %11674 = vmatprep.subr.bf16.mxu1 %v13509_v44 }
 0xca5   :  { %11696 = vmatprep.subr.bf16.mxu0 %v13511_v56 }
 0xca7   :  { %11675 = vmatpush3.bf16.msra.mxu1 %v13510_v3 }
 0xca8   :  { %11697 = vmatpush3.bf16.msra.mxu0 %v13512_v11  ;;  %11676 = vmatprep.subr.bf16.mxu1 %v13513_v38 }
 0xca9   :  { %11698 = vmatprep.subr.bf16.mxu0 %v13515_v53 }
 0xcab   :  { %11677 = vmatpush3.bf16.msra.mxu1 %v13514_v17 }
 0xcac   :  { %11699 = vmatpush3.bf16.msra.mxu0 %v13516_v59  ;;  %11678 = vmatprep.subr.bf16.mxu1 %v13517_v60 }
 0xcad   :  { %11700 = vmatprep.subr.bf16.mxu0 %v13519_v55 }
 0xcaf   :  { %11679 = vmatpush3.bf16.msra.mxu1 %v13518_v7 }
 0xcb0   :  { %11701 = vmatpush3.bf16.msra.mxu0 %v13520_v62  ;;  %11708 = vmatprep.subr.bf16.mxu1 %v13521_v10 }
 0xcb2   :  { %10262 = vmatmul.mubr.bf16.vlgmr.msra.gmra.mrb[64].mxu1 %v9160_v16 }
 0xcb3   :  { %10302 = vmatmul.mubr.bf16.vlgmr.msra.gmra.mrb[68].mxu0 %v9162_v27  ;;  %11709 = vmatpush3.bf16.msra.mxu1 %v13522_v40 }
 0xcb4   :  { %10341 = vmatprep.mubr.bf16.mxu1 %v9165_v23  ;;  %11710 = vmatprep.subr.bf16.mxu1 %v13523_v0 }
 0xcb7   :  { %11711 = vmatpush3.bf16.msra.mxu1 %v13524_v25 }
 0xcb8   :  { %11712 = vmatprep.subr.bf16.mxu1 %v13525_v32 }
 0xcbb   :  { %11713 = vmatpush3.bf16.msra.mxu1 %v13526_v2 }
 0xcbc   :  { %11714 = vmatprep.subr.bf16.mxu1 %v13527_v35 }
 0xcbf   :  { %11715 = vmatpush3.bf16.msra.mxu1 %v13528_v13 }
 0xcc0   :  { %11716 = vmatprep.subr.bf16.mxu1 %v13529_v14 }
 0xcc3   :  { %11717 = vmatpush3.bf16.msra.mxu1 %v13530_v50 }
 0xcc4   :  { %11718 = vmatprep.subr.bf16.mxu1 %v13531_v46 }
 0xcc7   :  { %11719 = vmatpush3.bf16.msra.mxu1 %v13532_v51 }
 0xcc8   :  { %11720 = vmatprep.subr.bf16.mxu1 %v13533_v26 }
 0xccb   :  { %11721 = vmatpush3.bf16.msra.mxu1 %v13534_v20 }
 0xccc   :  { %11722 = vmatprep.subr.bf16.mxu1 %v13535_v42 }
 0xccf   :  { %11723 = vmatpush3.bf16.msra.mxu1 %v13536_v61 }
 0xcd2   :  { %10342 = vmatmul.mubr.bf16.vlgmr.msra.gmra.mrb[68].mxu1 %v9164_v1 }
 0xd45   :  { %v11592_v4 = vpop.f32.mrb[56].mxu1 }
 0xd46   :  { %v11614_v34 = vpop.f32.mrb[60].mxu0  ;;  %v11593_v36 = vpop.f32.mrb[57].mxu1 }
 0xd47   :  { %v11615_v49 = vpop.f32.mrb[61].mxu0  ;;  %v11594_v29 = vadd.f32 %v11593_v36, %v11592_v4  ;;  %v11595_v9 = vpop.f32.mrb[58].mxu1 }
 0xd48   :  { %v11616_v45 = vadd.f32 %v11615_v49, %v11614_v34  ;;  %v11617_v37 = vpop.f32.mrb[62].mxu0  ;;  %v11596_v41 = vpop.f32.mrb[59].mxu1 }
 0xd49   :  { %v11618_v18 = vpop.f32.mrb[63].mxu0  ;;  %v10104_v47 = vadd.f32 %v11594_v29, %v11113_v58 }
 0xd4b   :  { %v10144_v8 = vadd.f32 %v11616_v45, %v10104_v47 }
 0xd65   :  { %v11636_v24 = vpop.f32.mrb[60].mxu1 }
 0xd66   :  { %v11637_v28 = vpop.f32.mrb[61].mxu1  ;;  %v11658_v57 = vpop.f32.mrb[64].mxu0 }
 0xd67   :  { %v11638_v33 = vadd.f32 %v11637_v28, %v11636_v24  ;;  %v11639_v19 = vpop.f32.mrb[62].mxu1  ;;  %v11659_v12 = vpop.f32.mrb[65].mxu0 }
 0xd68   :  { %v11660_v63 = vadd.f32 %v11659_v12, %v11658_v57  ;;  %v11640_v39 = vpop.f32.mrb[63].mxu1  ;;  %v11661_v6 = vpop.f32.mrb[66].mxu0 }
 0xd69   :  { %v10184_v43 = vadd.f32 %v11638_v33, %v10144_v8  ;;  %v11662_v22 = vpop.f32.mrb[67].mxu0 }
 0xd6b   :  { %v10224_v15 = vadd.f32 %v11660_v63, %v10184_v43 }
 0xd85   :  { %v11680_v54 = vpop.f32.mrb[64].mxu1 }
 0xd86   :  { %v11681_v21 = vpop.f32.mrb[65].mxu1  ;;  %v11702_v5 = vpop.f32.mrb[68].mxu0 }
 0xd87   :  { %v11682_v31 = vadd.f32 %v11681_v21, %v11680_v54  ;;  %v11683_v30 = vpop.f32.mrb[66].mxu1  ;;  %v11703_v48 = vpop.f32.mrb[69].mxu0 }
 0xd88   :  { %v11704_v52 = vadd.f32 %v11703_v48, %v11702_v5  ;;  %v11684_v44 = vpop.f32.mrb[67].mxu1  ;;  %v11705_v56 = vpop.f32.mrb[70].mxu0 }
 0xd89   :  { %v10264_v3 = vadd.f32 %v11682_v31, %v10224_v15  ;;  %v11706_v11 = vpop.f32.mrb[71].mxu0 }
 0xd8b   :  { %v10304_v38 = vadd.f32 %v11704_v52, %v10264_v3 }
 0xda5   :  { %v11724_v53 = vpop.f32.mrb[68].mxu1 }
 0xda6   :  { %v11725_v17 = vpop.f32.mrb[69].mxu1 }
 0xda7   :  { %v11726_v59 = vadd.f32 %v11725_v17, %v11724_v53  ;;  %v11727_v60 = vpop.f32.mrb[70].mxu1 }
 0xda8   :  { %v11728_v55 = vpop.f32.mrb[71].mxu1 }
 0xda9   :  { %v10344_v7 = vadd.f32 %v11726_v59, %v10304_v38 }
 0xdab   :  { %10350 = vst.msk [vmem:[#allocation2] sm:$0x3] %vm10349_vm9, %v10344_v7 }
 0xdac   :  { %13552 = shalt.err (!%p13549_p4)
}
 0xdad   :  { %s13553_s30 = scalar_lea.hbm %s18613_s13, 32 }
 0xdae   :  { %p13554_p5 = scmp.ne.s32.totalorder %s18613_s13, %s13553_s30  ;;  %p13557_p6 = scmp.lt.u32.totalorder %s13553_s30, %s18613_s13 }
 0xdb0   :  { %p13559_p7 = pnand %p13557_p6, %p13554_p5 }
 0xdb2   :  { %13562 = shalt.err (!%p13559_p7)
}
 0xdb3   :  { %10360 = dma.vmem_to_hbm [thread:$0]  %s10358_s4, 32, %s18613_s13, [#allocation3]  }
 0xdb4   :  { %13563 = dma.done.wait [#allocation3], 32  }
 0xdb5   :  { %13564 = vsyncadd [#allocation3], 4294967264 }
 0xdb6   :  { %10364 = vsyncpa [#allocation3], 1 }

</bundles_post_ra>
